<compile_context>
chip_gen: v6e
topology: v6e:2x2x1
jax: 0.10.0
libtpu: 0.0.40
codegen_flags: <defaults>
</compile_context>

<pallas_src>
import numpy as np
import jax
import jax.numpy as jnp
from jax.experimental import pallas as pl
from jax.experimental.pallas import tpu as pltpu

HIDDEN_DIMS = [20] * 8
IN_DIM = 5
PAD_F = 24          # feature width padded to a multiple of 8 sublanes (>= 20)
TILE_B = 128        # batch tile on the 128-lane axis
N_CH = 13           # derivative channels carried through every layer


# ----------------------------- Pallas kernel ------------------------------- #
def pinn_kernel(inp_ref, lam_ref, wt_ref, b_ref, preds_ref, loss_ref, h_ref):
    PADF, TB = inp_ref.shape
    n_layers = wt_ref.shape[0]

    # ---- initialize the 13 channels for layer 0 (feature x batch layout) ----
    # channel order (lane blocks of width TB):
    #  0: value, 1: d/dx, 2: d/dy, 3: d/dt,
    #  4: xx, 5: xy, 6: yy, 7: xt, 8: yt,
    #  9: xxx, 10: xxy, 11: xyy, 12: yyy
    row = jax.lax.broadcasted_iota(jnp.int32, (PADF, TB), 0)
    h_ref[:, 0:TB] = inp_ref[...]                        # rows 0..4 = x,y,t,u,v
    h_ref[:, TB:2 * TB] = (row == 0).astype(jnp.float32)  # d(input)/dx
    h_ref[:, 2 * TB:3 * TB] = (row == 1).astype(jnp.float32)  # d(input)/dy
    h_ref[:, 3 * TB:4 * TB] = (row == 2).astype(jnp.float32)  # d(input)/dt
    h_ref[:, 4 * TB:] = jnp.zeros((PADF, 9 * TB), jnp.float32)

    # ---- hidden layers: ONE matmul per layer + exact tanh chain rule -------
    for k in range(n_layers - 1):
        Z = jnp.dot(wt_ref[k], h_ref[...], preferred_element_type=jnp.float32)

        def Zc(c, _Z=Z):
            return _Z[:, c * TB:(c + 1) * TB]

        a = jnp.tanh(Zc(0) + b_ref[k])                   # bias only on value channel
        s1 = 1.0 - a * a                                 # tanh'
        s2 = -2.0 * a * s1                               # tanh''
        s3 = -2.0 * (s1 * s1 + a * s2)                   # tanh'''
        zx, zy, zt = Zc(1), Zc(2), Zc(3)
        zxx, zxy, zyy, zxt, zyt = Zc(4), Zc(5), Zc(6), Zc(7), Zc(8)

        # third-order channels first: their Z slices are single-use -> retire early
        h_ref[:, 9 * TB:10 * TB] = s3 * zx * zx * zx + 3.0 * s2 * zxx * zx + s1 * Zc(9)
        h_ref[:, 10 * TB:11 * TB] = (s3 * zx * zx * zy
                                     + s2 * (zxx * zy + 2.0 * zxy * zx) + s1 * Zc(10))
        h_ref[:, 11 * TB:12 * TB] = (s3 * zx * zy * zy
                                     + s2 * (zyy * zx + 2.0 * zxy * zy) + s1 * Zc(11))
        h_ref[:, 12 * TB:13 * TB] = s3 * zy * zy * zy + 3.0 * s2 * zyy * zy + s1 * Zc(12)
        # second-order
        h_ref[:, 4 * TB:5 * TB] = s2 * zx * zx + s1 * zxx
        h_ref[:, 5 * TB:6 * TB] = s2 * zx * zy + s1 * zxy
        h_ref[:, 6 * TB:7 * TB] = s2 * zy * zy + s1 * zyy
        h_ref[:, 7 * TB:8 * TB] = s2 * zx * zt + s1 * zxt
        h_ref[:, 8 * TB:9 * TB] = s2 * zy * zt + s1 * zyt
        # first-order, then the value
        h_ref[:, TB:2 * TB] = s1 * zx
        h_ref[:, 2 * TB:3 * TB] = s1 * zy
        h_ref[:, 3 * TB:4 * TB] = s1 * zt
        h_ref[:, 0:TB] = a

    # ---- final linear layer: only output row 0 (psi) is real ---------------
    k = n_layers - 1
    Z = jnp.dot(wt_ref[k], h_ref[...], preferred_element_type=jnp.float32)
    zrow = Z[0:1, :]                                     # (1, 13*TB)

    def P(c):
        return zrow[:, c * TB:(c + 1) * TB]              # (1, TB)

    psi = P(0) + b_ref[k][0:1, :]
    psi_x, psi_y = P(1), P(2)
    psi_xx, psi_xy, psi_yy, psi_xt, psi_yt = P(4), P(5), P(6), P(7), P(8)
    psi_xxx, psi_xxy, psi_xyy, psi_yyy = P(9), P(10), P(11), P(12)

    lam1 = lam_ref[0, 0]
    lam2 = lam_ref[0, 1]

    p_pred = psi
    u_pred = psi_y
    v_pred = -psi_x

    u_t, u_x, u_y = psi_yt, psi_xy, psi_yy
    u_xx, u_yy = psi_xxy, psi_yyy
    v_t, v_x, v_y = -psi_xt, -psi_xx, -psi_xy
    v_xx, v_yy = -psi_xxx, -psi_xyy
    p_x, p_y = psi_x, psi_y

    f_u = u_t + lam1 * (u_pred * u_x + v_pred * u_y) + p_x - lam2 * (u_xx + u_yy)
    f_v = v_t + lam1 * (u_pred * v_x + v_pred * v_y) + p_y - lam2 * (v_xx + v_yy)

    # labels u, v live in input rows 3, 4 -- no separate label inputs needed
    du = inp_ref[3:4, :] - u_pred
    dv = inp_ref[4:5, :] - v_pred
    err = du * du + dv * dv + f_u * f_u + f_v * f_v      # per-sample error, (1, TB)

    loss_ref[...] = err                                  # lane-dense partials; host sums
    preds_ref[...] = jnp.concatenate([p_pred, u_pred, v_pred], axis=0)  # (3, TB)


# ----------------------------- host-side glue ------------------------------ #
def init_params(key):
    """Xavier-uniform weights, zero biases (mirrors Pinn.init_weights)."""
    dims = [IN_DIM] + HIDDEN_DIMS + [1]
    Ws, Bs = [], []
    for i in range(len(dims) - 1):
        key, sub = jax.random.split(key)
        fan_in, fan_out = dims[i], dims[i + 1]
        bound = float(np.sqrt(6.0 / (fan_in + fan_out)))
        W = jax.random.uniform(sub, (fan_in, fan_out), jnp.float32, -bound, bound)
        Ws.append(W)
        Bs.append(jnp.zeros((fan_out,), jnp.float32))
    return Ws, Bs


def pack_params(Ws, Bs):
    """Stack params, transposed so z = Wt @ h, zero-padded to PAD_F."""
    n = len(Ws)
    Wt = np.zeros((n, PAD_F, PAD_F), np.float32)
    Bc = np.zeros((n, PAD_F, 1), np.float32)
    for k, (W, b) in enumerate(zip(Ws, Bs)):
        fi, fo = W.shape
        Wt[k, :fo, :fi] = np.asarray(W).T
        Bc[k, :fo, 0] = np.asarray(b)
    return jnp.asarray(Wt), jnp.asarray(Bc)


def pinn_forward(x, y, t, u, v, Re, lambda1, lambda2, Wt_stack, B_stack):
    b = x.shape[0]
    n_tiles = (b + TILE_B - 1) // TILE_B
    b_pad = n_tiles * TILE_B
    n_layers = Wt_stack.shape[0]

    # batch-on-lanes input slab: rows 0..4 = x, y, t, u, v; rest zero-padding
    inp = jnp.zeros((PAD_F, b_pad), jnp.float32)
    inp = (inp.at[0, :b].set(x).at[1, :b].set(y).at[2, :b].set(t)
              .at[3, :b].set(u).at[4, :b].set(v))
    lam = jnp.stack([lambda1, lambda2]).astype(jnp.float32).reshape(1, 2)

    preds_t, loss_partials = pl.pallas_call(
        pinn_kernel,
        out_shape=(
            jax.ShapeDtypeStruct((3, b_pad), jnp.float32),      # preds (p,u,v) x batch
            jax.ShapeDtypeStruct((1, b_pad), jnp.float32),      # per-sample loss terms
        ),
        grid=(n_tiles,),
        in_specs=[
            pl.BlockSpec((PAD_F, TILE_B), lambda i: (0, i)),                     # inputs
            pl.BlockSpec((1, 2), lambda i: (0, 0),
                         memory_space=pltpu.MemorySpace.SMEM),                   # lambdas
            pl.BlockSpec((n_layers, PAD_F, PAD_F), lambda i: (0, 0, 0)),          # W^T stack
            pl.BlockSpec((n_layers, PAD_F, 1), lambda i: (0, 0, 0)),              # bias stack
        ],
        out_specs=(
            pl.BlockSpec((3, TILE_B), lambda i: (0, i)),
            pl.BlockSpec((1, TILE_B), lambda i: (0, i)),
        ),
        scratch_shapes=[pltpu.VMEM((PAD_F, N_CH * TILE_B), jnp.float32)],
        compiler_params=pltpu.CompilerParams(
            dimension_semantics=("parallel",)),
    )(inp, lam, Wt_stack, B_stack)

    preds = preds_t[:, :b].T                              # (b, 3)
    loss = jnp.sum(loss_partials[0, :b])                  # mask padded samples
    return {"preds": preds, "loss": loss, "label": Re}


# ------------------------- pure-JAX reference (check) ----------------------- #
def ref_forward(x, y, t, u, v, lambda1, lambda2, Ws, Bs):
    def psi_single(xyt, uv):
        h = jnp.concatenate([xyt, uv])
        for W, b in zip(Ws[:-1], Bs[:-1]):
            h = jnp.tanh(h @ W + b)
        return (h @ Ws[-1] + Bs[-1])[0]

    def per_sample(xi, yi, ti, ui, vi):
        xyt = jnp.stack([xi, yi, ti])
        uv = jnp.stack([ui, vi])
        f = lambda s: psi_single(s, uv)
        psi = f(xyt)
        g = jax.grad(f)(xyt)
        H = jax.jacfwd(jax.grad(f))(xyt)
        T3 = jax.jacfwd(jax.jacfwd(jax.grad(f)))(xyt)
        p_pred, u_pred, v_pred = psi, g[1], -g[0]
        u_t, u_x, u_y = H[1, 2], H[1, 0], H[1, 1]
        u_xx, u_yy = T3[1, 0, 0], T3[1, 1, 1]
        v_t, v_x, v_y = -H[0, 2], -H[0, 0], -H[0, 1]
        v_xx, v_yy = -T3[0, 0, 0], -T3[0, 1, 1]
        p_x, p_y = g[0], g[1]
        f_u = u_t + lambda1 * (u_pred * u_x + v_pred * u_y) + p_x - lambda2 * (u_xx + u_yy)
        f_v = v_t + lambda1 * (u_pred * v_x + v_pred * v_y) + p_y - lambda2 * (v_xx + v_yy)
        return p_pred, u_pred, v_pred, f_u, f_v

    pp, up, vp, fu, fv = jax.vmap(per_sample)(x, y, t, u, v)
    preds = jnp.stack([pp, up, vp], axis=1)
    loss = (jnp.sum((u - up) ** 2) + jnp.sum((v - vp) ** 2)
            + jnp.sum(fu ** 2) + jnp.sum(fv ** 2))
    return preds, loss


# ---------------------------------- main ----------------------------------- #
if __name__ == "__main__":
    key = jax.random.PRNGKey(0)
    k_param, k_data = jax.random.split(key)

    Ws, Bs = init_params(k_param)
    Wt_stack, B_stack = pack_params(Ws, Bs)

    B = 200  # number of data points (pads to 2 tiles of 128 -> exercises the grid)
    kx, ky, kt, kp, ku, kv = jax.random.split(k_data, 6)
    x = jax.random.normal(kx, (B,), jnp.float32)
    y = jax.random.normal(ky, (B,), jnp.float32)
    t = jax.random.normal(kt, (B,), jnp.float32)
    p = jax.random.normal(kp, (B,), jnp.float32)   # unused by forward (as in PyTorch)
    u = jax.random.normal(ku, (B,), jnp.float32)
    v = jax.random.normal(kv, (B,), jnp.float32)
    Re = jnp.zeros((B,), jnp.int32)

    lambda1 = jnp.float32(0.0)   # nn.Parameter(torch.tensor(0.0))
    lambda2 = jnp.float32(0.0)

    out = jax.jit(pinn_forward)(x, y, t, u, v, Re, lambda1, lambda2, Wt_stack, B_stack)
    preds = jax.block_until_ready(out["preds"])
    loss = jax.block_until_ready(out["loss"])

    # sanity-check against a pure-JAX autodiff reference
    ref_preds, ref_loss = ref_forward(x, y, t, u, v, lambda1, lambda2, Ws, Bs)
    np.testing.assert_allclose(np.asarray(preds), np.asarray(ref_preds),
                               rtol=1e-2, atol=1e-3)
    np.testing.assert_allclose(float(loss), float(ref_loss), rtol=1e-2, atol=1e-3)

    print("KERNEL_OK")
</pallas_src>

<mosaic_0001>
module attributes {stable_mosaic.version = 11 : i64} {
  func.func @pinn_kernel(%arg0: i32, %arg1: memref<24x128xf32, #tpu.memory_space<vmem>>, %arg2: memref<1x2xf32, #tpu.memory_space<smem>>, %arg3: memref<9x24x24xf32, #tpu.memory_space<vmem>>, %arg4: memref<9x24x1xf32, #tpu.memory_space<vmem>>, %arg5: memref<3x128xf32, #tpu.memory_space<vmem>>, %arg6: memref<1x128xf32, #tpu.memory_space<vmem>>, %arg7: memref<24x1664xf32, #tpu.memory_space<vmem>>) attributes {dimension_semantics = [#tpu.dimension_semantics<parallel>], iteration_bounds = array<i64: 2>, scalar_prefetch = 0 : i64, scratch_operands = 1 : i64, tpu.core_type = #tpu.core_type<tc>, window_params = [{transform_indices = @transform_0, window_bounds = array<i64: 24, 128>}, {transform_indices = @transform_1, window_bounds = array<i64: 1, 2>}, {pipeline_mode = #tpu.pipeline_mode<synchronous>, transform_indices = @transform_2, window_bounds = array<i64: 9, 24, 24>}, {pipeline_mode = #tpu.pipeline_mode<synchronous>, transform_indices = @transform_3, window_bounds = array<i64: 9, 24, 1>}, {transform_indices = @transform_4, window_bounds = array<i64: 3, 128>}, {transform_indices = @transform_5, window_bounds = array<i64: 1, 128>}]} {
    %0 = tpu.iota {dimensions = array<i32: 0>} : vector<24x128xi32>
    %c0 = arith.constant 0 : index
    %c0_0 = arith.constant 0 : index
    %1 = vector.load %arg1[%c0, %c0_0] : memref<24x128xf32, #tpu.memory_space<vmem>>, vector<24x128xf32>
    %c0_1 = arith.constant 0 : index
    %c0_2 = arith.constant 0 : index
    %2 = vector.load %arg7[%c0_1, %c0_2] : memref<24x1664xf32, #tpu.memory_space<vmem>>, vector<24x128xf32>
    tpu.vector_store %arg7[%c0_1, %c0_2], %1 {strides = array<i32>} : memref<24x1664xf32, #tpu.memory_space<vmem>>, vector<24x128xf32>,
    %c0_i32 = arith.constant 0 : i32
    %3 = vector.broadcast %c0_i32 : i32 to vector<24x128xi32>
    %4 = arith.cmpi eq, %0, %3 : vector<24x128xi32>
    %5 = arith.extui %4 : vector<24x128xi1> to vector<24x128xi32>
    %6 = arith.sitofp %5 : vector<24x128xi32> to vector<24x128xf32>
    %c0_3 = arith.constant 0 : index
    %c128 = arith.constant 128 : index
    %7 = vector.load %arg7[%c0_3, %c128] : memref<24x1664xf32, #tpu.memory_space<vmem>>, vector<24x128xf32>
    tpu.vector_store %arg7[%c0_3, %c128], %6 {strides = array<i32>} : memref<24x1664xf32, #tpu.memory_space<vmem>>, vector<24x128xf32>,
    %c1_i32 = arith.constant 1 : i32
    %8 = vector.broadcast %c1_i32 : i32 to vector<24x128xi32>
    %9 = arith.cmpi eq, %0, %8 : vector<24x128xi32>
    %10 = arith.extui %9 : vector<24x128xi1> to vector<24x128xi32>
    %11 = arith.sitofp %10 : vector<24x128xi32> to vector<24x128xf32>
    %c0_4 = arith.constant 0 : index
    %c256 = arith.constant 256 : index
    %12 = vector.load %arg7[%c0_4, %c256] : memref<24x1664xf32, #tpu.memory_space<vmem>>, vector<24x128xf32>
    tpu.vector_store %arg7[%c0_4, %c256], %11 {strides = array<i32>} : memref<24x1664xf32, #tpu.memory_space<vmem>>, vector<24x128xf32>,
    %c2_i32 = arith.constant 2 : i32
    %13 = vector.broadcast %c2_i32 : i32 to vector<24x128xi32>
    %14 = arith.cmpi eq, %0, %13 : vector<24x128xi32>
    %15 = arith.extui %14 : vector<24x128xi1> to vector<24x128xi32>
    %16 = arith.sitofp %15 : vector<24x128xi32> to vector<24x128xf32>
    %c0_5 = arith.constant 0 : index
    %c384 = arith.constant 384 : index
    %17 = vector.load %arg7[%c0_5, %c384] : memref<24x1664xf32, #tpu.memory_space<vmem>>, vector<24x128xf32>
    tpu.vector_store %arg7[%c0_5, %c384], %16 {strides = array<i32>} : memref<24x1664xf32, #tpu.memory_space<vmem>>, vector<24x128xf32>,
    %cst = arith.constant 0.000000e+00 : f32
    %18 = vector.broadcast %cst : f32 to vector<24x1152xf32>
    %c0_6 = arith.constant 0 : index
    %c512 = arith.constant 512 : index
    %19 = vector.load %arg7[%c0_6, %c512] : memref<24x1664xf32, #tpu.memory_space<vmem>>, vector<24x1152xf32>
    tpu.vector_store %arg7[%c0_6, %c512], %18 {strides = array<i32>} : memref<24x1664xf32, #tpu.memory_space<vmem>>, vector<24x1152xf32>,
    %c0_7 = arith.constant 0 : index
    %c0_8 = arith.constant 0 : index
    %c0_9 = arith.constant 0 : index
    %20 = vector.load %arg3[%c0_7, %c0_8, %c0_9] : memref<9x24x24xf32, #tpu.memory_space<vmem>>, vector<1x24x24xf32>
    %21 = vector.shape_cast %20 : vector<1x24x24xf32> to vector<24x24xf32>
    %c0_10 = arith.constant 0 : index
    %c0_11 = arith.constant 0 : index
    %22 = vector.load %arg7[%c0_10, %c0_11] : memref<24x1664xf32, #tpu.memory_space<vmem>>, vector<24x1664xf32>
    %cst_12 = arith.constant dense<0.000000e+00> : vector<24x1664xf32>
    %23 = tpu.matmul %21, %22, %cst_12 {dimension_numbers = #tpu.dot_dimension_numbers<[1], [0], [0], [1], [0, 0, 1, 1], [], []>} : vector<24x24xf32>, vector<24x1664xf32>, vector<24x1664xf32> -> vector<24x1664xf32>
    %24 = vector.extract_strided_slice %23 {offsets = [0, 0], sizes = [24, 128], strides = [1, 1]} : vector<24x1664xf32> to vector<24x128xf32>
    %c0_13 = arith.constant 0 : index
    %c0_14 = arith.constant 0 : index
    %c0_15 = arith.constant 0 : index
    %25 = vector.load %arg4[%c0_13, %c0_14, %c0_15] : memref<9x24x1xf32, #tpu.memory_space<vmem>>, vector<1x24x1xf32>
    %26 = vector.shape_cast %25 : vector<1x24x1xf32> to vector<24x1xf32>
    %27 = vector.broadcast %26 : vector<24x1xf32> to vector<24x128xf32>
    %28 = arith.addf %24, %27 : vector<24x128xf32>
    %29 = math.tanh %28 : vector<24x128xf32>
    %30 = arith.mulf %29, %29 : vector<24x128xf32>
    %cst_16 = arith.constant 1.000000e+00 : f32
    %31 = vector.broadcast %cst_16 : f32 to vector<24x128xf32>
    %32 = arith.subf %31, %30 : vector<24x128xf32>
    %cst_17 = arith.constant -2.000000e+00 : f32
    %33 = vector.broadcast %cst_17 : f32 to vector<24x128xf32>
    %34 = arith.mulf %33, %29 : vector<24x128xf32>
    %35 = arith.mulf %34, %32 : vector<24x128xf32>
    %36 = arith.mulf %32, %32 : vector<24x128xf32>
    %37 = arith.mulf %29, %35 : vector<24x128xf32>
    %38 = arith.addf %36, %37 : vector<24x128xf32>
    %cst_18 = arith.constant -2.000000e+00 : f32
    %39 = vector.broadcast %cst_18 : f32 to vector<24x128xf32>
    %40 = arith.mulf %39, %38 : vector<24x128xf32>
    %41 = vector.extract_strided_slice %23 {offsets = [0, 128], sizes = [24, 128], strides = [1, 1]} : vector<24x1664xf32> to vector<24x128xf32>
    %42 = vector.extract_strided_slice %23 {offsets = [0, 256], sizes = [24, 128], strides = [1, 1]} : vector<24x1664xf32> to vector<24x128xf32>
    %43 = vector.extract_strided_slice %23 {offsets = [0, 384], sizes = [24, 128], strides = [1, 1]} : vector<24x1664xf32> to vector<24x128xf32>
    %44 = vector.extract_strided_slice %23 {offsets = [0, 512], sizes = [24, 128], strides = [1, 1]} : vector<24x1664xf32> to vector<24x128xf32>
    %45 = vector.extract_strided_slice %23 {offsets = [0, 640], sizes = [24, 128], strides = [1, 1]} : vector<24x1664xf32> to vector<24x128xf32>
    %46 = vector.extract_strided_slice %23 {offsets = [0, 768], sizes = [24, 128], strides = [1, 1]} : vector<24x1664xf32> to vector<24x128xf32>
    %47 = vector.extract_strided_slice %23 {offsets = [0, 896], sizes = [24, 128], strides = [1, 1]} : vector<24x1664xf32> to vector<24x128xf32>
    %48 = vector.extract_strided_slice %23 {offsets = [0, 1024], sizes = [24, 128], strides = [1, 1]} : vector<24x1664xf32> to vector<24x128xf32>
    %49 = arith.mulf %40, %41 : vector<24x128xf32>
    %50 = arith.mulf %49, %41 : vector<24x128xf32>
    %51 = arith.mulf %50, %41 : vector<24x128xf32>
    %cst_19 = arith.constant 3.000000e+00 : f32
    %52 = vector.broadcast %cst_19 : f32 to vector<24x128xf32>
    %53 = arith.mulf %52, %35 : vector<24x128xf32>
    %54 = arith.mulf %53, %44 : vector<24x128xf32>
    %55 = arith.mulf %54, %41 : vector<24x128xf32>
    %56 = arith.addf %51, %55 : vector<24x128xf32>
    %57 = vector.extract_strided_slice %23 {offsets = [0, 1152], sizes = [24, 128], strides = [1, 1]} : vector<24x1664xf32> to vector<24x128xf32>
    %58 = arith.mulf %32, %57 : vector<24x128xf32>
    %59 = arith.addf %56, %58 : vector<24x128xf32>
    %c0_20 = arith.constant 0 : index
    %c1152 = arith.constant 1152 : index
    %60 = vector.load %arg7[%c0_20, %c1152] : memref<24x1664xf32, #tpu.memory_space<vmem>>, vector<24x128xf32>
    tpu.vector_store %arg7[%c0_20, %c1152], %59 {strides = array<i32>} : memref<24x1664xf32, #tpu.memory_space<vmem>>, vector<24x128xf32>,
    %61 = arith.mulf %40, %41 : vector<24x128xf32>
    %62 = arith.mulf %61, %41 : vector<24x128xf32>
    %63 = arith.mulf %62, %42 : vector<24x128xf32>
    %64 = arith.mulf %44, %42 : vector<24x128xf32>
    %cst_21 = arith.constant 2.000000e+00 : f32
    %65 = vector.broadcast %cst_21 : f32 to vector<24x128xf32>
    %66 = arith.mulf %65, %45 : vector<24x128xf32>
    %67 = arith.mulf %66, %41 : vector<24x128xf32>
    %68 = arith.addf %64, %67 : vector<24x128xf32>
    %69 = arith.mulf %35, %68 : vector<24x128xf32>
    %70 = arith.addf %63, %69 : vector<24x128xf32>
    %71 = vector.extract_strided_slice %23 {offsets = [0, 1280], sizes = [24, 128], strides = [1, 1]} : vector<24x1664xf32> to vector<24x128xf32>
    %72 = arith.mulf %32, %71 : vector<24x128xf32>
    %73 = arith.addf %70, %72 : vector<24x128xf32>
    %c0_22 = arith.constant 0 : index
    %c1280 = arith.constant 1280 : index
    %74 = vector.load %arg7[%c0_22, %c1280] : memref<24x1664xf32, #tpu.memory_space<vmem>>, vector<24x128xf32>
    tpu.vector_store %arg7[%c0_22, %c1280], %73 {strides = array<i32>} : memref<24x1664xf32, #tpu.memory_space<vmem>>, vector<24x128xf32>,
    %75 = arith.mulf %40, %41 : vector<24x128xf32>
    %76 = arith.mulf %75, %42 : vector<24x128xf32>
    %77 = arith.mulf %76, %42 : vector<24x128xf32>
    %78 = arith.mulf %46, %41 : vector<24x128xf32>
    %cst_23 = arith.constant 2.000000e+00 : f32
    %79 = vector.broadcast %cst_23 : f32 to vector<24x128xf32>
    %80 = arith.mulf %79, %45 : vector<24x128xf32>
    %81 = arith.mulf %80, %42 : vector<24x128xf32>
    %82 = arith.addf %78, %81 : vector<24x128xf32>
    %83 = arith.mulf %35, %82 : vector<24x128xf32>
    %84 = arith.addf %77, %83 : vector<24x128xf32>
    %85 = vector.extract_strided_slice %23 {offsets = [0, 1408], sizes = [24, 128], strides = [1, 1]} : vector<24x1664xf32> to vector<24x128xf32>
    %86 = arith.mulf %32, %85 : vector<24x128xf32>
    %87 = arith.addf %84, %86 : vector<24x128xf32>
    %c0_24 = arith.constant 0 : index
    %c1408 = arith.constant 1408 : index
    %88 = vector.load %arg7[%c0_24, %c1408] : memref<24x1664xf32, #tpu.memory_space<vmem>>, vector<24x128xf32>
    tpu.vector_store %arg7[%c0_24, %c1408], %87 {strides = array<i32>} : memref<24x1664xf32, #tpu.memory_space<vmem>>, vector<24x128xf32>,
    %89 = arith.mulf %40, %42 : vector<24x128xf32>
    %90 = arith.mulf %89, %42 : vector<24x128xf32>
    %91 = arith.mulf %90, %42 : vector<24x128xf32>
    %cst_25 = arith.constant 3.000000e+00 : f32
    %92 = vector.broadcast %cst_25 : f32 to vector<24x128xf32>
    %93 = arith.mulf %92, %35 : vector<24x128xf32>
    %94 = arith.mulf %93, %46 : vector<24x128xf32>
    %95 = arith.mulf %94, %42 : vector<24x128xf32>
    %96 = arith.addf %91, %95 : vector<24x128xf32>
    %97 = vector.extract_strided_slice %23 {offsets = [0, 1536], sizes = [24, 128], strides = [1, 1]} : vector<24x1664xf32> to vector<24x128xf32>
    %98 = arith.mulf %32, %97 : vector<24x128xf32>
    %99 = arith.addf %96, %98 : vector<24x128xf32>
    %c0_26 = arith.constant 0 : index
    %c1536 = arith.constant 1536 : index
    %100 = vector.load %arg7[%c0_26, %c1536] : memref<24x1664xf32, #tpu.memory_space<vmem>>, vector<24x128xf32>
    tpu.vector_store %arg7[%c0_26, %c1536], %99 {strides = array<i32>} : memref<24x1664xf32, #tpu.memory_space<vmem>>, vector<24x128xf32>,
    %101 = arith.mulf %35, %41 : vector<24x128xf32>
    %102 = arith.mulf %101, %41 : vector<24x128xf32>
    %103 = arith.mulf %32, %44 : vector<24x128xf32>
    %104 = arith.addf %102, %103 : vector<24x128xf32>
    %c0_27 = arith.constant 0 : index
    %c512_28 = arith.constant 512 : index
    %105 = vector.load %arg7[%c0_27, %c512_28] : memref<24x1664xf32, #tpu.memory_space<vmem>>, vector<24x128xf32>
    tpu.vector_store %arg7[%c0_27, %c512_28], %104 {strides = array<i32>} : memref<24x1664xf32, #tpu.memory_space<vmem>>, vector<24x128xf32>,
    %106 = arith.mulf %35, %41 : vector<24x128xf32>
    %107 = arith.mulf %106, %42 : vector<24x128xf32>
    %108 = arith.mulf %32, %45 : vector<24x128xf32>
    %109 = arith.addf %107, %108 : vector<24x128xf32>
    %c0_29 = arith.constant 0 : index
    %c640 = arith.constant 640 : index
    %110 = vector.load %arg7[%c0_29, %c640] : memref<24x1664xf32, #tpu.memory_space<vmem>>, vector<24x128xf32>
    tpu.vector_store %arg7[%c0_29, %c640], %109 {strides = array<i32>} : memref<24x1664xf32, #tpu.memory_space<vmem>>, vector<24x128xf32>,
    %111 = arith.mulf %35, %42 : vector<24x128xf32>
    %112 = arith.mulf %111, %42 : vector<24x128xf32>
    %113 = arith.mulf %32, %46 : vector<24x128xf32>
    %114 = arith.addf %112, %113 : vector<24x128xf32>
    %c0_30 = arith.constant 0 : index
    %c768 = arith.constant 768 : index
    %115 = vector.load %arg7[%c0_30, %c768] : memref<24x1664xf32, #tpu.memory_space<vmem>>, vector<24x128xf32>
    tpu.vector_store %arg7[%c0_30, %c768], %114 {strides = array<i32>} : memref<24x1664xf32, #tpu.memory_space<vmem>>, vector<24x128xf32>,
    %116 = arith.mulf %35, %41 : vector<24x128xf32>
    %117 = arith.mulf %116, %43 : vector<24x128xf32>
    %118 = arith.mulf %32, %47 : vector<24x128xf32>
    %119 = arith.addf %117, %118 : vector<24x128xf32>
    %c0_31 = arith.constant 0 : index
    %c896 = arith.constant 896 : index
    %120 = vector.load %arg7[%c0_31, %c896] : memref<24x1664xf32, #tpu.memory_space<vmem>>, vector<24x128xf32>
    tpu.vector_store %arg7[%c0_31, %c896], %119 {strides = array<i32>} : memref<24x1664xf32, #tpu.memory_space<vmem>>, vector<24x128xf32>,
    %121 = arith.mulf %35, %42 : vector<24x128xf32>
    %122 = arith.mulf %121, %43 : vector<24x128xf32>
    %123 = arith.mulf %32, %48 : vector<24x128xf32>
    %124 = arith.addf %122, %123 : vector<24x128xf32>
    %c0_32 = arith.constant 0 : index
    %c1024 = arith.constant 1024 : index
    %125 = vector.load %arg7[%c0_32, %c1024] : memref<24x1664xf32, #tpu.memory_space<vmem>>, vector<24x128xf32>
    tpu.vector_store %arg7[%c0_32, %c1024], %124 {strides = array<i32>} : memref<24x1664xf32, #tpu.memory_space<vmem>>, vector<24x128xf32>,
    %126 = arith.mulf %32, %41 : vector<24x128xf32>
    %c0_33 = arith.constant 0 : index
    %c128_34 = arith.constant 128 : index
    %127 = vector.load %arg7[%c0_33, %c128_34] : memref<24x1664xf32, #tpu.memory_space<vmem>>, vector<24x128xf32>
    tpu.vector_store %arg7[%c0_33, %c128_34], %126 {strides = array<i32>} : memref<24x1664xf32, #tpu.memory_space<vmem>>, vector<24x128xf32>,
    %128 = arith.mulf %32, %42 : vector<24x128xf32>
    %c0_35 = arith.constant 0 : index
    %c256_36 = arith.constant 256 : index
    %129 = vector.load %arg7[%c0_35, %c256_36] : memref<24x1664xf32, #tpu.memory_space<vmem>>, vector<24x128xf32>
    tpu.vector_store %arg7[%c0_35, %c256_36], %128 {strides = array<i32>} : memref<24x1664xf32, #tpu.memory_space<vmem>>, vector<24x128xf32>,
    %130 = arith.mulf %32, %43 : vector<24x128xf32>
    %c0_37 = arith.constant 0 : index
    %c384_38 = arith.constant 384 : index
    %131 = vector.load %arg7[%c0_37, %c384_38] : memref<24x1664xf32, #tpu.memory_space<vmem>>, vector<24x128xf32>
    tpu.vector_store %arg7[%c0_37, %c384_38], %130 {strides = array<i32>} : memref<24x1664xf32, #tpu.memory_space<vmem>>, vector<24x128xf32>,
    %c0_39 = arith.constant 0 : index
    %c0_40 = arith.constant 0 : index
    %132 = vector.load %arg7[%c0_39, %c0_40] : memref<24x1664xf32, #tpu.memory_space<vmem>>, vector<24x128xf32>
    tpu.vector_store %arg7[%c0_39, %c0_40], %29 {strides = array<i32>} : memref<24x1664xf32, #tpu.memory_space<vmem>>, vector<24x128xf32>,
    %c1 = arith.constant 1 : index
    %c0_41 = arith.constant 0 : index
    %c0_42 = arith.constant 0 : index
    %133 = vector.load %arg3[%c1, %c0_41, %c0_42] : memref<9x24x24xf32, #tpu.memory_space<vmem>>, vector<1x24x24xf32>
    %134 = vector.shape_cast %133 : vector<1x24x24xf32> to vector<24x24xf32>
    %c0_43 = arith.constant 0 : index
    %c0_44 = arith.constant 0 : index
    %135 = vector.load %arg7[%c0_43, %c0_44] : memref<24x1664xf32, #tpu.memory_space<vmem>>, vector<24x1664xf32>
    %cst_45 = arith.constant dense<0.000000e+00> : vector<24x1664xf32>
    %136 = tpu.matmul %134, %135, %cst_45 {dimension_numbers = #tpu.dot_dimension_numbers<[1], [0], [0], [1], [0, 0, 1, 1], [], []>} : vector<24x24xf32>, vector<24x1664xf32>, vector<24x1664xf32> -> vector<24x1664xf32>
    %137 = vector.extract_strided_slice %136 {offsets = [0, 0], sizes = [24, 128], strides = [1, 1]} : vector<24x1664xf32> to vector<24x128xf32>
    %c1_46 = arith.constant 1 : index
    %c0_47 = arith.constant 0 : index
    %c0_48 = arith.constant 0 : index
    %138 = vector.load %arg4[%c1_46, %c0_47, %c0_48] : memref<9x24x1xf32, #tpu.memory_space<vmem>>, vector<1x24x1xf32>
    %139 = vector.shape_cast %138 : vector<1x24x1xf32> to vector<24x1xf32>
    %140 = vector.broadcast %139 : vector<24x1xf32> to vector<24x128xf32>
    %141 = arith.addf %137, %140 : vector<24x128xf32>
    %142 = math.tanh %141 : vector<24x128xf32>
    %143 = arith.mulf %142, %142 : vector<24x128xf32>
    %cst_49 = arith.constant 1.000000e+00 : f32
    %144 = vector.broadcast %cst_49 : f32 to vector<24x128xf32>
    %145 = arith.subf %144, %143 : vector<24x128xf32>
    %cst_50 = arith.constant -2.000000e+00 : f32
    %146 = vector.broadcast %cst_50 : f32 to vector<24x128xf32>
    %147 = arith.mulf %146, %142 : vector<24x128xf32>
    %148 = arith.mulf %147, %145 : vector<24x128xf32>
    %149 = arith.mulf %145, %145 : vector<24x128xf32>
    %150 = arith.mulf %142, %148 : vector<24x128xf32>
    %151 = arith.addf %149, %150 : vector<24x128xf32>
    %cst_51 = arith.constant -2.000000e+00 : f32
    %152 = vector.broadcast %cst_51 : f32 to vector<24x128xf32>
    %153 = arith.mulf %152, %151 : vector<24x128xf32>
    %154 = vector.extract_strided_slice %136 {offsets = [0, 128], sizes = [24, 128], strides = [1, 1]} : vector<24x1664xf32> to vector<24x128xf32>
    %155 = vector.extract_strided_slice %136 {offsets = [0, 256], sizes = [24, 128], strides = [1, 1]} : vector<24x1664xf32> to vector<24x128xf32>
    %156 = vector.extract_strided_slice %136 {offsets = [0, 384], sizes = [24, 128], strides = [1, 1]} : vector<24x1664xf32> to vector<24x128xf32>
    %157 = vector.extract_strided_slice %136 {offsets = [0, 512], sizes = [24, 128], strides = [1, 1]} : vector<24x1664xf32> to vector<24x128xf32>
    %158 = vector.extract_strided_slice %136 {offsets = [0, 640], sizes = [24, 128], strides = [1, 1]} : vector<24x1664xf32> to vector<24x128xf32>
    %159 = vector.extract_strided_slice %136 {offsets = [0, 768], sizes = [24, 128], strides = [1, 1]} : vector<24x1664xf32> to vector<24x128xf32>
    %160 = vector.extract_strided_slice %136 {offsets = [0, 896], sizes = [24, 128], strides = [1, 1]} : vector<24x1664xf32> to vector<24x128xf32>
    %161 = vector.extract_strided_slice %136 {offsets = [0, 1024], sizes = [24, 128], strides = [1, 1]} : vector<24x1664xf32> to vector<24x128xf32>
    %162 = arith.mulf %153, %154 : vector<24x128xf32>
    %163 = arith.mulf %162, %154 : vector<24x128xf32>
    %164 = arith.mulf %163, %154 : vector<24x128xf32>
    %cst_52 = arith.constant 3.000000e+00 : f32
    %165 = vector.broadcast %cst_52 : f32 to vector<24x128xf32>
    %166 = arith.mulf %165, %148 : vector<24x128xf32>
    %167 = arith.mulf %166, %157 : vector<24x128xf32>
    %168 = arith.mulf %167, %154 : vector<24x128xf32>
    %169 = arith.addf %164, %168 : vector<24x128xf32>
    %170 = vector.extract_strided_slice %136 {offsets = [0, 1152], sizes = [24, 128], strides = [1, 1]} : vector<24x1664xf32> to vector<24x128xf32>
    %171 = arith.mulf %145, %170 : vector<24x128xf32>
    %172 = arith.addf %169, %171 : vector<24x128xf32>
    %c0_53 = arith.constant 0 : index
    %c1152_54 = arith.constant 1152 : index
    %173 = vector.load %arg7[%c0_53, %c1152_54] : memref<24x1664xf32, #tpu.memory_space<vmem>>, vector<24x128xf32>
    tpu.vector_store %arg7[%c0_53, %c1152_54], %172 {strides = array<i32>} : memref<24x1664xf32, #tpu.memory_space<vmem>>, vector<24x128xf32>,
    %174 = arith.mulf %153, %154 : vector<24x128xf32>
    %175 = arith.mulf %174, %154 : vector<24x128xf32>
    %176 = arith.mulf %175, %155 : vector<24x128xf32>
    %177 = arith.mulf %157, %155 : vector<24x128xf32>
    %cst_55 = arith.constant 2.000000e+00 : f32
    %178 = vector.broadcast %cst_55 : f32 to vector<24x128xf32>
    %179 = arith.mulf %178, %158 : vector<24x128xf32>
    %180 = arith.mulf %179, %154 : vector<24x128xf32>
    %181 = arith.addf %177, %180 : vector<24x128xf32>
    %182 = arith.mulf %148, %181 : vector<24x128xf32>
    %183 = arith.addf %176, %182 : vector<24x128xf32>
    %184 = vector.extract_strided_slice %136 {offsets = [0, 1280], sizes = [24, 128], strides = [1, 1]} : vector<24x1664xf32> to vector<24x128xf32>
    %185 = arith.mulf %145, %184 : vector<24x128xf32>
    %186 = arith.addf %183, %185 : vector<24x128xf32>
    %c0_56 = arith.constant 0 : index
    %c1280_57 = arith.constant 1280 : index
    %187 = vector.load %arg7[%c0_56, %c1280_57] : memref<24x1664xf32, #tpu.memory_space<vmem>>, vector<24x128xf32>
    tpu.vector_store %arg7[%c0_56, %c1280_57], %186 {strides = array<i32>} : memref<24x1664xf32, #tpu.memory_space<vmem>>, vector<24x128xf32>,
    %188 = arith.mulf %153, %154 : vector<24x128xf32>
    %189 = arith.mulf %188, %155 : vector<24x128xf32>
    %190 = arith.mulf %189, %155 : vector<24x128xf32>
    %191 = arith.mulf %159, %154 : vector<24x128xf32>
    %cst_58 = arith.constant 2.000000e+00 : f32
    %192 = vector.broadcast %cst_58 : f32 to vector<24x128xf32>
    %193 = arith.mulf %192, %158 : vector<24x128xf32>
    %194 = arith.mulf %193, %155 : vector<24x128xf32>
    %195 = arith.addf %191, %194 : vector<24x128xf32>
    %196 = arith.mulf %148, %195 : vector<24x128xf32>
    %197 = arith.addf %190, %196 : vector<24x128xf32>
    %198 = vector.extract_strided_slice %136 {offsets = [0, 1408], sizes = [24, 128], strides = [1, 1]} : vector<24x1664xf32> to vector<24x128xf32>
    %199 = arith.mulf %145, %198 : vector<24x128xf32>
    %200 = arith.addf %197, %199 : vector<24x128xf32>
    %c0_59 = arith.constant 0 : index
    %c1408_60 = arith.constant 1408 : index
    %201 = vector.load %arg7[%c0_59, %c1408_60] : memref<24x1664xf32, #tpu.memory_space<vmem>>, vector<24x128xf32>
    tpu.vector_store %arg7[%c0_59, %c1408_60], %200 {strides = array<i32>} : memref<24x1664xf32, #tpu.memory_space<vmem>>, vector<24x128xf32>,
    %202 = arith.mulf %153, %155 : vector<24x128xf32>
    %203 = arith.mulf %202, %155 : vector<24x128xf32>
    %204 = arith.mulf %203, %155 : vector<24x128xf32>
    %cst_61 = arith.constant 3.000000e+00 : f32
    %205 = vector.broadcast %cst_61 : f32 to vector<24x128xf32>
    %206 = arith.mulf %205, %148 : vector<24x128xf32>
    %207 = arith.mulf %206, %159 : vector<24x128xf32>
    %208 = arith.mulf %207, %155 : vector<24x128xf32>
    %209 = arith.addf %204, %208 : vector<24x128xf32>
    %210 = vector.extract_strided_slice %136 {offsets = [0, 1536], sizes = [24, 128], strides = [1, 1]} : vector<24x1664xf32> to vector<24x128xf32>
    %211 = arith.mulf %145, %210 : vector<24x128xf32>
    %212 = arith.addf %209, %211 : vector<24x128xf32>
    %c0_62 = arith.constant 0 : index
    %c1536_63 = arith.constant 1536 : index
    %213 = vector.load %arg7[%c0_62, %c1536_63] : memref<24x1664xf32, #tpu.memory_space<vmem>>, vector<24x128xf32>
    tpu.vector_store %arg7[%c0_62, %c1536_63], %212 {strides = array<i32>} : memref<24x1664xf32, #tpu.memory_space<vmem>>, vector<24x128xf32>,
    %214 = arith.mulf %148, %154 : vector<24x128xf32>
    %215 = arith.mulf %214, %154 : vector<24x128xf32>
    %216 = arith.mulf %145, %157 : vector<24x128xf32>
    %217 = arith.addf %215, %216 : vector<24x128xf32>
    %c0_64 = arith.constant 0 : index
    %c512_65 = arith.constant 512 : index
    %218 = vector.load %arg7[%c0_64, %c512_65] : memref<24x1664xf32, #tpu.memory_space<vmem>>, vector<24x128xf32>
    tpu.vector_store %arg7[%c0_64, %c512_65], %217 {strides = array<i32>} : memref<24x1664xf32, #tpu.memory_space<vmem>>, vector<24x128xf32>,
    %219 = arith.mulf %148, %154 : vector<24x128xf32>
    %220 = arith.mulf %219, %155 : vector<24x128xf32>
    %221 = arith.mulf %145, %158 : vector<24x128xf32>
    %222 = arith.addf %220, %221 : vector<24x128xf32>
    %c0_66 = arith.constant 0 : index
    %c640_67 = arith.constant 640 : index
    %223 = vector.load %arg7[%c0_66, %c640_67] : memref<24x1664xf32, #tpu.memory_space<vmem>>, vector<24x128xf32>
    tpu.vector_store %arg7[%c0_66, %c640_67], %222 {strides = array<i32>} : memref<24x1664xf32, #tpu.memory_space<vmem>>, vector<24x128xf32>,
    %224 = arith.mulf %148, %155 : vector<24x128xf32>
    %225 = arith.mulf %224, %155 : vector<24x128xf32>
    %226 = arith.mulf %145, %159 : vector<24x128xf32>
    %227 = arith.addf %225, %226 : vector<24x128xf32>
    %c0_68 = arith.constant 0 : index
    %c768_69 = arith.constant 768 : index
    %228 = vector.load %arg7[%c0_68, %c768_69] : memref<24x1664xf32, #tpu.memory_space<vmem>>, vector<24x128xf32>
    tpu.vector_store %arg7[%c0_68, %c768_69], %227 {strides = array<i32>} : memref<24x1664xf32, #tpu.memory_space<vmem>>, vector<24x128xf32>,
    %229 = arith.mulf %148, %154 : vector<24x128xf32>
    %230 = arith.mulf %229, %156 : vector<24x128xf32>
    %231 = arith.mulf %145, %160 : vector<24x128xf32>
    %232 = arith.addf %230, %231 : vector<24x128xf32>
    %c0_70 = arith.constant 0 : index
    %c896_71 = arith.constant 896 : index
    %233 = vector.load %arg7[%c0_70, %c896_71] : memref<24x1664xf32, #tpu.memory_space<vmem>>, vector<24x128xf32>
    tpu.vector_store %arg7[%c0_70, %c896_71], %232 {strides = array<i32>} : memref<24x1664xf32, #tpu.memory_space<vmem>>, vector<24x128xf32>,
    %234 = arith.mulf %148, %155 : vector<24x128xf32>
    %235 = arith.mulf %234, %156 : vector<24x128xf32>
    %236 = arith.mulf %145, %161 : vector<24x128xf32>
    %237 = arith.addf %235, %236 : vector<24x128xf32>
    %c0_72 = arith.constant 0 : index
    %c1024_73 = arith.constant 1024 : index
    %238 = vector.load %arg7[%c0_72, %c1024_73] : memref<24x1664xf32, #tpu.memory_space<vmem>>, vector<24x128xf32>
    tpu.vector_store %arg7[%c0_72, %c1024_73], %237 {strides = array<i32>} : memref<24x1664xf32, #tpu.memory_space<vmem>>, vector<24x128xf32>,
    %239 = arith.mulf %145, %154 : vector<24x128xf32>
    %c0_74 = arith.constant 0 : index
    %c128_75 = arith.constant 128 : index
    %240 = vector.load %arg7[%c0_74, %c128_75] : memref<24x1664xf32, #tpu.memory_space<vmem>>, vector<24x128xf32>
    tpu.vector_store %arg7[%c0_74, %c128_75], %239 {strides = array<i32>} : memref<24x1664xf32, #tpu.memory_space<vmem>>, vector<24x128xf32>,
    %241 = arith.mulf %145, %155 : vector<24x128xf32>
    %c0_76 = arith.constant 0 : index
    %c256_77 = arith.constant 256 : index
    %242 = vector.load %arg7[%c0_76, %c256_77] : memref<24x1664xf32, #tpu.memory_space<vmem>>, vector<24x128xf32>
    tpu.vector_store %arg7[%c0_76, %c256_77], %241 {strides = array<i32>} : memref<24x1664xf32, #tpu.memory_space<vmem>>, vector<24x128xf32>,
    %243 = arith.mulf %145, %156 : vector<24x128xf32>
    %c0_78 = arith.constant 0 : index
    %c384_79 = arith.constant 384 : index
    %244 = vector.load %arg7[%c0_78, %c384_79] : memref<24x1664xf32, #tpu.memory_space<vmem>>, vector<24x128xf32>
    tpu.vector_store %arg7[%c0_78, %c384_79], %243 {strides = array<i32>} : memref<24x1664xf32, #tpu.memory_space<vmem>>, vector<24x128xf32>,
    %c0_80 = arith.constant 0 : index
    %c0_81 = arith.constant 0 : index
    %245 = vector.load %arg7[%c0_80, %c0_81] : memref<24x1664xf32, #tpu.memory_space<vmem>>, vector<24x128xf32>
    tpu.vector_store %arg7[%c0_80, %c0_81], %142 {strides = array<i32>} : memref<24x1664xf32, #tpu.memory_space<vmem>>, vector<24x128xf32>,
    %c2 = arith.constant 2 : index
    %c0_82 = arith.constant 0 : index
    %c0_83 = arith.constant 0 : index
    %246 = vector.load %arg3[%c2, %c0_82, %c0_83] : memref<9x24x24xf32, #tpu.memory_space<vmem>>, vector<1x24x24xf32>
    %247 = vector.shape_cast %246 : vector<1x24x24xf32> to vector<24x24xf32>
    %c0_84 = arith.constant 0 : index
    %c0_85 = arith.constant 0 : index
    %248 = vector.load %arg7[%c0_84, %c0_85] : memref<24x1664xf32, #tpu.memory_space<vmem>>, vector<24x1664xf32>
    %cst_86 = arith.constant dense<0.000000e+00> : vector<24x1664xf32>
    %249 = tpu.matmul %247, %248, %cst_86 {dimension_numbers = #tpu.dot_dimension_numbers<[1], [0], [0], [1], [0, 0, 1, 1], [], []>} : vector<24x24xf32>, vector<24x1664xf32>, vector<24x1664xf32> -> vector<24x1664xf32>
    %250 = vector.extract_strided_slice %249 {offsets = [0, 0], sizes = [24, 128], strides = [1, 1]} : vector<24x1664xf32> to vector<24x128xf32>
    %c2_87 = arith.constant 2 : index
    %c0_88 = arith.constant 0 : index
    %c0_89 = arith.constant 0 : index
    %251 = vector.load %arg4[%c2_87, %c0_88, %c0_89] : memref<9x24x1xf32, #tpu.memory_space<vmem>>, vector<1x24x1xf32>
    %252 = vector.shape_cast %251 : vector<1x24x1xf32> to vector<24x1xf32>
    %253 = vector.broadcast %252 : vector<24x1xf32> to vector<24x128xf32>
    %254 = arith.addf %250, %253 : vector<24x128xf32>
    %255 = math.tanh %254 : vector<24x128xf32>
    %256 = arith.mulf %255, %255 : vector<24x128xf32>
    %cst_90 = arith.constant 1.000000e+00 : f32
    %257 = vector.broadcast %cst_90 : f32 to vector<24x128xf32>
    %258 = arith.subf %257, %256 : vector<24x128xf32>
    %cst_91 = arith.constant -2.000000e+00 : f32
    %259 = vector.broadcast %cst_91 : f32 to vector<24x128xf32>
    %260 = arith.mulf %259, %255 : vector<24x128xf32>
    %261 = arith.mulf %260, %258 : vector<24x128xf32>
    %262 = arith.mulf %258, %258 : vector<24x128xf32>
    %263 = arith.mulf %255, %261 : vector<24x128xf32>
    %264 = arith.addf %262, %263 : vector<24x128xf32>
    %cst_92 = arith.constant -2.000000e+00 : f32
    %265 = vector.broadcast %cst_92 : f32 to vector<24x128xf32>
    %266 = arith.mulf %265, %264 : vector<24x128xf32>
    %267 = vector.extract_strided_slice %249 {offsets = [0, 128], sizes = [24, 128], strides = [1, 1]} : vector<24x1664xf32> to vector<24x128xf32>
    %268 = vector.extract_strided_slice %249 {offsets = [0, 256], sizes = [24, 128], strides = [1, 1]} : vector<24x1664xf32> to vector<24x128xf32>
    %269 = vector.extract_strided_slice %249 {offsets = [0, 384], sizes = [24, 128], strides = [1, 1]} : vector<24x1664xf32> to vector<24x128xf32>
    %270 = vector.extract_strided_slice %249 {offsets = [0, 512], sizes = [24, 128], strides = [1, 1]} : vector<24x1664xf32> to vector<24x128xf32>
    %271 = vector.extract_strided_slice %249 {offsets = [0, 640], sizes = [24, 128], strides = [1, 1]} : vector<24x1664xf32> to vector<24x128xf32>
    %272 = vector.extract_strided_slice %249 {offsets = [0, 768], sizes = [24, 128], strides = [1, 1]} : vector<24x1664xf32> to vector<24x128xf32>
    %273 = vector.extract_strided_slice %249 {offsets = [0, 896], sizes = [24, 128], strides = [1, 1]} : vector<24x1664xf32> to vector<24x128xf32>
    %274 = vector.extract_strided_slice %249 {offsets = [0, 1024], sizes = [24, 128], strides = [1, 1]} : vector<24x1664xf32> to vector<24x128xf32>
    %275 = arith.mulf %266, %267 : vector<24x128xf32>
    %276 = arith.mulf %275, %267 : vector<24x128xf32>
    %277 = arith.mulf %276, %267 : vector<24x128xf32>
    %cst_93 = arith.constant 3.000000e+00 : f32
    %278 = vector.broadcast %cst_93 : f32 to vector<24x128xf32>
    %279 = arith.mulf %278, %261 : vector<24x128xf32>
    %280 = arith.mulf %279, %270 : vector<24x128xf32>
    %281 = arith.mulf %280, %267 : vector<24x128xf32>
    %282 = arith.addf %277, %281 : vector<24x128xf32>
    %283 = vector.extract_strided_slice %249 {offsets = [0, 1152], sizes = [24, 128], strides = [1, 1]} : vector<24x1664xf32> to vector<24x128xf32>
    %284 = arith.mulf %258, %283 : vector<24x128xf32>
    %285 = arith.addf %282, %284 : vector<24x128xf32>
    %c0_94 = arith.constant 0 : index
    %c1152_95 = arith.constant 1152 : index
    %286 = vector.load %arg7[%c0_94, %c1152_95] : memref<24x1664xf32, #tpu.memory_space<vmem>>, vector<24x128xf32>
    tpu.vector_store %arg7[%c0_94, %c1152_95], %285 {strides = array<i32>} : memref<24x1664xf32, #tpu.memory_space<vmem>>, vector<24x128xf32>,
    %287 = arith.mulf %266, %267 : vector<24x128xf32>
    %288 = arith.mulf %287, %267 : vector<24x128xf32>
    %289 = arith.mulf %288, %268 : vector<24x128xf32>
    %290 = arith.mulf %270, %268 : vector<24x128xf32>
    %cst_96 = arith.constant 2.000000e+00 : f32
    %291 = vector.broadcast %cst_96 : f32 to vector<24x128xf32>
    %292 = arith.mulf %291, %271 : vector<24x128xf32>
    %293 = arith.mulf %292, %267 : vector<24x128xf32>
    %294 = arith.addf %290, %293 : vector<24x128xf32>
    %295 = arith.mulf %261, %294 : vector<24x128xf32>
    %296 = arith.addf %289, %295 : vector<24x128xf32>
    %297 = vector.extract_strided_slice %249 {offsets = [0, 1280], sizes = [24, 128], strides = [1, 1]} : vector<24x1664xf32> to vector<24x128xf32>
    %298 = arith.mulf %258, %297 : vector<24x128xf32>
    %299 = arith.addf %296, %298 : vector<24x128xf32>
    %c0_97 = arith.constant 0 : index
    %c1280_98 = arith.constant 1280 : index
    %300 = vector.load %arg7[%c0_97, %c1280_98] : memref<24x1664xf32, #tpu.memory_space<vmem>>, vector<24x128xf32>
    tpu.vector_store %arg7[%c0_97, %c1280_98], %299 {strides = array<i32>} : memref<24x1664xf32, #tpu.memory_space<vmem>>, vector<24x128xf32>,
    %301 = arith.mulf %266, %267 : vector<24x128xf32>
    %302 = arith.mulf %301, %268 : vector<24x128xf32>
    %303 = arith.mulf %302, %268 : vector<24x128xf32>
    %304 = arith.mulf %272, %267 : vector<24x128xf32>
    %cst_99 = arith.constant 2.000000e+00 : f32
    %305 = vector.broadcast %cst_99 : f32 to vector<24x128xf32>
    %306 = arith.mulf %305, %271 : vector<24x128xf32>
    %307 = arith.mulf %306, %268 : vector<24x128xf32>
    %308 = arith.addf %304, %307 : vector<24x128xf32>
    %309 = arith.mulf %261, %308 : vector<24x128xf32>
    %310 = arith.addf %303, %309 : vector<24x128xf32>
    %311 = vector.extract_strided_slice %249 {offsets = [0, 1408], sizes = [24, 128], strides = [1, 1]} : vector<24x1664xf32> to vector<24x128xf32>
    %312 = arith.mulf %258, %311 : vector<24x128xf32>
    %313 = arith.addf %310, %312 : vector<24x128xf32>
    %c0_100 = arith.constant 0 : index
    %c1408_101 = arith.constant 1408 : index
    %314 = vector.load %arg7[%c0_100, %c1408_101] : memref<24x1664xf32, #tpu.memory_space<vmem>>, vector<24x128xf32>
    tpu.vector_store %arg7[%c0_100, %c1408_101], %313 {strides = array<i32>} : memref<24x1664xf32, #tpu.memory_space<vmem>>, vector<24x128xf32>,
    %315 = arith.mulf %266, %268 : vector<24x128xf32>
    %316 = arith.mulf %315, %268 : vector<24x128xf32>
    %317 = arith.mulf %316, %268 : vector<24x128xf32>
    %cst_102 = arith.constant 3.000000e+00 : f32
    %318 = vector.broadcast %cst_102 : f32 to vector<24x128xf32>
    %319 = arith.mulf %318, %261 : vector<24x128xf32>
    %320 = arith.mulf %319, %272 : vector<24x128xf32>
    %321 = arith.mulf %320, %268 : vector<24x128xf32>
    %322 = arith.addf %317, %321 : vector<24x128xf32>
    %323 = vector.extract_strided_slice %249 {offsets = [0, 1536], sizes = [24, 128], strides = [1, 1]} : vector<24x1664xf32> to vector<24x128xf32>
    %324 = arith.mulf %258, %323 : vector<24x128xf32>
    %325 = arith.addf %322, %324 : vector<24x128xf32>
    %c0_103 = arith.constant 0 : index
    %c1536_104 = arith.constant 1536 : index
    %326 = vector.load %arg7[%c0_103, %c1536_104] : memref<24x1664xf32, #tpu.memory_space<vmem>>, vector<24x128xf32>
    tpu.vector_store %arg7[%c0_103, %c1536_104], %325 {strides = array<i32>} : memref<24x1664xf32, #tpu.memory_space<vmem>>, vector<24x128xf32>,
    %327 = arith.mulf %261, %267 : vector<24x128xf32>
    %328 = arith.mulf %327, %267 : vector<24x128xf32>
    %329 = arith.mulf %258, %270 : vector<24x128xf32>
    %330 = arith.addf %328, %329 : vector<24x128xf32>
    %c0_105 = arith.constant 0 : index
    %c512_106 = arith.constant 512 : index
    %331 = vector.load %arg7[%c0_105, %c512_106] : memref<24x1664xf32, #tpu.memory_space<vmem>>, vector<24x128xf32>
    tpu.vector_store %arg7[%c0_105, %c512_106], %330 {strides = array<i32>} : memref<24x1664xf32, #tpu.memory_space<vmem>>, vector<24x128xf32>,
    %332 = arith.mulf %261, %267 : vector<24x128xf32>
    %333 = arith.mulf %332, %268 : vector<24x128xf32>
    %334 = arith.mulf %258, %271 : vector<24x128xf32>
    %335 = arith.addf %333, %334 : vector<24x128xf32>
    %c0_107 = arith.constant 0 : index
    %c640_108 = arith.constant 640 : index
    %336 = vector.load %arg7[%c0_107, %c640_108] : memref<24x1664xf32, #tpu.memory_space<vmem>>, vector<24x128xf32>
    tpu.vector_store %arg7[%c0_107, %c640_108], %335 {strides = array<i32>} : memref<24x1664xf32, #tpu.memory_space<vmem>>, vector<24x128xf32>,
    %337 = arith.mulf %261, %268 : vector<24x128xf32>
    %338 = arith.mulf %337, %268 : vector<24x128xf32>
    %339 = arith.mulf %258, %272 : vector<24x128xf32>
    %340 = arith.addf %338, %339 : vector<24x128xf32>
    %c0_109 = arith.constant 0 : index
    %c768_110 = arith.constant 768 : index
    %341 = vector.load %arg7[%c0_109, %c768_110] : memref<24x1664xf32, #tpu.memory_space<vmem>>, vector<24x128xf32>
    tpu.vector_store %arg7[%c0_109, %c768_110], %340 {strides = array<i32>} : memref<24x1664xf32, #tpu.memory_space<vmem>>, vector<24x128xf32>,
    %342 = arith.mulf %261, %267 : vector<24x128xf32>
    %343 = arith.mulf %342, %269 : vector<24x128xf32>
    %344 = arith.mulf %258, %273 : vector<24x128xf32>
    %345 = arith.addf %343, %344 : vector<24x128xf32>
    %c0_111 = arith.constant 0 : index
    %c896_112 = arith.constant 896 : index
    %346 = vector.load %arg7[%c0_111, %c896_112] : memref<24x1664xf32, #tpu.memory_space<vmem>>, vector<24x128xf32>
    tpu.vector_store %arg7[%c0_111, %c896_112], %345 {strides = array<i32>} : memref<24x1664xf32, #tpu.memory_space<vmem>>, vector<24x128xf32>,
    %347 = arith.mulf %261, %268 : vector<24x128xf32>
    %348 = arith.mulf %347, %269 : vector<24x128xf32>
    %349 = arith.mulf %258, %274 : vector<24x128xf32>
    %350 = arith.addf %348, %349 : vector<24x128xf32>
    %c0_113 = arith.constant 0 : index
    %c1024_114 = arith.constant 1024 : index
    %351 = vector.load %arg7[%c0_113, %c1024_114] : memref<24x1664xf32, #tpu.memory_space<vmem>>, vector<24x128xf32>
    tpu.vector_store %arg7[%c0_113, %c1024_114], %350 {strides = array<i32>} : memref<24x1664xf32, #tpu.memory_space<vmem>>, vector<24x128xf32>,
    %352 = arith.mulf %258, %267 : vector<24x128xf32>
    %c0_115 = arith.constant 0 : index
    %c128_116 = arith.constant 128 : index
    %353 = vector.load %arg7[%c0_115, %c128_116] : memref<24x1664xf32, #tpu.memory_space<vmem>>, vector<24x128xf32>
    tpu.vector_store %arg7[%c0_115, %c128_116], %352 {strides = array<i32>} : memref<24x1664xf32, #tpu.memory_space<vmem>>, vector<24x128xf32>,
    %354 = arith.mulf %258, %268 : vector<24x128xf32>
    %c0_117 = arith.constant 0 : index
    %c256_118 = arith.constant 256 : index
    %355 = vector.load %arg7[%c0_117, %c256_118] : memref<24x1664xf32, #tpu.memory_space<vmem>>, vector<24x128xf32>
    tpu.vector_store %arg7[%c0_117, %c256_118], %354 {strides = array<i32>} : memref<24x1664xf32, #tpu.memory_space<vmem>>, vector<24x128xf32>,
    %356 = arith.mulf %258, %269 : vector<24x128xf32>
    %c0_119 = arith.constant 0 : index
    %c384_120 = arith.constant 384 : index
    %357 = vector.load %arg7[%c0_119, %c384_120] : memref<24x1664xf32, #tpu.memory_space<vmem>>, vector<24x128xf32>
    tpu.vector_store %arg7[%c0_119, %c384_120], %356 {strides = array<i32>} : memref<24x1664xf32, #tpu.memory_space<vmem>>, vector<24x128xf32>,
    %c0_121 = arith.constant 0 : index
    %c0_122 = arith.constant 0 : index
    %358 = vector.load %arg7[%c0_121, %c0_122] : memref<24x1664xf32, #tpu.memory_space<vmem>>, vector<24x128xf32>
    tpu.vector_store %arg7[%c0_121, %c0_122], %255 {strides = array<i32>} : memref<24x1664xf32, #tpu.memory_space<vmem>>, vector<24x128xf32>,
    %c3 = arith.constant 3 : index
    %c0_123 = arith.constant 0 : index
    %c0_124 = arith.constant 0 : index
    %359 = vector.load %arg3[%c3, %c0_123, %c0_124] : memref<9x24x24xf32, #tpu.memory_space<vmem>>, vector<1x24x24xf32>
    %360 = vector.shape_cast %359 : vector<1x24x24xf32> to vector<24x24xf32>
    %c0_125 = arith.constant 0 : index
    %c0_126 = arith.constant 0 : index
    %361 = vector.load %arg7[%c0_125, %c0_126] : memref<24x1664xf32, #tpu.memory_space<vmem>>, vector<24x1664xf32>
    %cst_127 = arith.constant dense<0.000000e+00> : vector<24x1664xf32>
    %362 = tpu.matmul %360, %361, %cst_127 {dimension_numbers = #tpu.dot_dimension_numbers<[1], [0], [0], [1], [0, 0, 1, 1], [], []>} : vector<24x24xf32>, vector<24x1664xf32>, vector<24x1664xf32> -> vector<24x1664xf32>
    %363 = vector.extract_strided_slice %362 {offsets = [0, 0], sizes = [24, 128], strides = [1, 1]} : vector<24x1664xf32> to vector<24x128xf32>
    %c3_128 = arith.constant 3 : index
    %c0_129 = arith.constant 0 : index
    %c0_130 = arith.constant 0 : index
    %364 = vector.load %arg4[%c3_128, %c0_129, %c0_130] : memref<9x24x1xf32, #tpu.memory_space<vmem>>, vector<1x24x1xf32>
    %365 = vector.shape_cast %364 : vector<1x24x1xf32> to vector<24x1xf32>
    %366 = vector.broadcast %365 : vector<24x1xf32> to vector<24x128xf32>
    %367 = arith.addf %363, %366 : vector<24x128xf32>
    %368 = math.tanh %367 : vector<24x128xf32>
    %369 = arith.mulf %368, %368 : vector<24x128xf32>
    %cst_131 = arith.constant 1.000000e+00 : f32
    %370 = vector.broadcast %cst_131 : f32 to vector<24x128xf32>
    %371 = arith.subf %370, %369 : vector<24x128xf32>
    %cst_132 = arith.constant -2.000000e+00 : f32
    %372 = vector.broadcast %cst_132 : f32 to vector<24x128xf32>
    %373 = arith.mulf %372, %368 : vector<24x128xf32>
    %374 = arith.mulf %373, %371 : vector<24x128xf32>
    %375 = arith.mulf %371, %371 : vector<24x128xf32>
    %376 = arith.mulf %368, %374 : vector<24x128xf32>
    %377 = arith.addf %375, %376 : vector<24x128xf32>
    %cst_133 = arith.constant -2.000000e+00 : f32
    %378 = vector.broadcast %cst_133 : f32 to vector<24x128xf32>
    %379 = arith.mulf %378, %377 : vector<24x128xf32>
    %380 = vector.extract_strided_slice %362 {offsets = [0, 128], sizes = [24, 128], strides = [1, 1]} : vector<24x1664xf32> to vector<24x128xf32>
    %381 = vector.extract_strided_slice %362 {offsets = [0, 256], sizes = [24, 128], strides = [1, 1]} : vector<24x1664xf32> to vector<24x128xf32>
    %382 = vector.extract_strided_slice %362 {offsets = [0, 384], sizes = [24, 128], strides = [1, 1]} : vector<24x1664xf32> to vector<24x128xf32>
    %383 = vector.extract_strided_slice %362 {offsets = [0, 512], sizes = [24, 128], strides = [1, 1]} : vector<24x1664xf32> to vector<24x128xf32>
    %384 = vector.extract_strided_slice %362 {offsets = [0, 640], sizes = [24, 128], strides = [1, 1]} : vector<24x1664xf32> to vector<24x128xf32>
    %385 = vector.extract_strided_slice %362 {offsets = [0, 768], sizes = [24, 128], strides = [1, 1]} : vector<24x1664xf32> to vector<24x128xf32>
    %386 = vector.extract_strided_slice %362 {offsets = [0, 896], sizes = [24, 128], strides = [1, 1]} : vector<24x1664xf32> to vector<24x128xf32>
    %387 = vector.extract_strided_slice %362 {offsets = [0, 1024], sizes = [24, 128], strides = [1, 1]} : vector<24x1664xf32> to vector<24x128xf32>
    %388 = arith.mulf %379, %380 : vector<24x128xf32>
    %389 = arith.mulf %388, %380 : vector<24x128xf32>
    %390 = arith.mulf %389, %380 : vector<24x128xf32>
    %cst_134 = arith.constant 3.000000e+00 : f32
    %391 = vector.broadcast %cst_134 : f32 to vector<24x128xf32>
    %392 = arith.mulf %391, %374 : vector<24x128xf32>
    %393 = arith.mulf %392, %383 : vector<24x128xf32>
    %394 = arith.mulf %393, %380 : vector<24x128xf32>
    %395 = arith.addf %390, %394 : vector<24x128xf32>
    %396 = vector.extract_strided_slice %362 {offsets = [0, 1152], sizes = [24, 128], strides = [1, 1]} : vector<24x1664xf32> to vector<24x128xf32>
    %397 = arith.mulf %371, %396 : vector<24x128xf32>
    %398 = arith.addf %395, %397 : vector<24x128xf32>
    %c0_135 = arith.constant 0 : index
    %c1152_136 = arith.constant 1152 : index
    %399 = vector.load %arg7[%c0_135, %c1152_136] : memref<24x1664xf32, #tpu.memory_space<vmem>>, vector<24x128xf32>
    tpu.vector_store %arg7[%c0_135, %c1152_136], %398 {strides = array<i32>} : memref<24x1664xf32, #tpu.memory_space<vmem>>, vector<24x128xf32>,
    %400 = arith.mulf %379, %380 : vector<24x128xf32>
    %401 = arith.mulf %400, %380 : vector<24x128xf32>
    %402 = arith.mulf %401, %381 : vector<24x128xf32>
    %403 = arith.mulf %383, %381 : vector<24x128xf32>
    %cst_137 = arith.constant 2.000000e+00 : f32
    %404 = vector.broadcast %cst_137 : f32 to vector<24x128xf32>
    %405 = arith.mulf %404, %384 : vector<24x128xf32>
    %406 = arith.mulf %405, %380 : vector<24x128xf32>
    %407 = arith.addf %403, %406 : vector<24x128xf32>
    %408 = arith.mulf %374, %407 : vector<24x128xf32>
    %409 = arith.addf %402, %408 : vector<24x128xf32>
    %410 = vector.extract_strided_slice %362 {offsets = [0, 1280], sizes = [24, 128], strides = [1, 1]} : vector<24x1664xf32> to vector<24x128xf32>
    %411 = arith.mulf %371, %410 : vector<24x128xf32>
    %412 = arith.addf %409, %411 : vector<24x128xf32>
    %c0_138 = arith.constant 0 : index
    %c1280_139 = arith.constant 1280 : index
    %413 = vector.load %arg7[%c0_138, %c1280_139] : memref<24x1664xf32, #tpu.memory_space<vmem>>, vector<24x128xf32>
    tpu.vector_store %arg7[%c0_138, %c1280_139], %412 {strides = array<i32>} : memref<24x1664xf32, #tpu.memory_space<vmem>>, vector<24x128xf32>,
    %414 = arith.mulf %379, %380 : vector<24x128xf32>
    %415 = arith.mulf %414, %381 : vector<24x128xf32>
    %416 = arith.mulf %415, %381 : vector<24x128xf32>
    %417 = arith.mulf %385, %380 : vector<24x128xf32>
    %cst_140 = arith.constant 2.000000e+00 : f32
    %418 = vector.broadcast %cst_140 : f32 to vector<24x128xf32>
    %419 = arith.mulf %418, %384 : vector<24x128xf32>
    %420 = arith.mulf %419, %381 : vector<24x128xf32>
    %421 = arith.addf %417, %420 : vector<24x128xf32>
    %422 = arith.mulf %374, %421 : vector<24x128xf32>
    %423 = arith.addf %416, %422 : vector<24x128xf32>
    %424 = vector.extract_strided_slice %362 {offsets = [0, 1408], sizes = [24, 128], strides = [1, 1]} : vector<24x1664xf32> to vector<24x128xf32>
    %425 = arith.mulf %371, %424 : vector<24x128xf32>
    %426 = arith.addf %423, %425 : vector<24x128xf32>
    %c0_141 = arith.constant 0 : index
    %c1408_142 = arith.constant 1408 : index
    %427 = vector.load %arg7[%c0_141, %c1408_142] : memref<24x1664xf32, #tpu.memory_space<vmem>>, vector<24x128xf32>
    tpu.vector_store %arg7[%c0_141, %c1408_142], %426 {strides = array<i32>} : memref<24x1664xf32, #tpu.memory_space<vmem>>, vector<24x128xf32>,
    %428 = arith.mulf %379, %381 : vector<24x128xf32>
    %429 = arith.mulf %428, %381 : vector<24x128xf32>
    %430 = arith.mulf %429, %381 : vector<24x128xf32>
    %cst_143 = arith.constant 3.000000e+00 : f32
    %431 = vector.broadcast %cst_143 : f32 to vector<24x128xf32>
    %432 = arith.mulf %431, %374 : vector<24x128xf32>
    %433 = arith.mulf %432, %385 : vector<24x128xf32>
    %434 = arith.mulf %433, %381 : vector<24x128xf32>
    %435 = arith.addf %430, %434 : vector<24x128xf32>
    %436 = vector.extract_strided_slice %362 {offsets = [0, 1536], sizes = [24, 128], strides = [1, 1]} : vector<24x1664xf32> to vector<24x128xf32>
    %437 = arith.mulf %371, %436 : vector<24x128xf32>
    %438 = arith.addf %435, %437 : vector<24x128xf32>
    %c0_144 = arith.constant 0 : index
    %c1536_145 = arith.constant 1536 : index
    %439 = vector.load %arg7[%c0_144, %c1536_145] : memref<24x1664xf32, #tpu.memory_space<vmem>>, vector<24x128xf32>
    tpu.vector_store %arg7[%c0_144, %c1536_145], %438 {strides = array<i32>} : memref<24x1664xf32, #tpu.memory_space<vmem>>, vector<24x128xf32>,
    %440 = arith.mulf %374, %380 : vector<24x128xf32>
    %441 = arith.mulf %440, %380 : vector<24x128xf32>
    %442 = arith.mulf %371, %383 : vector<24x128xf32>
    %443 = arith.addf %441, %442 : vector<24x128xf32>
    %c0_146 = arith.constant 0 : index
    %c512_147 = arith.constant 512 : index
    %444 = vector.load %arg7[%c0_146, %c512_147] : memref<24x1664xf32, #tpu.memory_space<vmem>>, vector<24x128xf32>
    tpu.vector_store %arg7[%c0_146, %c512_147], %443 {strides = array<i32>} : memref<24x1664xf32, #tpu.memory_space<vmem>>, vector<24x128xf32>,
    %445 = arith.mulf %374, %380 : vector<24x128xf32>
    %446 = arith.mulf %445, %381 : vector<24x128xf32>
    %447 = arith.mulf %371, %384 : vector<24x128xf32>
    %448 = arith.addf %446, %447 : vector<24x128xf32>
    %c0_148 = arith.constant 0 : index
    %c640_149 = arith.constant 640 : index
    %449 = vector.load %arg7[%c0_148, %c640_149] : memref<24x1664xf32, #tpu.memory_space<vmem>>, vector<24x128xf32>
    tpu.vector_store %arg7[%c0_148, %c640_149], %448 {strides = array<i32>} : memref<24x1664xf32, #tpu.memory_space<vmem>>, vector<24x128xf32>,
    %450 = arith.mulf %374, %381 : vector<24x128xf32>
    %451 = arith.mulf %450, %381 : vector<24x128xf32>
    %452 = arith.mulf %371, %385 : vector<24x128xf32>
    %453 = arith.addf %451, %452 : vector<24x128xf32>
    %c0_150 = arith.constant 0 : index
    %c768_151 = arith.constant 768 : index
    %454 = vector.load %arg7[%c0_150, %c768_151] : memref<24x1664xf32, #tpu.memory_space<vmem>>, vector<24x128xf32>
    tpu.vector_store %arg7[%c0_150, %c768_151], %453 {strides = array<i32>} : memref<24x1664xf32, #tpu.memory_space<vmem>>, vector<24x128xf32>,
    %455 = arith.mulf %374, %380 : vector<24x128xf32>
    %456 = arith.mulf %455, %382 : vector<24x128xf32>
    %457 = arith.mulf %371, %386 : vector<24x128xf32>
    %458 = arith.addf %456, %457 : vector<24x128xf32>
    %c0_152 = arith.constant 0 : index
    %c896_153 = arith.constant 896 : index
    %459 = vector.load %arg7[%c0_152, %c896_153] : memref<24x1664xf32, #tpu.memory_space<vmem>>, vector<24x128xf32>
    tpu.vector_store %arg7[%c0_152, %c896_153], %458 {strides = array<i32>} : memref<24x1664xf32, #tpu.memory_space<vmem>>, vector<24x128xf32>,
    %460 = arith.mulf %374, %381 : vector<24x128xf32>
    %461 = arith.mulf %460, %382 : vector<24x128xf32>
    %462 = arith.mulf %371, %387 : vector<24x128xf32>
    %463 = arith.addf %461, %462 : vector<24x128xf32>
    %c0_154 = arith.constant 0 : index
    %c1024_155 = arith.constant 1024 : index
    %464 = vector.load %arg7[%c0_154, %c1024_155] : memref<24x1664xf32, #tpu.memory_space<vmem>>, vector<24x128xf32>
    tpu.vector_store %arg7[%c0_154, %c1024_155], %463 {strides = array<i32>} : memref<24x1664xf32, #tpu.memory_space<vmem>>, vector<24x128xf32>,
    %465 = arith.mulf %371, %380 : vector<24x128xf32>
    %c0_156 = arith.constant 0 : index
    %c128_157 = arith.constant 128 : index
    %466 = vector.load %arg7[%c0_156, %c128_157] : memref<24x1664xf32, #tpu.memory_space<vmem>>, vector<24x128xf32>
    tpu.vector_store %arg7[%c0_156, %c128_157], %465 {strides = array<i32>} : memref<24x1664xf32, #tpu.memory_space<vmem>>, vector<24x128xf32>,
    %467 = arith.mulf %371, %381 : vector<24x128xf32>
    %c0_158 = arith.constant 0 : index
    %c256_159 = arith.constant 256 : index
    %468 = vector.load %arg7[%c0_158, %c256_159] : memref<24x1664xf32, #tpu.memory_space<vmem>>, vector<24x128xf32>
    tpu.vector_store %arg7[%c0_158, %c256_159], %467 {strides = array<i32>} : memref<24x1664xf32, #tpu.memory_space<vmem>>, vector<24x128xf32>,
    %469 = arith.mulf %371, %382 : vector<24x128xf32>
    %c0_160 = arith.constant 0 : index
    %c384_161 = arith.constant 384 : index
    %470 = vector.load %arg7[%c0_160, %c384_161] : memref<24x1664xf32, #tpu.memory_space<vmem>>, vector<24x128xf32>
    tpu.vector_store %arg7[%c0_160, %c384_161], %469 {strides = array<i32>} : memref<24x1664xf32, #tpu.memory_space<vmem>>, vector<24x128xf32>,
    %c0_162 = arith.constant 0 : index
    %c0_163 = arith.constant 0 : index
    %471 = vector.load %arg7[%c0_162, %c0_163] : memref<24x1664xf32, #tpu.memory_space<vmem>>, vector<24x128xf32>
    tpu.vector_store %arg7[%c0_162, %c0_163], %368 {strides = array<i32>} : memref<24x1664xf32, #tpu.memory_space<vmem>>, vector<24x128xf32>,
    %c4 = arith.constant 4 : index
    %c0_164 = arith.constant 0 : index
    %c0_165 = arith.constant 0 : index
    %472 = vector.load %arg3[%c4, %c0_164, %c0_165] : memref<9x24x24xf32, #tpu.memory_space<vmem>>, vector<1x24x24xf32>
    %473 = vector.shape_cast %472 : vector<1x24x24xf32> to vector<24x24xf32>
    %c0_166 = arith.constant 0 : index
    %c0_167 = arith.constant 0 : index
    %474 = vector.load %arg7[%c0_166, %c0_167] : memref<24x1664xf32, #tpu.memory_space<vmem>>, vector<24x1664xf32>
    %cst_168 = arith.constant dense<0.000000e+00> : vector<24x1664xf32>
    %475 = tpu.matmul %473, %474, %cst_168 {dimension_numbers = #tpu.dot_dimension_numbers<[1], [0], [0], [1], [0, 0, 1, 1], [], []>} : vector<24x24xf32>, vector<24x1664xf32>, vector<24x1664xf32> -> vector<24x1664xf32>
    %476 = vector.extract_strided_slice %475 {offsets = [0, 0], sizes = [24, 128], strides = [1, 1]} : vector<24x1664xf32> to vector<24x128xf32>
    %c4_169 = arith.constant 4 : index
    %c0_170 = arith.constant 0 : index
    %c0_171 = arith.constant 0 : index
    %477 = vector.load %arg4[%c4_169, %c0_170, %c0_171] : memref<9x24x1xf32, #tpu.memory_space<vmem>>, vector<1x24x1xf32>
    %478 = vector.shape_cast %477 : vector<1x24x1xf32> to vector<24x1xf32>
    %479 = vector.broadcast %478 : vector<24x1xf32> to vector<24x128xf32>
    %480 = arith.addf %476, %479 : vector<24x128xf32>
    %481 = math.tanh %480 : vector<24x128xf32>
    %482 = arith.mulf %481, %481 : vector<24x128xf32>
    %cst_172 = arith.constant 1.000000e+00 : f32
    %483 = vector.broadcast %cst_172 : f32 to vector<24x128xf32>
    %484 = arith.subf %483, %482 : vector<24x128xf32>
    %cst_173 = arith.constant -2.000000e+00 : f32
    %485 = vector.broadcast %cst_173 : f32 to vector<24x128xf32>
    %486 = arith.mulf %485, %481 : vector<24x128xf32>
    %487 = arith.mulf %486, %484 : vector<24x128xf32>
    %488 = arith.mulf %484, %484 : vector<24x128xf32>
    %489 = arith.mulf %481, %487 : vector<24x128xf32>
    %490 = arith.addf %488, %489 : vector<24x128xf32>
    %cst_174 = arith.constant -2.000000e+00 : f32
    %491 = vector.broadcast %cst_174 : f32 to vector<24x128xf32>
    %492 = arith.mulf %491, %490 : vector<24x128xf32>
    %493 = vector.extract_strided_slice %475 {offsets = [0, 128], sizes = [24, 128], strides = [1, 1]} : vector<24x1664xf32> to vector<24x128xf32>
    %494 = vector.extract_strided_slice %475 {offsets = [0, 256], sizes = [24, 128], strides = [1, 1]} : vector<24x1664xf32> to vector<24x128xf32>
    %495 = vector.extract_strided_slice %475 {offsets = [0, 384], sizes = [24, 128], strides = [1, 1]} : vector<24x1664xf32> to vector<24x128xf32>
    %496 = vector.extract_strided_slice %475 {offsets = [0, 512], sizes = [24, 128], strides = [1, 1]} : vector<24x1664xf32> to vector<24x128xf32>
    %497 = vector.extract_strided_slice %475 {offsets = [0, 640], sizes = [24, 128], strides = [1, 1]} : vector<24x1664xf32> to vector<24x128xf32>
    %498 = vector.extract_strided_slice %475 {offsets = [0, 768], sizes = [24, 128], strides = [1, 1]} : vector<24x1664xf32> to vector<24x128xf32>
    %499 = vector.extract_strided_slice %475 {offsets = [0, 896], sizes = [24, 128], strides = [1, 1]} : vector<24x1664xf32> to vector<24x128xf32>
    %500 = vector.extract_strided_slice %475 {offsets = [0, 1024], sizes = [24, 128], strides = [1, 1]} : vector<24x1664xf32> to vector<24x128xf32>
    %501 = arith.mulf %492, %493 : vector<24x128xf32>
    %502 = arith.mulf %501, %493 : vector<24x128xf32>
    %503 = arith.mulf %502, %493 : vector<24x128xf32>
    %cst_175 = arith.constant 3.000000e+00 : f32
    %504 = vector.broadcast %cst_175 : f32 to vector<24x128xf32>
    %505 = arith.mulf %504, %487 : vector<24x128xf32>
    %506 = arith.mulf %505, %496 : vector<24x128xf32>
    %507 = arith.mulf %506, %493 : vector<24x128xf32>
    %508 = arith.addf %503, %507 : vector<24x128xf32>
    %509 = vector.extract_strided_slice %475 {offsets = [0, 1152], sizes = [24, 128], strides = [1, 1]} : vector<24x1664xf32> to vector<24x128xf32>
    %510 = arith.mulf %484, %509 : vector<24x128xf32>
    %511 = arith.addf %508, %510 : vector<24x128xf32>
    %c0_176 = arith.constant 0 : index
    %c1152_177 = arith.constant 1152 : index
    %512 = vector.load %arg7[%c0_176, %c1152_177] : memref<24x1664xf32, #tpu.memory_space<vmem>>, vector<24x128xf32>
    tpu.vector_store %arg7[%c0_176, %c1152_177], %511 {strides = array<i32>} : memref<24x1664xf32, #tpu.memory_space<vmem>>, vector<24x128xf32>,
    %513 = arith.mulf %492, %493 : vector<24x128xf32>
    %514 = arith.mulf %513, %493 : vector<24x128xf32>
    %515 = arith.mulf %514, %494 : vector<24x128xf32>
    %516 = arith.mulf %496, %494 : vector<24x128xf32>
    %cst_178 = arith.constant 2.000000e+00 : f32
    %517 = vector.broadcast %cst_178 : f32 to vector<24x128xf32>
    %518 = arith.mulf %517, %497 : vector<24x128xf32>
    %519 = arith.mulf %518, %493 : vector<24x128xf32>
    %520 = arith.addf %516, %519 : vector<24x128xf32>
    %521 = arith.mulf %487, %520 : vector<24x128xf32>
    %522 = arith.addf %515, %521 : vector<24x128xf32>
    %523 = vector.extract_strided_slice %475 {offsets = [0, 1280], sizes = [24, 128], strides = [1, 1]} : vector<24x1664xf32> to vector<24x128xf32>
    %524 = arith.mulf %484, %523 : vector<24x128xf32>
    %525 = arith.addf %522, %524 : vector<24x128xf32>
    %c0_179 = arith.constant 0 : index
    %c1280_180 = arith.constant 1280 : index
    %526 = vector.load %arg7[%c0_179, %c1280_180] : memref<24x1664xf32, #tpu.memory_space<vmem>>, vector<24x128xf32>
    tpu.vector_store %arg7[%c0_179, %c1280_180], %525 {strides = array<i32>} : memref<24x1664xf32, #tpu.memory_space<vmem>>, vector<24x128xf32>,
    %527 = arith.mulf %492, %493 : vector<24x128xf32>
    %528 = arith.mulf %527, %494 : vector<24x128xf32>
    %529 = arith.mulf %528, %494 : vector<24x128xf32>
    %530 = arith.mulf %498, %493 : vector<24x128xf32>
    %cst_181 = arith.constant 2.000000e+00 : f32
    %531 = vector.broadcast %cst_181 : f32 to vector<24x128xf32>
    %532 = arith.mulf %531, %497 : vector<24x128xf32>
    %533 = arith.mulf %532, %494 : vector<24x128xf32>
    %534 = arith.addf %530, %533 : vector<24x128xf32>
    %535 = arith.mulf %487, %534 : vector<24x128xf32>
    %536 = arith.addf %529, %535 : vector<24x128xf32>
    %537 = vector.extract_strided_slice %475 {offsets = [0, 1408], sizes = [24, 128], strides = [1, 1]} : vector<24x1664xf32> to vector<24x128xf32>
    %538 = arith.mulf %484, %537 : vector<24x128xf32>
    %539 = arith.addf %536, %538 : vector<24x128xf32>
    %c0_182 = arith.constant 0 : index
    %c1408_183 = arith.constant 1408 : index
    %540 = vector.load %arg7[%c0_182, %c1408_183] : memref<24x1664xf32, #tpu.memory_space<vmem>>, vector<24x128xf32>
    tpu.vector_store %arg7[%c0_182, %c1408_183], %539 {strides = array<i32>} : memref<24x1664xf32, #tpu.memory_space<vmem>>, vector<24x128xf32>,
    %541 = arith.mulf %492, %494 : vector<24x128xf32>
    %542 = arith.mulf %541, %494 : vector<24x128xf32>
    %543 = arith.mulf %542, %494 : vector<24x128xf32>
    %cst_184 = arith.constant 3.000000e+00 : f32
    %544 = vector.broadcast %cst_184 : f32 to vector<24x128xf32>
    %545 = arith.mulf %544, %487 : vector<24x128xf32>
    %546 = arith.mulf %545, %498 : vector<24x128xf32>
    %547 = arith.mulf %546, %494 : vector<24x128xf32>
    %548 = arith.addf %543, %547 : vector<24x128xf32>
    %549 = vector.extract_strided_slice %475 {offsets = [0, 1536], sizes = [24, 128], strides = [1, 1]} : vector<24x1664xf32> to vector<24x128xf32>
    %550 = arith.mulf %484, %549 : vector<24x128xf32>
    %551 = arith.addf %548, %550 : vector<24x128xf32>
    %c0_185 = arith.constant 0 : index
    %c1536_186 = arith.constant 1536 : index
    %552 = vector.load %arg7[%c0_185, %c1536_186] : memref<24x1664xf32, #tpu.memory_space<vmem>>, vector<24x128xf32>
    tpu.vector_store %arg7[%c0_185, %c1536_186], %551 {strides = array<i32>} : memref<24x1664xf32, #tpu.memory_space<vmem>>, vector<24x128xf32>,
    %553 = arith.mulf %487, %493 : vector<24x128xf32>
    %554 = arith.mulf %553, %493 : vector<24x128xf32>
    %555 = arith.mulf %484, %496 : vector<24x128xf32>
    %556 = arith.addf %554, %555 : vector<24x128xf32>
    %c0_187 = arith.constant 0 : index
    %c512_188 = arith.constant 512 : index
    %557 = vector.load %arg7[%c0_187, %c512_188] : memref<24x1664xf32, #tpu.memory_space<vmem>>, vector<24x128xf32>
    tpu.vector_store %arg7[%c0_187, %c512_188], %556 {strides = array<i32>} : memref<24x1664xf32, #tpu.memory_space<vmem>>, vector<24x128xf32>,
    %558 = arith.mulf %487, %493 : vector<24x128xf32>
    %559 = arith.mulf %558, %494 : vector<24x128xf32>
    %560 = arith.mulf %484, %497 : vector<24x128xf32>
    %561 = arith.addf %559, %560 : vector<24x128xf32>
    %c0_189 = arith.constant 0 : index
    %c640_190 = arith.constant 640 : index
    %562 = vector.load %arg7[%c0_189, %c640_190] : memref<24x1664xf32, #tpu.memory_space<vmem>>, vector<24x128xf32>
    tpu.vector_store %arg7[%c0_189, %c640_190], %561 {strides = array<i32>} : memref<24x1664xf32, #tpu.memory_space<vmem>>, vector<24x128xf32>,
    %563 = arith.mulf %487, %494 : vector<24x128xf32>
    %564 = arith.mulf %563, %494 : vector<24x128xf32>
    %565 = arith.mulf %484, %498 : vector<24x128xf32>
    %566 = arith.addf %564, %565 : vector<24x128xf32>
    %c0_191 = arith.constant 0 : index
    %c768_192 = arith.constant 768 : index
    %567 = vector.load %arg7[%c0_191, %c768_192] : memref<24x1664xf32, #tpu.memory_space<vmem>>, vector<24x128xf32>
    tpu.vector_store %arg7[%c0_191, %c768_192], %566 {strides = array<i32>} : memref<24x1664xf32, #tpu.memory_space<vmem>>, vector<24x128xf32>,
    %568 = arith.mulf %487, %493 : vector<24x128xf32>
    %569 = arith.mulf %568, %495 : vector<24x128xf32>
    %570 = arith.mulf %484, %499 : vector<24x128xf32>
    %571 = arith.addf %569, %570 : vector<24x128xf32>
    %c0_193 = arith.constant 0 : index
    %c896_194 = arith.constant 896 : index
    %572 = vector.load %arg7[%c0_193, %c896_194] : memref<24x1664xf32, #tpu.memory_space<vmem>>, vector<24x128xf32>
    tpu.vector_store %arg7[%c0_193, %c896_194], %571 {strides = array<i32>} : memref<24x1664xf32, #tpu.memory_space<vmem>>, vector<24x128xf32>,
    %573 = arith.mulf %487, %494 : vector<24x128xf32>
    %574 = arith.mulf %573, %495 : vector<24x128xf32>
    %575 = arith.mulf %484, %500 : vector<24x128xf32>
    %576 = arith.addf %574, %575 : vector<24x128xf32>
    %c0_195 = arith.constant 0 : index
    %c1024_196 = arith.constant 1024 : index
    %577 = vector.load %arg7[%c0_195, %c1024_196] : memref<24x1664xf32, #tpu.memory_space<vmem>>, vector<24x128xf32>
    tpu.vector_store %arg7[%c0_195, %c1024_196], %576 {strides = array<i32>} : memref<24x1664xf32, #tpu.memory_space<vmem>>, vector<24x128xf32>,
    %578 = arith.mulf %484, %493 : vector<24x128xf32>
    %c0_197 = arith.constant 0 : index
    %c128_198 = arith.constant 128 : index
    %579 = vector.load %arg7[%c0_197, %c128_198] : memref<24x1664xf32, #tpu.memory_space<vmem>>, vector<24x128xf32>
    tpu.vector_store %arg7[%c0_197, %c128_198], %578 {strides = array<i32>} : memref<24x1664xf32, #tpu.memory_space<vmem>>, vector<24x128xf32>,
    %580 = arith.mulf %484, %494 : vector<24x128xf32>
    %c0_199 = arith.constant 0 : index
    %c256_200 = arith.constant 256 : index
    %581 = vector.load %arg7[%c0_199, %c256_200] : memref<24x1664xf32, #tpu.memory_space<vmem>>, vector<24x128xf32>
    tpu.vector_store %arg7[%c0_199, %c256_200], %580 {strides = array<i32>} : memref<24x1664xf32, #tpu.memory_space<vmem>>, vector<24x128xf32>,
    %582 = arith.mulf %484, %495 : vector<24x128xf32>
    %c0_201 = arith.constant 0 : index
    %c384_202 = arith.constant 384 : index
    %583 = vector.load %arg7[%c0_201, %c384_202] : memref<24x1664xf32, #tpu.memory_space<vmem>>, vector<24x128xf32>
    tpu.vector_store %arg7[%c0_201, %c384_202], %582 {strides = array<i32>} : memref<24x1664xf32, #tpu.memory_space<vmem>>, vector<24x128xf32>,
    %c0_203 = arith.constant 0 : index
    %c0_204 = arith.constant 0 : index
    %584 = vector.load %arg7[%c0_203, %c0_204] : memref<24x1664xf32, #tpu.memory_space<vmem>>, vector<24x128xf32>
    tpu.vector_store %arg7[%c0_203, %c0_204], %481 {strides = array<i32>} : memref<24x1664xf32, #tpu.memory_space<vmem>>, vector<24x128xf32>,
    %c5 = arith.constant 5 : index
    %c0_205 = arith.constant 0 : index
    %c0_206 = arith.constant 0 : index
    %585 = vector.load %arg3[%c5, %c0_205, %c0_206] : memref<9x24x24xf32, #tpu.memory_space<vmem>>, vector<1x24x24xf32>
    %586 = vector.shape_cast %585 : vector<1x24x24xf32> to vector<24x24xf32>
    %c0_207 = arith.constant 0 : index
    %c0_208 = arith.constant 0 : index
    %587 = vector.load %arg7[%c0_207, %c0_208] : memref<24x1664xf32, #tpu.memory_space<vmem>>, vector<24x1664xf32>
    %cst_209 = arith.constant dense<0.000000e+00> : vector<24x1664xf32>
    %588 = tpu.matmul %586, %587, %cst_209 {dimension_numbers = #tpu.dot_dimension_numbers<[1], [0], [0], [1], [0, 0, 1, 1], [], []>} : vector<24x24xf32>, vector<24x1664xf32>, vector<24x1664xf32> -> vector<24x1664xf32>
    %589 = vector.extract_strided_slice %588 {offsets = [0, 0], sizes = [24, 128], strides = [1, 1]} : vector<24x1664xf32> to vector<24x128xf32>
    %c5_210 = arith.constant 5 : index
    %c0_211 = arith.constant 0 : index
    %c0_212 = arith.constant 0 : index
    %590 = vector.load %arg4[%c5_210, %c0_211, %c0_212] : memref<9x24x1xf32, #tpu.memory_space<vmem>>, vector<1x24x1xf32>
    %591 = vector.shape_cast %590 : vector<1x24x1xf32> to vector<24x1xf32>
    %592 = vector.broadcast %591 : vector<24x1xf32> to vector<24x128xf32>
    %593 = arith.addf %589, %592 : vector<24x128xf32>
    %594 = math.tanh %593 : vector<24x128xf32>
    %595 = arith.mulf %594, %594 : vector<24x128xf32>
    %cst_213 = arith.constant 1.000000e+00 : f32
    %596 = vector.broadcast %cst_213 : f32 to vector<24x128xf32>
    %597 = arith.subf %596, %595 : vector<24x128xf32>
    %cst_214 = arith.constant -2.000000e+00 : f32
    %598 = vector.broadcast %cst_214 : f32 to vector<24x128xf32>
    %599 = arith.mulf %598, %594 : vector<24x128xf32>
    %600 = arith.mulf %599, %597 : vector<24x128xf32>
    %601 = arith.mulf %597, %597 : vector<24x128xf32>
    %602 = arith.mulf %594, %600 : vector<24x128xf32>
    %603 = arith.addf %601, %602 : vector<24x128xf32>
    %cst_215 = arith.constant -2.000000e+00 : f32
    %604 = vector.broadcast %cst_215 : f32 to vector<24x128xf32>
    %605 = arith.mulf %604, %603 : vector<24x128xf32>
    %606 = vector.extract_strided_slice %588 {offsets = [0, 128], sizes = [24, 128], strides = [1, 1]} : vector<24x1664xf32> to vector<24x128xf32>
    %607 = vector.extract_strided_slice %588 {offsets = [0, 256], sizes = [24, 128], strides = [1, 1]} : vector<24x1664xf32> to vector<24x128xf32>
    %608 = vector.extract_strided_slice %588 {offsets = [0, 384], sizes = [24, 128], strides = [1, 1]} : vector<24x1664xf32> to vector<24x128xf32>
    %609 = vector.extract_strided_slice %588 {offsets = [0, 512], sizes = [24, 128], strides = [1, 1]} : vector<24x1664xf32> to vector<24x128xf32>
    %610 = vector.extract_strided_slice %588 {offsets = [0, 640], sizes = [24, 128], strides = [1, 1]} : vector<24x1664xf32> to vector<24x128xf32>
    %611 = vector.extract_strided_slice %588 {offsets = [0, 768], sizes = [24, 128], strides = [1, 1]} : vector<24x1664xf32> to vector<24x128xf32>
    %612 = vector.extract_strided_slice %588 {offsets = [0, 896], sizes = [24, 128], strides = [1, 1]} : vector<24x1664xf32> to vector<24x128xf32>
    %613 = vector.extract_strided_slice %588 {offsets = [0, 1024], sizes = [24, 128], strides = [1, 1]} : vector<24x1664xf32> to vector<24x128xf32>
    %614 = arith.mulf %605, %606 : vector<24x128xf32>
    %615 = arith.mulf %614, %606 : vector<24x128xf32>
    %616 = arith.mulf %615, %606 : vector<24x128xf32>
    %cst_216 = arith.constant 3.000000e+00 : f32
    %617 = vector.broadcast %cst_216 : f32 to vector<24x128xf32>
    %618 = arith.mulf %617, %600 : vector<24x128xf32>
    %619 = arith.mulf %618, %609 : vector<24x128xf32>
    %620 = arith.mulf %619, %606 : vector<24x128xf32>
    %621 = arith.addf %616, %620 : vector<24x128xf32>
    %622 = vector.extract_strided_slice %588 {offsets = [0, 1152], sizes = [24, 128], strides = [1, 1]} : vector<24x1664xf32> to vector<24x128xf32>
    %623 = arith.mulf %597, %622 : vector<24x128xf32>
    %624 = arith.addf %621, %623 : vector<24x128xf32>
    %c0_217 = arith.constant 0 : index
    %c1152_218 = arith.constant 1152 : index
    %625 = vector.load %arg7[%c0_217, %c1152_218] : memref<24x1664xf32, #tpu.memory_space<vmem>>, vector<24x128xf32>
    tpu.vector_store %arg7[%c0_217, %c1152_218], %624 {strides = array<i32>} : memref<24x1664xf32, #tpu.memory_space<vmem>>, vector<24x128xf32>,
    %626 = arith.mulf %605, %606 : vector<24x128xf32>
    %627 = arith.mulf %626, %606 : vector<24x128xf32>
    %628 = arith.mulf %627, %607 : vector<24x128xf32>
    %629 = arith.mulf %609, %607 : vector<24x128xf32>
    %cst_219 = arith.constant 2.000000e+00 : f32
    %630 = vector.broadcast %cst_219 : f32 to vector<24x128xf32>
    %631 = arith.mulf %630, %610 : vector<24x128xf32>
    %632 = arith.mulf %631, %606 : vector<24x128xf32>
    %633 = arith.addf %629, %632 : vector<24x128xf32>
    %634 = arith.mulf %600, %633 : vector<24x128xf32>
    %635 = arith.addf %628, %634 : vector<24x128xf32>
    %636 = vector.extract_strided_slice %588 {offsets = [0, 1280], sizes = [24, 128], strides = [1, 1]} : vector<24x1664xf32> to vector<24x128xf32>
    %637 = arith.mulf %597, %636 : vector<24x128xf32>
    %638 = arith.addf %635, %637 : vector<24x128xf32>
    %c0_220 = arith.constant 0 : index
    %c1280_221 = arith.constant 1280 : index
    %639 = vector.load %arg7[%c0_220, %c1280_221] : memref<24x1664xf32, #tpu.memory_space<vmem>>, vector<24x128xf32>
    tpu.vector_store %arg7[%c0_220, %c1280_221], %638 {strides = array<i32>} : memref<24x1664xf32, #tpu.memory_space<vmem>>, vector<24x128xf32>,
    %640 = arith.mulf %605, %606 : vector<24x128xf32>
    %641 = arith.mulf %640, %607 : vector<24x128xf32>
    %642 = arith.mulf %641, %607 : vector<24x128xf32>
    %643 = arith.mulf %611, %606 : vector<24x128xf32>
    %cst_222 = arith.constant 2.000000e+00 : f32
    %644 = vector.broadcast %cst_222 : f32 to vector<24x128xf32>
    %645 = arith.mulf %644, %610 : vector<24x128xf32>
    %646 = arith.mulf %645, %607 : vector<24x128xf32>
    %647 = arith.addf %643, %646 : vector<24x128xf32>
    %648 = arith.mulf %600, %647 : vector<24x128xf32>
    %649 = arith.addf %642, %648 : vector<24x128xf32>
    %650 = vector.extract_strided_slice %588 {offsets = [0, 1408], sizes = [24, 128], strides = [1, 1]} : vector<24x1664xf32> to vector<24x128xf32>
    %651 = arith.mulf %597, %650 : vector<24x128xf32>
    %652 = arith.addf %649, %651 : vector<24x128xf32>
    %c0_223 = arith.constant 0 : index
    %c1408_224 = arith.constant 1408 : index
    %653 = vector.load %arg7[%c0_223, %c1408_224] : memref<24x1664xf32, #tpu.memory_space<vmem>>, vector<24x128xf32>
    tpu.vector_store %arg7[%c0_223, %c1408_224], %652 {strides = array<i32>} : memref<24x1664xf32, #tpu.memory_space<vmem>>, vector<24x128xf32>,
    %654 = arith.mulf %605, %607 : vector<24x128xf32>
    %655 = arith.mulf %654, %607 : vector<24x128xf32>
    %656 = arith.mulf %655, %607 : vector<24x128xf32>
    %cst_225 = arith.constant 3.000000e+00 : f32
    %657 = vector.broadcast %cst_225 : f32 to vector<24x128xf32>
    %658 = arith.mulf %657, %600 : vector<24x128xf32>
    %659 = arith.mulf %658, %611 : vector<24x128xf32>
    %660 = arith.mulf %659, %607 : vector<24x128xf32>
    %661 = arith.addf %656, %660 : vector<24x128xf32>
    %662 = vector.extract_strided_slice %588 {offsets = [0, 1536], sizes = [24, 128], strides = [1, 1]} : vector<24x1664xf32> to vector<24x128xf32>
    %663 = arith.mulf %597, %662 : vector<24x128xf32>
    %664 = arith.addf %661, %663 : vector<24x128xf32>
    %c0_226 = arith.constant 0 : index
    %c1536_227 = arith.constant 1536 : index
    %665 = vector.load %arg7[%c0_226, %c1536_227] : memref<24x1664xf32, #tpu.memory_space<vmem>>, vector<24x128xf32>
    tpu.vector_store %arg7[%c0_226, %c1536_227], %664 {strides = array<i32>} : memref<24x1664xf32, #tpu.memory_space<vmem>>, vector<24x128xf32>,
    %666 = arith.mulf %600, %606 : vector<24x128xf32>
    %667 = arith.mulf %666, %606 : vector<24x128xf32>
    %668 = arith.mulf %597, %609 : vector<24x128xf32>
    %669 = arith.addf %667, %668 : vector<24x128xf32>
    %c0_228 = arith.constant 0 : index
    %c512_229 = arith.constant 512 : index
    %670 = vector.load %arg7[%c0_228, %c512_229] : memref<24x1664xf32, #tpu.memory_space<vmem>>, vector<24x128xf32>
    tpu.vector_store %arg7[%c0_228, %c512_229], %669 {strides = array<i32>} : memref<24x1664xf32, #tpu.memory_space<vmem>>, vector<24x128xf32>,
    %671 = arith.mulf %600, %606 : vector<24x128xf32>
    %672 = arith.mulf %671, %607 : vector<24x128xf32>
    %673 = arith.mulf %597, %610 : vector<24x128xf32>
    %674 = arith.addf %672, %673 : vector<24x128xf32>
    %c0_230 = arith.constant 0 : index
    %c640_231 = arith.constant 640 : index
    %675 = vector.load %arg7[%c0_230, %c640_231] : memref<24x1664xf32, #tpu.memory_space<vmem>>, vector<24x128xf32>
    tpu.vector_store %arg7[%c0_230, %c640_231], %674 {strides = array<i32>} : memref<24x1664xf32, #tpu.memory_space<vmem>>, vector<24x128xf32>,
    %676 = arith.mulf %600, %607 : vector<24x128xf32>
    %677 = arith.mulf %676, %607 : vector<24x128xf32>
    %678 = arith.mulf %597, %611 : vector<24x128xf32>
    %679 = arith.addf %677, %678 : vector<24x128xf32>
    %c0_232 = arith.constant 0 : index
    %c768_233 = arith.constant 768 : index
    %680 = vector.load %arg7[%c0_232, %c768_233] : memref<24x1664xf32, #tpu.memory_space<vmem>>, vector<24x128xf32>
    tpu.vector_store %arg7[%c0_232, %c768_233], %679 {strides = array<i32>} : memref<24x1664xf32, #tpu.memory_space<vmem>>, vector<24x128xf32>,
    %681 = arith.mulf %600, %606 : vector<24x128xf32>
    %682 = arith.mulf %681, %608 : vector<24x128xf32>
    %683 = arith.mulf %597, %612 : vector<24x128xf32>
    %684 = arith.addf %682, %683 : vector<24x128xf32>
    %c0_234 = arith.constant 0 : index
    %c896_235 = arith.constant 896 : index
    %685 = vector.load %arg7[%c0_234, %c896_235] : memref<24x1664xf32, #tpu.memory_space<vmem>>, vector<24x128xf32>
    tpu.vector_store %arg7[%c0_234, %c896_235], %684 {strides = array<i32>} : memref<24x1664xf32, #tpu.memory_space<vmem>>, vector<24x128xf32>,
    %686 = arith.mulf %600, %607 : vector<24x128xf32>
    %687 = arith.mulf %686, %608 : vector<24x128xf32>
    %688 = arith.mulf %597, %613 : vector<24x128xf32>
    %689 = arith.addf %687, %688 : vector<24x128xf32>
    %c0_236 = arith.constant 0 : index
    %c1024_237 = arith.constant 1024 : index
    %690 = vector.load %arg7[%c0_236, %c1024_237] : memref<24x1664xf32, #tpu.memory_space<vmem>>, vector<24x128xf32>
    tpu.vector_store %arg7[%c0_236, %c1024_237], %689 {strides = array<i32>} : memref<24x1664xf32, #tpu.memory_space<vmem>>, vector<24x128xf32>,
    %691 = arith.mulf %597, %606 : vector<24x128xf32>
    %c0_238 = arith.constant 0 : index
    %c128_239 = arith.constant 128 : index
    %692 = vector.load %arg7[%c0_238, %c128_239] : memref<24x1664xf32, #tpu.memory_space<vmem>>, vector<24x128xf32>
    tpu.vector_store %arg7[%c0_238, %c128_239], %691 {strides = array<i32>} : memref<24x1664xf32, #tpu.memory_space<vmem>>, vector<24x128xf32>,
    %693 = arith.mulf %597, %607 : vector<24x128xf32>
    %c0_240 = arith.constant 0 : index
    %c256_241 = arith.constant 256 : index
    %694 = vector.load %arg7[%c0_240, %c256_241] : memref<24x1664xf32, #tpu.memory_space<vmem>>, vector<24x128xf32>
    tpu.vector_store %arg7[%c0_240, %c256_241], %693 {strides = array<i32>} : memref<24x1664xf32, #tpu.memory_space<vmem>>, vector<24x128xf32>,
    %695 = arith.mulf %597, %608 : vector<24x128xf32>
    %c0_242 = arith.constant 0 : index
    %c384_243 = arith.constant 384 : index
    %696 = vector.load %arg7[%c0_242, %c384_243] : memref<24x1664xf32, #tpu.memory_space<vmem>>, vector<24x128xf32>
    tpu.vector_store %arg7[%c0_242, %c384_243], %695 {strides = array<i32>} : memref<24x1664xf32, #tpu.memory_space<vmem>>, vector<24x128xf32>,
    %c0_244 = arith.constant 0 : index
    %c0_245 = arith.constant 0 : index
    %697 = vector.load %arg7[%c0_244, %c0_245] : memref<24x1664xf32, #tpu.memory_space<vmem>>, vector<24x128xf32>
    tpu.vector_store %arg7[%c0_244, %c0_245], %594 {strides = array<i32>} : memref<24x1664xf32, #tpu.memory_space<vmem>>, vector<24x128xf32>,
    %c6 = arith.constant 6 : index
    %c0_246 = arith.constant 0 : index
    %c0_247 = arith.constant 0 : index
    %698 = vector.load %arg3[%c6, %c0_246, %c0_247] : memref<9x24x24xf32, #tpu.memory_space<vmem>>, vector<1x24x24xf32>
    %699 = vector.shape_cast %698 : vector<1x24x24xf32> to vector<24x24xf32>
    %c0_248 = arith.constant 0 : index
    %c0_249 = arith.constant 0 : index
    %700 = vector.load %arg7[%c0_248, %c0_249] : memref<24x1664xf32, #tpu.memory_space<vmem>>, vector<24x1664xf32>
    %cst_250 = arith.constant dense<0.000000e+00> : vector<24x1664xf32>
    %701 = tpu.matmul %699, %700, %cst_250 {dimension_numbers = #tpu.dot_dimension_numbers<[1], [0], [0], [1], [0, 0, 1, 1], [], []>} : vector<24x24xf32>, vector<24x1664xf32>, vector<24x1664xf32> -> vector<24x1664xf32>
    %702 = vector.extract_strided_slice %701 {offsets = [0, 0], sizes = [24, 128], strides = [1, 1]} : vector<24x1664xf32> to vector<24x128xf32>
    %c6_251 = arith.constant 6 : index
    %c0_252 = arith.constant 0 : index
    %c0_253 = arith.constant 0 : index
    %703 = vector.load %arg4[%c6_251, %c0_252, %c0_253] : memref<9x24x1xf32, #tpu.memory_space<vmem>>, vector<1x24x1xf32>
    %704 = vector.shape_cast %703 : vector<1x24x1xf32> to vector<24x1xf32>
    %705 = vector.broadcast %704 : vector<24x1xf32> to vector<24x128xf32>
    %706 = arith.addf %702, %705 : vector<24x128xf32>
    %707 = math.tanh %706 : vector<24x128xf32>
    %708 = arith.mulf %707, %707 : vector<24x128xf32>
    %cst_254 = arith.constant 1.000000e+00 : f32
    %709 = vector.broadcast %cst_254 : f32 to vector<24x128xf32>
    %710 = arith.subf %709, %708 : vector<24x128xf32>
    %cst_255 = arith.constant -2.000000e+00 : f32
    %711 = vector.broadcast %cst_255 : f32 to vector<24x128xf32>
    %712 = arith.mulf %711, %707 : vector<24x128xf32>
    %713 = arith.mulf %712, %710 : vector<24x128xf32>
    %714 = arith.mulf %710, %710 : vector<24x128xf32>
    %715 = arith.mulf %707, %713 : vector<24x128xf32>
    %716 = arith.addf %714, %715 : vector<24x128xf32>
    %cst_256 = arith.constant -2.000000e+00 : f32
    %717 = vector.broadcast %cst_256 : f32 to vector<24x128xf32>
    %718 = arith.mulf %717, %716 : vector<24x128xf32>
    %719 = vector.extract_strided_slice %701 {offsets = [0, 128], sizes = [24, 128], strides = [1, 1]} : vector<24x1664xf32> to vector<24x128xf32>
    %720 = vector.extract_strided_slice %701 {offsets = [0, 256], sizes = [24, 128], strides = [1, 1]} : vector<24x1664xf32> to vector<24x128xf32>
    %721 = vector.extract_strided_slice %701 {offsets = [0, 384], sizes = [24, 128], strides = [1, 1]} : vector<24x1664xf32> to vector<24x128xf32>
    %722 = vector.extract_strided_slice %701 {offsets = [0, 512], sizes = [24, 128], strides = [1, 1]} : vector<24x1664xf32> to vector<24x128xf32>
    %723 = vector.extract_strided_slice %701 {offsets = [0, 640], sizes = [24, 128], strides = [1, 1]} : vector<24x1664xf32> to vector<24x128xf32>
    %724 = vector.extract_strided_slice %701 {offsets = [0, 768], sizes = [24, 128], strides = [1, 1]} : vector<24x1664xf32> to vector<24x128xf32>
    %725 = vector.extract_strided_slice %701 {offsets = [0, 896], sizes = [24, 128], strides = [1, 1]} : vector<24x1664xf32> to vector<24x128xf32>
    %726 = vector.extract_strided_slice %701 {offsets = [0, 1024], sizes = [24, 128], strides = [1, 1]} : vector<24x1664xf32> to vector<24x128xf32>
    %727 = arith.mulf %718, %719 : vector<24x128xf32>
    %728 = arith.mulf %727, %719 : vector<24x128xf32>
    %729 = arith.mulf %728, %719 : vector<24x128xf32>
    %cst_257 = arith.constant 3.000000e+00 : f32
    %730 = vector.broadcast %cst_257 : f32 to vector<24x128xf32>
    %731 = arith.mulf %730, %713 : vector<24x128xf32>
    %732 = arith.mulf %731, %722 : vector<24x128xf32>
    %733 = arith.mulf %732, %719 : vector<24x128xf32>
    %734 = arith.addf %729, %733 : vector<24x128xf32>
    %735 = vector.extract_strided_slice %701 {offsets = [0, 1152], sizes = [24, 128], strides = [1, 1]} : vector<24x1664xf32> to vector<24x128xf32>
    %736 = arith.mulf %710, %735 : vector<24x128xf32>
    %737 = arith.addf %734, %736 : vector<24x128xf32>
    %c0_258 = arith.constant 0 : index
    %c1152_259 = arith.constant 1152 : index
    %738 = vector.load %arg7[%c0_258, %c1152_259] : memref<24x1664xf32, #tpu.memory_space<vmem>>, vector<24x128xf32>
    tpu.vector_store %arg7[%c0_258, %c1152_259], %737 {strides = array<i32>} : memref<24x1664xf32, #tpu.memory_space<vmem>>, vector<24x128xf32>,
    %739 = arith.mulf %718, %719 : vector<24x128xf32>
    %740 = arith.mulf %739, %719 : vector<24x128xf32>
    %741 = arith.mulf %740, %720 : vector<24x128xf32>
    %742 = arith.mulf %722, %720 : vector<24x128xf32>
    %cst_260 = arith.constant 2.000000e+00 : f32
    %743 = vector.broadcast %cst_260 : f32 to vector<24x128xf32>
    %744 = arith.mulf %743, %723 : vector<24x128xf32>
    %745 = arith.mulf %744, %719 : vector<24x128xf32>
    %746 = arith.addf %742, %745 : vector<24x128xf32>
    %747 = arith.mulf %713, %746 : vector<24x128xf32>
    %748 = arith.addf %741, %747 : vector<24x128xf32>
    %749 = vector.extract_strided_slice %701 {offsets = [0, 1280], sizes = [24, 128], strides = [1, 1]} : vector<24x1664xf32> to vector<24x128xf32>
    %750 = arith.mulf %710, %749 : vector<24x128xf32>
    %751 = arith.addf %748, %750 : vector<24x128xf32>
    %c0_261 = arith.constant 0 : index
    %c1280_262 = arith.constant 1280 : index
    %752 = vector.load %arg7[%c0_261, %c1280_262] : memref<24x1664xf32, #tpu.memory_space<vmem>>, vector<24x128xf32>
    tpu.vector_store %arg7[%c0_261, %c1280_262], %751 {strides = array<i32>} : memref<24x1664xf32, #tpu.memory_space<vmem>>, vector<24x128xf32>,
    %753 = arith.mulf %718, %719 : vector<24x128xf32>
    %754 = arith.mulf %753, %720 : vector<24x128xf32>
    %755 = arith.mulf %754, %720 : vector<24x128xf32>
    %756 = arith.mulf %724, %719 : vector<24x128xf32>
    %cst_263 = arith.constant 2.000000e+00 : f32
    %757 = vector.broadcast %cst_263 : f32 to vector<24x128xf32>
    %758 = arith.mulf %757, %723 : vector<24x128xf32>
    %759 = arith.mulf %758, %720 : vector<24x128xf32>
    %760 = arith.addf %756, %759 : vector<24x128xf32>
    %761 = arith.mulf %713, %760 : vector<24x128xf32>
    %762 = arith.addf %755, %761 : vector<24x128xf32>
    %763 = vector.extract_strided_slice %701 {offsets = [0, 1408], sizes = [24, 128], strides = [1, 1]} : vector<24x1664xf32> to vector<24x128xf32>
    %764 = arith.mulf %710, %763 : vector<24x128xf32>
    %765 = arith.addf %762, %764 : vector<24x128xf32>
    %c0_264 = arith.constant 0 : index
    %c1408_265 = arith.constant 1408 : index
    %766 = vector.load %arg7[%c0_264, %c1408_265] : memref<24x1664xf32, #tpu.memory_space<vmem>>, vector<24x128xf32>
    tpu.vector_store %arg7[%c0_264, %c1408_265], %765 {strides = array<i32>} : memref<24x1664xf32, #tpu.memory_space<vmem>>, vector<24x128xf32>,
    %767 = arith.mulf %718, %720 : vector<24x128xf32>
    %768 = arith.mulf %767, %720 : vector<24x128xf32>
    %769 = arith.mulf %768, %720 : vector<24x128xf32>
    %cst_266 = arith.constant 3.000000e+00 : f32
    %770 = vector.broadcast %cst_266 : f32 to vector<24x128xf32>
    %771 = arith.mulf %770, %713 : vector<24x128xf32>
    %772 = arith.mulf %771, %724 : vector<24x128xf32>
    %773 = arith.mulf %772, %720 : vector<24x128xf32>
    %774 = arith.addf %769, %773 : vector<24x128xf32>
    %775 = vector.extract_strided_slice %701 {offsets = [0, 1536], sizes = [24, 128], strides = [1, 1]} : vector<24x1664xf32> to vector<24x128xf32>
    %776 = arith.mulf %710, %775 : vector<24x128xf32>
    %777 = arith.addf %774, %776 : vector<24x128xf32>
    %c0_267 = arith.constant 0 : index
    %c1536_268 = arith.constant 1536 : index
    %778 = vector.load %arg7[%c0_267, %c1536_268] : memref<24x1664xf32, #tpu.memory_space<vmem>>, vector<24x128xf32>
    tpu.vector_store %arg7[%c0_267, %c1536_268], %777 {strides = array<i32>} : memref<24x1664xf32, #tpu.memory_space<vmem>>, vector<24x128xf32>,
    %779 = arith.mulf %713, %719 : vector<24x128xf32>
    %780 = arith.mulf %779, %719 : vector<24x128xf32>
    %781 = arith.mulf %710, %722 : vector<24x128xf32>
    %782 = arith.addf %780, %781 : vector<24x128xf32>
    %c0_269 = arith.constant 0 : index
    %c512_270 = arith.constant 512 : index
    %783 = vector.load %arg7[%c0_269, %c512_270] : memref<24x1664xf32, #tpu.memory_space<vmem>>, vector<24x128xf32>
    tpu.vector_store %arg7[%c0_269, %c512_270], %782 {strides = array<i32>} : memref<24x1664xf32, #tpu.memory_space<vmem>>, vector<24x128xf32>,
    %784 = arith.mulf %713, %719 : vector<24x128xf32>
    %785 = arith.mulf %784, %720 : vector<24x128xf32>
    %786 = arith.mulf %710, %723 : vector<24x128xf32>
    %787 = arith.addf %785, %786 : vector<24x128xf32>
    %c0_271 = arith.constant 0 : index
    %c640_272 = arith.constant 640 : index
    %788 = vector.load %arg7[%c0_271, %c640_272] : memref<24x1664xf32, #tpu.memory_space<vmem>>, vector<24x128xf32>
    tpu.vector_store %arg7[%c0_271, %c640_272], %787 {strides = array<i32>} : memref<24x1664xf32, #tpu.memory_space<vmem>>, vector<24x128xf32>,
    %789 = arith.mulf %713, %720 : vector<24x128xf32>
    %790 = arith.mulf %789, %720 : vector<24x128xf32>
    %791 = arith.mulf %710, %724 : vector<24x128xf32>
    %792 = arith.addf %790, %791 : vector<24x128xf32>
    %c0_273 = arith.constant 0 : index
    %c768_274 = arith.constant 768 : index
    %793 = vector.load %arg7[%c0_273, %c768_274] : memref<24x1664xf32, #tpu.memory_space<vmem>>, vector<24x128xf32>
    tpu.vector_store %arg7[%c0_273, %c768_274], %792 {strides = array<i32>} : memref<24x1664xf32, #tpu.memory_space<vmem>>, vector<24x128xf32>,
    %794 = arith.mulf %713, %719 : vector<24x128xf32>
    %795 = arith.mulf %794, %721 : vector<24x128xf32>
    %796 = arith.mulf %710, %725 : vector<24x128xf32>
    %797 = arith.addf %795, %796 : vector<24x128xf32>
    %c0_275 = arith.constant 0 : index
    %c896_276 = arith.constant 896 : index
    %798 = vector.load %arg7[%c0_275, %c896_276] : memref<24x1664xf32, #tpu.memory_space<vmem>>, vector<24x128xf32>
    tpu.vector_store %arg7[%c0_275, %c896_276], %797 {strides = array<i32>} : memref<24x1664xf32, #tpu.memory_space<vmem>>, vector<24x128xf32>,
    %799 = arith.mulf %713, %720 : vector<24x128xf32>
    %800 = arith.mulf %799, %721 : vector<24x128xf32>
    %801 = arith.mulf %710, %726 : vector<24x128xf32>
    %802 = arith.addf %800, %801 : vector<24x128xf32>
    %c0_277 = arith.constant 0 : index
    %c1024_278 = arith.constant 1024 : index
    %803 = vector.load %arg7[%c0_277, %c1024_278] : memref<24x1664xf32, #tpu.memory_space<vmem>>, vector<24x128xf32>
    tpu.vector_store %arg7[%c0_277, %c1024_278], %802 {strides = array<i32>} : memref<24x1664xf32, #tpu.memory_space<vmem>>, vector<24x128xf32>,
    %804 = arith.mulf %710, %719 : vector<24x128xf32>
    %c0_279 = arith.constant 0 : index
    %c128_280 = arith.constant 128 : index
    %805 = vector.load %arg7[%c0_279, %c128_280] : memref<24x1664xf32, #tpu.memory_space<vmem>>, vector<24x128xf32>
    tpu.vector_store %arg7[%c0_279, %c128_280], %804 {strides = array<i32>} : memref<24x1664xf32, #tpu.memory_space<vmem>>, vector<24x128xf32>,
    %806 = arith.mulf %710, %720 : vector<24x128xf32>
    %c0_281 = arith.constant 0 : index
    %c256_282 = arith.constant 256 : index
    %807 = vector.load %arg7[%c0_281, %c256_282] : memref<24x1664xf32, #tpu.memory_space<vmem>>, vector<24x128xf32>
    tpu.vector_store %arg7[%c0_281, %c256_282], %806 {strides = array<i32>} : memref<24x1664xf32, #tpu.memory_space<vmem>>, vector<24x128xf32>,
    %808 = arith.mulf %710, %721 : vector<24x128xf32>
    %c0_283 = arith.constant 0 : index
    %c384_284 = arith.constant 384 : index
    %809 = vector.load %arg7[%c0_283, %c384_284] : memref<24x1664xf32, #tpu.memory_space<vmem>>, vector<24x128xf32>
    tpu.vector_store %arg7[%c0_283, %c384_284], %808 {strides = array<i32>} : memref<24x1664xf32, #tpu.memory_space<vmem>>, vector<24x128xf32>,
    %c0_285 = arith.constant 0 : index
    %c0_286 = arith.constant 0 : index
    %810 = vector.load %arg7[%c0_285, %c0_286] : memref<24x1664xf32, #tpu.memory_space<vmem>>, vector<24x128xf32>
    tpu.vector_store %arg7[%c0_285, %c0_286], %707 {strides = array<i32>} : memref<24x1664xf32, #tpu.memory_space<vmem>>, vector<24x128xf32>,
    %c7 = arith.constant 7 : index
    %c0_287 = arith.constant 0 : index
    %c0_288 = arith.constant 0 : index
    %811 = vector.load %arg3[%c7, %c0_287, %c0_288] : memref<9x24x24xf32, #tpu.memory_space<vmem>>, vector<1x24x24xf32>
    %812 = vector.shape_cast %811 : vector<1x24x24xf32> to vector<24x24xf32>
    %c0_289 = arith.constant 0 : index
    %c0_290 = arith.constant 0 : index
    %813 = vector.load %arg7[%c0_289, %c0_290] : memref<24x1664xf32, #tpu.memory_space<vmem>>, vector<24x1664xf32>
    %cst_291 = arith.constant dense<0.000000e+00> : vector<24x1664xf32>
    %814 = tpu.matmul %812, %813, %cst_291 {dimension_numbers = #tpu.dot_dimension_numbers<[1], [0], [0], [1], [0, 0, 1, 1], [], []>} : vector<24x24xf32>, vector<24x1664xf32>, vector<24x1664xf32> -> vector<24x1664xf32>
    %815 = vector.extract_strided_slice %814 {offsets = [0, 0], sizes = [24, 128], strides = [1, 1]} : vector<24x1664xf32> to vector<24x128xf32>
    %c7_292 = arith.constant 7 : index
    %c0_293 = arith.constant 0 : index
    %c0_294 = arith.constant 0 : index
    %816 = vector.load %arg4[%c7_292, %c0_293, %c0_294] : memref<9x24x1xf32, #tpu.memory_space<vmem>>, vector<1x24x1xf32>
    %817 = vector.shape_cast %816 : vector<1x24x1xf32> to vector<24x1xf32>
    %818 = vector.broadcast %817 : vector<24x1xf32> to vector<24x128xf32>
    %819 = arith.addf %815, %818 : vector<24x128xf32>
    %820 = math.tanh %819 : vector<24x128xf32>
    %821 = arith.mulf %820, %820 : vector<24x128xf32>
    %cst_295 = arith.constant 1.000000e+00 : f32
    %822 = vector.broadcast %cst_295 : f32 to vector<24x128xf32>
    %823 = arith.subf %822, %821 : vector<24x128xf32>
    %cst_296 = arith.constant -2.000000e+00 : f32
    %824 = vector.broadcast %cst_296 : f32 to vector<24x128xf32>
    %825 = arith.mulf %824, %820 : vector<24x128xf32>
    %826 = arith.mulf %825, %823 : vector<24x128xf32>
    %827 = arith.mulf %823, %823 : vector<24x128xf32>
    %828 = arith.mulf %820, %826 : vector<24x128xf32>
    %829 = arith.addf %827, %828 : vector<24x128xf32>
    %cst_297 = arith.constant -2.000000e+00 : f32
    %830 = vector.broadcast %cst_297 : f32 to vector<24x128xf32>
    %831 = arith.mulf %830, %829 : vector<24x128xf32>
    %832 = vector.extract_strided_slice %814 {offsets = [0, 128], sizes = [24, 128], strides = [1, 1]} : vector<24x1664xf32> to vector<24x128xf32>
    %833 = vector.extract_strided_slice %814 {offsets = [0, 256], sizes = [24, 128], strides = [1, 1]} : vector<24x1664xf32> to vector<24x128xf32>
    %834 = vector.extract_strided_slice %814 {offsets = [0, 384], sizes = [24, 128], strides = [1, 1]} : vector<24x1664xf32> to vector<24x128xf32>
    %835 = vector.extract_strided_slice %814 {offsets = [0, 512], sizes = [24, 128], strides = [1, 1]} : vector<24x1664xf32> to vector<24x128xf32>
    %836 = vector.extract_strided_slice %814 {offsets = [0, 640], sizes = [24, 128], strides = [1, 1]} : vector<24x1664xf32> to vector<24x128xf32>
    %837 = vector.extract_strided_slice %814 {offsets = [0, 768], sizes = [24, 128], strides = [1, 1]} : vector<24x1664xf32> to vector<24x128xf32>
    %838 = vector.extract_strided_slice %814 {offsets = [0, 896], sizes = [24, 128], strides = [1, 1]} : vector<24x1664xf32> to vector<24x128xf32>
    %839 = vector.extract_strided_slice %814 {offsets = [0, 1024], sizes = [24, 128], strides = [1, 1]} : vector<24x1664xf32> to vector<24x128xf32>
    %840 = arith.mulf %831, %832 : vector<24x128xf32>
    %841 = arith.mulf %840, %832 : vector<24x128xf32>
    %842 = arith.mulf %841, %832 : vector<24x128xf32>
    %cst_298 = arith.constant 3.000000e+00 : f32
    %843 = vector.broadcast %cst_298 : f32 to vector<24x128xf32>
    %844 = arith.mulf %843, %826 : vector<24x128xf32>
    %845 = arith.mulf %844, %835 : vector<24x128xf32>
    %846 = arith.mulf %845, %832 : vector<24x128xf32>
    %847 = arith.addf %842, %846 : vector<24x128xf32>
    %848 = vector.extract_strided_slice %814 {offsets = [0, 1152], sizes = [24, 128], strides = [1, 1]} : vector<24x1664xf32> to vector<24x128xf32>
    %849 = arith.mulf %823, %848 : vector<24x128xf32>
    %850 = arith.addf %847, %849 : vector<24x128xf32>
    %c0_299 = arith.constant 0 : index
    %c1152_300 = arith.constant 1152 : index
    %851 = vector.load %arg7[%c0_299, %c1152_300] : memref<24x1664xf32, #tpu.memory_space<vmem>>, vector<24x128xf32>
    tpu.vector_store %arg7[%c0_299, %c1152_300], %850 {strides = array<i32>} : memref<24x1664xf32, #tpu.memory_space<vmem>>, vector<24x128xf32>,
    %852 = arith.mulf %831, %832 : vector<24x128xf32>
    %853 = arith.mulf %852, %832 : vector<24x128xf32>
    %854 = arith.mulf %853, %833 : vector<24x128xf32>
    %855 = arith.mulf %835, %833 : vector<24x128xf32>
    %cst_301 = arith.constant 2.000000e+00 : f32
    %856 = vector.broadcast %cst_301 : f32 to vector<24x128xf32>
    %857 = arith.mulf %856, %836 : vector<24x128xf32>
    %858 = arith.mulf %857, %832 : vector<24x128xf32>
    %859 = arith.addf %855, %858 : vector<24x128xf32>
    %860 = arith.mulf %826, %859 : vector<24x128xf32>
    %861 = arith.addf %854, %860 : vector<24x128xf32>
    %862 = vector.extract_strided_slice %814 {offsets = [0, 1280], sizes = [24, 128], strides = [1, 1]} : vector<24x1664xf32> to vector<24x128xf32>
    %863 = arith.mulf %823, %862 : vector<24x128xf32>
    %864 = arith.addf %861, %863 : vector<24x128xf32>
    %c0_302 = arith.constant 0 : index
    %c1280_303 = arith.constant 1280 : index
    %865 = vector.load %arg7[%c0_302, %c1280_303] : memref<24x1664xf32, #tpu.memory_space<vmem>>, vector<24x128xf32>
    tpu.vector_store %arg7[%c0_302, %c1280_303], %864 {strides = array<i32>} : memref<24x1664xf32, #tpu.memory_space<vmem>>, vector<24x128xf32>,
    %866 = arith.mulf %831, %832 : vector<24x128xf32>
    %867 = arith.mulf %866, %833 : vector<24x128xf32>
    %868 = arith.mulf %867, %833 : vector<24x128xf32>
    %869 = arith.mulf %837, %832 : vector<24x128xf32>
    %cst_304 = arith.constant 2.000000e+00 : f32
    %870 = vector.broadcast %cst_304 : f32 to vector<24x128xf32>
    %871 = arith.mulf %870, %836 : vector<24x128xf32>
    %872 = arith.mulf %871, %833 : vector<24x128xf32>
    %873 = arith.addf %869, %872 : vector<24x128xf32>
    %874 = arith.mulf %826, %873 : vector<24x128xf32>
    %875 = arith.addf %868, %874 : vector<24x128xf32>
    %876 = vector.extract_strided_slice %814 {offsets = [0, 1408], sizes = [24, 128], strides = [1, 1]} : vector<24x1664xf32> to vector<24x128xf32>
    %877 = arith.mulf %823, %876 : vector<24x128xf32>
    %878 = arith.addf %875, %877 : vector<24x128xf32>
    %c0_305 = arith.constant 0 : index
    %c1408_306 = arith.constant 1408 : index
    %879 = vector.load %arg7[%c0_305, %c1408_306] : memref<24x1664xf32, #tpu.memory_space<vmem>>, vector<24x128xf32>
    tpu.vector_store %arg7[%c0_305, %c1408_306], %878 {strides = array<i32>} : memref<24x1664xf32, #tpu.memory_space<vmem>>, vector<24x128xf32>,
    %880 = arith.mulf %831, %833 : vector<24x128xf32>
    %881 = arith.mulf %880, %833 : vector<24x128xf32>
    %882 = arith.mulf %881, %833 : vector<24x128xf32>
    %cst_307 = arith.constant 3.000000e+00 : f32
    %883 = vector.broadcast %cst_307 : f32 to vector<24x128xf32>
    %884 = arith.mulf %883, %826 : vector<24x128xf32>
    %885 = arith.mulf %884, %837 : vector<24x128xf32>
    %886 = arith.mulf %885, %833 : vector<24x128xf32>
    %887 = arith.addf %882, %886 : vector<24x128xf32>
    %888 = vector.extract_strided_slice %814 {offsets = [0, 1536], sizes = [24, 128], strides = [1, 1]} : vector<24x1664xf32> to vector<24x128xf32>
    %889 = arith.mulf %823, %888 : vector<24x128xf32>
    %890 = arith.addf %887, %889 : vector<24x128xf32>
    %c0_308 = arith.constant 0 : index
    %c1536_309 = arith.constant 1536 : index
    %891 = vector.load %arg7[%c0_308, %c1536_309] : memref<24x1664xf32, #tpu.memory_space<vmem>>, vector<24x128xf32>
    tpu.vector_store %arg7[%c0_308, %c1536_309], %890 {strides = array<i32>} : memref<24x1664xf32, #tpu.memory_space<vmem>>, vector<24x128xf32>,
    %892 = arith.mulf %826, %832 : vector<24x128xf32>
    %893 = arith.mulf %892, %832 : vector<24x128xf32>
    %894 = arith.mulf %823, %835 : vector<24x128xf32>
    %895 = arith.addf %893, %894 : vector<24x128xf32>
    %c0_310 = arith.constant 0 : index
    %c512_311 = arith.constant 512 : index
    %896 = vector.load %arg7[%c0_310, %c512_311] : memref<24x1664xf32, #tpu.memory_space<vmem>>, vector<24x128xf32>
    tpu.vector_store %arg7[%c0_310, %c512_311], %895 {strides = array<i32>} : memref<24x1664xf32, #tpu.memory_space<vmem>>, vector<24x128xf32>,
    %897 = arith.mulf %826, %832 : vector<24x128xf32>
    %898 = arith.mulf %897, %833 : vector<24x128xf32>
    %899 = arith.mulf %823, %836 : vector<24x128xf32>
    %900 = arith.addf %898, %899 : vector<24x128xf32>
    %c0_312 = arith.constant 0 : index
    %c640_313 = arith.constant 640 : index
    %901 = vector.load %arg7[%c0_312, %c640_313] : memref<24x1664xf32, #tpu.memory_space<vmem>>, vector<24x128xf32>
    tpu.vector_store %arg7[%c0_312, %c640_313], %900 {strides = array<i32>} : memref<24x1664xf32, #tpu.memory_space<vmem>>, vector<24x128xf32>,
    %902 = arith.mulf %826, %833 : vector<24x128xf32>
    %903 = arith.mulf %902, %833 : vector<24x128xf32>
    %904 = arith.mulf %823, %837 : vector<24x128xf32>
    %905 = arith.addf %903, %904 : vector<24x128xf32>
    %c0_314 = arith.constant 0 : index
    %c768_315 = arith.constant 768 : index
    %906 = vector.load %arg7[%c0_314, %c768_315] : memref<24x1664xf32, #tpu.memory_space<vmem>>, vector<24x128xf32>
    tpu.vector_store %arg7[%c0_314, %c768_315], %905 {strides = array<i32>} : memref<24x1664xf32, #tpu.memory_space<vmem>>, vector<24x128xf32>,
    %907 = arith.mulf %826, %832 : vector<24x128xf32>
    %908 = arith.mulf %907, %834 : vector<24x128xf32>
    %909 = arith.mulf %823, %838 : vector<24x128xf32>
    %910 = arith.addf %908, %909 : vector<24x128xf32>
    %c0_316 = arith.constant 0 : index
    %c896_317 = arith.constant 896 : index
    %911 = vector.load %arg7[%c0_316, %c896_317] : memref<24x1664xf32, #tpu.memory_space<vmem>>, vector<24x128xf32>
    tpu.vector_store %arg7[%c0_316, %c896_317], %910 {strides = array<i32>} : memref<24x1664xf32, #tpu.memory_space<vmem>>, vector<24x128xf32>,
    %912 = arith.mulf %826, %833 : vector<24x128xf32>
    %913 = arith.mulf %912, %834 : vector<24x128xf32>
    %914 = arith.mulf %823, %839 : vector<24x128xf32>
    %915 = arith.addf %913, %914 : vector<24x128xf32>
    %c0_318 = arith.constant 0 : index
    %c1024_319 = arith.constant 1024 : index
    %916 = vector.load %arg7[%c0_318, %c1024_319] : memref<24x1664xf32, #tpu.memory_space<vmem>>, vector<24x128xf32>
    tpu.vector_store %arg7[%c0_318, %c1024_319], %915 {strides = array<i32>} : memref<24x1664xf32, #tpu.memory_space<vmem>>, vector<24x128xf32>,
    %917 = arith.mulf %823, %832 : vector<24x128xf32>
    %c0_320 = arith.constant 0 : index
    %c128_321 = arith.constant 128 : index
    %918 = vector.load %arg7[%c0_320, %c128_321] : memref<24x1664xf32, #tpu.memory_space<vmem>>, vector<24x128xf32>
    tpu.vector_store %arg7[%c0_320, %c128_321], %917 {strides = array<i32>} : memref<24x1664xf32, #tpu.memory_space<vmem>>, vector<24x128xf32>,
    %919 = arith.mulf %823, %833 : vector<24x128xf32>
    %c0_322 = arith.constant 0 : index
    %c256_323 = arith.constant 256 : index
    %920 = vector.load %arg7[%c0_322, %c256_323] : memref<24x1664xf32, #tpu.memory_space<vmem>>, vector<24x128xf32>
    tpu.vector_store %arg7[%c0_322, %c256_323], %919 {strides = array<i32>} : memref<24x1664xf32, #tpu.memory_space<vmem>>, vector<24x128xf32>,
    %921 = arith.mulf %823, %834 : vector<24x128xf32>
    %c0_324 = arith.constant 0 : index
    %c384_325 = arith.constant 384 : index
    %922 = vector.load %arg7[%c0_324, %c384_325] : memref<24x1664xf32, #tpu.memory_space<vmem>>, vector<24x128xf32>
    tpu.vector_store %arg7[%c0_324, %c384_325], %921 {strides = array<i32>} : memref<24x1664xf32, #tpu.memory_space<vmem>>, vector<24x128xf32>,
    %c0_326 = arith.constant 0 : index
    %c0_327 = arith.constant 0 : index
    %923 = vector.load %arg7[%c0_326, %c0_327] : memref<24x1664xf32, #tpu.memory_space<vmem>>, vector<24x128xf32>
    tpu.vector_store %arg7[%c0_326, %c0_327], %820 {strides = array<i32>} : memref<24x1664xf32, #tpu.memory_space<vmem>>, vector<24x128xf32>,
    %c8 = arith.constant 8 : index
    %c0_328 = arith.constant 0 : index
    %c0_329 = arith.constant 0 : index
    %924 = vector.load %arg3[%c8, %c0_328, %c0_329] : memref<9x24x24xf32, #tpu.memory_space<vmem>>, vector<1x24x24xf32>
    %925 = vector.shape_cast %924 : vector<1x24x24xf32> to vector<24x24xf32>
    %c0_330 = arith.constant 0 : index
    %c0_331 = arith.constant 0 : index
    %926 = vector.load %arg7[%c0_330, %c0_331] : memref<24x1664xf32, #tpu.memory_space<vmem>>, vector<24x1664xf32>
    %cst_332 = arith.constant dense<0.000000e+00> : vector<24x1664xf32>
    %927 = tpu.matmul %925, %926, %cst_332 {dimension_numbers = #tpu.dot_dimension_numbers<[1], [0], [0], [1], [0, 0, 1, 1], [], []>} : vector<24x24xf32>, vector<24x1664xf32>, vector<24x1664xf32> -> vector<24x1664xf32>
    %928 = vector.extract_strided_slice %927 {offsets = [0, 0], sizes = [1, 1664], strides = [1, 1]} : vector<24x1664xf32> to vector<1x1664xf32>
    %929 = vector.extract_strided_slice %928 {offsets = [0, 0], sizes = [1, 128], strides = [1, 1]} : vector<1x1664xf32> to vector<1x128xf32>
    %c8_333 = arith.constant 8 : index
    %c0_334 = arith.constant 0 : index
    %c0_335 = arith.constant 0 : index
    %930 = vector.load %arg4[%c8_333, %c0_334, %c0_335] : memref<9x24x1xf32, #tpu.memory_space<vmem>>, vector<1x24x1xf32>
    %931 = vector.shape_cast %930 : vector<1x24x1xf32> to vector<24x1xf32>
    %932 = vector.extract_strided_slice %931 {offsets = [0, 0], sizes = [1, 1], strides = [1, 1]} : vector<24x1xf32> to vector<1x1xf32>
    %933 = vector.broadcast %932 : vector<1x1xf32> to vector<1x128xf32>
    %934 = arith.addf %929, %933 : vector<1x128xf32>
    %935 = vector.extract_strided_slice %928 {offsets = [0, 128], sizes = [1, 128], strides = [1, 1]} : vector<1x1664xf32> to vector<1x128xf32>
    %936 = vector.extract_strided_slice %928 {offsets = [0, 256], sizes = [1, 128], strides = [1, 1]} : vector<1x1664xf32> to vector<1x128xf32>
    %937 = vector.extract_strided_slice %928 {offsets = [0, 512], sizes = [1, 128], strides = [1, 1]} : vector<1x1664xf32> to vector<1x128xf32>
    %938 = vector.extract_strided_slice %928 {offsets = [0, 640], sizes = [1, 128], strides = [1, 1]} : vector<1x1664xf32> to vector<1x128xf32>
    %939 = vector.extract_strided_slice %928 {offsets = [0, 768], sizes = [1, 128], strides = [1, 1]} : vector<1x1664xf32> to vector<1x128xf32>
    %940 = vector.extract_strided_slice %928 {offsets = [0, 896], sizes = [1, 128], strides = [1, 1]} : vector<1x1664xf32> to vector<1x128xf32>
    %941 = vector.extract_strided_slice %928 {offsets = [0, 1024], sizes = [1, 128], strides = [1, 1]} : vector<1x1664xf32> to vector<1x128xf32>
    %942 = vector.extract_strided_slice %928 {offsets = [0, 1152], sizes = [1, 128], strides = [1, 1]} : vector<1x1664xf32> to vector<1x128xf32>
    %943 = vector.extract_strided_slice %928 {offsets = [0, 1280], sizes = [1, 128], strides = [1, 1]} : vector<1x1664xf32> to vector<1x128xf32>
    %944 = vector.extract_strided_slice %928 {offsets = [0, 1408], sizes = [1, 128], strides = [1, 1]} : vector<1x1664xf32> to vector<1x128xf32>
    %945 = vector.extract_strided_slice %928 {offsets = [0, 1536], sizes = [1, 128], strides = [1, 1]} : vector<1x1664xf32> to vector<1x128xf32>
    %c0_336 = arith.constant 0 : index
    %c0_337 = arith.constant 0 : index
    %946 = memref.load %arg2[%c0_336, %c0_337] : memref<1x2xf32, #tpu.memory_space<smem>>
    %c0_338 = arith.constant 0 : index
    %c1_339 = arith.constant 1 : index
    %947 = memref.load %arg2[%c0_338, %c1_339] : memref<1x2xf32, #tpu.memory_space<smem>>
    %cst_340 = arith.constant 0.000000e+00 : f32
    %948 = vector.broadcast %cst_340 : f32 to vector<1x128xf32>
    %949 = arith.subf %948, %935 : vector<1x128xf32>
    %cst_341 = arith.constant 0.000000e+00 : f32
    %950 = vector.broadcast %cst_341 : f32 to vector<1x128xf32>
    %951 = arith.subf %950, %940 : vector<1x128xf32>
    %cst_342 = arith.constant 0.000000e+00 : f32
    %952 = vector.broadcast %cst_342 : f32 to vector<1x128xf32>
    %953 = arith.subf %952, %937 : vector<1x128xf32>
    %cst_343 = arith.constant 0.000000e+00 : f32
    %954 = vector.broadcast %cst_343 : f32 to vector<1x128xf32>
    %955 = arith.subf %954, %938 : vector<1x128xf32>
    %cst_344 = arith.constant 0.000000e+00 : f32
    %956 = vector.broadcast %cst_344 : f32 to vector<1x128xf32>
    %957 = arith.subf %956, %942 : vector<1x128xf32>
    %cst_345 = arith.constant 0.000000e+00 : f32
    %958 = vector.broadcast %cst_345 : f32 to vector<1x128xf32>
    %959 = arith.subf %958, %944 : vector<1x128xf32>
    %960 = arith.mulf %936, %938 : vector<1x128xf32>
    %961 = arith.mulf %949, %939 : vector<1x128xf32>
    %962 = arith.addf %960, %961 : vector<1x128xf32>
    %963 = vector.broadcast %946 : f32 to vector<1x128xf32>
    %964 = arith.mulf %963, %962 : vector<1x128xf32>
    %965 = arith.addf %941, %964 : vector<1x128xf32>
    %966 = arith.addf %965, %935 : vector<1x128xf32>
    %967 = arith.addf %943, %945 : vector<1x128xf32>
    %968 = vector.broadcast %947 : f32 to vector<1x128xf32>
    %969 = arith.mulf %968, %967 : vector<1x128xf32>
    %970 = arith.subf %966, %969 : vector<1x128xf32>
    %971 = arith.mulf %936, %953 : vector<1x128xf32>
    %972 = arith.mulf %949, %955 : vector<1x128xf32>
    %973 = arith.addf %971, %972 : vector<1x128xf32>
    %974 = vector.broadcast %946 : f32 to vector<1x128xf32>
    %975 = arith.mulf %974, %973 : vector<1x128xf32>
    %976 = arith.addf %951, %975 : vector<1x128xf32>
    %977 = arith.addf %976, %936 : vector<1x128xf32>
    %978 = arith.addf %957, %959 : vector<1x128xf32>
    %979 = vector.broadcast %947 : f32 to vector<1x128xf32>
    %980 = arith.mulf %979, %978 : vector<1x128xf32>
    %981 = arith.subf %977, %980 : vector<1x128xf32>
    %c3_346 = arith.constant 3 : index
    %c0_347 = arith.constant 0 : index
    %982 = vector.load %arg1[%c3_346, %c0_347] : memref<24x128xf32, #tpu.memory_space<vmem>>, vector<1x128xf32>
    %983 = arith.subf %982, %936 : vector<1x128xf32>
    %c4_348 = arith.constant 4 : index
    %c0_349 = arith.constant 0 : index
    %984 = vector.load %arg1[%c4_348, %c0_349] : memref<24x128xf32, #tpu.memory_space<vmem>>, vector<1x128xf32>
    %985 = arith.subf %984, %949 : vector<1x128xf32>
    %986 = arith.mulf %983, %983 : vector<1x128xf32>
    %987 = arith.mulf %985, %985 : vector<1x128xf32>
    %988 = arith.addf %986, %987 : vector<1x128xf32>
    %989 = arith.mulf %970, %970 : vector<1x128xf32>
    %990 = arith.addf %988, %989 : vector<1x128xf32>
    %991 = arith.mulf %981, %981 : vector<1x128xf32>
    %992 = arith.addf %990, %991 : vector<1x128xf32>
    %c0_350 = arith.constant 0 : index
    %c0_351 = arith.constant 0 : index
    %993 = vector.load %arg6[%c0_350, %c0_351] : memref<1x128xf32, #tpu.memory_space<vmem>>, vector<1x128xf32>
    tpu.vector_store %arg6[%c0_350, %c0_351], %992 {strides = array<i32>} : memref<1x128xf32, #tpu.memory_space<vmem>>, vector<1x128xf32>,
    %994 = tpu.concatenate %934, %936, %949 in 0 : vector<1x128xf32>, vector<1x128xf32>, vector<1x128xf32> -> vector<3x128xf32>
    %c0_352 = arith.constant 0 : index
    %c0_353 = arith.constant 0 : index
    %995 = vector.load %arg5[%c0_352, %c0_353] : memref<3x128xf32, #tpu.memory_space<vmem>>, vector<3x128xf32>
    tpu.vector_store %arg5[%c0_352, %c0_353], %994 {strides = array<i32>} : memref<3x128xf32, #tpu.memory_space<vmem>>, vector<3x128xf32>,
    return
  }
  func.func @transform_0(%arg0: i32) -> (i32, i32) {
    %c0_i32 = arith.constant 0 : i32
    %c0_i32_0 = arith.constant 0 : i32
    return %c0_i32, %arg0 : i32, i32
  }
  func.func @transform_1(%arg0: i32) -> (i32, i32) {
    %c0_i32 = arith.constant 0 : i32
    %c0_i32_0 = arith.constant 0 : i32
    %c0_i32_1 = arith.constant 0 : i32
    return %c0_i32, %c0_i32_0 : i32, i32
  }
  func.func @transform_2(%arg0: i32) -> (i32, i32, i32) {
    %c0_i32 = arith.constant 0 : i32
    %c0_i32_0 = arith.constant 0 : i32
    %c0_i32_1 = arith.constant 0 : i32
    %c0_i32_2 = arith.constant 0 : i32
    return %c0_i32, %c0_i32_0, %c0_i32_1 : i32, i32, i32
  }
  func.func @transform_3(%arg0: i32) -> (i32, i32, i32) {
    %c0_i32 = arith.constant 0 : i32
    %c0_i32_0 = arith.constant 0 : i32
    %c0_i32_1 = arith.constant 0 : i32
    %c0_i32_2 = arith.constant 0 : i32
    return %c0_i32, %c0_i32_0, %c0_i32_1 : i32, i32, i32
  }
  func.func @transform_4(%arg0: i32) -> (i32, i32) {
    %c0_i32 = arith.constant 0 : i32
    %c0_i32_0 = arith.constant 0 : i32
    return %c0_i32, %arg0 : i32, i32
  }
  func.func @transform_5(%arg0: i32) -> (i32, i32) {
    %c0_i32 = arith.constant 0 : i32
    %c0_i32_0 = arith.constant 0 : i32
    return %c0_i32, %arg0 : i32, i32
  }
}

</mosaic_0001>

<bundles_post_ra>
// kernel: pinn_forward.1
= control target key start
LH: loop header
LB: loop body
LE: loop exit
PB: predicated region body
PF: predicated region fallthrough
CT: control target
= control target key end

     0   :  { %11 = vsyncpa [#allocation5], 0  ;;  %s8850_s18 = smov 0   ;;  %s8852_s19 = smov 0   ;;  %s12705_s0 = inlined_call_operand.vmem [shape: f32[24,256], index: 0, kind: input, shape index: {}]   ;;  %s12706_s1 = inlined_call_operand.vmem [shape: f32[1,2], index: 1, kind: input, shape index: {}]   ;;  %s12707_s2 = inlined_call_operand.vmem [shape: f32[9,24,24], index: 2, kind: input, shape index: {}]   ;;  %s12708_s3 = inlined_call_operand.vmem [shape: f32[9,24,1], index: 3, kind: input, shape index: {}]   ;;  %s12709_s4 = inlined_call_operand.vmem [shape: f32[3,256], index: 4, kind: output, shape index: {0}]   ;;  %s12710_s5 = inlined_call_operand.vmem [shape: f32[1,256], index: 5, kind: output, shape index: {1}]  }
   0x1   :  { %s8854_s20 = smov 0  }
   0x2 LB: > { %s8866_s21 = sadd.s32 4294967295, %s8813_s20   ;;  %s8869_s22 = sadd.s32 1, %s8813_s20   ;;  %s8813_s20 = sphi %s8854_s20, %s13002_s20   ;;  %s8809_s19 = sphi %s8852_s19, %s13001_s19   ;;  %s8805_s18 = sphi %s8850_s18, %s13000_s18  }
   0x3   : > { %s21_s23 = ssub.s32 %s8813_s20, %s8869_s22  ;;  %s24_s24 = sadd.s32 1, %s8809_s19 }
   0x4   : > { %p22_p0 = scmp.eq.s32.totalorder %s21_s23, 0  ;;  %p31_p1 = scmp.ne.s32.totalorder %s8809_s19, %s8805_s18 }
   0x5   : > { %p32_p2 = scmp.eq.s32.totalorder %s8813_s20, 0  ;;  %p8185_p3 = scmp.ge.s32.totalorder %s8813_s20, 1 }
   0x6   : > { %s8879_s25 = scalar_select %p22_p0, %s8809_s19, %s24_s24  }
   0x7   : > { %p8881_p4 = por %p32_p2, %p31_p1  ;;  %p163_p5 = scmp.lt.s32.totalorder %s8813_s20, 3 }
   0x8   : > { %p8691_p6 = scmp.eq.s32.totalorder %s8866_s21, 0  ;;  %s176_s30 = sshll.u32 %s12706_s1, 4  ;;  %s177_s30 = int_to_ptr.vmem [resolvable:$true] %s176_s30 }
   0x9   : > { %p8887_p7 = pnand %p8185_p3, %p163_p5  ;;  %s8772_s6 = scalar_lea.vmem %s177_s30, 16 }
   0xa   : > { %p8773_p10 = scmp.ne.s32.totalorder %s177_s30, %s8772_s6  ;;  %p8780_p0 = scmp.lt.s32.totalorder %s177_s30, %s177_s30 }
   0xb   : > { %p8687_p8 = pneg %p8887_p7  ;;  %p8781_p1 = scmp.lt.s32.totalorder %s8772_s6, %s8772_s6 }
   0xd   : > { %p8688_p9 = pnand %p8691_p6, %p8687_p8  ;;  %p8782_p2 = por %p8781_p1, %p8780_p0 }
   0xf   : > { %p8774_p11 = pneg %p8688_p9 }
  0x11   : > { %p8775_p12 = pnand %p8774_p11, %p8773_p10 }
  0x13   : > { %p8776_p13 = pneg %p8775_p12 }
  0x15   : > { %p8783_p3 = pnand %p8782_p2, %p8776_p13 }
  0x17   : > { %8786 = shalt.err (!%p8783_p3)
}
  0x18   : > { %s8815_s7 = smov [#allocation4]   ;;  %p8187_p5 = scmp.ge.s32.totalorder %s8813_s20, 2 }
  0x19   : > { %8690 = dma.vmem_to_smem (!%p8688_p9), %s177_s30, 16, %s8815_s7, [#allocation5]  }
  0x1a   : > { %189 = sbr.rel (%p8187_p5) target bundleno = 37 (0x25), region = 28 }
  0x1f   : > { %192 = sbr.rel (!%p8881_p4) target bundleno = 37 (0x25), region = 32  ;;  %s194_s8 = sand.u32 (%p8881_p4), 1, %s8809_s19  }
  0x20   : > { %s8188_s9 = sshll.u32 (%p8881_p4), %s8813_s20, 3  ;;  %s8681_s10 = smul.u32 (%p8881_p4), 24, %s194_s8 }
  0x21   : > { %s198_s13 = scalar_lea.vmem (%p8881_p4), %s12705_s0, %s8188_s9 }
  0x22   : > { %v231_v0 = vld [vmem:[%s198_s13] sm:$0xff] (%p8881_p4)  ;;  %v233_v1 = vld [vmem:[%s198_s13 + $0x10] sm:$0xff] (%p8881_p4)  ;;  %s196_s14 = scalar_lea.vmem (%p8881_p4), [#allocation3], %s8681_s10 }
  0x23   : > { %v235_v2 = vld [vmem:[%s198_s13 + $0x20] sm:$0xff] (%p8881_p4)  ;;  %232 = vst [vmem:[%s196_s14] sm:$0xff] (%p8881_p4), %v231_v0  ;;  %234 = vst [vmem:[%s196_s14 + $0x8] sm:$0xff] (%p8881_p4), %v233_v1 }
  0x24   : > { %236 = vst [vmem:[%s196_s14 + $0x10] sm:$0xff] %v235_v2 }
  0x25 PF: > { %245 = sbr.rel (%p8887_p7) target bundleno = 2258 (0x8d2), region = 70 }
  0x2a   : > { %s248_s15 = sand.u32 1, %s8805_s18  }
  0x2b   : > { %s8682_s16 = smul.u32 24, %s248_s15 }
  0x2d   : > { %s8909_s17 = scalar_lea.vmem [#allocation3], %s8682_s16 }
  0x2e   : > { %8800 = dma.done.wait (%p8691_p6), [#allocation5], 16  }
  0x2f   : > { %8802 = vsyncadd (%p8691_p6), [#allocation5], 4294967280 }
  0x30   : > { %258 = sfence }
  0x31   : > { %v295_v3 = vld [vmem:[%s8909_s17 + $0x10] sm:$0xff]  ;;  %v289_v4 = vlaneseq  ;;  %v12711_v5 = vmov 0.0   ;;  %v294_v6 = vld [vmem:[%s8909_s17 + $0x8] sm:$0xff]  ;;  %v293_v9 = vld [vmem:[%s8909_s17] sm:$0xff]  ;;  %v8817_v10 = vmov 0   ;;  %vm404_vm3 = vcmask 195584  }
  0x32   : > { %440 = vmatprep.subr.mxu0 %v12711_v5  ;;  %478 = vmatprep.mubr.f32.mxu0 %v12711_v5  ;;  %v994_v8 = vld [vmem:[%s12708_s3 + $0x10] sm:$0xff]  ;;  %v8928_v11 = vld [vmem:[%s12707_s2] sm:$0xff]  ;;  %v8933_v12 = vld [vmem:[%s12707_s2 + $0x8] sm:$0xff]  ;;  %v8818_v13 = vmov 1.0   ;;  %vm8819_vm4 = vmmov 0   ;;  %p282_p4 = scmp.lt.s32.totalorder %s8866_s21, 1 }
  0x33   : > { %441 = vmatpush1.msra.mxu0 %v295_v3  ;;  %v290_v7 = vshrl.u32 %v289_v4, 7  ;;  %567 = vmatprep.mubr.f32.mxu1 %v12711_v5  ;;  %v8946_v14 = vld [vmem:[%s12707_s2 + $0x10] sm:$0xff]  ;;  %v993_v15 = vld [vmem:[%s12708_s3 + $0x8] sm:$0xff]  ;;  %v992_v16 = vld [vmem:[%s12708_s3] sm:$0xff]  ;;  %vm8082_vm5 = vcmask 1040384   ;;  %vm8084_vm6 = vcmask 1041408  }
  0x34   : > { %442 = vmatprep.subr.mxu0 %v12711_v5  ;;  %8722 = vset.pattern.permute.xlu0 %v8817_v10  ;;  %v8241_v17 = vld [vmem:[%s12708_s3 + $0x20] sm:$0xff]  ;;  %v8242_v19 = vld [vmem:[%s12708_s3 + $0x28] sm:$0xff]  ;;  %v8267_v20 = vld [vmem:[%s12708_s3 + $0x30] sm:$0xff]  ;;  %s13004_s21 = smov (!%p282_p4, %s8866_s21), 1  ;;  %s8036_s30 = sld [smem:[#allocation4]] }
  0x35   : > { %443 = vmatpush1.msra.mxu0 %v294_v6  ;;  %vm299_vm0 = vcmp.eq.s32.totalorder %v290_v7, 0  ;;  %vm323_vm1 = vcmp.eq.s32.totalorder %v290_v7, 2  ;;  %vm311_vm2 = vcmp.eq.s32.totalorder %v290_v7, 1  ;;  %1007 = vperm.xlu0 %8722, %v994_v8   ;;  %v8269_v18 = vld [vmem:[%s12708_s3 + $0x40] sm:$0xff]  ;;  %v8240_v21 = vld [vmem:[%s12708_s3 + $0x18] sm:$0xff]  ;;  %v8295_v22 = vld [vmem:[%s12708_s3 + $0x50] sm:$0xff]  ;;  %s288_s8 = scalar_lea.vmem %s12710_s5, %s13004_s21 }
  0x36   : > { %8433 = vmatprep.subr.msk.mxu0 %vm299_vm0, %v8818_v13  ;;  %8679 = vmatprep.subr.msk.mxu1 %vm323_vm1, %v8818_v13  ;;  %v8268_v23 = vld [vmem:[%s12708_s3 + $0x38] sm:$0xff]  ;;  %v8323_v24 = vld [vmem:[%s12708_s3 + $0x70] sm:$0xff]  ;;  %v8321_v26 = vld [vmem:[%s12708_s3 + $0x60] sm:$0xff]  ;;  %s8191_s26 = sshll.u32 %s13004_s21, 2  ;;  %s12683_s6 = sld [smem:[#allocation4 + $0x1]] }
  0x37   : > { %445 = vmatpush1.msra.mxu0 %v293_v9  ;;  %8680 = vmatpush1.msk.msra.mxu1 %vm311_vm2, %v8818_v13  ;;  %v8296_v25 = vld [vmem:[%s12708_s3 + $0x58] sm:$0xff]  ;;  %v8294_v27 = vld [vmem:[%s12708_s3 + $0x48] sm:$0xff]  ;;  %v8349_v28 = vld [vmem:[%s12708_s3 + $0x80] sm:$0xff]  ;;  %s285_s29 = scalar_lea.vmem %s12709_s4, %s8191_s26 }
  0x38   : > { %8195 = vmatmul.mubr.msk.f32.vlgmr.msra.gmra.mxu0 %vm404_vm3, %v8928_v11  ;;  %8199 = vmatmul.mubr.msk.f32.vlgmr.msra.gmra.mxu1 %vm404_vm3, %v8933_v12  ;;  %v8322_v29 = vld [vmem:[%s12708_s3 + $0x68] sm:$0xff]  ;;  %v8377_v30 = vld [vmem:[%s12708_s3 + $0xa0] sm:$0xff]  ;;  %v8375_v32 = vld [vmem:[%s12708_s3 + $0x90] sm:$0xff] }
  0x39   : > { %484 = vmatprep.mubr.f32.mxu0 %v12711_v5  ;;  %573 = vmatprep.mubr.f32.mxu1 %v12711_v5  ;;  %v8350_v31 = vld [vmem:[%s12708_s3 + $0x88] sm:$0xff]  ;;  %v8348_v33 = vld [vmem:[%s12708_s3 + $0x78] sm:$0xff]  ;;  %v8403_v34 = vld [vmem:[%s12708_s3 + $0xb0] sm:$0xff] }
  0x3a   : > { %8504 = vmatprep.subr.mxu1 %v12711_v5  ;;  %8434 = vmatprep.subr.msk.mxu0 %vm323_vm1, %v8818_v13  ;;  %v8376_v35 = vld [vmem:[%s12708_s3 + $0x98] sm:$0xff]  ;;  %v8429_v36 = vld [vmem:[%s12708_s3 + $0xc0] sm:$0xff]  ;;  %v8402_v38 = vld [vmem:[%s12708_s3 + $0xa8] sm:$0xff] }
  0x3b   : > { %8505 = vmatpush3.msra.mxu1 %v12711_v5  ;;  %8435 = vmatpush1.msk.msra.mxu0 %vm311_vm2, %v8818_v13  ;;  %v8404_v37 = vld [vmem:[%s12708_s3 + $0xb8] sm:$0xff] }
  0x3c   : > { %8196 = vmatmul.mubr.msk.f32.gmra.mxu0 %vm404_vm3, %v8933_v12  ;;  %8200 = vmatmul.mubr.msk.f32.gmra.mxu1 %vm404_vm3, %v8946_v14 }
  0x3d   : > { %490 = vmatprep.mubr.f32.mxu0 %v12711_v5  ;;  %8506 = vmatprep.mubr.msk.f32.mxu1 %vm8819_vm4, %v12711_v5 }
  0x3e   : > { %8515 = vmatprep.subr.mxu0 %v12711_v5  ;;  %8526 = vmatprep.subr.mxu1 %v12711_v5 }
  0x3f   : > { %1002 = vperm.xlu0 %8722, %v993_v15   ;;  %8723 = vset.pattern.permute.xlu1 %v8817_v10 }
  0x40   : > { %8197 = vmatmul.mubr.msk.f32.gmra.mxu0 %vm404_vm3, %v8946_v14  ;;  %8507 = vmatmul.mubr.msk.f32.vlgmr.msra.gmra.mxu1 %vm404_vm3, %v8928_v11 }
  0x41   : > { %561 = vmatprep.mubr.f32.mxu0 %v12711_v5  ;;  %8509 = vmatprep.mubr.msk.f32.mxu1 %vm8819_vm4, %v12711_v5 }
  0x42   : > { %8527 = vmatpush3.msra.mxu1 %v12711_v5  ;;  %997 = vperm.xlu1 %8723, %v992_v16  }
  0x43   : > { %8548 = vmatprep.subr.mxu1 %v12711_v5  ;;  %1885 = vperm.xlu0 %8722, %v8241_v17  }
  0x44   : > { %8198 = vmatmul.mubr.msk.f32.vlgmr.msra.gmra.mxu0 %vm404_vm3, %v8928_v11  ;;  %8510 = vmatmul.mubr.msk.f32.gmra.mxu1 %vm404_vm3, %v8933_v12 }
  0x45   : > { %8512 = vmatprep.mubr.msk.f32.mxu1 %vm8819_vm4, %v12711_v5  ;;  %8516 = vmatpush3.msra.mxu0 %v12711_v5 }
  0x46   : > { %8517 = vmatprep.mubr.msk.f32.mxu0 %vm8819_vm4, %v12711_v5  ;;  %8537 = vmatprep.subr.mxu0 %v12711_v5 }
  0x47   : > { %2773 = vperm.xlu0 %8722, %v8269_v18   ;;  %1890 = vperm.xlu1 %8723, %v8242_v19  }
  0x48   : > { %8513 = vmatmul.mubr.msk.f32.gmra.mxu1 %vm404_vm3, %v8946_v14  ;;  %8518 = vmatmul.mubr.msk.f32.vlgmr.msra.gmra.mxu0 %vm404_vm3, %v8928_v11 }
  0x49   : > { %8520 = vmatprep.mubr.msk.f32.mxu0 %vm8819_vm4, %v12711_v5  ;;  %8528 = vmatprep.mubr.msk.f32.mxu1 %vm8819_vm4, %v12711_v5 }
  0x4a   : > { %8538 = vmatpush3.msra.mxu0 %v12711_v5 }
  0x4b   : > { %2763 = vperm.xlu0 %8722, %v8267_v20   ;;  %1880 = vperm.xlu1 %8723, %v8240_v21  }
  0x4c   : > { %8521 = vmatmul.mubr.msk.f32.gmra.mxu0 %vm404_vm3, %v8933_v12  ;;  %8529 = vmatmul.mubr.msk.f32.vlgmr.msra.gmra.mxu1 %vm404_vm3, %v8928_v11 }
  0x4d   : > { %8523 = vmatprep.mubr.msk.f32.mxu0 %vm8819_vm4, %v12711_v5  ;;  %8531 = vmatprep.mubr.msk.f32.mxu1 %vm8819_vm4, %v12711_v5 }
  0x4e   : > { %8549 = vmatpush3.msra.mxu1 %v12711_v5 }
  0x4f   : > { %3651 = vperm.xlu0 %8722, %v8295_v22   ;;  %2768 = vperm.xlu1 %8723, %v8268_v23  }
  0x50   : > { %8524 = vmatmul.mubr.msk.f32.gmra.mxu0 %vm404_vm3, %v8946_v14  ;;  %8532 = vmatmul.mubr.msk.f32.gmra.mxu1 %vm404_vm3, %v8933_v12 }
  0x51   : > { %8534 = vmatprep.mubr.msk.f32.mxu1 %vm8819_vm4, %v12711_v5  ;;  %8539 = vmatprep.mubr.msk.f32.mxu0 %vm8819_vm4, %v12711_v5 }
  0x53   : > { %4539 = vperm.xlu0 %8722, %v8323_v24   ;;  %3656 = vperm.xlu1 %8723, %v8296_v25  }
  0x54   : > { %8535 = vmatmul.mubr.msk.f32.gmra.mxu1 %vm404_vm3, %v8946_v14  ;;  %8540 = vmatmul.mubr.msk.f32.vlgmr.msra.gmra.mxu0 %vm404_vm3, %v8928_v11 }
  0x55   : > { %8542 = vmatprep.mubr.msk.f32.mxu0 %vm8819_vm4, %v12711_v5  ;;  %8550 = vmatprep.mubr.msk.f32.mxu1 %vm8819_vm4, %v12711_v5 }
  0x57   : > { %4529 = vperm.xlu0 %8722, %v8321_v26   ;;  %3646 = vperm.xlu1 %8723, %v8294_v27  }
  0x58   : > { %8543 = vmatmul.mubr.msk.f32.gmra.mxu0 %vm404_vm3, %v8933_v12  ;;  %8551 = vmatmul.mubr.msk.f32.vlgmr.msra.gmra.mxu1 %vm404_vm3, %v8928_v11 }
  0x59   : > { %8545 = vmatprep.mubr.msk.f32.mxu0 %vm8819_vm4, %v12711_v5  ;;  %8553 = vmatprep.mubr.msk.f32.mxu1 %vm8819_vm4, %v12711_v5 }
  0x5b   : > { %5417 = vperm.xlu0 %8722, %v8349_v28   ;;  %4534 = vperm.xlu1 %8723, %v8322_v29  }
  0x5c   : > { %8546 = vmatmul.mubr.msk.f32.gmra.mxu0 %vm404_vm3, %v8946_v14  ;;  %8554 = vmatmul.mubr.msk.f32.gmra.mxu1 %vm404_vm3, %v8933_v12 }
  0x5d   : > { %8556 = vmatprep.mubr.msk.f32.mxu1 %vm8819_vm4, %v12711_v5  ;;  %1360 = vmatprep.mubr.f32.mxu0 %v12711_v5 }
  0x5f   : > { %6305 = vperm.xlu0 %8722, %v8377_v30   ;;  %5422 = vperm.xlu1 %8723, %v8350_v31  }
  0x60   : > { %8557 = vmatmul.mubr.msk.f32.gmra.mxu1 %vm404_vm3, %v8946_v14 }
  0x61   : > { %1443 = vmatprep.mubr.f32.mxu1 %v12711_v5 }
  0x63   : > { %6295 = vperm.xlu0 %8722, %v8375_v32   ;;  %5412 = vperm.xlu1 %8723, %v8348_v33  }
  0x67   : > { %7183 = vperm.xlu0 %8722, %v8403_v34   ;;  %6300 = vperm.xlu1 %8723, %v8376_v35  }
  0x6b   : > { %8032 = vperm.xlu0 %8722, %v8429_v36   ;;  %7188 = vperm.xlu1 %8723, %v8404_v37  }
  0x6f   : > { %7178 = vperm.xlu1 %8723, %v8402_v38  }
  0xb0   : > { %v1008_v39 = vpop.permute.xlu0 %1007 }
  0xba   : > { %v1003_v46 = vpop.permute.xlu0 %1002 }
  0xbd   : > { %v998_v40 = vpop.permute.xlu1 %997 }
  0xf8   : > { %v480_v41 = vpop.f32.mrf.mxu0  ;;  %v9104_v42 = vpop.f32.mrf.mxu1 }
  0xf9   : > { %v1010_v43 = vadd.f32 %v998_v40, %v480_v41  ;;  %v1110_v36 = vmul.f32 0.0, %v9104_v42 }
  0xfa   : > { %v9106_v44 = vpop.f32.mrf.mxu0  ;;  %v9108_v45 = vpop.f32.mrf.mxu1 }
  0xfb   : > { %8724 = vtanh.f32 %v1010_v43  ;;  %v1079_v33 = vmul.f32 0.0, %v9106_v44 }
  0xfc   : > { %v486_v47 = vpop.f32.mrf.mxu0  ;;  %v9110_v48 = vpop.f32.mrf.mxu1 }
  0xfd   : > { %v1011_v49 = vadd.f32 %v1003_v46, %v486_v47 }
  0xfe   : > { %v9112_v50 = vpop.f32.mrf.mxu0  ;;  %v9114_v51 = vpop.f32.mrf.mxu1 }
  0xff   : > { %8726 = vtanh.f32 %v1011_v49  ;;  %v1080_v31 = vmul.f32 0.0, %v9112_v50 }
 0x100   : > { %v492_v52 = vpop.f32.mrf.mxu0  ;;  %v646_v53 = vpop.f32.mrf.mxu1 }
 0x101   : > { %v1012_v54 = vadd.f32 %v1008_v39, %v492_v52 }
 0x102   : > { %v9116_v55 = vpop.f32.mrf.mxu0  ;;  %v8508_v56 = vpop.f32.mrf.mxu1 }
 0x103   : > { %8728 = vtanh.f32 %v1012_v54  ;;  %v1081_v32 = vmul.f32 0.0, %v9116_v55 }
 0x104   : > { %v9118_v57 = vpop.f32.mrf.mxu0  ;;  %v9120_v58 = vpop.f32.mrf.mxu1 }
 0x105   : > { %v1074_v21 = vmul.f32 %v9120_v58, %v9104_v42  ;;  %v1073_v23 = vmul.f32 %v646_v53, %v9118_v57  ;;  %v1109_v27 = vmul.f32 0.0, %v9118_v57 }
 0x106   : > { %v9122_v59 = vpop.f32.mrf.mxu0  ;;  %v8511_v60 = vpop.f32.mrf.mxu1 }
 0x107   : > { %v9182_v39 = vadd.f32 %v1080_v31, %v1074_v21  ;;  %v1082_v43 = vadd.f32 %v1079_v33, %v1073_v23 }
 0x108   : > { %v9124_v61 = vpop.eup %8724  ;;  %v9126_v62 = vpop.f32.mrf.mxu1 }
 0x109   : > { %v9128_v63 = vpop.f32.mrf.mxu0  ;;  %v1016_v0 = vmul.f32 %v9124_v61, %v9124_v61  ;;  %v1022_v9 = vmul.f32 -2.0, %v9124_v61  ;;  %v1075_v22 = vmul.f32 %v9126_v62, %v9110_v48 }
 0x10a   : > { %12757 = vst [vmem:[#allocation7_spill] sm:$0xff] %v9128_v63  ;;  %v8514_v1 = vpop.f32.mrf.mxu1  ;;  %v1106_v26 = vmul.f32 %v9128_v63, %v9106_v44 }
 0x10b   : > { %v8519_v2 = vpop.f32.mrf.mxu0  ;;  %v9134_v4 = vsub.f32 1.0, %v1016_v0  ;;  %v9184_v40 = vadd.f32 %v1081_v32, %v1075_v22 }
 0x10c   : > { %v9132_v3 = vpop.eup %8726  ;;  %v9138_v7 = vpop.f32.mrf.mxu1  ;;  %v1112_v52 = vadd.f32 %v1109_v27, %v1106_v26 }
 0x10d   : > { %v9136_v6 = vpop.f32.mrf.mxu0  ;;  %v1017_v8 = vmul.f32 %v9132_v3, %v9132_v3  ;;  %v1025_v14 = vmul.f32 %v1022_v9, %v9134_v4  ;;  %v1023_v18 = vmul.f32 -2.0, %v9132_v3  ;;  %v1163_v0 = vmul.f32 %v9134_v4, %v646_v53 }
 0x10e   : > { %v8530_v11 = vpop.f32.mrf.mxu1  ;;  %v1107_v41 = vmul.f32 %v9136_v6, %v9112_v50  ;;  %v1190_v2 = vmul.f32 %v9134_v4, %v9128_v63 }
 0x10f   : > { %v8522_v10 = vpop.f32.mrf.mxu0  ;;  %v9145_v13 = vsub.f32 1.0, %v1017_v8  ;;  %v9160_v24 = vmul.f32 3.0, %v1025_v14  ;;  %v9173_v30 = vmul.f32 %v1025_v14, %v9106_v44  ;;  %v1184_v35 = vmul.f32 %v1025_v14, %v9118_v57 }
 0x110   : > { %v9143_v12 = vpop.eup %8728  ;;  %v9150_v16 = vpop.f32.mrf.mxu1  ;;  %v9209_v9 = vmul.f32 %v1112_v52, %v1025_v14  ;;  %v1028_v11 = vmul.f32 %v9134_v4, %v9134_v4  ;;  %v9217_v21 = vmul.f32 %v1082_v43, %v1025_v14 }
 0x111   : > { %v9148_v15 = vpop.f32.mrf.mxu0  ;;  %v1018_v17 = vmul.f32 %v9143_v12, %v9143_v12  ;;  %12758 = vst [vmem:[#allocation8_spill] sm:$0xff] %v9160_v24  ;;  %v9163_v25 = vmul.f32 %v1023_v18, %v9145_v13  ;;  %v1052_v46 = vmul.f32 %v9160_v24, %v646_v53  ;;  %v1024_v49 = vmul.f32 -2.0, %v9143_v12 }
 0x112   : > { %v8533_v20 = vpop.f32.mrf.mxu1  ;;  %v1160_v60 = vmul.f32 %v9173_v30, %v9106_v44  ;;  %v1187_v10 = vmul.f32 %v1184_v35, %v9118_v57  ;;  %v1164_v53 = vmul.f32 %v9145_v13, %v9120_v58  ;;  %v9226_v26 = vmul.f32 %v9173_v30, %v9122_v59 }
 0x113   : > { %v8525_v19 = vpop.f32.mrf.mxu0  ;;  %v9178_v34 = vsub.f32 1.0, %v1018_v17  ;;  %v9190_v47 = vmul.f32 3.0, %v9163_v25  ;;  %v9202_v1 = vmul.f32 %v9163_v25, %v9112_v50  ;;  %v1031_v20 = vmul.f32 %v9124_v61, %v1025_v14 }
 0x114   : > { %v9168_v28 = vpop.f32.mrf.mxu1  ;;  %v1113_v19 = vadd.f32 %v1110_v36, %v1107_v41  ;;  %v9220_v22 = vmul.f32 %v1052_v46, %v9106_v44  ;;  %v1185_v27 = vmul.f32 %v9163_v25, %v9104_v42  ;;  %v9234_v33 = vadd.f32 %v1163_v0, %v1160_v60 }
 0x115   : > { %v9170_v29 = vpop.f32.mrf.mxu0  ;;  %v9207_v8 = vmul.f32 %v1024_v49, %v9178_v34  ;;  %v1053_v23 = vmul.f32 %v9190_v47, %v9120_v58  ;;  %v1161_v14 = vmul.f32 %v9202_v1, %v9112_v50  ;;  %v1165_v36 = vmul.f32 %v9178_v34, %v9126_v62 }
 0x116   : > { %v8536_v37 = vpop.f32.mrf.mxu1  ;;  %v9241_v58 = vmul.f32 %v1113_v19, %v9163_v25  ;;  %v1225_v41 = vmul.f32 %v9178_v34, %v9116_v55  ;;  %v1237_v43 = vmul.f32 %v9178_v34, %v9114_v51  ;;  %v1191_v60 = vmul.f32 %v9145_v13, %v9136_v6 }
 0x117   : > { %v8541_v38 = vpop.f32.mrf.mxu0  ;;  %v9244_v37 = vmul.f32 3.0, %v9207_v8  ;;  %v1159_v52 = vmul.f32 %v9207_v8, %v9116_v55  ;;  %v1029_v0 = vmul.f32 %v9145_v13, %v9145_v13  ;;  %v1231_v19 = vmul.f32 %v9178_v34, %v9110_v48 }
 0x118   : > { %v9195_v56 = vpop.f32.mrf.mxu1  ;;  %v9246_v38 = vadd.f32 %v1190_v2, %v1187_v10  ;;  %v1032_v2 = vmul.f32 %v9132_v3, %v9163_v25  ;;  %v9261_v10 = vmul.f32 %v1053_v23, %v9112_v50  ;;  %1322 = vmatprep.subr.mxu0 %v1225_v41  ;;  %1405 = vmatprep.subr.mxu1 %v1237_v43 }
 0x119   : > { %v9193_v54 = vpop.f32.mrf.mxu0  ;;  %12759 = vst [vmem:[#allocation9_spill] sm:$0xff] %v9195_v56  ;;  %v1186_v5 = vmul.f32 %v9207_v8, %v9110_v48  ;;  %1323 = vmatpush1.msra.mxu0 %v9143_v12  ;;  %v1224_v23 = vmul.f32 %v9145_v13, %v9112_v50  ;;  %v1054_v41 = vmul.f32 %v9244_v37, %v9126_v62 }
 0x11a   : > { %v8552_v18 = vpop.f32.mrf.mxu1  ;;  %v1035_v56 = vadd.f32 %v1032_v2, %v1029_v0  ;;  %v9281_v43 = vmul.f32 %v1184_v35, %v9122_v59  ;;  %1406 = vmatpush1.msra.mxu1 %v1231_v19  ;;  %v1162_v0 = vmul.f32 %v1159_v52, %v9116_v55  ;;  %v1034_v2 = vadd.f32 %v1031_v20, %v1028_v11  ;;  %v9300_v11 = vld [vmem:[%s12707_s2 + $0x18] sm:$0xff] }
 0x11b   : > { %v8544_v17 = vpop.f32.mrf.mxu0  ;;  %v1111_v18 = vmul.f32 0.0, %v9110_v48  ;;  %1324 = vmatprep.subr.mxu0 %v1224_v23  ;;  %v1230_v63 = vmul.f32 %v9145_v13, %v9104_v42  ;;  %v1235_v62 = vmul.f32 %v9134_v4, %v9122_v59  ;;  %v1030_v35 = vmul.f32 %v9178_v34, %v9178_v34 }
 0x11c   : > { %v9232_v32 = vpop.f32.mrf.mxu1  ;;  %v1188_v17 = vmul.f32 %v1185_v27, %v9104_v42  ;;  %12762 = vst [vmem:[#allocation12_spill] sm:$0xff] %v9281_v43  ;;  %1325 = vmatpush1.msra.mxu0 %v9132_v3  ;;  %v1189_v19 = vmul.f32 %v1186_v5, %v9110_v48  ;;  %v1057_v59 = vmul.f32 %v1054_v41, %v9116_v55 }
 0x11d   : > { %v9230_v31 = vpop.f32.mrf.mxu0  ;;  %12760 = vst [vmem:[#allocation10_spill] sm:$0xff] %v9232_v32  ;;  %v9276_v32 = vadd.f32 %v1164_v53, %v1161_v14  ;;  %v1223_v53 = vmul.f32 %v9134_v4, %v9106_v44  ;;  %v1192_v3 = vmul.f32 %v9178_v34, %v9148_v15  ;;  %v1168_v23 = vadd.f32 %v1165_v36, %v1162_v0 }
 0x11e   : > { %v8555_v46 = vpop.f32.mrf.mxu1  ;;  %v1194_v20 = vadd.f32 %v1191_v60, %v1188_v17  ;;  %v1212_v43 = vmul.f32 %v1185_v27, %v9108_v45  ;;  %v9310_v60 = vmul.f32 -2.0, %v1034_v2  ;;  %v9319_v17 = vmul.f32 0.0, %v9178_v34 }
 0x11f   : > { %v8547_v49 = vpop.f32.mrf.mxu0  ;;  %1326 = vmatprep.subr.mxu0 %v1223_v53  ;;  %v12763_v36 = vmov 0.0   ;;  %v1195_v27 = vadd.f32 %v1192_v3, %v1189_v19  ;;  %v1173_v0 = vmul.f32 %v9202_v1, %v9104_v42  ;;  %v9349_v19 = vld [vmem:[%s12707_s2 + $0x20] sm:$0xff] }
 0x120   : > { %v9267_v46 = vpop.f32.mrf.mxu1  ;;  %v1108_v49 = vmul.f32 %v9148_v15, %v9116_v55  ;;  %1327 = vmatpush1.msra.mxu0 %v9124_v61  ;;  %v1201_v61 = vmul.f32 %v1159_v52, %v9114_v51  ;;  %v1040_v3 = vmul.f32 %v9310_v60, %v9106_v44 }
 0x121   : > { %12761 = vst [vmem:[#allocation11_spill] sm:$0xff] %v9267_v46  ;;  %v1236_v46 = vmul.f32 %v9145_v13, %v9108_v45  ;;  %8219 = vmatmul.mubr.msk.f32.vlgmr.msra.gmra.mxu0 %vm404_vm3, %v9300_v11 }
 0x122   : > { %v8558_v24 = vpop.f32.mrf.mxu1  ;;  %v1114_v14 = vadd.f32 %v1111_v18, %v1108_v49  ;;  %v1174_v18 = vmul.f32 %v1159_v52, %v9110_v48  ;;  %1366 = vmatprep.mubr.f32.mxu0 %v12763_v36  ;;  %v1213_v49 = vmul.f32 %v1186_v5, %v9114_v51  ;;  %v1207_v53 = vadd.f32 %v1201_v61, %v9319_v17 }
 0x123   : > { %1407 = vmatprep.subr.mxu1 %v1236_v46  ;;  %v1033_v24 = vmul.f32 %v9143_v12, %v9207_v8  ;;  %v9303_v46 = vmul.f32 -2.0, %v1035_v56  ;;  %v1229_v56 = vmul.f32 %v9134_v4, %v9118_v57  ;;  %v1215_v51 = vmul.f32 %v9145_v13, %v9150_v16 }
 0x124   : > { %1408 = vmatpush1.msra.mxu1 %v1230_v63  ;;  %v1180_v52 = vadd.f32 %v1174_v18, %v9319_v17  ;;  %v1117_v5 = vmul.f32 %v1114_v14, %v9207_v8  ;;  %v1086_v18 = vmul.f32 %v9182_v39, %v9163_v25 }
 0x125   : > { %1409 = vmatprep.subr.mxu1 %v1235_v62  ;;  %v1036_v12 = vadd.f32 %v1033_v24, %v1030_v35  ;;  %v1041_v41 = vmul.f32 %v9303_v46, %v9112_v50  ;;  %v9336_v62 = vmul.f32 0.0, %v9145_v13  ;;  %v1216_v35 = vmul.f32 %v9178_v34, %v9168_v28  ;;  %8220 = vmatmul.mubr.msk.f32.gmra.mxu0 %vm404_vm3, %v9349_v19 }
 0x126   : > { %1410 = vmatpush1.msra.mxu1 %v1229_v56  ;;  %v1200_v24 = vmul.f32 %v9202_v1, %v9108_v45  ;;  %1488 = vmatprep.subr.mxu0 %v1180_v52  ;;  %v9355_v28 = vadd.f32 %v1215_v51, %v1212_v43  ;;  %v1172_v43 = vmul.f32 %v9173_v30, %v9118_v57 }
 0x127   : > { %v9316_v63 = vmul.f32 -2.0, %v1036_v12  ;;  %8222 = vmatmul.mubr.msk.f32.vlgmr.msra.gmra.mxu1 %vm404_vm3, %v9300_v11  ;;  %1571 = vmatprep.subr.mxu1 %v1207_v53  ;;  %v1179_v16 = vadd.f32 %v1173_v0, %v9336_v62  ;;  %v1044_v45 = vmul.f32 %v1041_v41, %v9112_v50  ;;  %v9360_v12 = vmul.f32 0.0, %v9134_v4 }
 0x128   : > { %1449 = vmatprep.mubr.f32.mxu1 %v12763_v36  ;;  %1489 = vmatpush1.msra.mxu0 %v1168_v23  ;;  %v1206_v1 = vadd.f32 %v1200_v24, %v9336_v62  ;;  %v1219_v56 = vadd.f32 %v1216_v35, %v1213_v49  ;;  %v1043_v49 = vmul.f32 %v1040_v3, %v9106_v44 }
 0x129   : > { %v1042_v2 = vmul.f32 %v9316_v63, %v9116_v55  ;;  %1572 = vmatpush1.msra.mxu1 %v1195_v27  ;;  %1490 = vmatprep.subr.mxu0 %v1179_v16  ;;  %v1205_v23 = vadd.f32 %v9226_v26, %v9360_v12  ;;  %v1178_v25 = vadd.f32 %v1172_v43, %v9360_v12 }
 0x12a   : > { %1573 = vmatprep.subr.mxu1 %v1206_v1  ;;  %1491 = vmatpush1.msra.mxu0 %v9276_v32  ;;  %v1087_v30 = vmul.f32 %v9184_v40, %v9207_v8  ;;  %v1047_v32 = vmul.f32 %v1044_v45, %v9112_v50  ;;  %v1101_v40 = vmul.f32 %v1041_v41, %v9104_v42 }
 0x12b   : > { %v1045_v14 = vmul.f32 %v1042_v2, %v9116_v55  ;;  %1574 = vmatpush1.msra.mxu1 %v1194_v20  ;;  %1372 = vmatprep.mubr.f32.mxu0 %v12763_v36  ;;  %v1102_v39 = vmul.f32 %v1042_v2, %v9110_v48  ;;  %v1071_v20 = vmul.f32 %v1044_v45, %v9104_v42 }
 0x12c   : > { %8223 = vmatmul.mubr.msk.f32.gmra.mxu1 %vm404_vm3, %v9349_v19  ;;  %1575 = vmatprep.subr.mxu1 %v1205_v23  ;;  %v1104_v52 = vmul.f32 %v1101_v40, %v9104_v42  ;;  %v1100_v53 = vmul.f32 %v1040_v3, %v9118_v57  ;;  %v1070_v41 = vmul.f32 %v1043_v49, %v9118_v57 }
 0x12d   : > { %v1072_v61 = vmul.f32 %v1045_v14, %v9110_v48  ;;  %v1048_v27 = vmul.f32 %v1045_v14, %v9116_v55  ;;  %v9384_v55 = vld [vmem:[%s12707_s2 + $0x28] sm:$0xff]  ;;  %1492 = vmatprep.subr.mxu0 %v1178_v25  ;;  %1576 = vmatpush1.msra.mxu1 %v9246_v38  ;;  %v1105_v0 = vmul.f32 %v1102_v39, %v9110_v48  ;;  %v12767_v25 = vld [vmem:[#allocation11_spill] sm:$0xff] }
 0x12e   : > { %1493 = vmatpush1.msra.mxu0 %v9234_v33  ;;  %1455 = vmatprep.mubr.f32.mxu1 %v12763_v36  ;;  %v1046_v38 = vmul.f32 %v1043_v49, %v9106_v44  ;;  %v1093_v33 = vmul.f32 %v9178_v34, %v9230_v31  ;;  %v1132_v51 = vmul.f32 %v9316_v63, %v9110_v48 }
 0x12f   : > { %v1060_v26 = vadd.f32 %v1057_v59, %v1048_v27  ;;  %v1090_v8 = vadd.f32 %v1087_v30, %v1072_v61  ;;  %v1059_v59 = vadd.f32 %v9261_v10, %v1047_v32  ;;  %8221 = vmatmul.mubr.msk.f32.gmra.mxu0 %vm404_vm3, %v9384_v55  ;;  %v1120_v50 = vadd.f32 %v1117_v5, %v1105_v0  ;;  %v12768_v30 = vld [vmem:[#allocation10_spill] sm:$0xff] }
 0x130   : > { %8224 = vmatmul.mubr.msk.f32.gmra.mxu1 %vm404_vm3, %v9384_v55  ;;  %v1089_v10 = vadd.f32 %v1086_v18, %v1071_v20  ;;  %1526 = vmatprep.mubr.f32.mxu0 %v12763_v36  ;;  %v1119_v44 = vadd.f32 %v9241_v58, %v1104_v52  ;;  %v1092_v35 = vmul.f32 %v9145_v13, %v9193_v54 }
 0x131   : > { %v1066_v2 = vadd.f32 %v9319_v17, %v1060_v26  ;;  %v1126_v5 = vadd.f32 %v1120_v50, %v9319_v17  ;;  %1609 = vmatprep.mubr.f32.mxu1 %v12763_v36  ;;  %v1131_v31 = vmul.f32 %v9303_v46, %v9104_v42  ;;  %v1058_v63 = vadd.f32 %v9220_v22, %v1046_v38  ;;  %v1886_v50 = vpop.permute.xlu0 %1885 }
 0x132   : > { %v1103_v24 = vmul.f32 %v1100_v53, %v9118_v57  ;;  %v1130_v3 = vmul.f32 %v9310_v60, %v9118_v57  ;;  %v1096_v17 = vadd.f32 %v1093_v33, %v1090_v8  ;;  %v1065_v58 = vadd.f32 %v9336_v62, %v1059_v59 }
 0x133   : > { %1654 = vmatprep.subr.mxu0 %v1066_v2  ;;  %1737 = vmatprep.subr.mxu1 %v1126_v5  ;;  %v1135_v14 = vmul.f32 %v1132_v51, %v9110_v48  ;;  %v1125_v54 = vadd.f32 %v1119_v44, %v9336_v62  ;;  %v1214_v46 = vmul.f32 %v9134_v4, %v9138_v7 }
 0x134   : > { %8225 = vmatmul.mubr.msk.f32.vlgmr.msra.gmra.mxu0 %vm404_vm3, %v9300_v11  ;;  %8228 = vmatmul.mubr.msk.f32.vlgmr.msra.gmra.mxu1 %vm404_vm3, %v9300_v11  ;;  %v1118_v22 = vadd.f32 %v9209_v9, %v1103_v24  ;;  %v1088_v60 = vadd.f32 %v9217_v21, %v1070_v41  ;;  %v1095_v16 = vadd.f32 %v1092_v35, %v1089_v10 }
 0x135   : > { %1655 = vmatpush1.msra.mxu0 %v1219_v56  ;;  %1738 = vmatpush1.msra.mxu1 %v1096_v17  ;;  %v1141_v45 = vmul.f32 %v9244_v37, %v9148_v15  ;;  %v1134_v1 = vmul.f32 %v1131_v31, %v9104_v42  ;;  %v1064_v62 = vadd.f32 %v9360_v12, %v1058_v63  ;;  %v12764_v56 = vld [vmem:[#allocation12_spill] sm:$0xff] }
 0x136   : > { %1656 = vmatprep.subr.mxu0 %v1065_v58  ;;  %1739 = vmatprep.subr.mxu1 %v1125_v54  ;;  %v1140_v9 = vmul.f32 %v9190_v47, %v9136_v6  ;;  %v1091_v7 = vmul.f32 %v9134_v4, %v9170_v29  ;;  %v1124_v21 = vadd.f32 %v1118_v22, %v9360_v12  ;;  %v12765_v6 = vld [vmem:[#allocation7_spill] sm:$0xff]  ;;  %v12766_v29 = vld [vmem:[#allocation8_spill] sm:$0xff] }
 0x137   : > { %1657 = vmatpush1.msra.mxu0 %v9355_v28  ;;  %1740 = vmatpush1.msra.mxu1 %v1095_v16  ;;  %v1217_v15 = vadd.f32 %v1214_v46, %v12764_v56  ;;  %v1133_v37 = vmul.f32 %v1130_v3, %v9118_v57  ;;  %v1138_v18 = vmul.f32 %v1135_v14, %v9110_v48 }
 0x138   : > { %1532 = vmatprep.mubr.f32.mxu0 %v12763_v36  ;;  %1615 = vmatprep.mubr.f32.mxu1 %v12763_v36  ;;  %v1094_v28 = vadd.f32 %v1091_v7, %v1088_v60  ;;  %v1139_v47 = vmul.f32 %v12766_v29, %v12765_v6  ;;  %v1144_v43 = vmul.f32 %v1141_v45, %v9110_v48 }
 0x139   : > { %1658 = vmatprep.subr.mxu0 %v1064_v62  ;;  %1741 = vmatprep.subr.mxu1 %v1124_v21  ;;  %v1137_v12 = vmul.f32 %v1134_v1, %v9104_v42  ;;  %v1143_v61 = vmul.f32 %v1140_v9, %v9104_v42  ;;  %v1136_v23 = vmul.f32 %v1133_v37, %v9118_v57 }
 0x13a   : > { %8226 = vmatmul.mubr.msk.f32.gmra.mxu0 %vm404_vm3, %v9349_v19  ;;  %8229 = vmatmul.mubr.msk.f32.gmra.mxu1 %vm404_vm3, %v9349_v19  ;;  %v1147_v27 = vadd.f32 %v1144_v43, %v1138_v18  ;;  %v1142_v48 = vmul.f32 %v1139_v47, %v9118_v57  ;;  %v1150_v39 = vmul.f32 %v9178_v34, %v12767_v25  ;;  %v12769_v57 = vld [vmem:[#allocation9_spill] sm:$0xff] }
 0x13b   : > { %1659 = vmatpush1.msra.mxu0 %v1217_v15  ;;  %1742 = vmatpush1.msra.mxu1 %v1094_v28  ;;  %v1146_v49 = vadd.f32 %v1143_v61, %v1137_v12  ;;  %v1149_v26 = vmul.f32 %v9145_v13, %v12768_v30  ;;  %v1148_v20 = vmul.f32 %v9134_v4, %v12769_v57  ;;  %v1891_v4 = vpop.permute.xlu1 %1890 }
 0x13c   : > { %1538 = vmatprep.mubr.f32.mxu0 %v12763_v36  ;;  %1621 = vmatprep.mubr.f32.mxu1 %v12763_v36  ;;  %v1145_v42 = vadd.f32 %v1142_v48, %v1136_v23  ;;  %v1153_v32 = vadd.f32 %v1150_v39, %v1147_v27 }
 0x13d   : > { %8559 = vmatprep.subr.mxu0 %v12763_v36  ;;  %v1152_v0 = vadd.f32 %v1149_v26, %v1146_v49 }
 0x13e   : > { %8227 = vmatmul.mubr.msk.f32.gmra.mxu0 %vm404_vm3, %v9384_v55  ;;  %8230 = vmatmul.mubr.msk.f32.gmra.mxu1 %vm404_vm3, %v9384_v55  ;;  %v1151_v34 = vadd.f32 %v1148_v20, %v1145_v42 }
 0x13f   : > { %1692 = vmatprep.mubr.f32.mxu0 %v12763_v36  ;;  %1775 = vmatprep.mubr.f32.mxu1 %v12763_v36  ;;  %v1881_v13 = vpop.permute.xlu1 %1880 }
 0x142   : > { %8231 = vmatmul.mubr.msk.f32.vlgmr.msra.gmra.mxu0 %vm404_vm3, %v9300_v11  ;;  %8234 = vmatmul.mubr.msk.f32.vlgmr.msra.gmra.mxu1 %vm404_vm3, %v9300_v11 }
 0x143   : > { %8560 = vmatpush3.msra.mxu0 %v1153_v32  ;;  %1698 = vmatprep.mubr.f32.mxu0 %v12763_v36 }
 0x144   : > { %8561 = vmatprep.subr.mxu0 %v12763_v36  ;;  %1781 = vmatprep.mubr.f32.mxu1 %v12763_v36 }
 0x145   : > { %8562 = vmatpush3.msra.mxu0 %v1152_v0 }
 0x146   : > { %8563 = vmatprep.subr.mxu0 %v12763_v36  ;;  %8232 = vmatmul.mubr.msk.f32.gmra.mxu0 %vm404_vm3, %v9349_v19 }
 0x147   : > { %8235 = vmatmul.mubr.msk.f32.gmra.mxu1 %vm404_vm3, %v9349_v19  ;;  %8564 = vmatpush3.msra.mxu0 %v1151_v34 }
 0x148   : > { %1704 = vmatprep.mubr.f32.mxu0 %v12763_v36  ;;  %1787 = vmatprep.mubr.f32.mxu1 %v12763_v36 }
 0x14a   : > { %8233 = vmatmul.mubr.msk.f32.gmra.mxu0 %vm404_vm3, %v9384_v55 }
 0x14b   : > { %8236 = vmatmul.mubr.msk.f32.gmra.mxu1 %vm404_vm3, %v9384_v55  ;;  %8565 = vmatprep.mubr.msk.f32.mxu0 %vm8819_vm4, %v12763_v36 }
 0x14c   : > { %2243 = vmatprep.mubr.f32.mxu1 %v12763_v36 }
 0x14e   : > { %8566 = vmatmul.mubr.msk.f32.vlgmr.msra.gmra.mxu0 %vm404_vm3, %v9300_v11 }
 0x14f   : > { %8568 = vmatprep.mubr.msk.f32.mxu0 %vm8819_vm4, %v12763_v36 }
 0x152   : > { %8569 = vmatmul.mubr.msk.f32.gmra.mxu0 %vm404_vm3, %v9349_v19 }
 0x153   : > { %8571 = vmatprep.mubr.msk.f32.mxu0 %vm8819_vm4, %v12763_v36 }
 0x156   : > { %8572 = vmatmul.mubr.msk.f32.gmra.mxu0 %vm404_vm3, %v9384_v55 }
 0x157   : > { %2326 = vmatprep.mubr.f32.mxu0 %v12763_v36 }
 0x1e1   : > { %v1362_v40 = vpop.f32.mrf.mxu0 }
 0x1e2   : > { %v1893_v8 = vadd.f32 %v1881_v13, %v1362_v40 }
 0x1e3   : > { %v9505_v11 = vpop.f32.mrf.mxu0 }
 0x1e4   : > { %8730 = vtanh.f32 %v1893_v8 }
 0x1e5   : > { %v1368_v19 = vpop.f32.mrf.mxu0 }
 0x1e6   : > { %v1894_v38 = vadd.f32 %v1886_v50, %v1368_v19 }
 0x1e7   : > { %v9503_v2 = vpop.f32.mrf.mxu1  ;;  %v9509_v52 = vpop.f32.mrf.mxu0 }
 0x1e8   : > { %8732 = vtanh.f32 %v1894_v38 }
 0x1e9   : > { %v9507_v59 = vpop.f32.mrf.mxu1 }
 0x1ec   : > { %v9511_v53 = vpop.f32.mrf.mxu1 }
 0x1ee   : > { %v9513_v55 = vpop.f32.mrf.mxu1 }
 0x1ef   : > { %v1374_v41 = vpop.f32.mrf.mxu0 }
 0x1f0   : > { %v9515_v33 = vpop.f32.mrf.mxu1  ;;  %v1895_v10 = vadd.f32 %v1891_v4, %v1374_v41 }
 0x1f1   : > { %v9517_v51 = vpop.f32.mrf.mxu0  ;;  %v9521_v35 = vpop.eup %8730 }
 0x1f2   : > { %v9519_v5 = vpop.f32.mrf.mxu1  ;;  %8734 = vtanh.f32 %v1895_v10  ;;  %v1899_v24 = vmul.f32 %v9521_v35, %v9521_v35  ;;  %v1905_v22 = vmul.f32 -2.0, %v9521_v35 }
 0x1f4   : > { %v1528_v44 = vpop.f32.mrf.mxu0  ;;  %v9523_v63 = vpop.f32.mrf.mxu1  ;;  %v9529_v58 = vsub.f32 1.0, %v1899_v24 }
 0x1f5   : > { %12770 = vst [vmem:[#allocation12_spill] sm:$0xff] %v9523_v63  ;;  %v9531_v54 = vpop.eup %8732  ;;  %v1956_v47 = vmul.f32 %v1528_v44, %v9503_v2  ;;  %v1989_v48 = vmul.f32 %v9523_v63, %v9505_v11 }
 0x1f6   : > { %v1530_v31 = vpop.f32.mrf.mxu0  ;;  %v1613_v17 = vpop.f32.mrf.mxu1  ;;  %v9539_v16 = vmul.f32 %v1905_v22, %v9529_v58  ;;  %v1900_v1 = vmul.f32 %v9531_v54, %v9531_v54  ;;  %v1906_v12 = vmul.f32 -2.0, %v9531_v54  ;;  %v2046_v27 = vmul.f32 %v9529_v58, %v1528_v44 }
 0x1f7   : > { %v1959_v9 = vmul.f32 2.0, %v1530_v31  ;;  %v2073_v42 = vmul.f32 %v9529_v58, %v9523_v63  ;;  %v9585_v30 = vmul.f32 %v9529_v58, %v1530_v31  ;;  %v2085_v57 = vmul.f32 %v9529_v58, %v1613_v17 }
 0x1f8   : > { %v9550_v56 = vmul.f32 3.0, %v9539_v16  ;;  %v9554_v37 = vsub.f32 1.0, %v1900_v1  ;;  %v9558_v18 = vmul.f32 %v9539_v16, %v9505_v11  ;;  %v9562_v28 = vmul.f32 %v9539_v16, %v9503_v2 }
 0x1f9   : > { %v1962_v43 = vmul.f32 %v1959_v9, %v9505_v11  ;;  %v1992_v49 = vmul.f32 %v1959_v9, %v9503_v2  ;;  %12774 = vst [vmem:[#allocation10_spill] sm:$0xff] %v9585_v30  ;;  %v9595_v0 = vmul.f32 %v9529_v58, %v9529_v58  ;;  %v9609_v19 = vmul.f32 %v9521_v35, %v9539_v16 }
 0x1fa   : > { %v9527_v3 = vpop.f32.mrf.mxu0  ;;  %v9536_v60 = vpop.f32.mrf.mxu1  ;;  %12772 = vst [vmem:[#allocation8_spill] sm:$0xff] %v9550_v56  ;;  %v1935_v23 = vmul.f32 %v9550_v56, %v1528_v44  ;;  %v2043_v39 = vmul.f32 %v9558_v18, %v9505_v11  ;;  %v9588_v26 = vmul.f32 %v1906_v12, %v9554_v37  ;;  %v2070_v32 = vmul.f32 %v9562_v28, %v9503_v2 }
 0x1fb   : > { %12771 = vst [vmem:[#allocation7_spill] sm:$0xff] %v9536_v60  ;;  %v9601_v13 = vadd.f32 %v1962_v43, %v1956_v47  ;;  %v2082_v40 = vmul.f32 %v9558_v18, %v9507_v59  ;;  %v9614_v38 = vadd.f32 %v1992_v49, %v1989_v48  ;;  %v1957_v41 = vmul.f32 %v9527_v3, %v9511_v53 }
 0x1fc   : > { %v1536_v14 = vpop.f32.mrf.mxu0  ;;  %v1619_v7 = vpop.f32.mrf.mxu1  ;;  %v9612_v50 = vmul.f32 %v1935_v23, %v9505_v11  ;;  %v1990_v10 = vmul.f32 %v9536_v60, %v9509_v52  ;;  %v9622_v31 = vadd.f32 %v2046_v27, %v2043_v39  ;;  %v9625_v24 = vmul.f32 3.0, %v9588_v26 }
 0x1fd   : > { %v1960_v20 = vmul.f32 2.0, %v1536_v14  ;;  %v9629_v17 = vmul.f32 %v9588_v26, %v9509_v52  ;;  %v9632_v1 = vadd.f32 %v2073_v42, %v2070_v32  ;;  %v9636_v9 = vmul.f32 %v9588_v26, %v9511_v53 }
 0x1fe   : > { %v9534_v46 = vpop.f32.mrf.mxu0  ;;  %v9571_v61 = vpop.f32.mrf.mxu1  ;;  %12776 = vst [vmem:[#allocation13_spill] sm:$0xff] %v9612_v50  ;;  %12777 = vst [vmem:[#allocation14_spill] sm:$0xff] %v9622_v31  ;;  %v9642_v12 = vadd.f32 %v2085_v57, %v2082_v40  ;;  %v2047_v23 = vmul.f32 %v9554_v37, %v9527_v3  ;;  %v2074_v27 = vmul.f32 %v9554_v37, %v9536_v60 }
 0x1ff   : > { %v9547_v21 = vpop.eup %8734  ;;  %12778 = vst [vmem:[#allocation15_spill] sm:$0xff] %v9625_v24  ;;  %12779 = vst [vmem:[#allocation16_spill] sm:$0xff] %v9632_v1  ;;  %v1993_v47 = vmul.f32 %v1960_v20, %v9511_v53  ;;  %v9654_v39 = vmul.f32 %v9554_v37, %v1536_v14  ;;  %v2086_v42 = vmul.f32 %v9554_v37, %v1619_v7 }
 0x200   : > { %v9541_v45 = vpop.f32.mrf.mxu0  ;;  %v1901_v29 = vmul.f32 %v9547_v21, %v9547_v21  ;;  %v9605_v8 = vpop.f32.mrf.mxu1  ;;  %v1907_v22 = vmul.f32 -2.0, %v9547_v21  ;;  %12781 = vst [vmem:[#allocation18_spill] sm:$0xff] %v9642_v12  ;;  %v9659_v32 = vmul.f32 %v9534_v46, %v9515_v33  ;;  %v9663_v57 = vmul.f32 %v9571_v61, %v9517_v51 }
 0x201   : > { %v1936_v40 = vmul.f32 %v9625_v24, %v9527_v3  ;;  %v9677_v63 = vadd.f32 %v1993_v47, %v1990_v10  ;;  %v2083_v24 = vmul.f32 %v9629_v17, %v9513_v55  ;;  %v2107_v12 = vmul.f32 %v9554_v37, %v9509_v52 }
 0x202   : > { %v9545_v62 = vpop.f32.mrf.mxu0  ;;  %v9599_v4 = vsub.f32 1.0, %v1901_v29  ;;  %v1963_v29 = vmul.f32 %v1960_v20, %v9509_v52  ;;  %v9651_v49 = vpop.f32.mrf.mxu1 }
 0x203   : > { %12782 = vst [vmem:[#allocation19_spill] sm:$0xff] %v9651_v49  ;;  %12783 = vst [vmem:[#allocation20_spill] sm:$0xff] %v9677_v63 }
 0x204   : > { %v9552_v15 = vpop.f32.mrf.mxu0  ;;  %v9649_v48 = vmul.f32 %v1907_v22, %v9599_v4  ;;  %v2044_v22 = vmul.f32 %v9629_v17, %v9509_v52  ;;  %v2108_v14 = vmul.f32 %v9599_v4, %v9517_v51  ;;  %v2120_v7 = vmul.f32 %v9599_v4, %v9519_v5  ;;  %v9685_v60 = vpop.f32.mrf.mxu1 }
 0x205   : > { %v9675_v56 = vadd.f32 %v1963_v29, %v1957_v41  ;;  %v1913_v49 = vmul.f32 %v9599_v4, %v9599_v4 }
 0x206   : > { %v9564_v6 = vpop.f32.mrf.mxu0  ;;  %2205 = vmatprep.subr.mxu1 %v2108_v14  ;;  %2288 = vmatprep.subr.mxu0 %v2120_v7  ;;  %v1916_v41 = vmul.f32 %v9547_v21, %v9649_v48  ;;  %v9692_v10 = vmul.f32 3.0, %v9649_v48  ;;  %v2042_v29 = vmul.f32 %v9649_v48, %v9517_v51  ;;  %v9698_v47 = vmul.f32 %v9649_v48, %v9515_v33 }
 0x207   : > { %v1912_v14 = vmul.f32 %v9554_v37, %v9554_v37  ;;  %2206 = vmatpush1.msra.mxu1 %v9547_v21  ;;  %v9709_v1 = vadd.f32 %v2047_v23, %v2044_v22  ;;  %v9717_v21 = vadd.f32 %v2086_v42, %v2083_v24  ;;  %v2075_v42 = vmul.f32 %v9599_v4, %v9571_v61 }
 0x208   : > { %v9578_v25 = vpop.f32.mrf.mxu0  ;;  %12785 = vst [vmem:[#allocation22_spill] sm:$0xff] %v9692_v10  ;;  %v1919_v50 = vadd.f32 %v1916_v41, %v1913_v49  ;;  %v1937_v23 = vmul.f32 %v9692_v10, %v9534_v46  ;;  %v2072_v24 = vmul.f32 %v9698_v47, %v9515_v33  ;;  %2207 = vmatprep.subr.mxu1 %v2107_v12 }
 0x209   : > { %12773 = vst [vmem:[#allocation11_spill] sm:$0xff] %v9578_v25  ;;  %v1961_v25 = vmul.f32 2.0, %v9541_v45  ;;  %v2084_v41 = vmul.f32 %v2042_v29, %v9519_v5  ;;  %2208 = vmatpush1.msra.mxu1 %v9531_v54  ;;  %v2113_v12 = vmul.f32 %v9554_v37, %v9511_v53  ;;  %v9781_v10 = vmul.f32 %v9601_v13, %v9539_v16 }
 0x20a   : > { %v9597_v34 = vpop.f32.mrf.mxu0  ;;  %v9723_v49 = vmul.f32 -2.0, %v1919_v50  ;;  %v9798_v13 = vmul.f32 %v9614_v38, %v9539_v16 }
 0x20b   : > { %12775 = vst [vmem:[#allocation9_spill] sm:$0xff] %v9597_v34  ;;  %v2114_v34 = vmul.f32 %v9599_v4, %v9515_v33  ;;  %v1964_v50 = vmul.f32 %v1961_v25, %v9517_v51 }
 0x20c   : > { %v9620_v44 = vpop.f32.mrf.mxu0 }
 0x20d   : > { %2289 = vmatpush1.msra.mxu0 %v2114_v34  ;;  %v1994_v34 = vmul.f32 %v1961_v25, %v9515_v33  ;;  %v2060_v25 = vmul.f32 %v9599_v4, %v9541_v45  ;;  %v2118_v45 = vmul.f32 %v9529_v58, %v9507_v59 }
 0x20e   : > { %v9640_v43 = vpop.f32.mrf.mxu0 }
 0x20f   : > { %12780 = vst [vmem:[#allocation17_spill] sm:$0xff] %v9640_v43  ;;  %v2071_v43 = vmul.f32 %v9636_v9, %v9511_v53 }
 0x210   : > { %v8567_v20 = vpop.f32.mrf.mxu0 }
 0x211   : > { %v1915_v20 = vmul.f32 %v9531_v54, %v9588_v26  ;;  %v9711_v31 = vadd.f32 %v2074_v27, %v2071_v43  ;;  %v2119_v43 = vmul.f32 %v9554_v37, %v9513_v55  ;;  %v2045_v27 = vmul.f32 %v2042_v29, %v9517_v51 }
 0x212   : > { %v9681_v3 = vpop.f32.mrf.mxu0 }
 0x213   : > { %12784 = vst [vmem:[#allocation21_spill] sm:$0xff] %v9681_v3  ;;  %v9704_v3 = vmul.f32 %v1936_v40, %v9509_v52  ;;  %v1918_v63 = vadd.f32 %v1915_v20, %v1912_v14  ;;  %v2048_v40 = vmul.f32 %v9599_v4, %v9534_v46  ;;  %v1917_v20 = vadd.f32 %v9609_v19, %v9595_v0 }
 0x214   : > { %v8570_v7 = vpop.f32.mrf.mxu0  ;;  %v1925_v46 = vmul.f32 %v9723_v49, %v9517_v51  ;;  %2290 = vmatprep.subr.mxu0 %v2119_v43  ;;  %v2087_v0 = vmul.f32 %v9599_v4, %v9605_v8  ;;  %v9754_v19 = vmul.f32 %v9562_v28, %v9507_v59  ;;  %v9769_v28 = vld [vmem:[%s12707_s2 + $0x30] sm:$0xff]  ;;  %v1940_v8 = vmul.f32 %v1937_v23, %v9517_v51 }
 0x215   : > { %v9721_v7 = vpop.f32.mrf.mxu1  ;;  %v9741_v14 = vmul.f32 -2.0, %v1918_v63  ;;  %v9758_v63 = vmul.f32 %v9529_v58, %v9545_v62  ;;  %2291 = vmatpush1.msra.mxu0 %v2113_v12  ;;  %v2051_v62 = vadd.f32 %v2048_v40, %v2045_v27  ;;  %v1997_v12 = vadd.f32 %v1994_v34, %v9663_v57 }
 0x216   : > { %v9715_v30 = vpop.f32.mrf.mxu0  ;;  %12787 = vst [vmem:[#allocation24_spill] sm:$0xff] %v9754_v19  ;;  %v1928_v43 = vmul.f32 %v1925_v46, %v9517_v51  ;;  %v9772_v19 = vmul.f32 -2.0, %v1917_v20  ;;  %2292 = vmatprep.subr.mxu0 %v2118_v45  ;;  %v2112_v40 = vmul.f32 %v9529_v58, %v9503_v2  ;;  %v9794_v57 = vmul.f32 %v9529_v58, %v9552_v15  ;;  %v9831_v20 = vld [vmem:[%s12707_s2 + $0x38] sm:$0xff] }
 0x217   : > { %12786 = vst [vmem:[#allocation23_spill] sm:$0xff] %v9715_v30  ;;  %12788 = vst [vmem:[#allocation25_spill] sm:$0xff] %v9758_v63  ;;  %v9760_v54 = vpop.f32.mrf.mxu1  ;;  %v1985_v30 = vmul.f32 %v1925_v46, %v9515_v33  ;;  %v2078_v63 = vadd.f32 %v2075_v42, %v2072_v24  ;;  %v1967_v46 = vadd.f32 %v1964_v50, %v9659_v32 }
 0x218   : > { %v8573_v22 = vpop.f32.mrf.mxu0  ;;  %v1924_v59 = vmul.f32 %v9741_v14, %v9509_v52  ;;  %v2056_v32 = vmul.f32 %v9629_v17, %v9511_v53  ;;  %v1931_v27 = vmul.f32 %v1928_v43, %v9517_v51  ;;  %v9807_v17 = vmul.f32 %v9529_v58, %v9685_v60  ;;  %2293 = vmatpush1.msra.mxu0 %v2112_v40 }
 0x219   : > { %v2106_v22 = vmul.f32 %v9529_v58, %v9505_v11  ;;  %v9783_v23 = vpop.f32.mrf.mxu1  ;;  %v1988_v24 = vmul.f32 %v1985_v30, %v9515_v33  ;;  %v9811_v15 = vmul.f32 %v9636_v9, %v9513_v55  ;;  %v9815_v51 = vmul.f32 %v9554_v37, %v9564_v6  ;;  %8249 = vmatmul.mubr.msk.f32.vlgmr.msra.gmra.mxu0 %vm404_vm3, %v9769_v28 }
 0x21a   : > { %v1927_v30 = vmul.f32 %v1924_v59, %v9509_v52  ;;  %v2000_v38 = vmul.f32 %v1997_v12, %v9649_v48  ;;  %v1984_v60 = vmul.f32 %v1924_v59, %v9511_v53  ;;  %v2062_v55 = vadd.f32 %v9654_v39, %v2056_v32  ;;  %2332 = vmatprep.mubr.f32.mxu0 %v12763_v36  ;;  %v12793_v59 = vld [vmem:[#allocation16_spill] sm:$0xff] }
 0x21b   : > { %2209 = vmatprep.subr.mxu1 %v2106_v22  ;;  %v2090_v22 = vadd.f32 %v2087_v0, %v2084_v41  ;;  %v1791_v42 = vpop.f32.mrf.mxu1  ;;  %v2055_v9 = vmul.f32 %v9558_v18, %v9503_v2  ;;  %v1969_v6 = vmul.f32 %v9675_v56, %v9588_v26  ;;  %v1943_v50 = vadd.f32 %v1940_v8, %v1931_v27 }
 0x21c   : > { %2210 = vmatpush1.msra.mxu1 %v9521_v35  ;;  %v2057_v35 = vmul.f32 %v2042_v29, %v9515_v33  ;;  %v1923_v29 = vmul.f32 %v9772_v19, %v9505_v11  ;;  %v2003_v34 = vadd.f32 %v2000_v38, %v1988_v24  ;;  %v1946_v18 = vmul.f32 %v9599_v4, %v9620_v44 }
 0x21d   : > { %8246 = vmatmul.mubr.msk.f32.vlgmr.msra.gmra.mxu1 %vm404_vm3, %v9769_v28  ;;  %2454 = vmatprep.subr.mxu0 %v2090_v22  ;;  %v1955_v56 = vmul.f32 %v1928_v43, %v9515_v33  ;;  %v1987_v45 = vmul.f32 %v1984_v60, %v9511_v53  ;;  %v1970_v8 = vmul.f32 %v1967_v46, %v9649_v48  ;;  %v12792_v22 = vld [vmem:[#allocation14_spill] sm:$0xff] }
 0x21e   : > { %2249 = vmatprep.mubr.f32.mxu1 %v12763_v36  ;;  %v2063_v16 = vadd.f32 %v2060_v25, %v2057_v35  ;;  %2455 = vmatpush1.msra.mxu0 %v2078_v63  ;;  %v1926_v41 = vmul.f32 %v1923_v29, %v9505_v11  ;;  %v1983_v39 = vmul.f32 %v1923_v29, %v9503_v2  ;;  %v12794_v35 = vld [vmem:[#allocation9_spill] sm:$0xff] }
 0x21f   : > { %2456 = vmatprep.subr.mxu0 %v9717_v21  ;;  %v2006_v25 = vmul.f32 %v9599_v4, %v1791_v42  ;;  %v12789_v21 = vld [vmem:[#allocation10_spill] sm:$0xff]  ;;  %v1930_v63 = vmul.f32 %v1927_v30, %v9509_v52  ;;  %8250 = vmatmul.mubr.msk.f32.gmra.mxu0 %vm404_vm3, %v9831_v20  ;;  %v1954_v44 = vmul.f32 %v1927_v30, %v9511_v53  ;;  %v9855_v52 = vld [vmem:[%s12707_s2 + $0x40] sm:$0xff] }
 0x220   : > { %2371 = vmatprep.subr.mxu1 %v2063_v16  ;;  %2457 = vmatpush1.msra.mxu0 %v9711_v31  ;;  %v2061_v0 = vadd.f32 %v12789_v21, %v2055_v9  ;;  %v1949_v43 = vadd.f32 %v1946_v18, %v1943_v50  ;;  %v12790_v31 = vld [vmem:[#allocation18_spill] sm:$0xff]  ;;  %v1929_v48 = vmul.f32 %v1926_v41, %v9505_v11  ;;  %v12795_v16 = vld [vmem:[#allocation13_spill] sm:$0xff] }
 0x221   : > { %2372 = vmatpush1.msra.mxu1 %v2051_v62  ;;  %2458 = vmatprep.subr.mxu0 %v12790_v31  ;;  %v12791_v62 = vld [vmem:[#allocation20_spill] sm:$0xff]  ;;  %v2096_v12 = vmul.f32 %v9698_v47, %v9519_v5  ;;  %v1986_v40 = vmul.f32 %v1983_v39, %v9503_v2  ;;  %v2099_v32 = vmul.f32 %v9599_v4, %v12794_v35 }
 0x222   : > { %2373 = vmatprep.subr.mxu1 %v2062_v55  ;;  %8247 = vmatmul.mubr.msk.f32.gmra.mxu1 %vm404_vm3, %v9831_v20  ;;  %v1999_v46 = vmul.f32 %v12791_v62, %v9588_v26  ;;  %v1973_v27 = vadd.f32 %v1970_v8, %v1955_v56  ;;  %v1975_v11 = vmul.f32 %v9554_v37, %v9721_v7  ;;  %v12796_v7 = vld [vmem:[#allocation11_spill] sm:$0xff]  ;;  %v12799_v56 = vld [vmem:[#allocation24_spill] sm:$0xff] }
 0x223   : > { %2374 = vmatpush1.msra.mxu1 %v9709_v1  ;;  %v2009_v1 = vadd.f32 %v2006_v25, %v2003_v34  ;;  %2459 = vmatpush1.msra.mxu0 %v12793_v59  ;;  %v1942_v26 = vadd.f32 %v9704_v3, %v1930_v63  ;;  %v1953_v47 = vmul.f32 %v1926_v41, %v9503_v2  ;;  %v12803_v8 = vld [vmem:[#allocation12_spill] sm:$0xff] }
 0x224   : > { %2375 = vmatprep.subr.mxu1 %v2061_v0  ;;  %2255 = vmatprep.mubr.f32.mxu1 %v12763_v36  ;;  %v2002_v5 = vadd.f32 %v1999_v46, %v1987_v45  ;;  %v1972_v24 = vadd.f32 %v1969_v6, %v1954_v44  ;;  %v1976_v29 = vmul.f32 %v9599_v4, %v9783_v23  ;;  %v12802_v0 = vld [vmem:[#allocation15_spill] sm:$0xff]  ;;  %v12804_v44 = vld [vmem:[#allocation8_spill] sm:$0xff] }
 0x225   : > { %2376 = vmatpush1.msra.mxu1 %v12792_v22  ;;  %2338 = vmatprep.mubr.f32.mxu0 %v12763_v36  ;;  %v1941_v30 = vadd.f32 %v12795_v16, %v1929_v48  ;;  %v1945_v3 = vmul.f32 %v9554_v37, %v12796_v7  ;;  %v2005_v38 = vmul.f32 %v9554_v37, %v9760_v54  ;;  %v12805_v48 = vld [vmem:[#allocation23_spill] sm:$0xff]  ;;  %v12806_v22 = vld [vmem:[#allocation21_spill] sm:$0xff]  ;;  %v2769_v16 = vpop.permute.xlu1 %2768 }
 0x226   : > { %8248 = vmatmul.mubr.msk.f32.gmra.mxu1 %vm404_vm3, %v9855_v52  ;;  %8251 = vmatmul.mubr.msk.f32.gmra.mxu0 %vm404_vm3, %v9855_v52  ;;  %v2001_v60 = vadd.f32 %v9798_v13, %v1986_v40  ;;  %v2102_v42 = vadd.f32 %v2099_v32, %v2096_v12  ;;  %v1979_v55 = vadd.f32 %v1976_v29, %v1973_v27  ;;  %v12807_v40 = vld [vmem:[#allocation17_spill] sm:$0xff] }
 0x227   : > { %2537 = vmatprep.subr.mxu1 %v1949_v43  ;;  %2620 = vmatprep.subr.mxu0 %v2009_v1  ;;  %v2015_v23 = vmul.f32 %v9723_v49, %v9515_v33  ;;  %v2101_v9 = vadd.f32 %v9815_v51, %v9811_v15  ;;  %v1948_v6 = vadd.f32 %v1945_v3, %v1942_v26  ;;  %v12797_v49 = vld [vmem:[#allocation19_spill] sm:$0xff] }
 0x228   : > { %2409 = vmatprep.mubr.f32.mxu1 %v12763_v36  ;;  %2492 = vmatprep.mubr.f32.mxu0 %v12763_v36  ;;  %v2008_v50 = vadd.f32 %v2005_v38, %v2002_v5  ;;  %v1971_v54 = vadd.f32 %v9781_v10, %v1953_v47  ;;  %v1978_v34 = vadd.f32 %v1975_v11, %v1972_v24 }
 0x229   : > { %v2014_v13 = vmul.f32 %v9741_v14, %v9511_v53  ;;  %v1974_v41 = vmul.f32 %v9529_v58, %v12797_v49  ;;  %v1947_v15 = vadd.f32 %v9794_v57, %v1941_v30  ;;  %v2007_v51 = vadd.f32 %v9807_v17, %v2001_v60  ;;  %v12798_v14 = vld [vmem:[#allocation22_spill] sm:$0xff]  ;;  %v12800_v57 = vld [vmem:[#allocation25_spill] sm:$0xff] }
 0x22a   : > { %8252 = vmatmul.mubr.msk.f32.vlgmr.msra.gmra.mxu1 %vm404_vm3, %v9769_v28  ;;  %8255 = vmatmul.mubr.msk.f32.vlgmr.msra.gmra.mxu0 %vm404_vm3, %v9769_v28  ;;  %v2013_v39 = vmul.f32 %v9772_v19, %v9503_v2  ;;  %v2018_v10 = vmul.f32 %v2015_v23, %v9515_v33  ;;  %v2024_v18 = vmul.f32 %v12798_v14, %v9571_v61  ;;  %v12801_v19 = vld [vmem:[#allocation7_spill] sm:$0xff] }
 0x22b   : > { %2538 = vmatpush1.msra.mxu1 %v2102_v42  ;;  %2621 = vmatpush1.msra.mxu0 %v1979_v55  ;;  %v2100_v25 = vadd.f32 %v12800_v57, %v12799_v56  ;;  %v1977_v21 = vadd.f32 %v1974_v41, %v1971_v54  ;;  %v2017_v17 = vmul.f32 %v2014_v13, %v9511_v53 }
 0x22c   : > { %2539 = vmatprep.subr.mxu1 %v1948_v6  ;;  %2622 = vmatprep.subr.mxu0 %v2008_v50  ;;  %v2023_v63 = vmul.f32 %v12802_v0, %v12801_v19  ;;  %v2016_v61 = vmul.f32 %v2013_v39, %v9503_v2  ;;  %v2021_v45 = vmul.f32 %v2018_v10, %v9515_v33 }
 0x22d   : > { %2540 = vmatpush1.msra.mxu1 %v2101_v9  ;;  %2623 = vmatpush1.msra.mxu0 %v1978_v34  ;;  %v2022_v43 = vmul.f32 %v12804_v44, %v12803_v8  ;;  %v2027_v1 = vmul.f32 %v2024_v18, %v9515_v33  ;;  %v2020_v31 = vmul.f32 %v2017_v17, %v9511_v53 }
 0x22e   : > { %2415 = vmatprep.mubr.f32.mxu1 %v12763_v36  ;;  %2498 = vmatprep.mubr.f32.mxu0 %v12763_v36  ;;  %v2033_v62 = vmul.f32 %v9599_v4, %v12805_v48  ;;  %v2026_v46 = vmul.f32 %v2023_v63, %v9511_v53  ;;  %v2019_v12 = vmul.f32 %v2016_v61, %v9503_v2 }
 0x22f   : > { %2541 = vmatprep.subr.mxu1 %v1947_v15  ;;  %2624 = vmatprep.subr.mxu0 %v2007_v51  ;;  %v2032_v33 = vmul.f32 %v9554_v37, %v12806_v22  ;;  %v2030_v59 = vadd.f32 %v2027_v1, %v2021_v45  ;;  %v2025_v4 = vmul.f32 %v2022_v43, %v9503_v2 }
 0x230   : > { %8253 = vmatmul.mubr.msk.f32.gmra.mxu1 %vm404_vm3, %v9831_v20  ;;  %8256 = vmatmul.mubr.msk.f32.gmra.mxu0 %vm404_vm3, %v9831_v20  ;;  %v2031_v53 = vmul.f32 %v9529_v58, %v12807_v40  ;;  %v2029_v35 = vadd.f32 %v2026_v46, %v2020_v31  ;;  %v2774_v58 = vpop.permute.xlu0 %2773 }
 0x231   : > { %2542 = vmatpush1.msra.mxu1 %v2100_v25  ;;  %2625 = vmatpush1.msra.mxu0 %v1977_v21  ;;  %v2036_v32 = vadd.f32 %v2033_v62, %v2030_v59  ;;  %v2028_v27 = vadd.f32 %v2025_v4, %v2019_v12 }
 0x232   : > { %2421 = vmatprep.mubr.f32.mxu1 %v12763_v36  ;;  %2504 = vmatprep.mubr.f32.mxu0 %v12763_v36  ;;  %v2035_v37 = vadd.f32 %v2032_v33, %v2029_v35 }
 0x233   : > { %8574 = vmatprep.subr.mxu1 %v12763_v36  ;;  %v2034_v2 = vadd.f32 %v2031_v53, %v2028_v27 }
 0x234   : > { %8254 = vmatmul.mubr.msk.f32.gmra.mxu1 %vm404_vm3, %v9855_v52  ;;  %8257 = vmatmul.mubr.msk.f32.gmra.mxu0 %vm404_vm3, %v9855_v52  ;;  %v2764_v26 = vpop.permute.xlu0 %2763 }
 0x235   : > { %2575 = vmatprep.mubr.f32.mxu1 %v12763_v36  ;;  %2658 = vmatprep.mubr.f32.mxu0 %v12763_v36 }
 0x238   : > { %8258 = vmatmul.mubr.msk.f32.vlgmr.msra.gmra.mxu1 %vm404_vm3, %v9769_v28  ;;  %8261 = vmatmul.mubr.msk.f32.vlgmr.msra.gmra.mxu0 %vm404_vm3, %v9769_v28 }
 0x239   : > { %8575 = vmatpush3.msra.mxu1 %v2036_v32  ;;  %2581 = vmatprep.mubr.f32.mxu1 %v12763_v36 }
 0x23a   : > { %8576 = vmatprep.subr.mxu1 %v12763_v36  ;;  %2664 = vmatprep.mubr.f32.mxu0 %v12763_v36 }
 0x23b   : > { %8577 = vmatpush3.msra.mxu1 %v2035_v37 }
 0x23c   : > { %8578 = vmatprep.subr.mxu1 %v12763_v36  ;;  %8259 = vmatmul.mubr.msk.f32.gmra.mxu1 %vm404_vm3, %v9831_v20 }
 0x23d   : > { %8262 = vmatmul.mubr.msk.f32.gmra.mxu0 %vm404_vm3, %v9831_v20  ;;  %8579 = vmatpush3.msra.mxu1 %v2034_v2 }
 0x23e   : > { %2587 = vmatprep.mubr.f32.mxu1 %v12763_v36  ;;  %2670 = vmatprep.mubr.f32.mxu0 %v12763_v36 }
 0x240   : > { %8260 = vmatmul.mubr.msk.f32.gmra.mxu1 %vm404_vm3, %v9855_v52 }
 0x241   : > { %8263 = vmatmul.mubr.msk.f32.gmra.mxu0 %vm404_vm3, %v9855_v52  ;;  %8580 = vmatprep.mubr.msk.f32.mxu1 %vm8819_vm4, %v12763_v36 }
 0x242   : > { %3126 = vmatprep.mubr.f32.mxu0 %v12763_v36 }
 0x244   : > { %8581 = vmatmul.mubr.msk.f32.vlgmr.msra.gmra.mxu1 %vm404_vm3, %v9769_v28 }
 0x245   : > { %8583 = vmatprep.mubr.msk.f32.mxu1 %vm8819_vm4, %v12763_v36 }
 0x248   : > { %8584 = vmatmul.mubr.msk.f32.gmra.mxu1 %vm404_vm3, %v9831_v20 }
 0x249   : > { %8586 = vmatprep.mubr.msk.f32.mxu1 %vm8819_vm4, %v12763_v36 }
 0x24c   : > { %8587 = vmatmul.mubr.msk.f32.gmra.mxu1 %vm404_vm3, %v9855_v52 }
 0x24d   : > { %3209 = vmatprep.mubr.f32.mxu1 %v12763_v36 }
 0x2d9   : > { %v9974_v47 = vpop.f32.mrf.mxu0 }
 0x2db   : > { %v9978_v24 = vpop.f32.mrf.mxu0 }
 0x2dd   : > { %v2245_v11 = vpop.f32.mrf.mxu1 }
 0x2de   : > { %v2776_v5 = vadd.f32 %v2764_v26, %v2245_v11 }
 0x2df   : > { %v9976_v28 = vpop.f32.mrf.mxu1  ;;  %v9980_v29 = vpop.f32.mrf.mxu0 }
 0x2e0   : > { %8736 = vtanh.f32 %v2776_v5 }
 0x2e1   : > { %v9984_v52 = vpop.f32.mrf.mxu0 }
 0x2e2   : > { %v2251_v20 = vpop.f32.mrf.mxu1 }
 0x2e3   : > { %v2777_v7 = vadd.f32 %v2769_v16, %v2251_v20 }
 0x2e4   : > { %v9982_v30 = vpop.f32.mrf.mxu1 }
 0x2e5   : > { %8738 = vtanh.f32 %v2777_v7 }
 0x2e6   : > { %v2257_v3 = vpop.f32.mrf.mxu1  ;;  %v9986_v38 = vpop.f32.mrf.mxu0 }
 0x2e7   : > { %v2778_v42 = vadd.f32 %v2774_v58, %v2257_v3 }
 0x2e8   : > { %v9988_v60 = vpop.f32.mrf.mxu1  ;;  %v9990_v55 = vpop.f32.mrf.mxu0 }
 0x2e9   : > { %8740 = vtanh.f32 %v2778_v42 }
 0x2ea   : > { %v2411_v23 = vpop.f32.mrf.mxu1  ;;  %v9994_v50 = vpop.f32.mrf.mxu0 }
 0x2eb   : > { %12808 = vst [vmem:[#allocation10_spill] sm:$0xff] %v9994_v50  ;;  %v2839_v43 = vmul.f32 %v2411_v23, %v9974_v47  ;;  %v2872_v62 = vmul.f32 %v9994_v50, %v9976_v28 }
 0x2ec   : > { %v2413_v9 = vpop.f32.mrf.mxu1  ;;  %v2496_v13 = vpop.f32.mrf.mxu0 }
 0x2ed   : > { %v9992_v6 = vpop.eup %8736  ;;  %v2842_v25 = vmul.f32 2.0, %v2413_v9 }
 0x2ee   : > { %v2782_v54 = vmul.f32 %v9992_v6, %v9992_v6  ;;  %v2788_v39 = vmul.f32 -2.0, %v9992_v6 }
 0x2ef   : > { %v2845_v1 = vmul.f32 %v2842_v25, %v9976_v28  ;;  %v2875_v46 = vmul.f32 %v2842_v25, %v9974_v47 }
 0x2f0   : > { %v9998_v34 = vpop.f32.mrf.mxu1  ;;  %v10002_v41 = vsub.f32 1.0, %v2782_v54  ;;  %v10009_v10 = vpop.f32.mrf.mxu0 }
 0x2f1   : > { %12809 = vst [vmem:[#allocation18_spill] sm:$0xff] %v10009_v10  ;;  %v10071_v58 = vadd.f32 %v2845_v1, %v2839_v43  ;;  %v10083_v16 = vadd.f32 %v2875_v46, %v2872_v62  ;;  %v2840_v7 = vmul.f32 %v9998_v34, %v9980_v29 }
 0x2f2   : > { %v10000_v49 = vpop.f32.mrf.mxu1  ;;  %v10006_v51 = vpop.eup %8738  ;;  %v10014_v18 = vmul.f32 %v2788_v39, %v10002_v41  ;;  %v2929_v59 = vmul.f32 %v10002_v41, %v2411_v23  ;;  %v2956_v4 = vmul.f32 %v10002_v41, %v9994_v50  ;;  %v10057_v40 = vmul.f32 %v10002_v41, %v2413_v9 }
 0x2f3   : > { %v2783_v57 = vmul.f32 %v10006_v51, %v10006_v51  ;;  %v2502_v21 = vpop.f32.mrf.mxu0  ;;  %v2789_v12 = vmul.f32 -2.0, %v10006_v51  ;;  %v2843_v22 = vmul.f32 2.0, %v10000_v49  ;;  %v2968_v27 = vmul.f32 %v10002_v41, %v2496_v13 }
 0x2f4   : > { %v10004_v15 = vpop.f32.mrf.mxu1  ;;  %v10025_v0 = vmul.f32 3.0, %v10014_v18  ;;  %v10033_v45 = vmul.f32 %v10014_v18, %v9976_v28  ;;  %v10037_v8 = vmul.f32 %v10014_v18, %v9974_v47  ;;  %12813 = vst [vmem:[#allocation9_spill] sm:$0xff] %v10057_v40  ;;  %v10079_v5 = vmul.f32 %v10002_v41, %v10002_v41 }
 0x2f5   : > { %v10029_v61 = vsub.f32 1.0, %v2783_v57  ;;  %v10043_v31 = vpop.f32.mrf.mxu0  ;;  %v2846_v3 = vmul.f32 %v2843_v22, %v9982_v30  ;;  %v2876_v42 = vmul.f32 %v2843_v22, %v9980_v29  ;;  %v2873_v9 = vmul.f32 %v10009_v10, %v9982_v30 }
 0x2f6   : > { %v10011_v14 = vpop.f32.mrf.mxu1  ;;  %v10022_v19 = vpop.eup %8740  ;;  %12810 = vst [vmem:[#allocation20_spill] sm:$0xff] %v10025_v0  ;;  %12811 = vst [vmem:[#allocation14_spill] sm:$0xff] %v10043_v31  ;;  %v2818_v33 = vmul.f32 %v10025_v0, %v2411_v23  ;;  %v2926_v35 = vmul.f32 %v10033_v45, %v9976_v28  ;;  %v2953_v32 = vmul.f32 %v10037_v8, %v9974_v47 }
 0x2f7   : > { %v2784_v44 = vmul.f32 %v10022_v19, %v10022_v19  ;;  %v10067_v37 = vmul.f32 %v2789_v12, %v10029_v61  ;;  %v2965_v11 = vmul.f32 %v10033_v45, %v9978_v24  ;;  %v10075_v26 = vpop.f32.mrf.mxu0  ;;  %v2790_v54 = vmul.f32 -2.0, %v10022_v19 }
 0x2f8   : > { %v10016_v56 = vpop.f32.mrf.mxu1  ;;  %v10090_v23 = vmul.f32 %v2818_v33, %v9976_v28  ;;  %v2797_v13 = vmul.f32 %v9992_v6, %v10014_v18  ;;  %v10099_v57 = vadd.f32 %v2929_v59, %v2926_v35  ;;  %v10101_v25 = vadd.f32 %v2956_v4, %v2953_v32 }
 0x2f9   : > { %v10069_v2 = vsub.f32 1.0, %v2784_v44  ;;  %v10104_v44 = vmul.f32 3.0, %v10067_v37  ;;  %v10108_v43 = vmul.f32 %v10067_v37, %v9982_v30  ;;  %v10110_v1 = vadd.f32 %v2968_v27, %v2965_v11  ;;  %v10121_v22 = vpop.f32.mrf.mxu0 }
 0x2fa   : > { %v10020_v17 = vpop.f32.mrf.mxu1  ;;  %12815 = vst [vmem:[#allocation11_spill] sm:$0xff] %v10090_v23  ;;  %12817 = vst [vmem:[#allocation22_spill] sm:$0xff] %v10099_v57  ;;  %v2930_v62 = vmul.f32 %v10029_v61, %v9998_v34  ;;  %v10116_v46 = vmul.f32 %v10067_v37, %v9980_v29  ;;  %v2957_v59 = vmul.f32 %v10029_v61, %v10009_v10 }
 0x2fb   : > { %12818 = vst [vmem:[#allocation24_spill] sm:$0xff] %v10101_v25  ;;  %12819 = vst [vmem:[#allocation25_spill] sm:$0xff] %v10104_v44  ;;  %v10119_v12 = vmul.f32 %v2790_v54, %v10069_v2  ;;  %v10125_v4 = vadd.f32 %v2846_v3, %v2840_v7  ;;  %v10127_v35 = vadd.f32 %v2876_v42, %v2873_v9  ;;  %v2844_v9 = vmul.f32 2.0, %v10011_v14  ;;  %v10153_v0 = vpop.f32.mrf.mxu0 }
 0x2fc   : > { %v10027_v63 = vpop.f32.mrf.mxu1  ;;  %12820 = vst [vmem:[#allocation7_spill] sm:$0xff] %v10110_v1  ;;  %12821 = vst [vmem:[#allocation15_spill] sm:$0xff] %v10121_v22  ;;  %v10131_v32 = vmul.f32 %v10029_v61, %v10000_v49  ;;  %v2969_v27 = vmul.f32 %v10029_v61, %v2502_v21  ;;  %v2841_v11 = vmul.f32 %v10004_v15, %v9986_v38 }
 0x2fd   : > { %12822 = vst [vmem:[#allocation12_spill] sm:$0xff] %v10127_v35  ;;  %v2991_v54 = vmul.f32 %v10069_v2, %v9988_v60  ;;  %v2819_v7 = vmul.f32 %v10104_v44, %v9998_v34  ;;  %v2927_v49 = vmul.f32 %v10108_v43, %v9982_v30  ;;  %v2874_v21 = vmul.f32 %v10043_v31, %v9988_v60 }
 0x2fe   : > { %v10045_v48 = vpop.f32.mrf.mxu1  ;;  %v2798_v3 = vmul.f32 %v10006_v51, %v10067_v37  ;;  %v2954_v42 = vmul.f32 %v10116_v46, %v9980_v29  ;;  %v2796_v34 = vmul.f32 %v10069_v2, %v10069_v2  ;;  %v2966_v44 = vmul.f32 %v10108_v43, %v9984_v52 }
 0x2ff   : > { %12812 = vst [vmem:[#allocation16_spill] sm:$0xff] %v10045_v48  ;;  %3088 = vmatprep.subr.mxu0 %v2991_v54  ;;  %v10162_v10 = vmul.f32 3.0, %v10119_v12  ;;  %v2931_v22 = vmul.f32 %v10069_v2, %v10004_v15  ;;  %v2795_v54 = vmul.f32 %v10029_v61, %v10029_v61  ;;  %v2997_v23 = vmul.f32 %v10069_v2, %v9986_v38 }
 0x300   : > { %v10059_v53 = vpop.f32.mrf.mxu1  ;;  %3089 = vmatpush1.msra.mxu0 %v10022_v19  ;;  %v10180_v25 = vmul.f32 %v2819_v7, %v9982_v30  ;;  %v2958_v57 = vmul.f32 %v10069_v2, %v10043_v31  ;;  %v2990_v35 = vmul.f32 %v10029_v61, %v9982_v30  ;;  %v2847_v1 = vmul.f32 %v2844_v9, %v9988_v60 }
 0x301   : > { %12814 = vst [vmem:[#allocation13_spill] sm:$0xff] %v10059_v53  ;;  %v2877_v40 = vmul.f32 %v2844_v9, %v9986_v38  ;;  %v3002_v7 = vmul.f32 %v10029_v61, %v9984_v52  ;;  %v10196_v31 = vadd.f32 %v2957_v59, %v2954_v42 }
 0x302   : > { %v10081_v20 = vpop.f32.mrf.mxu1  ;;  %12825 = vst [vmem:[#allocation21_spill] sm:$0xff] %v10180_v25  ;;  %v10194_v25 = vadd.f32 %v2930_v62, %v2927_v49  ;;  %3090 = vmatprep.subr.mxu0 %v2990_v35  ;;  %v10216_v35 = vadd.f32 %v2847_v1, %v2841_v11 }
 0x303   : > { %3091 = vmatpush1.msra.mxu0 %v10006_v51 }
 0x304   : > { %v10097_v39 = vpop.f32.mrf.mxu1 }
 0x305   : > { %12816 = vst [vmem:[#allocation19_spill] sm:$0xff] %v10097_v39 }
 0x306   : > { %v8582_v33 = vpop.f32.mrf.mxu1 }
 0x307   : > { %v3003_v33 = vmul.f32 %v10069_v2, %v9990_v55 }
 0x308   : > { %v10140_v39 = vpop.f32.mrf.mxu1 }
 0x309   : > { %12823 = vst [vmem:[#allocation8_spill] sm:$0xff] %v10140_v39  ;;  %3171 = vmatprep.subr.mxu1 %v3003_v33  ;;  %v2799_v39 = vmul.f32 %v10022_v19, %v10119_v12  ;;  %v2925_v33 = vmul.f32 %v10119_v12, %v9988_v60  ;;  %v2801_v19 = vadd.f32 %v2798_v3, %v2795_v54 }
 0x30a   : > { %v8585_v50 = vpop.f32.mrf.mxu1  ;;  %3172 = vmatpush1.msra.mxu1 %v2997_v23  ;;  %v10198_v3 = vadd.f32 %v2969_v27, %v2966_v44  ;;  %v2820_v54 = vmul.f32 %v10162_v10, %v10004_v15  ;;  %v2800_v23 = vadd.f32 %v2797_v13, %v10079_v5  ;;  %v2996_v15 = vmul.f32 %v10029_v61, %v9980_v29 }
 0x30b   : > { %v10173_v50 = vmul.f32 %v10119_v12, %v9986_v38  ;;  %v2802_v48 = vadd.f32 %v2799_v39, %v2796_v34  ;;  %v10188_v39 = vpop.f32.mrf.mxu0  ;;  %v2928_v9 = vmul.f32 %v2925_v33, %v9988_v60  ;;  %3173 = vmatprep.subr.mxu1 %v3002_v7  ;;  %v2967_v62 = vmul.f32 %v2925_v33, %v9990_v55 }
 0x30c   : > { %v10177_v53 = vpop.f32.mrf.mxu1  ;;  %v10209_v59 = vmul.f32 -2.0, %v2801_v19  ;;  %v2989_v44 = vmul.f32 %v10002_v41, %v9976_v28  ;;  %v2880_v27 = vadd.f32 %v2877_v40, %v2874_v21  ;;  %v2943_v5 = vmul.f32 %v10069_v2, %v10011_v14  ;;  %3174 = vmatpush1.msra.mxu1 %v2996_v15  ;;  %v10231_v40 = vld [vmem:[%s12707_s2 + $0x48] sm:$0xff] }
 0x30d   : > { %12824 = vst [vmem:[#allocation23_spill] sm:$0xff] %v10177_v53  ;;  %v10190_v34 = vmul.f32 -2.0, %v2802_v48  ;;  %v2955_v48 = vmul.f32 %v10173_v50, %v9986_v38  ;;  %v2970_v13 = vmul.f32 %v10069_v2, %v10075_v26  ;;  %v10222_v49 = vpop.f32.mrf.mxu0  ;;  %v3001_v19 = vmul.f32 %v10002_v41, %v9978_v24 }
 0x30e   : > { %v8588_v53 = vpop.f32.mrf.mxu1  ;;  %3092 = vmatprep.subr.mxu0 %v2989_v44  ;;  %v2823_v14 = vmul.f32 %v2820_v54, %v9988_v60  ;;  %v2934_v1 = vadd.f32 %v2931_v22, %v2928_v9  ;;  %v10236_v26 = vmul.f32 %v10037_v8, %v9978_v24  ;;  %v10238_v11 = vmul.f32 -2.0, %v2800_v23 }
 0x30f   : > { %v2808_v53 = vmul.f32 %v10190_v34, %v9988_v60  ;;  %3093 = vmatpush1.msra.mxu0 %v9992_v6  ;;  %v2961_v21 = vadd.f32 %v2958_v57, %v2955_v48  ;;  %v2973_v7 = vadd.f32 %v2970_v13, %v2967_v62  ;;  %v2807_v15 = vmul.f32 %v10209_v59, %v9982_v30  ;;  %v10251_v24 = vpop.f32.mrf.mxu0 }
 0x310   : > { %3175 = vmatprep.subr.mxu1 %v3001_v19  ;;  %v10249_v22 = vmul.f32 %v10071_v58, %v10014_v18  ;;  %v2995_v8 = vmul.f32 %v10002_v41, %v9974_v47  ;;  %8273 = vmatmul.mubr.msk.f32.vlgmr.msra.gmra.mxu0 %vm404_vm3, %v10231_v40  ;;  %v2940_v6 = vmul.f32 %v2925_v33, %v9986_v38 }
 0x311   : > { %v2811_v42 = vmul.f32 %v2808_v53, %v9988_v60  ;;  %v2868_v51 = vmul.f32 %v2808_v53, %v9986_v38  ;;  %v10243_v53 = vmul.f32 %v10002_v41, %v10016_v56  ;;  %v2939_v56 = vmul.f32 %v10108_v43, %v9980_v29  ;;  %3132 = vmatprep.mubr.f32.mxu0 %v12763_v36  ;;  %v2674_v23 = vpop.f32.mrf.mxu0 }
 0x312   : > { %v10262_v57 = vmul.f32 %v10002_v41, %v10020_v17  ;;  %v10266_v58 = vmul.f32 %v10083_v16, %v10014_v18  ;;  %v2806_v33 = vmul.f32 %v10238_v11, %v9976_v28  ;;  %v10275_v43 = vmul.f32 %v10002_v41, %v10153_v0  ;;  %3176 = vmatpush1.msra.mxu1 %v2995_v8  ;;  %v12830_v8 = vld [vmem:[#allocation24_spill] sm:$0xff] }
 0x313   : > { %v2814_v54 = vmul.f32 %v2811_v42, %v9988_v60  ;;  %v2871_v9 = vmul.f32 %v2868_v51, %v9986_v38  ;;  %v10279_v17 = vmul.f32 %v10116_v46, %v9984_v52  ;;  %v2946_v18 = vadd.f32 %v2943_v5, %v2940_v6  ;;  %8276 = vmatmul.mubr.msk.f32.vlgmr.msra.gmra.mxu1 %vm404_vm3, %v10231_v40 }
 0x314   : > { %v10283_v60 = vmul.f32 %v10029_v61, %v10027_v63  ;;  %v2810_v16 = vmul.f32 %v2807_v15, %v9982_v30  ;;  %v2883_v48 = vmul.f32 %v2880_v27, %v10119_v12  ;;  %3337 = vmatprep.subr.mxu1 %v2973_v7  ;;  %v2867_v0 = vmul.f32 %v2807_v15, %v9980_v29  ;;  %v10299_v27 = vld [vmem:[%s12707_s2 + $0x50] sm:$0xff]  ;;  %v12829_v15 = vld [vmem:[#allocation22_spill] sm:$0xff] }
 0x315   : > { %3254 = vmatprep.subr.mxu0 %v2946_v18  ;;  %3338 = vmatpush1.msra.mxu1 %v2961_v21  ;;  %v2945_v52 = vadd.f32 %v10131_v32, %v2939_v56  ;;  %v2938_v46 = vmul.f32 %v10033_v45, %v9974_v47  ;;  %v2852_v63 = vmul.f32 %v10125_v4, %v10067_v37  ;;  %v12831_v56 = vld [vmem:[#allocation13_spill] sm:$0xff] }
 0x316   : > { %v2826_v62 = vadd.f32 %v2823_v14, %v2814_v54  ;;  %v2886_v44 = vadd.f32 %v2883_v48, %v2871_v9  ;;  %3255 = vmatpush1.msra.mxu0 %v2934_v1  ;;  %3339 = vmatprep.subr.mxu1 %v10198_v3  ;;  %v2809_v5 = vmul.f32 %v2806_v33, %v9976_v28  ;;  %v12826_v3 = vld [vmem:[#allocation9_spill] sm:$0xff]  ;;  %v12833_v48 = vld [vmem:[#allocation11_spill] sm:$0xff] }
 0x317   : > { %v2866_v32 = vmul.f32 %v2806_v33, %v9974_v47  ;;  %v2829_v45 = vmul.f32 %v10069_v2, %v10081_v20  ;;  %3256 = vmatprep.subr.mxu0 %v2945_v52  ;;  %3215 = vmatprep.mubr.f32.mxu1 %v12763_v36  ;;  %v2838_v4 = vmul.f32 %v2811_v42, %v9986_v38 }
 0x318   : > { %v2889_v13 = vmul.f32 %v10069_v2, %v2674_v23  ;;  %3257 = vmatpush1.msra.mxu0 %v10194_v25  ;;  %3340 = vmatpush1.msra.mxu1 %v10196_v31  ;;  %v2944_v51 = vadd.f32 %v12826_v3, %v2938_v46  ;;  %v2813_v19 = vmul.f32 %v2810_v16, %v9982_v30  ;;  %v12827_v31 = vld [vmem:[#allocation7_spill] sm:$0xff]  ;;  %v10324_v30 = vld [vmem:[%s12707_s2 + $0x58] sm:$0xff]  ;;  %v12836_v3 = vld [vmem:[#allocation14_spill] sm:$0xff] }
 0x319   : > { %v2870_v14 = vmul.f32 %v2867_v0, %v9980_v29  ;;  %v2853_v20 = vmul.f32 %v10216_v35, %v10119_v12  ;;  %8274 = vmatmul.mubr.msk.f32.gmra.mxu0 %vm404_vm3, %v10299_v27  ;;  %8277 = vmatmul.mubr.msk.f32.gmra.mxu1 %vm404_vm3, %v10299_v27  ;;  %v2837_v42 = vmul.f32 %v2810_v16, %v9980_v29  ;;  %v12828_v35 = vld [vmem:[#allocation12_spill] sm:$0xff] }
 0x31a   : > { %v2832_v25 = vadd.f32 %v2829_v45, %v2826_v62  ;;  %v2892_v1 = vadd.f32 %v2889_v13, %v2886_v44  ;;  %3258 = vmatprep.subr.mxu0 %v2944_v51  ;;  %3341 = vmatprep.subr.mxu1 %v12827_v31  ;;  %v2812_v12 = vmul.f32 %v2809_v5, %v9976_v28  ;;  %v12841_v31 = vld [vmem:[#allocation23_spill] sm:$0xff] }
 0x31b   : > { %v2882_v21 = vmul.f32 %v12828_v35, %v10067_v37  ;;  %v2979_v7 = vmul.f32 %v10173_v50, %v9990_v55  ;;  %3259 = vmatpush1.msra.mxu0 %v12829_v15  ;;  %3342 = vmatpush1.msra.mxu1 %v12830_v8  ;;  %v2869_v6 = vmul.f32 %v2866_v32, %v9974_v47  ;;  %v12832_v37 = vld [vmem:[#allocation21_spill] sm:$0xff]  ;;  %v12843_v8 = vld [vmem:[#allocation19_spill] sm:$0xff] }
 0x31c   : > { %v2982_v54 = vmul.f32 %v10069_v2, %v12831_v56  ;;  %v2856_v9 = vadd.f32 %v2853_v20, %v2838_v4  ;;  %3138 = vmatprep.mubr.f32.mxu0 %v12763_v36  ;;  %3221 = vmatprep.mubr.f32.mxu1 %v12763_v36  ;;  %v2858_v28 = vmul.f32 %v10029_v61, %v10188_v39  ;;  %v12834_v39 = vld [vmem:[#allocation16_spill] sm:$0xff] }
 0x31d   : > { %v2825_v33 = vadd.f32 %v12832_v37, %v2813_v19  ;;  %v2885_v55 = vadd.f32 %v2882_v21, %v2870_v14  ;;  %8275 = vmatmul.mubr.msk.f32.gmra.mxu0 %vm404_vm3, %v10324_v30  ;;  %8278 = vmatmul.mubr.msk.f32.gmra.mxu1 %vm404_vm3, %v10324_v30  ;;  %v2836_v50 = vmul.f32 %v2809_v5, %v9974_v47  ;;  %v12838_v19 = vld [vmem:[#allocation25_spill] sm:$0xff] }
 0x31e   : > { %v2855_v18 = vadd.f32 %v2852_v63, %v2837_v42  ;;  %v2859_v16 = vmul.f32 %v10069_v2, %v10251_v24  ;;  %3420 = vmatprep.subr.mxu0 %v2832_v25  ;;  %3503 = vmatprep.subr.mxu1 %v2892_v1  ;;  %v2824_v0 = vadd.f32 %v12833_v48, %v2812_v12 }
 0x31f   : > { %v2828_v23 = vmul.f32 %v10029_v61, %v12834_v39  ;;  %v2888_v52 = vmul.f32 %v10029_v61, %v10222_v49  ;;  %3292 = vmatprep.mubr.f32.mxu0 %v12763_v36  ;;  %3375 = vmatprep.mubr.f32.mxu1 %v12763_v36  ;;  %v2884_v46 = vadd.f32 %v10266_v58, %v2869_v6 }
 0x320   : > { %v2985_v63 = vadd.f32 %v2982_v54, %v2979_v7  ;;  %v2862_v62 = vadd.f32 %v2859_v16, %v2856_v9  ;;  %v2898_v24 = vmul.f32 %v10190_v34, %v9986_v38  ;;  %v2984_v44 = vadd.f32 %v10283_v60, %v10279_v17  ;;  %v12835_v34 = vld [vmem:[#allocation15_spill] sm:$0xff]  ;;  %v12842_v7 = vld [vmem:[#allocation8_spill] sm:$0xff] }
 0x321   : > { %v2831_v5 = vadd.f32 %v2828_v23, %v2825_v33  ;;  %v2891_v32 = vadd.f32 %v2888_v52, %v2885_v55  ;;  %8279 = vmatmul.mubr.msk.f32.vlgmr.msra.gmra.mxu0 %vm404_vm3, %v10231_v40  ;;  %8282 = vmatmul.mubr.msk.f32.vlgmr.msra.gmra.mxu1 %vm404_vm3, %v10231_v40  ;;  %v2854_v49 = vadd.f32 %v10249_v22, %v2836_v50 }
 0x322   : > { %v2861_v45 = vadd.f32 %v2858_v28, %v2855_v18  ;;  %v2897_v58 = vmul.f32 %v10209_v59, %v9980_v29  ;;  %3421 = vmatpush1.msra.mxu0 %v2985_v63  ;;  %3504 = vmatpush1.msra.mxu1 %v2862_v62  ;;  %v2857_v4 = vmul.f32 %v10002_v41, %v12835_v34  ;;  %v3652_v18 = vpop.permute.xlu0 %3651 }
 0x323   : > { %v2830_v17 = vadd.f32 %v10262_v57, %v2824_v0  ;;  %3422 = vmatprep.subr.mxu0 %v2831_v5  ;;  %3505 = vmatprep.subr.mxu1 %v2891_v32  ;;  %v2890_v60 = vadd.f32 %v10275_v43, %v2884_v46  ;;  %v2896_v13 = vmul.f32 %v10238_v11, %v9974_v47  ;;  %v12837_v11 = vld [vmem:[#allocation18_spill] sm:$0xff] }
 0x324   : > { %v2901_v22 = vmul.f32 %v2898_v24, %v9986_v38  ;;  %3423 = vmatpush1.msra.mxu0 %v2984_v44  ;;  %3506 = vmatpush1.msra.mxu1 %v2861_v45  ;;  %v2907_v59 = vmul.f32 %v10162_v10, %v12836_v3  ;;  %v2983_v57 = vadd.f32 %v10243_v53, %v10236_v26  ;;  %v12839_v26 = vld [vmem:[#allocation10_spill] sm:$0xff]  ;;  %v12840_v53 = vld [vmem:[#allocation20_spill] sm:$0xff] }
 0x325   : > { %3298 = vmatprep.mubr.f32.mxu0 %v12763_v36  ;;  %3381 = vmatprep.mubr.f32.mxu1 %v12763_v36  ;;  %v2860_v51 = vadd.f32 %v2857_v4, %v2854_v49  ;;  %v2900_v43 = vmul.f32 %v2897_v58, %v9980_v29  ;;  %v2906_v14 = vmul.f32 %v12838_v19, %v12837_v11 }
 0x326   : > { %3424 = vmatprep.subr.mxu0 %v2830_v17  ;;  %3507 = vmatprep.subr.mxu1 %v2890_v60  ;;  %v2899_v10 = vmul.f32 %v2896_v13, %v9974_v47  ;;  %v2904_v20 = vmul.f32 %v2901_v22, %v9986_v38  ;;  %v2905_v42 = vmul.f32 %v12840_v53, %v12839_v26 }
 0x327   : > { %8280 = vmatmul.mubr.msk.f32.gmra.mxu0 %vm404_vm3, %v10299_v27  ;;  %8283 = vmatmul.mubr.msk.f32.gmra.mxu1 %vm404_vm3, %v10299_v27  ;;  %v2910_v25 = vmul.f32 %v2907_v59, %v9986_v38  ;;  %v2903_v1 = vmul.f32 %v2900_v43, %v9980_v29  ;;  %v2916_v12 = vmul.f32 %v10069_v2, %v12841_v31 }
 0x328   : > { %3425 = vmatpush1.msra.mxu0 %v2983_v57  ;;  %3508 = vmatpush1.msra.mxu1 %v2860_v51  ;;  %v2909_v35 = vmul.f32 %v2906_v14, %v9980_v29  ;;  %v2902_v21 = vmul.f32 %v2899_v10, %v9974_v47  ;;  %v2915_v38 = vmul.f32 %v10029_v61, %v12842_v7 }
 0x329   : > { %3304 = vmatprep.mubr.f32.mxu0 %v12763_v36  ;;  %3387 = vmatprep.mubr.f32.mxu1 %v12763_v36  ;;  %v2913_v15 = vadd.f32 %v2910_v25, %v2904_v20  ;;  %v2908_v2 = vmul.f32 %v2905_v42, %v9974_v47  ;;  %v2914_v29 = vmul.f32 %v10002_v41, %v12843_v8  ;;  %v3657_v41 = vpop.permute.xlu1 %3656 }
 0x32a   : > { %8589 = vmatprep.subr.mxu0 %v12763_v36  ;;  %v2912_v6 = vadd.f32 %v2909_v35, %v2903_v1 }
 0x32b   : > { %8281 = vmatmul.mubr.msk.f32.gmra.mxu0 %vm404_vm3, %v10324_v30  ;;  %8284 = vmatmul.mubr.msk.f32.gmra.mxu1 %vm404_vm3, %v10324_v30  ;;  %v2919_v56 = vadd.f32 %v2916_v12, %v2913_v15  ;;  %v2911_v54 = vadd.f32 %v2908_v2, %v2902_v21 }
 0x32c   : > { %3458 = vmatprep.mubr.f32.mxu0 %v12763_v36  ;;  %3541 = vmatprep.mubr.f32.mxu1 %v12763_v36  ;;  %v2918_v61 = vadd.f32 %v2915_v38, %v2912_v6 }
 0x32d   : > { %v2917_v47 = vadd.f32 %v2914_v29, %v2911_v54  ;;  %v3647_v28 = vpop.permute.xlu1 %3646 }
 0x32f   : > { %8285 = vmatmul.mubr.msk.f32.vlgmr.msra.gmra.mxu0 %vm404_vm3, %v10231_v40  ;;  %8288 = vmatmul.mubr.msk.f32.vlgmr.msra.gmra.mxu1 %vm404_vm3, %v10231_v40 }
 0x330   : > { %8590 = vmatpush3.msra.mxu0 %v2919_v56  ;;  %3464 = vmatprep.mubr.f32.mxu0 %v12763_v36 }
 0x331   : > { %8591 = vmatprep.subr.mxu0 %v12763_v36  ;;  %3547 = vmatprep.mubr.f32.mxu1 %v12763_v36 }
 0x332   : > { %8592 = vmatpush3.msra.mxu0 %v2918_v61 }
 0x333   : > { %8593 = vmatprep.subr.mxu0 %v12763_v36  ;;  %8286 = vmatmul.mubr.msk.f32.gmra.mxu0 %vm404_vm3, %v10299_v27 }
 0x334   : > { %8289 = vmatmul.mubr.msk.f32.gmra.mxu1 %vm404_vm3, %v10299_v27  ;;  %8594 = vmatpush3.msra.mxu0 %v2917_v47 }
 0x335   : > { %3470 = vmatprep.mubr.f32.mxu0 %v12763_v36  ;;  %3553 = vmatprep.mubr.f32.mxu1 %v12763_v36 }
 0x337   : > { %8287 = vmatmul.mubr.msk.f32.gmra.mxu0 %vm404_vm3, %v10324_v30 }
 0x338   : > { %8290 = vmatmul.mubr.msk.f32.gmra.mxu1 %vm404_vm3, %v10324_v30  ;;  %8595 = vmatprep.mubr.msk.f32.mxu0 %vm8819_vm4, %v12763_v36 }
 0x339   : > { %4009 = vmatprep.mubr.f32.mxu1 %v12763_v36 }
 0x33b   : > { %8596 = vmatmul.mubr.msk.f32.vlgmr.msra.gmra.mxu0 %vm404_vm3, %v10231_v40 }
 0x33c   : > { %8598 = vmatprep.mubr.msk.f32.mxu0 %vm8819_vm4, %v12763_v36 }
 0x33f   : > { %8599 = vmatmul.mubr.msk.f32.gmra.mxu0 %vm404_vm3, %v10299_v27 }
 0x340   : > { %8601 = vmatprep.mubr.msk.f32.mxu0 %vm8819_vm4, %v12763_v36 }
 0x343   : > { %8602 = vmatmul.mubr.msk.f32.gmra.mxu0 %vm404_vm3, %v10324_v30 }
 0x344   : > { %4092 = vmatprep.mubr.f32.mxu0 %v12763_v36 }
 0x3d0   : > { %v3128_v9 = vpop.f32.mrf.mxu0 }
 0x3d1   : > { %v3659_v37 = vadd.f32 %v3647_v28, %v3128_v9 }
 0x3d2   : > { %v10445_v40 = vpop.f32.mrf.mxu0 }
 0x3d3   : > { %v10443_v33 = vpop.f32.mrf.mxu1  ;;  %8742 = vtanh.f32 %v3659_v37 }
 0x3d5   : > { %v10447_v55 = vpop.f32.mrf.mxu1 }
 0x3d9   : > { %v3134_v27 = vpop.f32.mrf.mxu0  ;;  %v10449_v50 = vpop.f32.mrf.mxu1 }
 0x3da   : > { %v3660_v48 = vadd.f32 %v3652_v18, %v3134_v27 }
 0x3db   : > { %v10451_v16 = vpop.f32.mrf.mxu0  ;;  %v10453_v30 = vpop.f32.mrf.mxu1 }
 0x3dc   : > { %8744 = vtanh.f32 %v3660_v48 }
 0x3dd   : > { %v3140_v0 = vpop.f32.mrf.mxu0  ;;  %v10455_v39 = vpop.f32.mrf.mxu1 }
 0x3de   : > { %v3661_v52 = vadd.f32 %v3657_v41, %v3140_v0 }
 0x3df   : > { %v10457_v23 = vpop.f32.mrf.mxu0  ;;  %v10459_v46 = vpop.f32.mrf.mxu1 }
 0x3e0   : > { %v10461_v24 = vpop.eup %8742  ;;  %8746 = vtanh.f32 %v3661_v52 }
 0x3e1   : > { %v3294_v63 = vpop.f32.mrf.mxu0  ;;  %v10463_v44 = vpop.f32.mrf.mxu1  ;;  %v3665_v5 = vmul.f32 %v10461_v24, %v10461_v24  ;;  %v3671_v17 = vmul.f32 -2.0, %v10461_v24 }
 0x3e2   : > { %12844 = vst [vmem:[#allocation17_spill] sm:$0xff] %v10463_v44  ;;  %v3722_v42 = vmul.f32 %v3294_v63, %v10443_v33  ;;  %v3755_v12 = vmul.f32 %v10463_v44, %v10445_v40 }
 0x3e3   : > { %v3296_v62 = vpop.f32.mrf.mxu0  ;;  %v3379_v49 = vpop.f32.mrf.mxu1  ;;  %v10471_v58 = vsub.f32 1.0, %v3665_v5 }
 0x3e4   : > { %v3725_v57 = vmul.f32 2.0, %v3296_v62 }
 0x3e5   : > { %v10483_v22 = vmul.f32 %v3671_v17, %v10471_v58  ;;  %v3812_v15 = vmul.f32 %v10471_v58, %v3294_v63  ;;  %v3839_v2 = vmul.f32 %v10471_v58, %v10463_v44  ;;  %v10526_v8 = vmul.f32 %v10471_v58, %v3296_v62 }
 0x3e6   : > { %v3728_v25 = vmul.f32 %v3725_v57, %v10445_v40  ;;  %v3758_v35 = vmul.f32 %v3725_v57, %v10443_v33  ;;  %v3851_v54 = vmul.f32 %v10471_v58, %v3379_v49  ;;  %v10548_v37 = vmul.f32 %v10471_v58, %v10471_v58 }
 0x3e7   : > { %v10467_v32 = vpop.f32.mrf.mxu0  ;;  %v10478_v60 = vpop.f32.mrf.mxu1  ;;  %v10494_v19 = vmul.f32 3.0, %v10483_v22  ;;  %v10502_v20 = vmul.f32 %v10483_v22, %v10445_v40  ;;  %v10506_v26 = vmul.f32 %v10483_v22, %v10443_v33  ;;  %12849 = vst [vmem:[#allocation24_spill] sm:$0xff] %v10526_v8  ;;  %v3680_v49 = vmul.f32 %v10461_v24, %v10483_v22 }
 0x3e8   : > { %12845 = vst [vmem:[#allocation9_spill] sm:$0xff] %v10478_v60  ;;  %v10540_v41 = vadd.f32 %v3728_v25, %v3722_v42  ;;  %v10552_v18 = vadd.f32 %v3758_v35, %v3755_v12  ;;  %v3723_v48 = vmul.f32 %v10467_v32, %v10449_v50  ;;  %v3756_v62 = vmul.f32 %v10478_v60, %v10451_v16 }
 0x3e9   : > { %v10469_v45 = vpop.f32.mrf.mxu0  ;;  %v10475_v4 = vpop.eup %8744  ;;  %12846 = vst [vmem:[#allocation7_spill] sm:$0xff] %v10494_v19  ;;  %v3701_v38 = vmul.f32 %v10494_v19, %v3294_v63  ;;  %v3809_v6 = vmul.f32 %v10502_v20, %v10445_v40  ;;  %v3836_v56 = vmul.f32 %v10506_v26, %v10443_v33  ;;  %v3848_v9 = vmul.f32 %v10502_v20, %v10447_v55 }
 0x3ea   : > { %v3666_v59 = vmul.f32 %v10475_v4, %v10475_v4  ;;  %v3385_v51 = vpop.f32.mrf.mxu1  ;;  %v3672_v21 = vmul.f32 -2.0, %v10475_v4  ;;  %v3726_v7 = vmul.f32 2.0, %v10469_v45 }
 0x3eb   : > { %v10473_v34 = vpop.f32.mrf.mxu0  ;;  %v10559_v63 = vmul.f32 %v3701_v38, %v10445_v40  ;;  %v10570_v57 = vadd.f32 %v3839_v2, %v3836_v56  ;;  %v10579_v25 = vadd.f32 %v3851_v54, %v3848_v9 }
 0x3ec   : > { %v10498_v10 = vsub.f32 1.0, %v3666_v59  ;;  %v10512_v1 = vpop.f32.mrf.mxu1  ;;  %v3729_v0 = vmul.f32 %v3726_v7, %v10451_v16  ;;  %v3759_v52 = vmul.f32 %v3726_v7, %v10449_v50  ;;  %v10568_v59 = vadd.f32 %v3812_v15, %v3809_v6 }
 0x3ed   : > { %v10480_v13 = vpop.f32.mrf.mxu0  ;;  %v10491_v11 = vpop.eup %8746  ;;  %12847 = vst [vmem:[#allocation12_spill] sm:$0xff] %v10512_v1  ;;  %12851 = vst [vmem:[#allocation21_spill] sm:$0xff] %v10559_v63  ;;  %v3724_v9 = vmul.f32 %v10473_v34, %v10455_v39 }
 0x3ee   : > { %v3667_v53 = vmul.f32 %v10491_v11, %v10491_v11  ;;  %v10536_v61 = vmul.f32 %v3672_v21, %v10498_v10  ;;  %v10544_v28 = vpop.f32.mrf.mxu1  ;;  %v3673_v5 = vmul.f32 -2.0, %v10491_v11  ;;  %12853 = vst [vmem:[#allocation16_spill] sm:$0xff] %v10568_v59  ;;  %12854 = vst [vmem:[#allocation15_spill] sm:$0xff] %v10570_v57  ;;  %v3813_v12 = vmul.f32 %v10498_v10, %v10467_v32 }
 0x3ef   : > { %v10485_v3 = vpop.f32.mrf.mxu0  ;;  %12856 = vst [vmem:[#allocation18_spill] sm:$0xff] %v10579_v25  ;;  %v3840_v15 = vmul.f32 %v10498_v10, %v10478_v60  ;;  %v10594_v2 = vadd.f32 %v3729_v0, %v3723_v48  ;;  %v10596_v6 = vadd.f32 %v3759_v52, %v3756_v62  ;;  %v10600_v56 = vmul.f32 %v10498_v10, %v10469_v45 }
 0x3f0   : > { %v10538_v47 = vsub.f32 1.0, %v3667_v53  ;;  %v10573_v53 = vmul.f32 3.0, %v10536_v61  ;;  %v10577_v42 = vmul.f32 %v10536_v61, %v10451_v16  ;;  %v10585_v35 = vmul.f32 %v10536_v61, %v10449_v50  ;;  %v10590_v7 = vpop.f32.mrf.mxu1 }
 0x3f1   : > { %v10489_v43 = vpop.f32.mrf.mxu0  ;;  %12857 = vst [vmem:[#allocation25_spill] sm:$0xff] %v10590_v7  ;;  %12858 = vst [vmem:[#allocation10_spill] sm:$0xff] %v10596_v6  ;;  %v3852_v54 = vmul.f32 %v10498_v10, %v3385_v51  ;;  %v3757_v51 = vmul.f32 %v10512_v1, %v10457_v23  ;;  %v3681_v0 = vmul.f32 %v10475_v4, %v10536_v61  ;;  %v3727_v62 = vmul.f32 2.0, %v10480_v13 }
 0x3f2   : > { %12855 = vst [vmem:[#allocation14_spill] sm:$0xff] %v10573_v53  ;;  %v10588_v21 = vmul.f32 %v3673_v5, %v10538_v47  ;;  %v3874_v5 = vmul.f32 %v10538_v47, %v10457_v23  ;;  %v3702_v48 = vmul.f32 %v10573_v53, %v10467_v32  ;;  %v3810_v45 = vmul.f32 %v10577_v42, %v10451_v16  ;;  %v10622_v19 = vpop.f32.mrf.mxu1 }
 0x3f3   : > { %v10496_v14 = vpop.f32.mrf.mxu0  ;;  %v3837_v52 = vmul.f32 %v10585_v35, %v10449_v50  ;;  %v3679_v32 = vmul.f32 %v10538_v47, %v10538_v47  ;;  %v3849_v53 = vmul.f32 %v10577_v42, %v10453_v30  ;;  %v3814_v7 = vmul.f32 %v10538_v47, %v10473_v34 }
 0x3f4   : > { %3971 = vmatprep.subr.mxu1 %v3874_v5  ;;  %v10631_v60 = vmul.f32 3.0, %v10588_v21  ;;  %v3678_v5 = vmul.f32 %v10498_v10, %v10498_v10  ;;  %v3880_v63 = vmul.f32 %v10538_v47, %v10455_v39  ;;  %v10649_v57 = vmul.f32 %v3702_v48, %v10451_v16 }
 0x3f5   : > { %v10514_v31 = vpop.f32.mrf.mxu0  ;;  %3972 = vmatpush1.msra.mxu1 %v10491_v11  ;;  %v3841_v59 = vmul.f32 %v10538_v47, %v10512_v1  ;;  %v3873_v6 = vmul.f32 %v10498_v10, %v10451_v16  ;;  %v3730_v25 = vmul.f32 %v3727_v62, %v10457_v23  ;;  %v3760_v8 = vmul.f32 %v3727_v62, %v10455_v39 }
 0x3f6   : > { %12848 = vst [vmem:[#allocation22_spill] sm:$0xff] %v10514_v31  ;;  %12861 = vst [vmem:[#allocation8_spill] sm:$0xff] %v10649_v57  ;;  %v3885_v48 = vmul.f32 %v10498_v10, %v10453_v30  ;;  %v10663_v57 = vadd.f32 %v3813_v12, %v3810_v45  ;;  %v10665_v1 = vadd.f32 %v3840_v15, %v3837_v52 }
 0x3f7   : > { %v10528_v29 = vpop.f32.mrf.mxu0  ;;  %3973 = vmatprep.subr.mxu1 %v3873_v6  ;;  %v10685_v6 = vadd.f32 %v3730_v25, %v3724_v9 }
 0x3f8   : > { %12850 = vst [vmem:[#allocation13_spill] sm:$0xff] %v10528_v29  ;;  %3974 = vmatpush1.msra.mxu1 %v10475_v4 }
 0x3f9   : > { %v10550_v27 = vpop.f32.mrf.mxu0 }
 0x3fb   : > { %v10566_v17 = vpop.f32.mrf.mxu0 }
 0x3fc   : > { %12852 = vst [vmem:[#allocation11_spill] sm:$0xff] %v10566_v17 }
 0x3fd   : > { %v8597_v38 = vpop.f32.mrf.mxu0 }
 0x3fe   : > { %v3886_v38 = vmul.f32 %v10538_v47, %v10459_v46 }
 0x3ff   : > { %v10609_v17 = vpop.f32.mrf.mxu0 }
 0x400   : > { %12859 = vst [vmem:[#allocation20_spill] sm:$0xff] %v10609_v17  ;;  %4054 = vmatprep.subr.mxu0 %v3886_v38  ;;  %v3682_v17 = vmul.f32 %v10491_v11, %v10588_v21  ;;  %v3808_v38 = vmul.f32 %v10588_v21, %v10457_v23  ;;  %v3684_v11 = vadd.f32 %v3681_v0, %v3678_v5 }
 0x401   : > { %v8600_v44 = vpop.f32.mrf.mxu0  ;;  %4055 = vmatpush1.msra.mxu0 %v3880_v63  ;;  %v10667_v0 = vadd.f32 %v3852_v54, %v3849_v53  ;;  %v3703_v5 = vmul.f32 %v10631_v60, %v10473_v34  ;;  %v3683_v63 = vadd.f32 %v3680_v49, %v10548_v37  ;;  %v3879_v34 = vmul.f32 %v10498_v10, %v10449_v50 }
 0x402   : > { %v10642_v44 = vmul.f32 %v10588_v21, %v10455_v39  ;;  %v3685_v31 = vadd.f32 %v3682_v17, %v3679_v32  ;;  %v10657_v17 = vpop.f32.mrf.mxu1  ;;  %v3811_v62 = vmul.f32 %v3808_v38, %v10457_v23  ;;  %4056 = vmatprep.subr.mxu0 %v3885_v48  ;;  %v3850_v12 = vmul.f32 %v3808_v38, %v10459_v46 }
 0x403   : > { %v10646_v29 = vpop.f32.mrf.mxu0  ;;  %v10678_v15 = vmul.f32 -2.0, %v3684_v11  ;;  %v3872_v53 = vmul.f32 %v10471_v58, %v10445_v40  ;;  %v3763_v54 = vadd.f32 %v3760_v8, %v3757_v51  ;;  %v3826_v37 = vmul.f32 %v10538_v47, %v10480_v13  ;;  %4057 = vmatpush1.msra.mxu0 %v3879_v34  ;;  %v10700_v8 = vld [vmem:[%s12707_s2 + $0x60] sm:$0xff] }
 0x404   : > { %12860 = vst [vmem:[#allocation23_spill] sm:$0xff] %v10646_v29  ;;  %v10659_v32 = vmul.f32 -2.0, %v3685_v31  ;;  %v3838_v31 = vmul.f32 %v10642_v44, %v10455_v39  ;;  %v3853_v49 = vmul.f32 %v10538_v47, %v10544_v28  ;;  %v10691_v45 = vpop.f32.mrf.mxu1  ;;  %v3884_v11 = vmul.f32 %v10471_v58, %v10447_v55 }
 0x405   : > { %v8603_v29 = vpop.f32.mrf.mxu0  ;;  %3975 = vmatprep.subr.mxu1 %v3872_v53  ;;  %v3706_v13 = vmul.f32 %v3703_v5, %v10457_v23  ;;  %v3817_v25 = vadd.f32 %v3814_v7, %v3811_v62  ;;  %v10705_v28 = vmul.f32 %v10506_v26, %v10447_v55  ;;  %v10707_v9 = vmul.f32 -2.0, %v3683_v63 }
 0x406   : > { %v3691_v29 = vmul.f32 %v10659_v32, %v10457_v23  ;;  %3976 = vmatpush1.msra.mxu1 %v10461_v24  ;;  %v3844_v51 = vadd.f32 %v3841_v59, %v3838_v31  ;;  %v3856_v48 = vadd.f32 %v3853_v49, %v3850_v12  ;;  %v3690_v34 = vmul.f32 %v10678_v15, %v10451_v16  ;;  %v10720_v55 = vpop.f32.mrf.mxu1 }
 0x407   : > { %4058 = vmatprep.subr.mxu0 %v3884_v11  ;;  %v10718_v7 = vmul.f32 %v10540_v41, %v10483_v22  ;;  %v3878_v26 = vmul.f32 %v10471_v58, %v10443_v33  ;;  %8300 = vmatmul.mubr.msk.f32.vlgmr.msra.gmra.mxu1 %vm404_vm3, %v10700_v8  ;;  %v3823_v24 = vmul.f32 %v3808_v38, %v10455_v39 }
 0x408   : > { %v3694_v52 = vmul.f32 %v3691_v29, %v10457_v23  ;;  %v3751_v4 = vmul.f32 %v3691_v29, %v10455_v39  ;;  %v10712_v29 = vmul.f32 %v10471_v58, %v10485_v3  ;;  %v3822_v3 = vmul.f32 %v10577_v42, %v10449_v50  ;;  %4015 = vmatprep.mubr.f32.mxu1 %v12763_v36  ;;  %v3557_v63 = vpop.f32.mrf.mxu1 }
 0x409   : > { %v10731_v59 = vmul.f32 %v10471_v58, %v10489_v43  ;;  %v10735_v41 = vmul.f32 %v10552_v18, %v10483_v22  ;;  %v3689_v38 = vmul.f32 %v10707_v9, %v10445_v40  ;;  %v10744_v42 = vmul.f32 %v10471_v58, %v10622_v19  ;;  %4059 = vmatpush1.msra.mxu0 %v3878_v26  ;;  %v12866_v26 = vld [vmem:[#allocation15_spill] sm:$0xff] }
 0x40a   : > { %v3697_v5 = vmul.f32 %v3694_v52, %v10457_v23  ;;  %v3754_v62 = vmul.f32 %v3751_v4, %v10455_v39  ;;  %v10748_v43 = vmul.f32 %v10585_v35, %v10453_v30  ;;  %v3829_v22 = vadd.f32 %v3826_v37, %v3823_v24  ;;  %8303 = vmatmul.mubr.msk.f32.vlgmr.msra.gmra.mxu0 %vm404_vm3, %v10700_v8 }
 0x40b   : > { %v10752_v23 = vmul.f32 %v10498_v10, %v10496_v14  ;;  %v3693_v18 = vmul.f32 %v3690_v34, %v10451_v16  ;;  %v3766_v31 = vmul.f32 %v3763_v54, %v10588_v21  ;;  %4220 = vmatprep.subr.mxu0 %v3856_v48  ;;  %v3750_v19 = vmul.f32 %v3690_v34, %v10449_v50  ;;  %v10768_v54 = vld [vmem:[%s12707_s2 + $0x68] sm:$0xff]  ;;  %v12865_v34 = vld [vmem:[#allocation16_spill] sm:$0xff] }
 0x40c   : > { %4137 = vmatprep.subr.mxu1 %v3829_v22  ;;  %4221 = vmatpush1.msra.mxu0 %v3844_v51  ;;  %v3828_v30 = vadd.f32 %v10600_v56, %v3822_v3  ;;  %v3821_v35 = vmul.f32 %v10502_v20, %v10443_v33  ;;  %v3735_v14 = vmul.f32 %v10594_v2, %v10536_v61  ;;  %v12867_v3 = vld [vmem:[#allocation13_spill] sm:$0xff] }
 0x40d   : > { %v3709_v12 = vadd.f32 %v3706_v13, %v3697_v5  ;;  %v3769_v53 = vadd.f32 %v3766_v31, %v3754_v62  ;;  %4138 = vmatpush1.msra.mxu1 %v3817_v25  ;;  %4222 = vmatprep.subr.mxu0 %v10667_v0  ;;  %v3692_v37 = vmul.f32 %v3689_v38, %v10445_v40  ;;  %v12862_v0 = vld [vmem:[#allocation24_spill] sm:$0xff]  ;;  %v12869_v31 = vld [vmem:[#allocation21_spill] sm:$0xff] }
 0x40e   : > { %v3749_v56 = vmul.f32 %v3689_v38, %v10443_v33  ;;  %v3712_v20 = vmul.f32 %v10538_v47, %v10550_v27  ;;  %4139 = vmatprep.subr.mxu1 %v3828_v30  ;;  %4098 = vmatprep.mubr.f32.mxu0 %v12763_v36  ;;  %v3721_v2 = vmul.f32 %v3694_v52, %v10455_v39 }
 0x40f   : > { %v3772_v49 = vmul.f32 %v10538_v47, %v3557_v63  ;;  %4140 = vmatpush1.msra.mxu1 %v10663_v57  ;;  %4223 = vmatpush1.msra.mxu0 %v10665_v1  ;;  %v3827_v4 = vadd.f32 %v12862_v0, %v3821_v35  ;;  %v3696_v11 = vmul.f32 %v3693_v18, %v10451_v16  ;;  %v12863_v1 = vld [vmem:[#allocation18_spill] sm:$0xff]  ;;  %v10793_v16 = vld [vmem:[%s12707_s2 + $0x70] sm:$0xff]  ;;  %v12872_v0 = vld [vmem:[#allocation12_spill] sm:$0xff] }
 0x410   : > { %v3753_v13 = vmul.f32 %v3750_v19, %v10449_v50  ;;  %v3736_v27 = vmul.f32 %v10685_v6, %v10588_v21  ;;  %8301 = vmatmul.mubr.msk.f32.gmra.mxu1 %vm404_vm3, %v10768_v54  ;;  %8304 = vmatmul.mubr.msk.f32.gmra.mxu0 %vm404_vm3, %v10768_v54  ;;  %v3720_v52 = vmul.f32 %v3693_v18, %v10449_v50  ;;  %v12864_v6 = vld [vmem:[#allocation10_spill] sm:$0xff] }
 0x411   : > { %v3715_v57 = vadd.f32 %v3712_v20, %v3709_v12  ;;  %v3775_v25 = vadd.f32 %v3772_v49, %v3769_v53  ;;  %4141 = vmatprep.subr.mxu1 %v3827_v4  ;;  %4224 = vmatprep.subr.mxu0 %v12863_v1  ;;  %v3695_v21 = vmul.f32 %v3692_v37, %v10445_v40  ;;  %v12877_v1 = vld [vmem:[#allocation23_spill] sm:$0xff] }
 0x412   : > { %v3765_v51 = vmul.f32 %v12864_v6, %v10536_v61  ;;  %v3862_v48 = vmul.f32 %v10642_v44, %v10459_v46  ;;  %4142 = vmatpush1.msra.mxu1 %v12865_v34  ;;  %4225 = vmatpush1.msra.mxu0 %v12866_v26  ;;  %v3752_v24 = vmul.f32 %v3749_v56, %v10443_v33  ;;  %v12868_v61 = vld [vmem:[#allocation8_spill] sm:$0xff]  ;;  %v12879_v26 = vld [vmem:[#allocation11_spill] sm:$0xff] }
 0x413   : > { %v3865_v5 = vmul.f32 %v10538_v47, %v12867_v3  ;;  %v3739_v62 = vadd.f32 %v3736_v27, %v3721_v2  ;;  %4021 = vmatprep.mubr.f32.mxu1 %v12763_v36  ;;  %4104 = vmatprep.mubr.f32.mxu0 %v12763_v36  ;;  %v3741_v40 = vmul.f32 %v10498_v10, %v10657_v17  ;;  %v12870_v17 = vld [vmem:[#allocation22_spill] sm:$0xff] }
 0x414   : > { %v3708_v38 = vadd.f32 %v12868_v61, %v3696_v11  ;;  %v3768_v46 = vadd.f32 %v3765_v51, %v3753_v13  ;;  %8302 = vmatmul.mubr.msk.f32.gmra.mxu1 %vm404_vm3, %v10793_v16  ;;  %8305 = vmatmul.mubr.msk.f32.gmra.mxu0 %vm404_vm3, %v10793_v16  ;;  %v3719_v44 = vmul.f32 %v3692_v37, %v10443_v33  ;;  %v12874_v11 = vld [vmem:[#allocation14_spill] sm:$0xff] }
 0x415   : > { %v3738_v22 = vadd.f32 %v3735_v14, %v3720_v52  ;;  %v3742_v18 = vmul.f32 %v10538_v47, %v10720_v55  ;;  %4303 = vmatprep.subr.mxu1 %v3715_v57  ;;  %4386 = vmatprep.subr.mxu0 %v3775_v25  ;;  %v3707_v19 = vadd.f32 %v12869_v31, %v3695_v21 }
 0x416   : > { %v3711_v63 = vmul.f32 %v10498_v10, %v12870_v17  ;;  %v3771_v30 = vmul.f32 %v10498_v10, %v10691_v45  ;;  %4175 = vmatprep.mubr.f32.mxu1 %v12763_v36  ;;  %4258 = vmatprep.mubr.f32.mxu0 %v12763_v36  ;;  %v3767_v35 = vadd.f32 %v10735_v41, %v3752_v24 }
 0x417   : > { %v3868_v14 = vadd.f32 %v3865_v5, %v3862_v48  ;;  %v3745_v12 = vadd.f32 %v3742_v18, %v3739_v62  ;;  %v3781_v55 = vmul.f32 %v10659_v32, %v10455_v39  ;;  %v3867_v53 = vadd.f32 %v10752_v23, %v10748_v43  ;;  %v12871_v32 = vld [vmem:[#allocation25_spill] sm:$0xff]  ;;  %v12878_v48 = vld [vmem:[#allocation20_spill] sm:$0xff] }
 0x418   : > { %v3714_v37 = vadd.f32 %v3711_v63, %v3708_v38  ;;  %v3774_v56 = vadd.f32 %v3771_v30, %v3768_v46  ;;  %8306 = vmatmul.mubr.msk.f32.vlgmr.msra.gmra.mxu1 %vm404_vm3, %v10700_v8  ;;  %8309 = vmatmul.mubr.msk.f32.vlgmr.msra.gmra.mxu0 %vm404_vm3, %v10700_v8  ;;  %v3737_v45 = vadd.f32 %v10718_v7, %v3719_v44 }
 0x419   : > { %v3744_v20 = vadd.f32 %v3741_v40, %v3738_v22  ;;  %v3780_v41 = vmul.f32 %v10678_v15, %v10449_v50  ;;  %4304 = vmatpush1.msra.mxu1 %v3868_v14  ;;  %4387 = vmatpush1.msra.mxu0 %v3745_v12  ;;  %v3740_v2 = vmul.f32 %v10471_v58, %v12871_v32  ;;  %v4535_v22 = vpop.permute.xlu1 %4534 }
 0x41a   : > { %v3713_v43 = vadd.f32 %v10731_v59, %v3707_v19  ;;  %4305 = vmatprep.subr.mxu1 %v3714_v37  ;;  %4388 = vmatprep.subr.mxu0 %v3774_v56  ;;  %v3773_v23 = vadd.f32 %v10744_v42, %v3767_v35  ;;  %v3779_v49 = vmul.f32 %v10707_v9, %v10443_v33  ;;  %v12873_v9 = vld [vmem:[#allocation9_spill] sm:$0xff] }
 0x41b   : > { %v3784_v7 = vmul.f32 %v3781_v55, %v10455_v39  ;;  %4306 = vmatpush1.msra.mxu1 %v3867_v53  ;;  %4389 = vmatpush1.msra.mxu0 %v3744_v20  ;;  %v3790_v15 = vmul.f32 %v10631_v60, %v12872_v0  ;;  %v3866_v59 = vadd.f32 %v10712_v29, %v10705_v28  ;;  %v12875_v28 = vld [vmem:[#allocation17_spill] sm:$0xff]  ;;  %v12876_v29 = vld [vmem:[#allocation7_spill] sm:$0xff] }
 0x41c   : > { %4181 = vmatprep.mubr.f32.mxu1 %v12763_v36  ;;  %4264 = vmatprep.mubr.f32.mxu0 %v12763_v36  ;;  %v3743_v4 = vadd.f32 %v3740_v2, %v3737_v45  ;;  %v3783_v42 = vmul.f32 %v3780_v41, %v10449_v50  ;;  %v3789_v13 = vmul.f32 %v12874_v11, %v12873_v9 }
 0x41d   : > { %4307 = vmatprep.subr.mxu1 %v3713_v43  ;;  %4390 = vmatprep.subr.mxu0 %v3773_v23  ;;  %v3782_v60 = vmul.f32 %v3779_v49, %v10443_v33  ;;  %v3787_v27 = vmul.f32 %v3784_v7, %v10455_v39  ;;  %v3788_v52 = vmul.f32 %v12876_v29, %v12875_v28 }
 0x41e   : > { %8307 = vmatmul.mubr.msk.f32.gmra.mxu1 %vm404_vm3, %v10768_v54  ;;  %8310 = vmatmul.mubr.msk.f32.gmra.mxu0 %vm404_vm3, %v10768_v54  ;;  %v3793_v57 = vmul.f32 %v3790_v15, %v10455_v39  ;;  %v3786_v25 = vmul.f32 %v3783_v42, %v10449_v50  ;;  %v3799_v21 = vmul.f32 %v10538_v47, %v12877_v1 }
 0x41f   : > { %4308 = vmatpush1.msra.mxu1 %v3866_v59  ;;  %4391 = vmatpush1.msra.mxu0 %v3743_v4  ;;  %v3792_v6 = vmul.f32 %v3789_v13, %v10449_v50  ;;  %v3785_v51 = vmul.f32 %v3782_v60, %v10443_v33  ;;  %v3798_v39 = vmul.f32 %v10498_v10, %v12878_v48 }
 0x420   : > { %4187 = vmatprep.mubr.f32.mxu1 %v12763_v36  ;;  %4270 = vmatprep.mubr.f32.mxu0 %v12763_v36  ;;  %v3796_v34 = vadd.f32 %v3793_v57, %v3787_v27  ;;  %v3791_v47 = vmul.f32 %v3788_v52, %v10443_v33  ;;  %v3797_v50 = vmul.f32 %v10471_v58, %v12879_v26  ;;  %v4540_v58 = vpop.permute.xlu0 %4539 }
 0x421   : > { %8604 = vmatprep.subr.mxu1 %v12763_v36  ;;  %v3795_v24 = vadd.f32 %v3792_v6, %v3786_v25 }
 0x422   : > { %8308 = vmatmul.mubr.msk.f32.gmra.mxu1 %vm404_vm3, %v10793_v16  ;;  %8311 = vmatmul.mubr.msk.f32.gmra.mxu0 %vm404_vm3, %v10793_v16  ;;  %v3802_v3 = vadd.f32 %v3799_v21, %v3796_v34  ;;  %v3794_v5 = vadd.f32 %v3791_v47, %v3785_v51 }
 0x423   : > { %4341 = vmatprep.mubr.f32.mxu1 %v12763_v36  ;;  %4424 = vmatprep.mubr.f32.mxu0 %v12763_v36  ;;  %v3801_v10 = vadd.f32 %v3798_v39, %v3795_v24 }
 0x424   : > { %v3800_v33 = vadd.f32 %v3797_v50, %v3794_v5  ;;  %v4530_v40 = vpop.permute.xlu0 %4529 }
 0x426   : > { %8312 = vmatmul.mubr.msk.f32.vlgmr.msra.gmra.mxu1 %vm404_vm3, %v10700_v8  ;;  %8315 = vmatmul.mubr.msk.f32.vlgmr.msra.gmra.mxu0 %vm404_vm3, %v10700_v8 }
 0x427   : > { %8605 = vmatpush3.msra.mxu1 %v3802_v3  ;;  %4347 = vmatprep.mubr.f32.mxu1 %v12763_v36 }
 0x428   : > { %8606 = vmatprep.subr.mxu1 %v12763_v36  ;;  %4430 = vmatprep.mubr.f32.mxu0 %v12763_v36 }
 0x429   : > { %8607 = vmatpush3.msra.mxu1 %v3801_v10 }
 0x42a   : > { %8608 = vmatprep.subr.mxu1 %v12763_v36  ;;  %8313 = vmatmul.mubr.msk.f32.gmra.mxu1 %vm404_vm3, %v10768_v54 }
 0x42b   : > { %8316 = vmatmul.mubr.msk.f32.gmra.mxu0 %vm404_vm3, %v10768_v54  ;;  %8609 = vmatpush3.msra.mxu1 %v3800_v33 }
 0x42c   : > { %4353 = vmatprep.mubr.f32.mxu1 %v12763_v36  ;;  %4436 = vmatprep.mubr.f32.mxu0 %v12763_v36 }
 0x42e   : > { %8314 = vmatmul.mubr.msk.f32.gmra.mxu1 %vm404_vm3, %v10793_v16 }
 0x42f   : > { %8317 = vmatmul.mubr.msk.f32.gmra.mxu0 %vm404_vm3, %v10793_v16  ;;  %8610 = vmatprep.mubr.msk.f32.mxu1 %vm8819_vm4, %v12763_v36 }
 0x430   : > { %4892 = vmatprep.mubr.f32.mxu0 %v12763_v36 }
 0x432   : > { %8611 = vmatmul.mubr.msk.f32.vlgmr.msra.gmra.mxu1 %vm404_vm3, %v10700_v8 }
 0x433   : > { %8613 = vmatprep.mubr.msk.f32.mxu1 %vm8819_vm4, %v12763_v36 }
 0x436   : > { %8614 = vmatmul.mubr.msk.f32.gmra.mxu1 %vm404_vm3, %v10768_v54 }
 0x437   : > { %8616 = vmatprep.mubr.msk.f32.mxu1 %vm8819_vm4, %v12763_v36 }
 0x43a   : > { %8617 = vmatmul.mubr.msk.f32.gmra.mxu1 %vm404_vm3, %v10793_v16 }
 0x43b   : > { %4975 = vmatprep.mubr.f32.mxu1 %v12763_v36 }
 0x4c7   : > { %v4011_v62 = vpop.f32.mrf.mxu1 }
 0x4c8   : > { %v4542_v61 = vadd.f32 %v4530_v40, %v4011_v62 }
 0x4c9   : > { %v10914_v8 = vpop.f32.mrf.mxu1 }
 0x4ca   : > { %v10912_v38 = vpop.f32.mrf.mxu0  ;;  %8748 = vtanh.f32 %v4542_v61 }
 0x4cc   : > { %v10916_v46 = vpop.f32.mrf.mxu0 }
 0x4d0   : > { %v4017_v54 = vpop.f32.mrf.mxu1  ;;  %v10918_v44 = vpop.f32.mrf.mxu0 }
 0x4d1   : > { %v4543_v18 = vadd.f32 %v4535_v22, %v4017_v54 }
 0x4d2   : > { %v10920_v31 = vpop.f32.mrf.mxu1  ;;  %v10922_v16 = vpop.f32.mrf.mxu0 }
 0x4d3   : > { %8750 = vtanh.f32 %v4543_v18 }
 0x4d4   : > { %v4023_v19 = vpop.f32.mrf.mxu1  ;;  %v10924_v17 = vpop.f32.mrf.mxu0 }
 0x4d5   : > { %v4544_v63 = vadd.f32 %v4540_v58, %v4023_v19 }
 0x4d6   : > { %v10926_v30 = vpop.f32.mrf.mxu1  ;;  %v10928_v35 = vpop.f32.mrf.mxu0 }
 0x4d7   : > { %8752 = vtanh.f32 %v4544_v63  ;;  %v10930_v55 = vpop.eup %8748 }
 0x4d8   : > { %v4177_v14 = vpop.f32.mrf.mxu1  ;;  %v10932_v53 = vpop.f32.mrf.mxu0  ;;  %v4548_v56 = vmul.f32 %v10930_v55, %v10930_v55  ;;  %v4554_v7 = vmul.f32 -2.0, %v10930_v55 }
 0x4d9   : > { %12880 = vst [vmem:[#allocation19_spill] sm:$0xff] %v10932_v53  ;;  %v4605_v6 = vmul.f32 %v4177_v14, %v10912_v38  ;;  %v4638_v39 = vmul.f32 %v10932_v53, %v10914_v8 }
 0x4da   : > { %v4179_v12 = vpop.f32.mrf.mxu1  ;;  %v4262_v45 = vpop.f32.mrf.mxu0  ;;  %v10944_v2 = vsub.f32 1.0, %v4548_v56 }
 0x4db   : > { %v4608_v60 = vmul.f32 2.0, %v4179_v12 }
 0x4dc   : > { %v10958_v59 = vmul.f32 %v4554_v7, %v10944_v2  ;;  %v10988_v48 = vmul.f32 %v10944_v2, %v10916_v46  ;;  %v4695_v3 = vmul.f32 %v10944_v2, %v4177_v14  ;;  %v4722_v5 = vmul.f32 %v10944_v2, %v10932_v53 }
 0x4dd   : > { %v4611_v51 = vmul.f32 %v4608_v60, %v10914_v8  ;;  %v4641_v34 = vmul.f32 %v4608_v60, %v10912_v38  ;;  %v4707_v58 = vmul.f32 %v10944_v2, %v4179_v12  ;;  %v4734_v62 = vmul.f32 %v10944_v2, %v4262_v45 }
 0x4de   : > { %v10934_v37 = vpop.f32.mrf.mxu1  ;;  %v10948_v23 = vpop.f32.mrf.mxu0  ;;  %v4689_v28 = vmul.f32 %v10958_v59, %v10914_v8  ;;  %v10975_v52 = vmul.f32 3.0, %v10958_v59  ;;  %v4716_v1 = vmul.f32 %v10958_v59, %v10912_v38  ;;  %v4560_v56 = vmul.f32 %v10944_v2, %v10944_v2 }
 0x4df   : > { %12881 = vst [vmem:[#allocation24_spill] sm:$0xff] %v10948_v23  ;;  %v11012_v22 = vadd.f32 %v4611_v51, %v4605_v6  ;;  %v4606_v19 = vmul.f32 %v10934_v37, %v10918_v44  ;;  %v11017_v63 = vadd.f32 %v4641_v34, %v4638_v39 }
 0x4e0   : > { %v10938_v20 = vpop.f32.mrf.mxu1  ;;  %v10942_v32 = vpop.eup %8750  ;;  %12882 = vst [vmem:[#allocation18_spill] sm:$0xff] %v10975_v52  ;;  %v4731_v50 = vmul.f32 %v4689_v28, %v10916_v46  ;;  %v4584_v10 = vmul.f32 %v10975_v52, %v4177_v14  ;;  %v4692_v33 = vmul.f32 %v4689_v28, %v10914_v8  ;;  %v4719_v54 = vmul.f32 %v4716_v1, %v10912_v38 }
 0x4e1   : > { %v4549_v4 = vmul.f32 %v10942_v32, %v10942_v32  ;;  %v4268_v9 = vpop.f32.mrf.mxu0  ;;  %v4555_v21 = vmul.f32 -2.0, %v10942_v32  ;;  %v4609_v47 = vmul.f32 2.0, %v10938_v20  ;;  %v4704_v18 = vmul.f32 %v4689_v28, %v10912_v38 }
 0x4e2   : > { %v10940_v41 = vpop.f32.mrf.mxu1  ;;  %v4639_v14 = vmul.f32 %v10948_v23, %v10920_v31  ;;  %v11027_v7 = vmul.f32 %v4716_v1, %v10916_v46  ;;  %v11037_v28 = vmul.f32 %v4584_v10, %v10914_v8  ;;  %v11051_v34 = vadd.f32 %v4722_v5, %v4719_v54 }
 0x4e3   : > { %v10972_v29 = vsub.f32 1.0, %v4549_v4  ;;  %v10977_v57 = vpop.f32.mrf.mxu0  ;;  %v4612_v12 = vmul.f32 %v4609_v47, %v10920_v31 }
 0x4e4   : > { %v10946_v43 = vpop.eup %8752  ;;  %v10950_v49 = vpop.f32.mrf.mxu1  ;;  %12885 = vst [vmem:[#allocation15_spill] sm:$0xff] %v11027_v7  ;;  %12886 = vst [vmem:[#allocation13_spill] sm:$0xff] %v11037_v28 }
 0x4e5   : > { %v4550_v0 = vmul.f32 %v10946_v43, %v10946_v43  ;;  %v10998_v24 = vmul.f32 %v4555_v21, %v10972_v29  ;;  %v11007_v40 = vpop.f32.mrf.mxu0  ;;  %v4556_v4 = vmul.f32 -2.0, %v10946_v43  ;;  %v11039_v21 = vadd.f32 %v4695_v3, %v4692_v33 }
 0x4e6   : > { %v10955_v15 = vpop.f32.mrf.mxu1  ;;  %v4768_v51 = vmul.f32 %v10972_v29, %v10922_v16  ;;  %v4696_v3 = vmul.f32 %v10972_v29, %v10934_v37  ;;  %v4723_v10 = vmul.f32 %v10972_v29, %v10948_v23  ;;  %v11059_v33 = vadd.f32 %v4612_v12, %v4606_v19 }
 0x4e7   : > { %v10962_v42 = vsub.f32 1.0, %v4550_v0  ;;  %v4690_v0 = vmul.f32 %v10998_v24, %v10920_v31  ;;  %v4717_v60 = vmul.f32 %v10998_v24, %v10918_v44  ;;  %v11042_v6 = vmul.f32 3.0, %v10998_v24  ;;  %v11044_v46 = vpop.f32.mrf.mxu0 }
 0x4e8   : > { %v10964_v11 = vpop.f32.mrf.mxu1  ;;  %12888 = vst [vmem:[#allocation21_spill] sm:$0xff] %v11044_v46  ;;  %v11069_v5 = vmul.f32 %v10972_v29, %v10938_v20  ;;  %v4564_v54 = vmul.f32 %v10942_v32, %v10998_v24 }
 0x4e9   : > { %v4769_v13 = vmul.f32 %v10962_v42, %v10928_v35  ;;  %12887 = vst [vmem:[#allocation8_spill] sm:$0xff] %v11042_v6  ;;  %v11049_v39 = vmul.f32 %v4556_v4, %v10962_v42  ;;  %v4720_v19 = vmul.f32 %v4717_v60, %v10918_v44  ;;  %v11080_v12 = vpop.f32.mrf.mxu0  ;;  %v4757_v4 = vmul.f32 %v10962_v42, %v10926_v30 }
 0x4ea   : > { %v10968_v27 = vpop.f32.mrf.mxu1  ;;  %12890 = vst [vmem:[#allocation25_spill] sm:$0xff] %v11080_v12  ;;  %v4562_v52 = vmul.f32 %v10962_v42, %v10962_v42  ;;  %v11093_v53 = vmul.f32 %v4717_v60, %v10922_v16  ;;  %v4763_v23 = vmul.f32 %v10962_v42, %v10924_v17  ;;  %v4705_v12 = vmul.f32 %v4690_v0, %v10918_v44 }
 0x4eb   : > { %4937 = vmatprep.subr.mxu1 %v4769_v13  ;;  %v11032_v13 = vadd.f32 %v4734_v62, %v4731_v50  ;;  %v11053_v50 = vadd.f32 %v4707_v58, %v4704_v18  ;;  %v4642_v62 = vmul.f32 %v4609_v47, %v10918_v44  ;;  %v11072_v58 = vmul.f32 %v10972_v29, %v4268_v9 }
 0x4ec   : > { %v10979_v25 = vpop.f32.mrf.mxu1  ;;  %v4585_v18 = vmul.f32 %v11042_v6, %v10934_v37  ;;  %v4693_v47 = vmul.f32 %v4690_v0, %v10920_v31  ;;  %v4691_v9 = vmul.f32 %v11049_v39, %v10926_v30  ;;  %v4565_v37 = vmul.f32 %v10946_v43, %v11049_v39  ;;  %12891 = vst [vmem:[#allocation12_spill] sm:$0xff] %v11093_v53 }
 0x4ed   : > { %12883 = vst [vmem:[#allocation10_spill] sm:$0xff] %v10979_v25  ;;  %v4718_v6 = vmul.f32 %v11049_v39, %v10924_v17  ;;  %4854 = vmatprep.subr.mxu0 %v4757_v4  ;;  %v11103_v46 = vadd.f32 %v4642_v62, %v4639_v14  ;;  %v11112_v53 = vadd.f32 %v4723_v10, %v4720_v19  ;;  %v11114_v4 = vpop.f32.mrf.mxu0 }
 0x4ee   : > { %v10994_v26 = vpop.f32.mrf.mxu1  ;;  %v4568_v25 = vadd.f32 %v4565_v37, %v4562_v52  ;;  %4855 = vmatpush1.msra.mxu0 %v10946_v43  ;;  %v11110_v60 = vadd.f32 %v4696_v3, %v4693_v47  ;;  %4938 = vmatpush1.msra.mxu1 %v4763_v23  ;;  %v4756_v14 = vmul.f32 %v10972_v29, %v10920_v31  ;;  %v4610_v52 = vmul.f32 2.0, %v10950_v49 }
 0x4ef   : > { %v4706_v43 = vmul.f32 %v4691_v9, %v10924_v17  ;;  %4939 = vmatprep.subr.mxu1 %v4768_v51  ;;  %v4733_v3 = vmul.f32 %v4691_v9, %v10928_v35  ;;  %v4694_v10 = vmul.f32 %v4691_v9, %v10926_v30  ;;  %v4762_v23 = vmul.f32 %v10972_v29, %v10918_v44 }
 0x4f0   : > { %v11009_v61 = vpop.f32.mrf.mxu1  ;;  %4856 = vmatprep.subr.mxu0 %v4756_v14  ;;  %v4709_v47 = vmul.f32 %v10962_v42, %v10950_v49  ;;  %v4697_v51 = vmul.f32 %v10962_v42, %v10940_v41  ;;  %v4721_v9 = vmul.f32 %v4718_v6, %v10924_v17  ;;  %v4755_v49 = vmul.f32 %v10944_v2, %v10914_v8 }
 0x4f1   : > { %4857 = vmatpush1.msra.mxu0 %v10942_v32  ;;  %4940 = vmatpush1.msra.mxu1 %v4762_v23  ;;  %v4643_v37 = vmul.f32 %v4610_v52, %v10924_v17 }
 0x4f2   : > { %v11024_v45 = vpop.f32.mrf.mxu1  ;;  %v4712_v32 = vadd.f32 %v4709_v47, %v4706_v43  ;;  %4941 = vmatprep.subr.mxu1 %v10988_v48  ;;  %v4700_v14 = vadd.f32 %v4697_v51, %v4694_v10  ;;  %4858 = vmatprep.subr.mxu0 %v4755_v49  ;;  %v4640_v43 = vmul.f32 %v10977_v57, %v10926_v30 }
 0x4f3   : > { %12884 = vst [vmem:[#allocation16_spill] sm:$0xff] %v11024_v45  ;;  %v11065_v45 = vmul.f32 %v4690_v0, %v10922_v16  ;;  %v11108_v16 = vmul.f32 %v4585_v18, %v10920_v31  ;;  %v11119_v0 = vmul.f32 3.0, %v11049_v39  ;;  %v11130_v18 = vmul.f32 %v4718_v6, %v10928_v35  ;;  %v11144_v35 = vpop.f32.mrf.mxu0  ;;  %v11156_v6 = vld [vmem:[%s12707_s2 + $0x78] sm:$0xff]  ;;  %4859 = vmatpush1.msra.mxu0 %v10930_v55 }
 0x4f4   : > { %v8612_v1 = vpop.f32.mrf.mxu1  ;;  %v4724_v48 = vmul.f32 %v10962_v42, %v10977_v57  ;;  %v4613_v47 = vmul.f32 %v4610_v52, %v10926_v30  ;;  %8327 = vmatmul.mubr.msk.f32.vlgmr.msra.gmra.mxu0 %vm404_vm3, %v11156_v6  ;;  %v4646_v52 = vadd.f32 %v4643_v37, %v4640_v43  ;;  %5020 = vmatprep.subr.mxu0 %v4712_v32 }
 0x4f5   : > { %12893 = vst [vmem:[#allocation14_spill] sm:$0xff] %v11119_v0  ;;  %v4738_v10 = vadd.f32 %v11072_v58, %v11065_v45  ;;  %v11185_v45 = vmul.f32 %v10944_v2, %v10955_v15  ;;  %5021 = vmatpush1.msra.mxu0 %v4700_v14  ;;  %4898 = vmatprep.mubr.f32.mxu0 %v12763_v36 }
 0x4f6   : > { %v11062_v1 = vpop.f32.mrf.mxu1  ;;  %v4727_v49 = vadd.f32 %v4724_v48, %v4721_v9  ;;  %v4649_v9 = vmul.f32 %v4646_v52, %v11049_v39  ;;  %v11206_v32 = vmul.f32 %v10944_v2, %v10964_v11  ;;  %v4648_v48 = vmul.f32 %v11103_v46, %v10998_v24 }
 0x4f7   : > { %12889 = vst [vmem:[#allocation22_spill] sm:$0xff] %v11062_v1  ;;  %v4561_v1 = vmul.f32 %v10972_v29, %v10972_v29  ;;  %v4624_v52 = vmul.f32 %v10972_v29, %v11114_v4 }
 0x4f8   : > { %v8615_v20 = vpop.f32.mrf.mxu1 }
 0x4f9   : > { %v4563_v20 = vmul.f32 %v10930_v55, %v10958_v59  ;;  %v4567_v28 = vadd.f32 %v4564_v54, %v4561_v1  ;;  %v11123_v1 = vmul.f32 -2.0, %v4568_v25  ;;  %v4761_v55 = vmul.f32 %v10944_v2, %v10912_v38 }
 0x4fa   : > { %v11101_v7 = vpop.f32.mrf.mxu1 }
 0x4fb   : > { %12892 = vst [vmem:[#allocation9_spill] sm:$0xff] %v11101_v7  ;;  %v4566_v54 = vadd.f32 %v4563_v20, %v4560_v56  ;;  %v11134_v19 = vmul.f32 -2.0, %v4567_v28  ;;  %v4574_v25 = vmul.f32 %v11123_v1, %v10926_v30  ;;  %v4607_v56 = vmul.f32 %v10940_v41, %v10924_v17  ;;  %4942 = vmatpush1.msra.mxu1 %v4761_v55 }
 0x4fc   : > { %v8618_v62 = vpop.f32.mrf.mxu1  ;;  %v4586_v28 = vmul.f32 %v11119_v0, %v10940_v41  ;;  %8330 = vmatmul.mubr.msk.f32.vlgmr.msra.gmra.mxu1 %vm404_vm3, %v11156_v6 }
 0x4fd   : > { %v4577_v20 = vmul.f32 %v4574_v25, %v10926_v30  ;;  %v4736_v62 = vmul.f32 %v10962_v42, %v11007_v40  ;;  %v11160_v23 = vmul.f32 -2.0, %v4566_v54  ;;  %v4634_v41 = vmul.f32 %v4574_v25, %v10924_v17  ;;  %v11174_v25 = vpop.f32.mrf.mxu0  ;;  %4981 = vmatprep.mubr.f32.mxu1 %v12763_v36 }
 0x4fe   : > { %v4573_v7 = vmul.f32 %v11134_v19, %v10920_v31  ;;  %v4711_v40 = vadd.f32 %v11069_v5, %v4705_v12  ;;  %v4589_v5 = vmul.f32 %v4586_v28, %v10926_v30  ;;  %v4616_v12 = vadd.f32 %v4613_v47, %v4607_v56  ;;  %v11202_v56 = vld [vmem:[%s12707_s2 + $0x80] sm:$0xff] }
 0x4ff   : > { %v4739_v54 = vadd.f32 %v4736_v62, %v4733_v3  ;;  %v4580_v51 = vmul.f32 %v4577_v20, %v10926_v30  ;;  %v4637_v0 = vmul.f32 %v4634_v41, %v10924_v17  ;;  %v4572_v58 = vmul.f32 %v11160_v23, %v10914_v8  ;;  %v4440_v37 = vpop.f32.mrf.mxu0  ;;  %8328 = vmatmul.mubr.msk.f32.gmra.mxu0 %vm404_vm3, %v11202_v56 }
 0x500   : > { %v4576_v3 = vmul.f32 %v4573_v7, %v10920_v31  ;;  %5022 = vmatprep.subr.mxu0 %v4711_v40  ;;  %v11194_v30 = vmul.f32 %v11012_v22, %v10958_v59  ;;  %v4633_v15 = vmul.f32 %v4573_v7, %v10918_v44  ;;  %v4647_v22 = vmul.f32 %v11017_v63, %v10958_v59 }
 0x501   : > { %v4592_v28 = vadd.f32 %v4589_v5, %v4580_v51  ;;  %5103 = vmatprep.subr.mxu1 %v4739_v54  ;;  %v4652_v14 = vadd.f32 %v4649_v9, %v4637_v0  ;;  %v4575_v7 = vmul.f32 %v4572_v58, %v10914_v8  ;;  %v4632_v62 = vmul.f32 %v4572_v58, %v10912_v38  ;;  %v12896_v5 = vld [vmem:[#allocation12_spill] sm:$0xff] }
 0x502   : > { %5104 = vmatpush1.msra.mxu1 %v4727_v49  ;;  %v4595_v41 = vmul.f32 %v10962_v42, %v11009_v61  ;;  %5023 = vmatpush1.msra.mxu0 %v11110_v60  ;;  %v4579_v11 = vmul.f32 %v4576_v3, %v10920_v31  ;;  %v4604_v43 = vmul.f32 %v4577_v20, %v10924_v17  ;;  %v11231_v31 = vld [vmem:[%s12707_s2 + $0x88] sm:$0xff] }
 0x503   : > { %5105 = vmatprep.subr.mxu1 %v4738_v10  ;;  %v4655_v59 = vmul.f32 %v10962_v42, %v4440_v37  ;;  %v4618_v63 = vmul.f32 %v11059_v33, %v10998_v24  ;;  %v4636_v0 = vmul.f32 %v4633_v15, %v10918_v44  ;;  %8331 = vmatmul.mubr.msk.f32.gmra.mxu1 %vm404_vm3, %v11202_v56  ;;  %v12894_v24 = vld [vmem:[#allocation10_spill] sm:$0xff] }
 0x504   : > { %5106 = vmatpush1.msra.mxu1 %v11112_v53  ;;  %v4598_v61 = vadd.f32 %v4595_v41, %v4592_v28  ;;  %5024 = vmatprep.subr.mxu0 %v11053_v50  ;;  %v4603_v53 = vmul.f32 %v4576_v3, %v10918_v44  ;;  %v4619_v60 = vmul.f32 %v4616_v12, %v11049_v39  ;;  %v12902_v41 = vld [vmem:[#allocation8_spill] sm:$0xff] }
 0x505   : > { %v4658_v20 = vadd.f32 %v4655_v59, %v4652_v14  ;;  %5107 = vmatprep.subr.mxu1 %v11032_v13  ;;  %5025 = vmatpush1.msra.mxu0 %v11039_v21  ;;  %v4578_v33 = vmul.f32 %v4575_v7, %v10914_v8  ;;  %v4748_v50 = vmul.f32 %v10962_v42, %v10994_v26 }
 0x506   : > { %5108 = vmatpush1.msra.mxu1 %v11051_v34  ;;  %4904 = vmatprep.mubr.f32.mxu0 %v12763_v36  ;;  %v4635_v47 = vmul.f32 %v4632_v62, %v10912_v38  ;;  %v4591_v39 = vadd.f32 %v11108_v16, %v4579_v11  ;;  %v4622_v40 = vadd.f32 %v4619_v60, %v4604_v43  ;;  %v12895_v16 = vld [vmem:[#allocation13_spill] sm:$0xff] }
 0x507   : > { %4987 = vmatprep.mubr.f32.mxu1 %v12763_v36  ;;  %8329 = vmatmul.mubr.msk.f32.gmra.mxu0 %vm404_vm3, %v11231_v31  ;;  %v4747_v8 = vmul.f32 %v10972_v29, %v10968_v27  ;;  %v4594_v26 = vmul.f32 %v10972_v29, %v12894_v24  ;;  %v4651_v13 = vadd.f32 %v4648_v48, %v4636_v0  ;;  %v12905_v60 = vld [vmem:[#allocation9_spill] sm:$0xff] }
 0x508   : > { %8332 = vmatmul.mubr.msk.f32.gmra.mxu1 %vm404_vm3, %v11231_v31  ;;  %5186 = vmatprep.subr.mxu0 %v4598_v61  ;;  %v4602_v21 = vmul.f32 %v4575_v7, %v10912_v38  ;;  %v4621_v46 = vadd.f32 %v4618_v63, %v4603_v53  ;;  %v4625_v34 = vmul.f32 %v10962_v42, %v11174_v25  ;;  %v12900_v7 = vld [vmem:[#allocation15_spill] sm:$0xff]  ;;  %v12904_v63 = vld [vmem:[#allocation18_spill] sm:$0xff] }
 0x509   : > { %5269 = vmatprep.subr.mxu1 %v4658_v20  ;;  %5058 = vmatprep.mubr.f32.mxu0 %v12763_v36  ;;  %v4590_v10 = vadd.f32 %v12895_v16, %v4578_v33  ;;  %v4654_v27 = vmul.f32 %v10972_v29, %v11144_v35  ;;  %v4751_v54 = vadd.f32 %v4748_v50, %v11130_v18  ;;  %v12897_v35 = vld [vmem:[#allocation25_spill] sm:$0xff]  ;;  %v12906_v50 = vld [vmem:[#allocation22_spill] sm:$0xff]  ;;  %v5418_v16 = vpop.permute.xlu0 %5417 }
 0x50a   : > { %v4664_v51 = vmul.f32 %v11123_v1, %v10924_v17  ;;  %5141 = vmatprep.mubr.f32.mxu1 %v12763_v36  ;;  %v4650_v49 = vadd.f32 %v4647_v22, %v4635_v47  ;;  %v4597_v25 = vadd.f32 %v4594_v26, %v4591_v39  ;;  %v4628_v55 = vadd.f32 %v4625_v34, %v4622_v40  ;;  %v12907_v39 = vld [vmem:[#allocation16_spill] sm:$0xff] }
 0x50b   : > { %8333 = vmatmul.mubr.msk.f32.vlgmr.msra.gmra.mxu0 %vm404_vm3, %v11156_v6  ;;  %v4750_v58 = vadd.f32 %v4747_v8, %v12896_v5  ;;  %v4657_v12 = vadd.f32 %v4654_v27, %v4651_v13  ;;  %v4663_v18 = vmul.f32 %v11134_v19, %v10918_v44  ;;  %v4620_v1 = vadd.f32 %v11194_v30, %v4602_v21  ;;  %v12898_v19 = vld [vmem:[#allocation21_spill] sm:$0xff]  ;;  %v12899_v30 = vld [vmem:[#allocation14_spill] sm:$0xff] }
 0x50c   : > { %8336 = vmatmul.mubr.msk.f32.vlgmr.msra.gmra.mxu1 %vm404_vm3, %v11156_v6  ;;  %5187 = vmatpush1.msra.mxu0 %v4751_v54  ;;  %v4653_v4 = vmul.f32 %v10944_v2, %v12897_v35  ;;  %v4627_v3 = vadd.f32 %v4624_v52, %v4621_v46  ;;  %v4596_v9 = vadd.f32 %v11206_v32, %v4590_v10 }
 0x50d   : > { %5270 = vmatpush1.msra.mxu1 %v4628_v55  ;;  %5188 = vmatprep.subr.mxu0 %v4597_v25  ;;  %v4662_v15 = vmul.f32 %v11160_v23, %v10912_v38  ;;  %v4667_v28 = vmul.f32 %v4664_v51, %v10924_v17  ;;  %v4623_v37 = vmul.f32 %v10944_v2, %v12898_v19  ;;  %v12901_v23 = vld [vmem:[#allocation24_spill] sm:$0xff] }
 0x50e   : > { %5271 = vmatprep.subr.mxu1 %v4657_v12  ;;  %5189 = vmatpush1.msra.mxu0 %v4750_v58  ;;  %v4656_v22 = vadd.f32 %v4653_v4, %v4650_v49  ;;  %v4673_v14 = vmul.f32 %v12899_v30, %v10977_v57  ;;  %v4749_v32 = vadd.f32 %v11185_v45, %v12900_v7  ;;  %v12903_v45 = vld [vmem:[#allocation19_spill] sm:$0xff] }
 0x50f   : > { %5272 = vmatpush1.msra.mxu1 %v4627_v3  ;;  %5064 = vmatprep.mubr.f32.mxu0 %v12763_v36  ;;  %v4666_v62 = vmul.f32 %v4663_v18, %v10918_v44  ;;  %v4672_v11 = vmul.f32 %v12902_v41, %v12901_v23  ;;  %v4626_v43 = vadd.f32 %v4623_v37, %v4620_v1 }
 0x510   : > { %5147 = vmatprep.mubr.f32.mxu1 %v12763_v36  ;;  %5190 = vmatprep.subr.mxu0 %v4596_v9  ;;  %v4665_v59 = vmul.f32 %v4662_v15, %v10912_v38  ;;  %v4670_v57 = vmul.f32 %v4667_v28, %v10924_v17  ;;  %v4671_v0 = vmul.f32 %v12904_v63, %v12903_v45 }
 0x511   : > { %5273 = vmatprep.subr.mxu1 %v4656_v22  ;;  %8334 = vmatmul.mubr.msk.f32.gmra.mxu0 %vm404_vm3, %v11202_v56  ;;  %v4676_v61 = vmul.f32 %v4673_v14, %v10924_v17  ;;  %v4669_v53 = vmul.f32 %v4666_v62, %v10918_v44  ;;  %v4682_v20 = vmul.f32 %v10962_v42, %v12905_v60 }
 0x512   : > { %8337 = vmatmul.mubr.msk.f32.gmra.mxu1 %vm404_vm3, %v11202_v56  ;;  %5191 = vmatpush1.msra.mxu0 %v4749_v32  ;;  %v4675_v33 = vmul.f32 %v4672_v11, %v10918_v44  ;;  %v4668_v48 = vmul.f32 %v4665_v59, %v10912_v38  ;;  %v4681_v47 = vmul.f32 %v10972_v29, %v12906_v50 }
 0x513   : > { %5274 = vmatpush1.msra.mxu1 %v4626_v43  ;;  %5070 = vmatprep.mubr.f32.mxu0 %v12763_v36  ;;  %v4679_v17 = vadd.f32 %v4676_v61, %v4670_v57  ;;  %v4674_v42 = vmul.f32 %v4671_v0, %v10912_v38  ;;  %v4680_v44 = vmul.f32 %v10944_v2, %v12907_v39  ;;  %v5423_v38 = vpop.permute.xlu1 %5422 }
 0x514   : > { %5153 = vmatprep.mubr.f32.mxu1 %v12763_v36  ;;  %8619 = vmatprep.subr.mxu0 %v12763_v36  ;;  %v4678_v40 = vadd.f32 %v4675_v33, %v4669_v53 }
 0x515   : > { %8335 = vmatmul.mubr.msk.f32.gmra.mxu0 %vm404_vm3, %v11231_v31  ;;  %v4685_v8 = vadd.f32 %v4682_v20, %v4679_v17  ;;  %v4677_v24 = vadd.f32 %v4674_v42, %v4668_v48 }
 0x516   : > { %8338 = vmatmul.mubr.msk.f32.gmra.mxu1 %vm404_vm3, %v11231_v31  ;;  %5224 = vmatprep.mubr.f32.mxu0 %v12763_v36  ;;  %v4684_v29 = vadd.f32 %v4681_v47, %v4678_v40 }
 0x517   : > { %5307 = vmatprep.mubr.f32.mxu1 %v12763_v36  ;;  %v4683_v26 = vadd.f32 %v4680_v44, %v4677_v24  ;;  %v5413_v13 = vpop.permute.xlu1 %5412 }
 0x519   : > { %8339 = vmatmul.mubr.msk.f32.vlgmr.msra.gmra.mxu0 %vm404_vm3, %v11156_v6 }
 0x51a   : > { %8342 = vmatmul.mubr.msk.f32.vlgmr.msra.gmra.mxu1 %vm404_vm3, %v11156_v6  ;;  %8620 = vmatpush3.msra.mxu0 %v4685_v8 }
 0x51b   : > { %8621 = vmatprep.subr.mxu0 %v12763_v36  ;;  %5230 = vmatprep.mubr.f32.mxu0 %v12763_v36 }
 0x51c   : > { %8622 = vmatpush3.msra.mxu0 %v4684_v29  ;;  %5313 = vmatprep.mubr.f32.mxu1 %v12763_v36 }
 0x51d   : > { %8623 = vmatprep.subr.mxu0 %v12763_v36  ;;  %8340 = vmatmul.mubr.msk.f32.gmra.mxu0 %vm404_vm3, %v11202_v56 }
 0x51e   : > { %8343 = vmatmul.mubr.msk.f32.gmra.mxu1 %vm404_vm3, %v11202_v56  ;;  %8624 = vmatpush3.msra.mxu0 %v4683_v26 }
 0x51f   : > { %5236 = vmatprep.mubr.f32.mxu0 %v12763_v36  ;;  %5319 = vmatprep.mubr.f32.mxu1 %v12763_v36 }
 0x521   : > { %8341 = vmatmul.mubr.msk.f32.gmra.mxu0 %vm404_vm3, %v11231_v31 }
 0x522   : > { %8344 = vmatmul.mubr.msk.f32.gmra.mxu1 %vm404_vm3, %v11231_v31  ;;  %8625 = vmatprep.mubr.msk.f32.mxu0 %vm8819_vm4, %v12763_v36 }
 0x523   : > { %5775 = vmatprep.mubr.f32.mxu1 %v12763_v36 }
 0x525   : > { %8626 = vmatmul.mubr.msk.f32.vlgmr.msra.gmra.mxu0 %vm404_vm3, %v11156_v6 }
 0x526   : > { %8628 = vmatprep.mubr.msk.f32.mxu0 %vm8819_vm4, %v12763_v36 }
 0x529   : > { %8629 = vmatmul.mubr.msk.f32.gmra.mxu0 %vm404_vm3, %v11202_v56 }
 0x52a   : > { %8631 = vmatprep.mubr.msk.f32.mxu0 %vm8819_vm4, %v12763_v36 }
 0x52d   : > { %8632 = vmatmul.mubr.msk.f32.gmra.mxu0 %vm404_vm3, %v11231_v31 }
 0x52e   : > { %5858 = vmatprep.mubr.f32.mxu0 %v12763_v36 }
 0x5b4   : > { %v4894_v2 = vpop.f32.mrf.mxu0 }
 0x5b5   : > { %v5425_v21 = vadd.f32 %v5413_v13, %v4894_v2 }
 0x5b6   : > { %v11353_v46 = vpop.f32.mrf.mxu0 }
 0x5b7   : > { %8754 = vtanh.f32 %v5425_v21 }
 0x5bc   : > { %v11355_v6 = vpop.f32.mrf.mxu1 }
 0x5be   : > { %v11357_v34 = vpop.f32.mrf.mxu1 }
 0x5bf   : > { %v4900_v56 = vpop.f32.mrf.mxu0 }
 0x5c0   : > { %v5426_v27 = vadd.f32 %v5418_v16, %v4900_v56 }
 0x5c1   : > { %v11361_v54 = vpop.f32.mrf.mxu0 }
 0x5c2   : > { %8756 = vtanh.f32 %v5426_v27 }
 0x5c3   : > { %v11359_v10 = vpop.f32.mrf.mxu1 }
 0x5c4   : > { %v11373_v18 = vpop.eup %8754 }
 0x5c5   : > { %v11363_v31 = vpop.f32.mrf.mxu1  ;;  %v5431_v35 = vmul.f32 %v11373_v18, %v11373_v18  ;;  %v5437_v14 = vmul.f32 -2.0, %v11373_v18 }
 0x5c7   : > { %v4906_v51 = vpop.f32.mrf.mxu0  ;;  %v11387_v19 = vsub.f32 1.0, %v5431_v35 }
 0x5c8   : > { %v5427_v49 = vadd.f32 %v5423_v38, %v4906_v51  ;;  %v11365_v52 = vpop.f32.mrf.mxu1 }
 0x5c9   : > { %v11367_v25 = vpop.f32.mrf.mxu0  ;;  %v11403_v23 = vmul.f32 %v5437_v14, %v11387_v19  ;;  %v11434_v17 = vmul.f32 %v11387_v19, %v11357_v34 }
 0x5ca   : > { %8758 = vtanh.f32 %v5427_v49  ;;  %v11369_v55 = vpop.f32.mrf.mxu1 }
 0x5cb   : > { %v5060_v5 = vpop.f32.mrf.mxu0  ;;  %v11416_v63 = vmul.f32 3.0, %v11403_v23  ;;  %v5572_v20 = vmul.f32 %v11403_v23, %v11353_v46  ;;  %v5599_v50 = vmul.f32 %v11403_v23, %v11355_v6 }
 0x5cc   : > { %v11371_v12 = vpop.f32.mrf.mxu1  ;;  %v5488_v0 = vmul.f32 %v5060_v5, %v11355_v6  ;;  %v5578_v8 = vmul.f32 %v11387_v19, %v5060_v5 }
 0x5cd   : > { %v5062_v58 = vpop.f32.mrf.mxu0  ;;  %12908 = vst [vmem:[#allocation17_spill] sm:$0xff] %v11371_v12  ;;  %12910 = vst [vmem:[#allocation23_spill] sm:$0xff] %v11416_v63  ;;  %v5521_v39 = vmul.f32 %v11371_v12, %v11353_v46  ;;  %v5467_v40 = vmul.f32 %v11416_v63, %v5060_v5  ;;  %v5605_v24 = vmul.f32 %v11387_v19, %v11371_v12 }
 0x5ce   : > { %v5145_v4 = vpop.f32.mrf.mxu1  ;;  %v5491_v41 = vmul.f32 2.0, %v5062_v58  ;;  %v5614_v2 = vmul.f32 %v5572_v20, %v11357_v34  ;;  %v5575_v13 = vmul.f32 %v5572_v20, %v11353_v46  ;;  %v5590_v56 = vmul.f32 %v11387_v19, %v5062_v58 }
 0x5cf   : > { %v11383_v15 = vpop.eup %8756  ;;  %v5602_v16 = vmul.f32 %v5599_v50, %v11355_v6  ;;  %v5587_v27 = vmul.f32 %v5572_v20, %v11355_v6  ;;  %v5617_v51 = vmul.f32 %v11387_v19, %v5145_v4 }
 0x5d0   : > { %v5432_v32 = vmul.f32 %v11383_v15, %v11383_v15  ;;  %v5494_v61 = vmul.f32 %v5491_v41, %v11353_v46  ;;  %v5438_v33 = vmul.f32 -2.0, %v11383_v15  ;;  %v5524_v48 = vmul.f32 %v5491_v41, %v11355_v6 }
 0x5d1   : > { %v11375_v1 = vpop.f32.mrf.mxu0  ;;  %v11476_v41 = vmul.f32 %v5467_v40, %v11353_v46 }
 0x5d2   : > { %v11389_v37 = vpop.f32.mrf.mxu1  ;;  %v11413_v45 = vsub.f32 1.0, %v5432_v32  ;;  %v11446_v29 = vadd.f32 %v5494_v61, %v5488_v0  ;;  %v11454_v21 = vadd.f32 %v5524_v48, %v5521_v39  ;;  %v5489_v49 = vmul.f32 %v11375_v1, %v11359_v10 }
 0x5d3   : > { %v11379_v3 = vpop.f32.mrf.mxu0  ;;  %12909 = vst [vmem:[#allocation7_spill] sm:$0xff] %v11389_v37  ;;  %v5522_v14 = vmul.f32 %v11389_v37, %v11361_v54  ;;  %v11471_v32 = vmul.f32 %v5599_v50, %v11357_v34  ;;  %12915 = vst [vmem:[#allocation12_spill] sm:$0xff] %v11476_v41  ;;  %v11488_v34 = vadd.f32 %v5578_v8, %v5575_v13 }
 0x5d4   : > { %v11405_v11 = vpop.f32.mrf.mxu1  ;;  %v11437_v42 = vmul.f32 %v5438_v33, %v11413_v45  ;;  %v5492_v44 = vmul.f32 2.0, %v11379_v3  ;;  %v5651_v20 = vmul.f32 %v11413_v45, %v11363_v31  ;;  %v11490_v48 = vadd.f32 %v5617_v51, %v5614_v2 }
 0x5d5   : > { %v11381_v9 = vpop.f32.mrf.mxu0  ;;  %12914 = vst [vmem:[#allocation13_spill] sm:$0xff] %v11471_v32  ;;  %v11492_v50 = vadd.f32 %v5605_v24, %v5602_v16  ;;  %v11494_v39 = vadd.f32 %v5590_v56, %v5587_v27  ;;  %v5579_v40 = vmul.f32 %v11413_v45, %v11375_v1  ;;  %v5606_v8 = vmul.f32 %v11413_v45, %v11389_v37 }
 0x5d6   : > { %v11420_v53 = vpop.f32.mrf.mxu1  ;;  %v5573_v35 = vmul.f32 %v11437_v42, %v11361_v54  ;;  %v5495_v58 = vmul.f32 %v5492_v44, %v11361_v54  ;;  %v5600_v4 = vmul.f32 %v11437_v42, %v11359_v10  ;;  %v5591_v24 = vmul.f32 %v11413_v45, %v11379_v3 }
 0x5d7   : > { %v11385_v28 = vpop.eup %8758  ;;  %v11391_v22 = vpop.f32.mrf.mxu0  ;;  %12911 = vst [vmem:[#allocation20_spill] sm:$0xff] %v11420_v53  ;;  %v5447_v27 = vmul.f32 %v11383_v15, %v11437_v42 }
 0x5d8   : > { %v5433_v30 = vmul.f32 %v11385_v28, %v11385_v28  ;;  %v11448_v26 = vpop.f32.mrf.mxu1  ;;  %v11502_v63 = vmul.f32 %v5573_v35, %v11363_v31  ;;  %v11506_v13 = vadd.f32 %v5495_v58, %v5489_v49  ;;  %v11511_v2 = vmul.f32 %v5600_v4, %v11363_v31 }
 0x5d9   : > { %v11396_v7 = vpop.f32.mrf.mxu0  ;;  %v5603_v31 = vmul.f32 %v5600_v4, %v11359_v10  ;;  %v5444_v58 = vmul.f32 %v11413_v45, %v11413_v45  ;;  %v5446_v4 = vmul.f32 %v11373_v18, %v11403_v23 }
 0x5da   : > { %v11400_v62 = vsub.f32 1.0, %v5433_v30  ;;  %v5439_v30 = vmul.f32 -2.0, %v11385_v28  ;;  %v11481_v0 = vpop.f32.mrf.mxu1  ;;  %12919 = vst [vmem:[#allocation15_spill] sm:$0xff] %v11511_v2 }
 0x5db   : > { %v11407_v43 = vpop.f32.mrf.mxu0  ;;  %12917 = vst [vmem:[#allocation21_spill] sm:$0xff] %v11481_v0  ;;  %v11554_v2 = vadd.f32 %v5606_v8, %v5603_v31  ;;  %v5638_v31 = vmul.f32 %v11387_v19, %v11353_v46 }
 0x5dc   : > { %v5652_v59 = vmul.f32 %v11400_v62, %v11369_v55  ;;  %v11486_v33 = vmul.f32 %v5439_v30, %v11400_v62  ;;  %v11516_v16 = vpop.f32.mrf.mxu1  ;;  %v5592_v8 = vmul.f32 %v11400_v62, %v11391_v22 }
 0x5dd   : > { %v11411_v57 = vpop.f32.mrf.mxu0  ;;  %12920 = vst [vmem:[#allocation24_spill] sm:$0xff] %v11516_v16 }
 0x5de   : > { %5820 = vmatprep.subr.mxu0 %v5652_v59  ;;  %v11479_v59 = vmul.f32 3.0, %v11437_v42  ;;  %v5574_v49 = vmul.f32 %v11486_v33, %v11367_v25  ;;  %v11524_v3 = vmul.f32 %v11486_v33, %v11365_v52  ;;  %v11551_v0 = vpop.f32.mrf.mxu1 }
 0x5df   : > { %v11422_v60 = vpop.f32.mrf.mxu0 }
 0x5e0   : > { %12912 = vst [vmem:[#allocation11_spill] sm:$0xff] %v11422_v60  ;;  %12916 = vst [vmem:[#allocation25_spill] sm:$0xff] %v11479_v59  ;;  %v5468_v56 = vmul.f32 %v11479_v59, %v11375_v1  ;;  %v5640_v1 = vmul.f32 %v11400_v62, %v11367_v25  ;;  %v5588_v59 = vmul.f32 %v5573_v35, %v11359_v10 }
 0x5e1   : > { %v11430_v47 = vpop.f32.mrf.mxu0  ;;  %v5589_v41 = vmul.f32 %v5574_v49, %v11365_v52  ;;  %v5443_v60 = vmul.f32 %v11387_v19, %v11387_v19 }
 0x5e2   : > { %5737 = vmatprep.subr.mxu1 %v5640_v1  ;;  %v11547_v37 = vmul.f32 %v5468_v56, %v11361_v54  ;;  %v5493_v1 = vmul.f32 2.0, %v11391_v22  ;;  %v11562_v56 = vmul.f32 3.0, %v11486_v33  ;;  %v5618_v22 = vmul.f32 %v11413_v45, %v11405_v11 }
 0x5e3   : > { %v11450_v38 = vpop.f32.mrf.mxu0  ;;  %5738 = vmatpush1.msra.mxu1 %v11385_v28  ;;  %v5523_v11 = vmul.f32 %v11420_v53, %v11367_v25 }
 0x5e4   : > { %12922 = vst [vmem:[#allocation19_spill] sm:$0xff] %v11562_v56 }
 0x5e5   : > { %v11462_v5 = vpop.f32.mrf.mxu0 }
 0x5e6   : > { %12913 = vst [vmem:[#allocation10_spill] sm:$0xff] %v11462_v5  ;;  %v5525_v5 = vmul.f32 %v5492_v44, %v11359_v10  ;;  %v5576_v44 = vmul.f32 %v5573_v35, %v11361_v54 }
 0x5e7   : > { %v8627_v61 = vpop.f32.mrf.mxu0 }
 0x5e8   : > { %v11529_v30 = vadd.f32 %v5525_v5, %v5522_v14  ;;  %v5646_v5 = vmul.f32 %v11400_v62, %v11365_v52  ;;  %v5639_v14 = vmul.f32 %v11413_v45, %v11361_v54  ;;  %v11549_v32 = vadd.f32 %v5579_v40, %v5576_v44 }
 0x5e9   : > { %v11499_v61 = vpop.f32.mrf.mxu0  ;;  %v5616_v40 = vmul.f32 %v5574_v49, %v11369_v55  ;;  %v5449_v44 = vadd.f32 %v5446_v4, %v5443_v60  ;;  %v5526_v60 = vmul.f32 %v5493_v1, %v11365_v52  ;;  %v5604_v4 = vmul.f32 %v11524_v3, %v11365_v52 }
 0x5ea   : > { %12918 = vst [vmem:[#allocation14_spill] sm:$0xff] %v11499_v61  ;;  %v5448_v61 = vmul.f32 %v11385_v28, %v11486_v33  ;;  %5821 = vmatpush1.msra.mxu0 %v5646_v5  ;;  %5739 = vmatprep.subr.mxu1 %v5639_v14 }
 0x5eb   : > { %v8630_v51 = vpop.f32.mrf.mxu0  ;;  %5822 = vmatprep.subr.mxu0 %v5651_v20  ;;  %5740 = vmatpush1.msra.mxu1 %v11383_v15  ;;  %v5595_v20 = vadd.f32 %v5592_v8, %v5589_v41  ;;  %v5619_v41 = vmul.f32 %v11400_v62, %v11448_v26  ;;  %v11600_v14 = vmul.f32 -2.0, %v5449_v44  ;;  %v5607_v8 = vmul.f32 %v11400_v62, %v11420_v53 }
 0x5ec   : > { %v5445_v51 = vmul.f32 %v11400_v62, %v11400_v62  ;;  %5741 = vmatprep.subr.mxu1 %v5638_v31  ;;  %v5496_v26 = vmul.f32 %v5493_v1, %v11367_v25  ;;  %v5529_v44 = vadd.f32 %v5526_v60, %v5523_v11  ;;  %v5644_v53 = vmul.f32 %v11387_v19, %v11355_v6 }
 0x5ed   : > { %v11537_v12 = vpop.f32.mrf.mxu0  ;;  %5742 = vmatpush1.msra.mxu1 %v11373_v18  ;;  %v5622_v18 = vadd.f32 %v5619_v41, %v5616_v40  ;;  %v5455_v1 = vmul.f32 %v11600_v14, %v11353_v46 }
 0x5ee   : > { %12921 = vst [vmem:[#allocation8_spill] sm:$0xff] %v11537_v12  ;;  %v5450_v12 = vadd.f32 %v5447_v27, %v5444_v58  ;;  %v5451_v16 = vadd.f32 %v5448_v61, %v5445_v51  ;;  %v5577_v61 = vmul.f32 %v5574_v49, %v11367_v25  ;;  %v5645_v27 = vmul.f32 %v11413_v45, %v11359_v10 }
 0x5ef   : > { %v8633_v35 = vpop.f32.mrf.mxu0  ;;  %v5594_v58 = vadd.f32 %v5591_v24, %v5588_v59  ;;  %v5580_v51 = vmul.f32 %v11400_v62, %v11381_v9  ;;  %v11588_v59 = vld [vmem:[%s12707_s2 + $0x90] sm:$0xff]  ;;  %5903 = vmatprep.subr.mxu1 %v5595_v20  ;;  %v5532_v40 = vmul.f32 %v5529_v44, %v11486_v33 }
 0x5f0   : > { %v11565_v28 = vmul.f32 -2.0, %v5451_v16  ;;  %v11576_v49 = vmul.f32 -2.0, %v5450_v12  ;;  %v11578_v16 = vpop.f32.mrf.mxu1  ;;  %5823 = vmatpush1.msra.mxu0 %v5645_v27  ;;  %v5469_v12 = vmul.f32 %v11562_v56, %v11381_v9  ;;  %8354 = vmatmul.mubr.msk.f32.vlgmr.msra.gmra.mxu1 %vm404_vm3, %v11588_v59  ;;  %v5610_v56 = vadd.f32 %v5607_v8, %v5604_v4 }
 0x5f1   : > { %v5583_v24 = vadd.f32 %v5580_v51, %v5577_v61  ;;  %5824 = vmatprep.subr.mxu0 %v11434_v17  ;;  %v5490_v61 = vmul.f32 %v11381_v9, %v11365_v52  ;;  %v11619_v9 = vmul.f32 %v11524_v3, %v11369_v55  ;;  %5781 = vmatprep.mubr.f32.mxu1 %v12763_v36 }
 0x5f2   : > { %12923 = vst [vmem:[#allocation18_spill] sm:$0xff] %v11576_v49  ;;  %v5457_v15 = vmul.f32 %v11565_v28, %v11367_v25  ;;  %v5456_v17 = vmul.f32 %v11576_v49, %v11361_v54  ;;  %v11610_v27 = vpop.f32.mrf.mxu1  ;;  %v5621_v49 = vadd.f32 %v5618_v22, %v11502_v63  ;;  %v11631_v55 = vmul.f32 %v11387_v19, %v11396_v7  ;;  %v11638_v63 = vld [vmem:[%s12707_s2 + $0x98] sm:$0xff] }
 0x5f3   : > { %5904 = vmatpush1.msra.mxu1 %v5583_v24  ;;  %5825 = vmatpush1.msra.mxu0 %v5644_v53  ;;  %v5499_v22 = vadd.f32 %v5496_v26, %v5490_v61  ;;  %v5500_v7 = vmul.f32 %v11446_v29, %v11403_v23  ;;  %v11647_v53 = vmul.f32 %v11387_v19, %v11407_v43 }
 0x5f4   : > { %v5460_v5 = vmul.f32 %v5457_v15, %v11367_v25  ;;  %v5517_v35 = vmul.f32 %v5457_v15, %v11365_v52  ;;  %v5472_v15 = vmul.f32 %v5469_v12, %v11367_v25  ;;  %5905 = vmatprep.subr.mxu1 %v5594_v58  ;;  %v5323_v60 = vpop.f32.mrf.mxu1  ;;  %v5516_v58 = vmul.f32 %v5456_v17, %v11359_v10 }
 0x5f5   : > { %5906 = vmatpush1.msra.mxu1 %v11549_v32  ;;  %8357 = vmatmul.mubr.msk.f32.vlgmr.msra.gmra.mxu0 %vm404_vm3, %v11588_v59  ;;  %v5478_v32 = vmul.f32 %v11400_v62, %v11450_v38  ;;  %v5458_v12 = vmul.f32 %v5455_v1, %v11353_v46  ;;  %v5515_v24 = vmul.f32 %v5455_v1, %v11355_v6 }
 0x5f6   : > { %v5463_v31 = vmul.f32 %v5460_v5, %v11367_v25  ;;  %v5520_v51 = vmul.f32 %v5517_v35, %v11365_v52  ;;  %v5459_v25 = vmul.f32 %v5456_v17, %v11361_v54  ;;  %5986 = vmatprep.subr.mxu0 %v5622_v18  ;;  %5864 = vmatprep.mubr.f32.mxu0 %v12763_v36  ;;  %v12925_v35 = vld [vmem:[#allocation12_spill] sm:$0xff]  ;;  %v12926_v18 = vld [vmem:[#allocation15_spill] sm:$0xff] }
 0x5f7   : > { %5987 = vmatpush1.msra.mxu0 %v5610_v56  ;;  %v5538_v4 = vmul.f32 %v11400_v62, %v5323_v60  ;;  %8355 = vmatmul.mubr.msk.f32.gmra.mxu1 %vm404_vm3, %v11638_v63  ;;  %v5487_v43 = vmul.f32 %v5460_v5, %v11365_v52  ;;  %v5530_v38 = vmul.f32 %v11454_v21, %v11403_v23 }
 0x5f8   : > { %v5475_v3 = vadd.f32 %v5472_v15, %v5463_v31  ;;  %v5535_v20 = vadd.f32 %v5532_v40, %v5520_v51  ;;  %5988 = vmatprep.subr.mxu0 %v5621_v49  ;;  %v5462_v29 = vmul.f32 %v5459_v25, %v11361_v54  ;;  %5907 = vmatprep.subr.mxu1 %v11494_v39  ;;  %v11670_v54 = vld [vmem:[%s12707_s2 + $0xa0] sm:$0xff] }
 0x5f9   : > { %5989 = vmatpush1.msra.mxu0 %v11554_v2  ;;  %v5519_v56 = vmul.f32 %v5516_v58, %v11359_v10  ;;  %v5486_v2 = vmul.f32 %v5459_v25, %v11359_v10  ;;  %v5501_v39 = vmul.f32 %v11506_v13, %v11437_v42  ;;  %v5502_v23 = vmul.f32 %v5499_v22, %v11486_v33  ;;  %v12927_v1 = vld [vmem:[#allocation18_spill] sm:$0xff]  ;;  %v12929_v22 = vld [vmem:[#allocation21_spill] sm:$0xff] }
 0x5fa   : > { %v5481_v11 = vadd.f32 %v5478_v32, %v5475_v3  ;;  %v5541_v41 = vadd.f32 %v5538_v4, %v5535_v20  ;;  %8358 = vmatmul.mubr.msk.f32.gmra.mxu0 %vm404_vm3, %v11638_v63  ;;  %5990 = vmatprep.subr.mxu0 %v11490_v48  ;;  %v5461_v21 = vmul.f32 %v5458_v12, %v11353_v46  ;;  %v12931_v32 = vld [vmem:[#allocation19_spill] sm:$0xff] }
 0x5fb   : > { %5908 = vmatpush1.msra.mxu1 %v11488_v34  ;;  %5991 = vmatpush1.msra.mxu0 %v11492_v50  ;;  %v5531_v48 = vmul.f32 %v11529_v30, %v11437_v42  ;;  %v5631_v49 = vmul.f32 %v11400_v62, %v11430_v47  ;;  %v5518_v13 = vmul.f32 %v5515_v24, %v11355_v6  ;;  %v12924_v42 = vld [vmem:[#allocation11_spill] sm:$0xff]  ;;  %v12932_v24 = vld [vmem:[#allocation13_spill] sm:$0xff] }
 0x5fc   : > { %5787 = vmatprep.mubr.f32.mxu1 %v12763_v36  ;;  %5870 = vmatprep.mubr.f32.mxu0 %v12763_v36  ;;  %v5474_v33 = vadd.f32 %v11547_v37, %v5462_v29  ;;  %v5505_v5 = vadd.f32 %v5502_v23, %v5487_v43  ;;  %v5630_v46 = vmul.f32 %v11413_v45, %v11411_v57  ;;  %v12934_v29 = vld [vmem:[#allocation25_spill] sm:$0xff] }
 0x5fd   : > { %8356 = vmatmul.mubr.msk.f32.gmra.mxu1 %vm404_vm3, %v11670_v54  ;;  %6069 = vmatprep.subr.mxu1 %v5481_v11  ;;  %v5477_v34 = vmul.f32 %v11413_v45, %v12924_v42  ;;  %v5534_v47 = vadd.f32 %v5531_v48, %v5519_v56  ;;  %v5485_v50 = vmul.f32 %v5458_v12, %v11355_v6 }
 0x5fe   : > { %8359 = vmatmul.mubr.msk.f32.gmra.mxu0 %vm404_vm3, %v11670_v54  ;;  %6152 = vmatprep.subr.mxu0 %v5541_v41  ;;  %v5504_v30 = vadd.f32 %v5501_v39, %v5486_v2  ;;  %v5508_v37 = vmul.f32 %v11400_v62, %v11610_v27  ;;  %v5473_v57 = vadd.f32 %v12925_v35, %v5461_v21  ;;  %v12936_v41 = vld [vmem:[#allocation23_spill] sm:$0xff]  ;;  %v12937_v21 = vld [vmem:[#allocation8_spill] sm:$0xff] }
 0x5ff   : > { %5941 = vmatprep.mubr.f32.mxu1 %v12763_v36  ;;  %6024 = vmatprep.mubr.f32.mxu0 %v12763_v36  ;;  %v5537_v61 = vmul.f32 %v11413_v45, %v11578_v16  ;;  %v5634_v8 = vadd.f32 %v5631_v49, %v11619_v9  ;;  %v5547_v17 = vmul.f32 %v11565_v28, %v11365_v52  ;;  %v12928_v9 = vld [vmem:[#allocation24_spill] sm:$0xff] }
 0x600   : > { %v5533_v31 = vadd.f32 %v5530_v38, %v5518_v13  ;;  %v5507_v26 = vmul.f32 %v11413_v45, %v11551_v0  ;;  %v5480_v44 = vadd.f32 %v5477_v34, %v5474_v33  ;;  %v5511_v27 = vadd.f32 %v5508_v37, %v5505_v5  ;;  %v12938_v33 = vld [vmem:[#allocation14_spill] sm:$0xff] }
 0x601   : > { %8360 = vmatmul.mubr.msk.f32.vlgmr.msra.gmra.mxu1 %vm404_vm3, %v11588_v59  ;;  %v5633_v51 = vadd.f32 %v5630_v46, %v12926_v18  ;;  %v5540_v15 = vadd.f32 %v5537_v61, %v5534_v47  ;;  %v5546_v16 = vmul.f32 %v12927_v1, %v11359_v10  ;;  %v5503_v28 = vadd.f32 %v5500_v7, %v5485_v50  ;;  %v12930_v7 = vld [vmem:[#allocation20_spill] sm:$0xff]  ;;  %v12939_v46 = vld [vmem:[#allocation10_spill] sm:$0xff] }
 0x602   : > { %8363 = vmatmul.mubr.msk.f32.vlgmr.msra.gmra.mxu0 %vm404_vm3, %v11588_v59  ;;  %6070 = vmatpush1.msra.mxu1 %v5634_v8  ;;  %v5536_v40 = vmul.f32 %v11387_v19, %v12928_v9  ;;  %v5510_v0 = vadd.f32 %v5507_v26, %v5504_v30  ;;  %v5479_v25 = vadd.f32 %v11647_v53, %v5473_v57  ;;  %v6301_v57 = vpop.permute.xlu1 %6300 }
 0x603   : > { %6153 = vmatpush1.msra.mxu0 %v5511_v27  ;;  %6071 = vmatprep.subr.mxu1 %v5480_v44  ;;  %v5545_v3 = vmul.f32 %v11600_v14, %v11355_v6  ;;  %v5550_v60 = vmul.f32 %v5547_v17, %v11365_v52  ;;  %v5506_v58 = vmul.f32 %v11387_v19, %v12929_v22  ;;  %v12933_v14 = vld [vmem:[#allocation7_spill] sm:$0xff] }
 0x604   : > { %6154 = vmatprep.subr.mxu0 %v5540_v15  ;;  %6072 = vmatpush1.msra.mxu1 %v5633_v51  ;;  %v5539_v20 = vadd.f32 %v5536_v40, %v5533_v31  ;;  %v5556_v12 = vmul.f32 %v12931_v32, %v12930_v7  ;;  %v5632_v53 = vadd.f32 %v11631_v55, %v12932_v24  ;;  %v12935_v55 = vld [vmem:[#allocation17_spill] sm:$0xff] }
 0x605   : > { %6155 = vmatpush1.msra.mxu0 %v5510_v0  ;;  %5947 = vmatprep.mubr.f32.mxu1 %v12763_v36  ;;  %v5549_v4 = vmul.f32 %v5546_v16, %v11359_v10  ;;  %v5555_v43 = vmul.f32 %v12934_v29, %v12933_v14  ;;  %v5509_v11 = vadd.f32 %v5506_v58, %v5503_v28 }
 0x606   : > { %6030 = vmatprep.mubr.f32.mxu0 %v12763_v36  ;;  %6073 = vmatprep.subr.mxu1 %v5479_v25  ;;  %v5548_v38 = vmul.f32 %v5545_v3, %v11355_v6  ;;  %v5553_v56 = vmul.f32 %v5550_v60, %v11365_v52  ;;  %v5554_v2 = vmul.f32 %v12936_v41, %v12935_v55 }
 0x607   : > { %6156 = vmatprep.subr.mxu0 %v5539_v20  ;;  %8361 = vmatmul.mubr.msk.f32.gmra.mxu1 %vm404_vm3, %v11638_v63  ;;  %v5559_v39 = vmul.f32 %v5556_v12, %v11365_v52  ;;  %v5552_v23 = vmul.f32 %v5549_v4, %v11359_v10  ;;  %v5565_v48 = vmul.f32 %v11400_v62, %v12937_v21 }
 0x608   : > { %8364 = vmatmul.mubr.msk.f32.gmra.mxu0 %vm404_vm3, %v11638_v63  ;;  %6074 = vmatpush1.msra.mxu1 %v5632_v53  ;;  %v5558_v49 = vmul.f32 %v5555_v43, %v11359_v10  ;;  %v5551_v13 = vmul.f32 %v5548_v38, %v11355_v6  ;;  %v5564_v5 = vmul.f32 %v11413_v45, %v12938_v33 }
 0x609   : > { %6157 = vmatpush1.msra.mxu0 %v5509_v11  ;;  %5953 = vmatprep.mubr.f32.mxu1 %v12763_v36  ;;  %v5562_v52 = vadd.f32 %v5559_v39, %v5553_v56  ;;  %v5557_v62 = vmul.f32 %v5554_v2, %v11355_v6  ;;  %v5563_v10 = vmul.f32 %v11387_v19, %v12939_v46  ;;  %v6306_v6 = vpop.permute.xlu0 %6305 }
 0x60a   : > { %6036 = vmatprep.mubr.f32.mxu0 %v12763_v36  ;;  %8634 = vmatprep.subr.mxu1 %v12763_v36  ;;  %v5561_v42 = vadd.f32 %v5558_v49, %v5552_v23 }
 0x60b   : > { %8362 = vmatmul.mubr.msk.f32.gmra.mxu1 %vm404_vm3, %v11670_v54  ;;  %v5568_v34 = vadd.f32 %v5565_v48, %v5562_v52  ;;  %v5560_v47 = vadd.f32 %v5557_v62, %v5551_v13 }
 0x60c   : > { %8365 = vmatmul.mubr.msk.f32.gmra.mxu0 %vm404_vm3, %v11670_v54  ;;  %6107 = vmatprep.mubr.f32.mxu1 %v12763_v36  ;;  %v5567_v45 = vadd.f32 %v5564_v5, %v5561_v42 }
 0x60d   : > { %6190 = vmatprep.mubr.f32.mxu0 %v12763_v36  ;;  %v5566_v50 = vadd.f32 %v5563_v10, %v5560_v47  ;;  %v6296_v30 = vpop.permute.xlu0 %6295 }
 0x60f   : > { %8366 = vmatmul.mubr.msk.f32.vlgmr.msra.gmra.mxu1 %vm404_vm3, %v11588_v59 }
 0x610   : > { %8369 = vmatmul.mubr.msk.f32.vlgmr.msra.gmra.mxu0 %vm404_vm3, %v11588_v59  ;;  %8635 = vmatpush3.msra.mxu1 %v5568_v34 }
 0x611   : > { %8636 = vmatprep.subr.mxu1 %v12763_v36  ;;  %6113 = vmatprep.mubr.f32.mxu1 %v12763_v36 }
 0x612   : > { %8637 = vmatpush3.msra.mxu1 %v5567_v45  ;;  %6196 = vmatprep.mubr.f32.mxu0 %v12763_v36 }
 0x613   : > { %8638 = vmatprep.subr.mxu1 %v12763_v36  ;;  %8367 = vmatmul.mubr.msk.f32.gmra.mxu1 %vm404_vm3, %v11638_v63 }
 0x614   : > { %8370 = vmatmul.mubr.msk.f32.gmra.mxu0 %vm404_vm3, %v11638_v63  ;;  %8639 = vmatpush3.msra.mxu1 %v5566_v50 }
 0x615   : > { %6119 = vmatprep.mubr.f32.mxu1 %v12763_v36  ;;  %6202 = vmatprep.mubr.f32.mxu0 %v12763_v36 }
 0x617   : > { %8368 = vmatmul.mubr.msk.f32.gmra.mxu1 %vm404_vm3, %v11670_v54 }
 0x618   : > { %8371 = vmatmul.mubr.msk.f32.gmra.mxu0 %vm404_vm3, %v11670_v54  ;;  %8640 = vmatprep.mubr.msk.f32.mxu1 %vm8819_vm4, %v12763_v36 }
 0x619   : > { %6658 = vmatprep.mubr.f32.mxu0 %v12763_v36 }
 0x61b   : > { %8641 = vmatmul.mubr.msk.f32.vlgmr.msra.gmra.mxu1 %vm404_vm3, %v11588_v59 }
 0x61c   : > { %8643 = vmatprep.mubr.msk.f32.mxu1 %vm8819_vm4, %v12763_v36 }
 0x61f   : > { %8644 = vmatmul.mubr.msk.f32.gmra.mxu1 %vm404_vm3, %v11638_v63 }
 0x620   : > { %8646 = vmatprep.mubr.msk.f32.mxu1 %vm8819_vm4, %v12763_v36 }
 0x623   : > { %8647 = vmatmul.mubr.msk.f32.gmra.mxu1 %vm404_vm3, %v11670_v54 }
 0x624   : > { %6741 = vmatprep.mubr.f32.mxu1 %v12763_v36 }
 0x6b0   : > { %v5777_v19 = vpop.f32.mrf.mxu1 }
 0x6b1   : > { %v6308_v37 = vadd.f32 %v6296_v30, %v5777_v19 }
 0x6b2   : > { %v11792_v35 = vpop.f32.mrf.mxu1 }
 0x6b3   : > { %8760 = vtanh.f32 %v6308_v37 }
 0x6b5   : > { %v11794_v59 = vpop.f32.mrf.mxu0 }
 0x6b7   : > { %v11796_v61 = vpop.f32.mrf.mxu0  ;;  %v5783_v63 = vpop.f32.mrf.mxu1 }
 0x6b8   : > { %v6309_v8 = vadd.f32 %v6301_v57, %v5783_v63 }
 0x6b9   : > { %v11800_v31 = vpop.f32.mrf.mxu1 }
 0x6ba   : > { %v11798_v17 = vpop.f32.mrf.mxu0  ;;  %8762 = vtanh.f32 %v6309_v8 }
 0x6bc   : > { %v11802_v54 = vpop.f32.mrf.mxu0 }
 0x6bd   : > { %v5789_v26 = vpop.f32.mrf.mxu1 }
 0x6be   : > { %v6310_v44 = vadd.f32 %v6306_v6, %v5789_v26  ;;  %v11804_v27 = vpop.f32.mrf.mxu0 }
 0x6bf   : > { %v11806_v18 = vpop.f32.mrf.mxu1 }
 0x6c0   : > { %8764 = vtanh.f32 %v6310_v44  ;;  %v11808_v51 = vpop.f32.mrf.mxu0  ;;  %v11810_v16 = vpop.eup %8760 }
 0x6c1   : > { %v5943_v15 = vpop.f32.mrf.mxu1  ;;  %v6314_v9 = vmul.f32 %v11810_v16, %v11810_v16  ;;  %v6320_v20 = vmul.f32 -2.0, %v11810_v16 }
 0x6c2   : > { %v11812_v28 = vpop.f32.mrf.mxu0  ;;  %v6371_v13 = vmul.f32 %v5943_v15, %v11794_v59 }
 0x6c3   : > { %v5945_v1 = vpop.f32.mrf.mxu1  ;;  %12940 = vst [vmem:[#allocation9_spill] sm:$0xff] %v11812_v28  ;;  %v11822_v60 = vsub.f32 1.0, %v6314_v9  ;;  %v6404_v52 = vmul.f32 %v11812_v28, %v11792_v35 }
 0x6c4   : > { %v6028_v0 = vpop.f32.mrf.mxu0  ;;  %v6374_v56 = vmul.f32 2.0, %v5945_v1 }
 0x6c5   : > { %v11838_v53 = vmul.f32 %v6320_v20, %v11822_v60  ;;  %v11877_v10 = vmul.f32 %v11822_v60, %v11796_v61  ;;  %v6461_v34 = vmul.f32 %v11822_v60, %v5943_v15  ;;  %v6488_v47 = vmul.f32 %v11822_v60, %v11812_v28 }
 0x6c6   : > { %v6377_v33 = vmul.f32 %v6374_v56, %v11792_v35  ;;  %v6407_v62 = vmul.f32 %v6374_v56, %v11794_v59  ;;  %v6473_v50 = vmul.f32 %v11822_v60, %v5945_v1  ;;  %v6500_v6 = vmul.f32 %v11822_v60, %v6028_v0 }
 0x6c7   : > { %v11816_v40 = vpop.f32.mrf.mxu1  ;;  %v11820_v3 = vpop.eup %8762  ;;  %v11852_v41 = vmul.f32 3.0, %v11838_v53  ;;  %v6455_v39 = vmul.f32 %v11838_v53, %v11792_v35  ;;  %v6482_v49 = vmul.f32 %v11838_v53, %v11794_v59 }
 0x6c8   : > { %v6315_v7 = vmul.f32 %v11820_v3, %v11820_v3  ;;  %v11831_v32 = vpop.f32.mrf.mxu0  ;;  %v6321_v55 = vmul.f32 -2.0, %v11820_v3  ;;  %v11894_v63 = vadd.f32 %v6377_v33, %v6371_v13  ;;  %v6372_v26 = vmul.f32 %v11816_v40, %v11798_v17 }
 0x6c9   : > { %v11818_v25 = vpop.f32.mrf.mxu1  ;;  %12941 = vst [vmem:[#allocation22_spill] sm:$0xff] %v11831_v32  ;;  %12942 = vst [vmem:[#allocation16_spill] sm:$0xff] %v11852_v41  ;;  %v6350_v5 = vmul.f32 %v11852_v41, %v5943_v15  ;;  %v6458_v42 = vmul.f32 %v6455_v39, %v11792_v35  ;;  %v6497_v45 = vmul.f32 %v6455_v39, %v11796_v61 }
 0x6ca   : > { %v11844_v29 = vsub.f32 1.0, %v6315_v7  ;;  %v6034_v43 = vpop.f32.mrf.mxu0  ;;  %v6485_v57 = vmul.f32 %v6482_v49, %v11794_v59  ;;  %v6470_v8 = vmul.f32 %v6455_v39, %v11794_v59  ;;  %v11900_v44 = vmul.f32 %v6482_v49, %v11796_v61 }
 0x6cb   : > { %v11824_v22 = vpop.f32.mrf.mxu1  ;;  %v11905_v1 = vmul.f32 %v6350_v5, %v11792_v35  ;;  %v11907_v9 = vadd.f32 %v6407_v62, %v6404_v52  ;;  %v6375_v61 = vmul.f32 2.0, %v11818_v25  ;;  %v11919_v56 = vadd.f32 %v6500_v6, %v6497_v45 }
 0x6cc   : > { %v11859_v23 = vmul.f32 %v6321_v55, %v11844_v29  ;;  %v11861_v21 = vpop.f32.mrf.mxu0  ;;  %12945 = vst [vmem:[#allocation15_spill] sm:$0xff] %v11900_v44  ;;  %v6405_v39 = vmul.f32 %v11831_v32, %v11800_v31  ;;  %v11930_v5 = vadd.f32 %v6488_v47, %v6485_v57  ;;  %v11932_v52 = vadd.f32 %v6473_v50, %v6470_v8 }
 0x6cd   : > { %v11826_v58 = vpop.eup %8764  ;;  %v11833_v12 = vpop.f32.mrf.mxu1  ;;  %12943 = vst [vmem:[#allocation11_spill] sm:$0xff] %v11861_v21  ;;  %12946 = vst [vmem:[#allocation18_spill] sm:$0xff] %v11905_v1  ;;  %v6462_v62 = vmul.f32 %v11844_v29, %v11816_v40  ;;  %v11941_v45 = vmul.f32 %v11844_v29, %v11818_v25  ;;  %v6501_v6 = vmul.f32 %v11844_v29, %v6034_v43 }
 0x6ce   : > { %v6316_v24 = vmul.f32 %v11826_v58, %v11826_v58  ;;  %v11887_v19 = vmul.f32 3.0, %v11859_v23  ;;  %v11889_v30 = vpop.f32.mrf.mxu0  ;;  %v6456_v15 = vmul.f32 %v11859_v23, %v11800_v31  ;;  %v6483_v20 = vmul.f32 %v11859_v23, %v11798_v17 }
 0x6cf   : > { %v11840_v4 = vpop.f32.mrf.mxu1  ;;  %v6322_v7 = vmul.f32 -2.0, %v11826_v58  ;;  %v6378_v57 = vmul.f32 %v6375_v61, %v11800_v31  ;;  %v6408_v25 = vmul.f32 %v6375_v61, %v11798_v17  ;;  %v6327_v28 = vmul.f32 %v11844_v29, %v11844_v29 }
 0x6d0   : > { %v11842_v14 = vsub.f32 1.0, %v6316_v24  ;;  %12944 = vst [vmem:[#allocation12_spill] sm:$0xff] %v11887_v19  ;;  %v11914_v24 = vadd.f32 %v6461_v34, %v6458_v42  ;;  %v6351_v55 = vmul.f32 %v11887_v19, %v11816_v40  ;;  %v11925_v49 = vpop.f32.mrf.mxu0  ;;  %v6459_v42 = vmul.f32 %v6456_v15, %v11800_v31 }
 0x6d1   : > { %v11846_v11 = vpop.f32.mrf.mxu1  ;;  %12948 = vst [vmem:[#allocation21_spill] sm:$0xff] %v11925_v49  ;;  %v6489_v34 = vmul.f32 %v11844_v29, %v11831_v32  ;;  %v6498_v47 = vmul.f32 %v6456_v15, %v11802_v54  ;;  %v6486_v50 = vmul.f32 %v6483_v20, %v11798_v17  ;;  %v6330_v40 = vmul.f32 %v11820_v3, %v11859_v23 }
 0x6d2   : > { %v6535_v38 = vmul.f32 %v11842_v14, %v11808_v51  ;;  %v11928_v33 = vmul.f32 %v6322_v7, %v11842_v14  ;;  %v11952_v8 = vmul.f32 %v6483_v20, %v11802_v54  ;;  %v11958_v43 = vpop.f32.mrf.mxu0  ;;  %v6529_v19 = vmul.f32 %v11842_v14, %v11804_v27 }
 0x6d3   : > { %v11854_v2 = vpop.f32.mrf.mxu1  ;;  %12951 = vst [vmem:[#allocation13_spill] sm:$0xff] %v11958_v43  ;;  %v11980_v44 = vadd.f32 %v6489_v34, %v6486_v50  ;;  %v11982_v49 = vadd.f32 %v6378_v57, %v6372_v26  ;;  %v6333_v43 = vadd.f32 %v6330_v40, %v6327_v28  ;;  %v11985_v1 = vadd.f32 %v6408_v25, %v6405_v39 }
 0x6d4   : > { %6703 = vmatprep.subr.mxu1 %v6535_v38  ;;  %v6534_v38 = vmul.f32 %v11844_v29, %v11802_v54  ;;  %12950 = vst [vmem:[#allocation19_spill] sm:$0xff] %v11952_v8  ;;  %v6457_v41 = vmul.f32 %v11928_v33, %v11806_v18  ;;  %v6328_v54 = vmul.f32 %v11842_v14, %v11842_v14  ;;  %v6376_v50 = vmul.f32 2.0, %v11833_v12 }
 0x6d5   : > { %v11863_v48 = vpop.f32.mrf.mxu1  ;;  %v6331_v20 = vmul.f32 %v11826_v58, %v11928_v33  ;;  %v6484_v61 = vmul.f32 %v11928_v33, %v11804_v27  ;;  %6704 = vmatpush1.msra.mxu1 %v6529_v19  ;;  %v6522_v34 = vmul.f32 %v11844_v29, %v11800_v31  ;;  %v6471_v28 = vmul.f32 %v6456_v15, %v11798_v17 }
 0x6d6   : > { %6705 = vmatprep.subr.mxu1 %v6534_v38  ;;  %v12001_v57 = vadd.f32 %v6501_v6, %v6498_v47  ;;  %v6460_v40 = vmul.f32 %v6457_v41, %v11806_v18  ;;  %v6528_v19 = vmul.f32 %v11844_v29, %v11798_v17  ;;  %v6475_v15 = vmul.f32 %v11842_v14, %v11833_v12 }
 0x6d7   : > { %v11873_v46 = vpop.f32.mrf.mxu1  ;;  %v6334_v8 = vadd.f32 %v6331_v20, %v6328_v54  ;;  %v6499_v54 = vmul.f32 %v6457_v41, %v11808_v51  ;;  %v12009_v20 = vmul.f32 -2.0, %v6333_v43  ;;  %v12015_v38 = vmul.f32 %v6484_v61, %v11808_v51 }
 0x6d8   : > { %v6463_v47 = vmul.f32 %v11842_v14, %v11824_v22  ;;  %6706 = vmatpush1.msra.mxu1 %v6528_v19  ;;  %v6521_v12 = vmul.f32 %v11822_v60, %v11792_v35  ;;  %v6487_v43 = vmul.f32 %v6484_v61, %v11804_v27 }
 0x6d9   : > { %v11891_v37 = vpop.f32.mrf.mxu1  ;;  %v11999_v39 = vmul.f32 -2.0, %v6334_v8  ;;  %6707 = vmatprep.subr.mxu1 %v11877_v10  ;;  %v6406_v10 = vmul.f32 %v11861_v21, %v11806_v18 }
 0x6db   : > { %v11909_v0 = vpop.f32.mrf.mxu1  ;;  %v6340_v8 = vmul.f32 %v11999_v39, %v11806_v18 }
 0x6dc   : > { %12947 = vst [vmem:[#allocation24_spill] sm:$0xff] %v11909_v0  ;;  %v6523_v0 = vmul.f32 %v11842_v14, %v11806_v18 }
 0x6dd   : > { %v8642_v13 = vpop.f32.mrf.mxu1  ;;  %v6343_v51 = vmul.f32 %v6340_v8, %v11806_v18  ;;  %v6400_v61 = vmul.f32 %v6340_v8, %v11804_v27 }
 0x6de   : > { %v11955_v13 = vmul.f32 %v6351_v55, %v11800_v31  ;;  %v11972_v55 = vadd.f32 %v6462_v62, %v6459_v42  ;;  %6620 = vmatprep.subr.mxu0 %v6523_v0  ;;  %v11988_v62 = vmul.f32 3.0, %v11928_v33  ;;  %v6326_v0 = vmul.f32 %v11822_v60, %v11822_v60  ;;  %v11992_v42 = vpop.f32.mrf.mxu0 }
 0x6df   : > { %v11944_v7 = vpop.f32.mrf.mxu1  ;;  %6621 = vmatpush1.msra.mxu0 %v11826_v58  ;;  %v6472_v58 = vmul.f32 %v6457_v41, %v11804_v27 }
 0x6e0   : > { %12949 = vst [vmem:[#allocation20_spill] sm:$0xff] %v11944_v7  ;;  %12953 = vst [vmem:[#allocation25_spill] sm:$0xff] %v11988_v62  ;;  %6622 = vmatprep.subr.mxu0 %v6522_v34  ;;  %v6352_v6 = vmul.f32 %v11988_v62, %v11824_v22  ;;  %v12021_v41 = vpop.f32.mrf.mxu0  ;;  %v6466_v34 = vadd.f32 %v6463_v47, %v6460_v40  ;;  %v6339_v40 = vmul.f32 %v12009_v20, %v11800_v31 }
 0x6e1   : > { %v8645_v7 = vpop.f32.mrf.mxu1  ;;  %6623 = vmatpush1.msra.mxu0 %v11820_v3  ;;  %v6478_v3 = vadd.f32 %v6475_v15, %v6472_v58  ;;  %v6373_v58 = vmul.f32 %v11824_v22, %v11804_v27  ;;  %v6490_v15 = vmul.f32 %v11842_v14, %v11861_v21  ;;  %v6346_v22 = vmul.f32 %v6343_v51, %v11806_v18 }
 0x6e2   : > { %v6329_v7 = vmul.f32 %v11810_v16, %v11838_v53  ;;  %6624 = vmatprep.subr.mxu0 %v6521_v12  ;;  %v12050_v47 = vpop.f32.mrf.mxu0  ;;  %v6403_v62 = vmul.f32 %v6400_v61, %v11804_v27  ;;  %v6527_v21 = vmul.f32 %v11822_v60, %v11794_v59  ;;  %v6361_v61 = vmul.f32 %v11842_v14, %v11891_v37 }
 0x6e3   : > { %v11978_v32 = vpop.f32.mrf.mxu1  ;;  %6625 = vmatpush1.msra.mxu0 %v11810_v16  ;;  %v6493_v12 = vadd.f32 %v6490_v15, %v6487_v43  ;;  %v6355_v16 = vmul.f32 %v6352_v6, %v11806_v18 }
 0x6e4   : > { %12952 = vst [vmem:[#allocation7_spill] sm:$0xff] %v11978_v32  ;;  %v6332_v25 = vadd.f32 %v6329_v7, %v6326_v0  ;;  %v6409_v7 = vmul.f32 %v6376_v50, %v11804_v27  ;;  %v12032_v0 = vld [vmem:[%s12707_s2 + $0xa8] sm:$0xff]  ;;  %6786 = vmatprep.subr.mxu0 %v6478_v3  ;;  %6708 = vmatpush1.msra.mxu1 %v6527_v21 }
 0x6e5   : > { %v8648_v26 = vpop.f32.mrf.mxu1  ;;  %8381 = vmatmul.mubr.msk.f32.vlgmr.msra.gmra.mxu0 %vm404_vm3, %v12032_v0  ;;  %v6358_v6 = vadd.f32 %v6355_v16, %v6346_v22  ;;  %8384 = vmatmul.mubr.msk.f32.vlgmr.msra.gmra.mxu1 %vm404_vm3, %v12032_v0  ;;  %v12082_v3 = vmul.f32 %v11822_v60, %v11846_v11  ;;  %v12955_v22 = vld [vmem:[#allocation19_spill] sm:$0xff] }
 0x6e6   : > { %v6502_v26 = vmul.f32 %v11842_v14, %v11889_v30  ;;  %v12036_v19 = vmul.f32 -2.0, %v6332_v25  ;;  %v6477_v30 = vadd.f32 %v11941_v45, %v6471_v28  ;;  %v6379_v25 = vmul.f32 %v6376_v50, %v11806_v18  ;;  %6787 = vmatpush1.msra.mxu0 %v6466_v34  ;;  %6664 = vmatprep.mubr.f32.mxu0 %v12763_v36 }
 0x6e7   : > { %v6412_v32 = vadd.f32 %v6409_v7, %v6406_v10  ;;  %v12061_v45 = vmul.f32 %v11822_v60, %v11840_v4  ;;  %v12068_v50 = vmul.f32 %v11894_v63, %v11838_v53  ;;  %v6399_v4 = vmul.f32 %v6339_v40, %v11798_v17  ;;  %v6206_v7 = vpop.f32.mrf.mxu0  ;;  %v12078_v63 = vld [vmem:[%s12707_s2 + $0xb0] sm:$0xff]  ;;  %6747 = vmatprep.mubr.f32.mxu1 %v12763_v36 }
 0x6e8   : > { %v6505_v8 = vadd.f32 %v6502_v26, %v6499_v54  ;;  %v6338_v28 = vmul.f32 %v12036_v19, %v11792_v35  ;;  %v6342_v54 = vmul.f32 %v6339_v40, %v11800_v31  ;;  %6788 = vmatprep.subr.mxu0 %v6477_v30  ;;  %v6382_v18 = vadd.f32 %v6379_v25, %v6373_v58 }
 0x6e9   : > { %v6415_v43 = vmul.f32 %v6412_v32, %v11928_v33  ;;  %v6413_v32 = vmul.f32 %v11907_v9, %v11838_v53  ;;  %6789 = vmatpush1.msra.mxu0 %v11972_v55  ;;  %v6370_v58 = vmul.f32 %v6343_v51, %v11804_v27  ;;  %v6421_v53 = vmul.f32 %v11842_v14, %v6206_v7  ;;  %v12959_v7 = vld [vmem:[#allocation25_spill] sm:$0xff] }
 0x6ea   : > { %6869 = vmatprep.subr.mxu1 %v6505_v8  ;;  %v6341_v34 = vmul.f32 %v6338_v28, %v11792_v35  ;;  %v6398_v26 = vmul.f32 %v6338_v28, %v11794_v59  ;;  %v6345_v11 = vmul.f32 %v6342_v54, %v11800_v31  ;;  %8382 = vmatmul.mubr.msk.f32.gmra.mxu0 %vm404_vm3, %v12078_v63  ;;  %v12108_v31 = vld [vmem:[%s12707_s2 + $0xb8] sm:$0xff] }
 0x6eb   : > { %v6418_v21 = vadd.f32 %v6415_v43, %v6403_v62  ;;  %6870 = vmatpush1.msra.mxu1 %v6493_v12  ;;  %v6384_v9 = vmul.f32 %v11982_v49, %v11859_v23  ;;  %v6402_v37 = vmul.f32 %v6399_v4, %v11798_v17  ;;  %v6364_v62 = vadd.f32 %v6361_v61, %v6358_v6 }
 0x6ec   : > { %6871 = vmatprep.subr.mxu1 %v12001_v57  ;;  %8385 = vmatmul.mubr.msk.f32.gmra.mxu1 %vm404_vm3, %v12078_v63  ;;  %v6385_v55 = vmul.f32 %v6382_v18, %v11928_v33  ;;  %v6344_v49 = vmul.f32 %v6341_v34, %v11792_v35  ;;  %v6414_v51 = vmul.f32 %v11985_v1, %v11859_v23 }
 0x6ed   : > { %6872 = vmatpush1.msra.mxu1 %v11980_v44  ;;  %6790 = vmatprep.subr.mxu0 %v11932_v52  ;;  %v6369_v44 = vmul.f32 %v6342_v54, %v11798_v17  ;;  %v6424_v57 = vadd.f32 %v6421_v53, %v6418_v21  ;;  %v6514_v52 = vmul.f32 %v11842_v14, %v11873_v46  ;;  %v12960_v21 = vld [vmem:[#allocation15_spill] sm:$0xff] }
 0x6ee   : > { %6873 = vmatprep.subr.mxu1 %v11919_v56  ;;  %6791 = vmatpush1.msra.mxu0 %v11914_v24  ;;  %v6401_v10 = vmul.f32 %v6398_v26, %v11794_v59  ;;  %v6357_v33 = vadd.f32 %v11955_v13, %v6345_v11  ;;  %v6388_v15 = vadd.f32 %v6385_v55, %v6370_v58  ;;  %v12962_v26 = vld [vmem:[#allocation12_spill] sm:$0xff]  ;;  %v12965_v55 = vld [vmem:[#allocation7_spill] sm:$0xff] }
 0x6ef   : > { %6874 = vmatpush1.msra.mxu1 %v11930_v5  ;;  %6670 = vmatprep.mubr.f32.mxu0 %v12763_v36  ;;  %v6513_v35 = vmul.f32 %v11844_v29, %v11854_v2  ;;  %v6360_v23 = vmul.f32 %v11844_v29, %v11863_v48  ;;  %v6417_v46 = vadd.f32 %v6414_v51, %v6402_v37  ;;  %v12954_v5 = vld [vmem:[#allocation18_spill] sm:$0xff] }
 0x6f0   : > { %6753 = vmatprep.mubr.f32.mxu1 %v12763_v36  ;;  %8383 = vmatmul.mubr.msk.f32.gmra.mxu0 %vm404_vm3, %v12108_v31  ;;  %v6368_v1 = vmul.f32 %v6341_v34, %v11794_v59  ;;  %v6387_v24 = vadd.f32 %v6384_v9, %v6369_v44  ;;  %v6391_v56 = vmul.f32 %v11842_v14, %v12050_v47  ;;  %v12964_v9 = vld [vmem:[#allocation16_spill] sm:$0xff] }
 0x6f1   : > { %8386 = vmatmul.mubr.msk.f32.gmra.mxu1 %vm404_vm3, %v12108_v31  ;;  %6952 = vmatprep.subr.mxu0 %v6364_v62  ;;  %v6356_v13 = vadd.f32 %v12954_v5, %v6344_v49  ;;  %v6420_v2 = vmul.f32 %v11844_v29, %v12021_v41  ;;  %v6517_v48 = vadd.f32 %v6514_v52, %v12015_v38  ;;  %v12956_v41 = vld [vmem:[#allocation13_spill] sm:$0xff]  ;;  %v12966_v52 = vld [vmem:[#allocation20_spill] sm:$0xff] }
 0x6f2   : > { %7035 = vmatprep.subr.mxu1 %v6424_v57  ;;  %6824 = vmatprep.mubr.f32.mxu0 %v12763_v36  ;;  %v6430_v40 = vmul.f32 %v11999_v39, %v11804_v27  ;;  %v6416_v30 = vadd.f32 %v6413_v32, %v6401_v10  ;;  %v6390_v25 = vmul.f32 %v11844_v29, %v11992_v42 }
 0x6f3   : > { %6907 = vmatprep.mubr.f32.mxu1 %v12763_v36  ;;  %v6363_v8 = vadd.f32 %v6360_v23, %v6357_v33  ;;  %v6394_v47 = vadd.f32 %v6391_v56, %v6388_v15  ;;  %v6516_v12 = vadd.f32 %v6513_v35, %v12955_v22  ;;  %v6423_v16 = vadd.f32 %v6420_v2, %v6417_v46  ;;  %v12967_v33 = vld [vmem:[#allocation24_spill] sm:$0xff] }
 0x6f4   : > { %8387 = vmatmul.mubr.msk.f32.vlgmr.msra.gmra.mxu0 %vm404_vm3, %v12032_v0  ;;  %v6429_v38 = vmul.f32 %v12009_v20, %v11798_v17  ;;  %v6386_v39 = vadd.f32 %v12068_v50, %v6368_v1  ;;  %v6419_v42 = vmul.f32 %v11822_v60, %v12956_v41  ;;  %v6393_v28 = vadd.f32 %v6390_v25, %v6387_v24  ;;  %v12957_v20 = vld [vmem:[#allocation21_spill] sm:$0xff]  ;;  %v12958_v50 = vld [vmem:[#allocation11_spill] sm:$0xff] }
 0x6f5   : > { %8390 = vmatmul.mubr.msk.f32.vlgmr.msra.gmra.mxu1 %vm404_vm3, %v12032_v0  ;;  %6953 = vmatpush1.msra.mxu0 %v6517_v48  ;;  %v6362_v54 = vadd.f32 %v12082_v3, %v6356_v13  ;;  %v6428_v43 = vmul.f32 %v12036_v19, %v11794_v59  ;;  %v6433_v18 = vmul.f32 %v6430_v40, %v11804_v27  ;;  %v12961_v19 = vld [vmem:[#allocation22_spill] sm:$0xff]  ;;  %v7184_v13 = vpop.permute.xlu0 %7183 }
 0x6f6   : > { %7036 = vmatpush1.msra.mxu1 %v6394_v47  ;;  %6954 = vmatprep.subr.mxu0 %v6363_v8  ;;  %v6389_v4 = vmul.f32 %v11822_v60, %v12957_v20  ;;  %v6422_v6 = vadd.f32 %v6419_v42, %v6416_v30  ;;  %v6439_v32 = vmul.f32 %v12959_v7, %v12958_v50 }
 0x6f7   : > { %7037 = vmatprep.subr.mxu1 %v6423_v16  ;;  %6955 = vmatpush1.msra.mxu0 %v6516_v12  ;;  %v6515_v3 = vadd.f32 %v12061_v45, %v12960_v21  ;;  %v6432_v34 = vmul.f32 %v6429_v38, %v11798_v17  ;;  %v6438_v61 = vmul.f32 %v12962_v26, %v12961_v19  ;;  %v12963_v45 = vld [vmem:[#allocation9_spill] sm:$0xff] }
 0x6f8   : > { %7038 = vmatpush1.msra.mxu1 %v6393_v28  ;;  %6830 = vmatprep.mubr.f32.mxu0 %v12763_v36  ;;  %v6392_v11 = vadd.f32 %v6389_v4, %v6386_v39  ;;  %v6431_v58 = vmul.f32 %v6428_v43, %v11794_v59  ;;  %v6436_v53 = vmul.f32 %v6433_v18, %v11804_v27 }
 0x6f9   : > { %6913 = vmatprep.mubr.f32.mxu1 %v12763_v36  ;;  %6956 = vmatprep.subr.mxu0 %v6362_v54  ;;  %v6437_v37 = vmul.f32 %v12964_v9, %v12963_v45  ;;  %v6442_v62 = vmul.f32 %v6439_v32, %v11804_v27  ;;  %v6435_v44 = vmul.f32 %v6432_v34, %v11798_v17 }
 0x6fa   : > { %7039 = vmatprep.subr.mxu1 %v6422_v6  ;;  %8388 = vmatmul.mubr.msk.f32.gmra.mxu0 %vm404_vm3, %v12078_v63  ;;  %v6448_v57 = vmul.f32 %v11842_v14, %v12965_v55  ;;  %v6441_v49 = vmul.f32 %v6438_v61, %v11798_v17  ;;  %v6434_v51 = vmul.f32 %v6431_v58, %v11794_v59 }
 0x6fb   : > { %8391 = vmatmul.mubr.msk.f32.gmra.mxu1 %vm404_vm3, %v12078_v63  ;;  %6957 = vmatpush1.msra.mxu0 %v6515_v3  ;;  %v6447_v10 = vmul.f32 %v11844_v29, %v12966_v52  ;;  %v6445_v27 = vadd.f32 %v6442_v62, %v6436_v53  ;;  %v6440_v14 = vmul.f32 %v6437_v37, %v11794_v59  ;;  %v7189_v59 = vpop.permute.xlu1 %7188 }
 0x6fc   : > { %7040 = vmatpush1.msra.mxu1 %v6392_v11  ;;  %6836 = vmatprep.mubr.f32.mxu0 %v12763_v36  ;;  %v6446_v17 = vmul.f32 %v11822_v60, %v12967_v33  ;;  %v6444_v15 = vadd.f32 %v6441_v49, %v6435_v44 }
 0x6fd   : > { %6919 = vmatprep.mubr.f32.mxu1 %v12763_v36  ;;  %8649 = vmatprep.subr.mxu0 %v12763_v36  ;;  %v6451_v35 = vadd.f32 %v6448_v57, %v6445_v27  ;;  %v6443_v23 = vadd.f32 %v6440_v14, %v6434_v51 }
 0x6fe   : > { %8389 = vmatmul.mubr.msk.f32.gmra.mxu0 %vm404_vm3, %v12108_v31  ;;  %v6450_v29 = vadd.f32 %v6447_v10, %v6444_v15 }
 0x6ff   : > { %8392 = vmatmul.mubr.msk.f32.gmra.mxu1 %vm404_vm3, %v12108_v31  ;;  %6990 = vmatprep.mubr.f32.mxu0 %v12763_v36  ;;  %v6449_v46 = vadd.f32 %v6446_v17, %v6443_v23  ;;  %v7179_v1 = vpop.permute.xlu1 %7178 }
 0x700   : > { %7073 = vmatprep.mubr.f32.mxu1 %v12763_v36 }
 0x702   : > { %8393 = vmatmul.mubr.msk.f32.vlgmr.msra.gmra.mxu0 %vm404_vm3, %v12032_v0 }
 0x703   : > { %8396 = vmatmul.mubr.msk.f32.vlgmr.msra.gmra.mxu1 %vm404_vm3, %v12032_v0  ;;  %8650 = vmatpush3.msra.mxu0 %v6451_v35 }
 0x704   : > { %8651 = vmatprep.subr.mxu0 %v12763_v36  ;;  %6996 = vmatprep.mubr.f32.mxu0 %v12763_v36 }
 0x705   : > { %8652 = vmatpush3.msra.mxu0 %v6450_v29  ;;  %7079 = vmatprep.mubr.f32.mxu1 %v12763_v36 }
 0x706   : > { %8653 = vmatprep.subr.mxu0 %v12763_v36  ;;  %8394 = vmatmul.mubr.msk.f32.gmra.mxu0 %vm404_vm3, %v12078_v63 }
 0x707   : > { %8397 = vmatmul.mubr.msk.f32.gmra.mxu1 %vm404_vm3, %v12078_v63  ;;  %8654 = vmatpush3.msra.mxu0 %v6449_v46 }
 0x708   : > { %7002 = vmatprep.mubr.f32.mxu0 %v12763_v36  ;;  %7085 = vmatprep.mubr.f32.mxu1 %v12763_v36 }
 0x70a   : > { %8395 = vmatmul.mubr.msk.f32.gmra.mxu0 %vm404_vm3, %v12108_v31 }
 0x70b   : > { %8398 = vmatmul.mubr.msk.f32.gmra.mxu1 %vm404_vm3, %v12108_v31  ;;  %8655 = vmatprep.mubr.msk.f32.mxu0 %vm8819_vm4, %v12763_v36 }
 0x70c   : > { %7541 = vmatprep.mubr.f32.mxu1 %v12763_v36 }
 0x70e   : > { %8656 = vmatmul.mubr.msk.f32.vlgmr.msra.gmra.mxu0 %vm404_vm3, %v12032_v0 }
 0x70f   : > { %8658 = vmatprep.mubr.msk.f32.mxu0 %vm8819_vm4, %v12763_v36 }
 0x712   : > { %8659 = vmatmul.mubr.msk.f32.gmra.mxu0 %vm404_vm3, %v12078_v63 }
 0x713   : > { %8661 = vmatprep.mubr.msk.f32.mxu0 %vm8819_vm4, %v12763_v36 }
 0x716   : > { %8662 = vmatmul.mubr.msk.f32.gmra.mxu0 %vm404_vm3, %v12108_v31 }
 0x717   : > { %7620 = vmatprep.mubr.f32.mxu0 %v12763_v36 }
 0x7a5   : > { %v6660_v60 = vpop.f32.mrf.mxu0  ;;  %v12232_v0 = vpop.f32.mrf.mxu1 }
 0x7a6   : > { %v7191_v24 = vadd.f32 %v7179_v1, %v6660_v60 }
 0x7a7   : > { %v12230_v56 = vpop.f32.mrf.mxu0  ;;  %v12234_v5 = vpop.f32.mrf.mxu1 }
 0x7a8   : > { %8766 = vtanh.f32 %v7191_v24 }
 0x7aa   : > { %v6666_v63 = vpop.f32.mrf.mxu0 }
 0x7ab   : > { %v7192_v48 = vadd.f32 %v7184_v13, %v6666_v63 }
 0x7ac   : > { %v12236_v2 = vpop.f32.mrf.mxu1  ;;  %v12238_v40 = vpop.f32.mrf.mxu0 }
 0x7ad   : > { %8768 = vtanh.f32 %v7192_v48 }
 0x7ae   : > { %v12240_v31 = vpop.f32.mrf.mxu1 }
 0x7b0   : > { %v6672_v30 = vpop.f32.mrf.mxu0 }
 0x7b1   : > { %v7193_v25 = vadd.f32 %v7189_v59, %v6672_v30  ;;  %v12242_v8 = vpop.f32.mrf.mxu1 }
 0x7b2   : > { %v12244_v47 = vpop.f32.mrf.mxu0 }
 0x7b3   : > { %8770 = vtanh.f32 %v7193_v25  ;;  %v12246_v22 = vpop.f32.mrf.mxu1 }
 0x7b4   : > { %v6826_v12 = vpop.f32.mrf.mxu0 }
 0x7b5   : > { %v12248_v38 = vpop.f32.mrf.mxu1  ;;  %v12250_v39 = vpop.eup %8766  ;;  %v7254_v37 = vmul.f32 %v6826_v12, %v12232_v0 }
 0x7b6   : > { %v6828_v16 = vpop.f32.mrf.mxu0  ;;  %12968 = vst [vmem:[#allocation17_spill] sm:$0xff] %v12248_v38  ;;  %v7197_v42 = vmul.f32 %v12250_v39, %v12250_v39  ;;  %v7203_v32 = vmul.f32 -2.0, %v12250_v39  ;;  %v7287_v33 = vmul.f32 %v12248_v38, %v12230_v56 }
 0x7b7   : > { %v6911_v28 = vpop.f32.mrf.mxu1  ;;  %v7257_v26 = vmul.f32 2.0, %v6828_v16 }
 0x7b8   : > { %v12264_v4 = vsub.f32 1.0, %v7197_v42 }
 0x7b9   : > { %v7260_v62 = vmul.f32 %v7257_v26, %v12230_v56  ;;  %v7290_v51 = vmul.f32 %v7257_v26, %v12232_v0 }
 0x7ba   : > { %v12252_v41 = vpop.f32.mrf.mxu0  ;;  %v12260_v18 = vpop.eup %8768  ;;  %v12280_v19 = vmul.f32 %v7203_v32, %v12264_v4  ;;  %v12311_v27 = vmul.f32 %v12264_v4, %v12234_v5  ;;  %v7344_v35 = vmul.f32 %v12264_v4, %v6826_v12  ;;  %v7371_v23 = vmul.f32 %v12264_v4, %v12248_v38 }
 0x7bb   : > { %v12266_v6 = vpop.f32.mrf.mxu1  ;;  %v7198_v3 = vmul.f32 %v12260_v18, %v12260_v18  ;;  %v7204_v49 = vmul.f32 -2.0, %v12260_v18  ;;  %v12323_v29 = vadd.f32 %v7260_v62, %v7254_v37  ;;  %v12331_v24 = vadd.f32 %v7290_v51, %v7287_v33 }
 0x7bc   : > { %v12256_v54 = vpop.f32.mrf.mxu0  ;;  %12969 = vst [vmem:[#allocation23_spill] sm:$0xff] %v12266_v6  ;;  %v12293_v9 = vmul.f32 3.0, %v12280_v19  ;;  %v7338_v57 = vmul.f32 %v12280_v19, %v12230_v56  ;;  %v7365_v52 = vmul.f32 %v12280_v19, %v12232_v0  ;;  %v7356_v63 = vmul.f32 %v12264_v4, %v6828_v16 }
 0x7bd   : > { %v12282_v61 = vpop.f32.mrf.mxu1  ;;  %v12290_v45 = vsub.f32 1.0, %v7198_v3  ;;  %v7258_v17 = vmul.f32 2.0, %v12256_v54  ;;  %v7383_v30 = vmul.f32 %v12264_v4, %v6911_v28  ;;  %v7255_v25 = vmul.f32 %v12252_v41, %v12236_v2 }
 0x7be   : > { %v12258_v43 = vpop.f32.mrf.mxu0  ;;  %12970 = vst [vmem:[#allocation8_spill] sm:$0xff] %v12293_v9  ;;  %v7233_v15 = vmul.f32 %v12293_v9, %v6826_v12  ;;  %v7380_v60 = vmul.f32 %v7338_v57, %v12234_v5  ;;  %v7341_v1 = vmul.f32 %v7338_v57, %v12230_v56  ;;  %v7368_v13 = vmul.f32 %v7365_v52, %v12232_v0 }
 0x7bf   : > { %v12297_v44 = vpop.f32.mrf.mxu1  ;;  %v12314_v14 = vmul.f32 %v7204_v49, %v12290_v45  ;;  %v7353_v48 = vmul.f32 %v7338_v57, %v12232_v0  ;;  %v7288_v32 = vmul.f32 %v12266_v6, %v12238_v40  ;;  %v7261_v16 = vmul.f32 %v7258_v17, %v12238_v40 }
 0x7c0   : > { %v12262_v20 = vpop.eup %8770  ;;  %v12268_v50 = vpop.f32.mrf.mxu0  ;;  %12971 = vst [vmem:[#allocation14_spill] sm:$0xff] %v12297_v44  ;;  %v12348_v3 = vmul.f32 %v7365_v52, %v12234_v5  ;;  %v12353_v26 = vmul.f32 %v7233_v15, %v12230_v56  ;;  %v7417_v57 = vmul.f32 %v12290_v45, %v12240_v31  ;;  %v12365_v5 = vadd.f32 %v7344_v35, %v7341_v1 }
 0x7c1   : > { %v7199_v7 = vmul.f32 %v12262_v20, %v12262_v20  ;;  %v12325_v46 = vpop.f32.mrf.mxu1  ;;  %v7339_v42 = vmul.f32 %v12314_v14, %v12238_v40  ;;  %v7366_v28 = vmul.f32 %v12314_v14, %v12236_v2  ;;  %v12367_v51 = vadd.f32 %v7383_v30, %v7380_v60 }
 0x7c2   : > { %v12273_v21 = vpop.f32.mrf.mxu0  ;;  %12974 = vst [vmem:[#allocation19_spill] sm:$0xff] %v12348_v3  ;;  %12975 = vst [vmem:[#allocation13_spill] sm:$0xff] %v12353_v26  ;;  %v12369_v52 = vadd.f32 %v7371_v23, %v7368_v13  ;;  %v12371_v33 = vadd.f32 %v7356_v63, %v7353_v48  ;;  %v7345_v15 = vmul.f32 %v12290_v45, %v12252_v41 }
 0x7c3   : > { %v12277_v34 = vsub.f32 1.0, %v7199_v7  ;;  %v7205_v7 = vmul.f32 -2.0, %v12262_v20  ;;  %v12358_v37 = vpop.f32.mrf.mxu1  ;;  %v12379_v9 = vmul.f32 %v7339_v42, %v12240_v31  ;;  %v7372_v35 = vmul.f32 %v12290_v45, %v12266_v6 }
 0x7c4   : > { %v12284_v11 = vpop.f32.mrf.mxu0  ;;  %12977 = vst [vmem:[#allocation11_spill] sm:$0xff] %v12358_v37  ;;  %v12383_v1 = vadd.f32 %v7261_v16, %v7255_v25  ;;  %v7357_v23 = vmul.f32 %v12290_v45, %v12256_v54  ;;  %v12388_v60 = vmul.f32 %v7366_v28, %v12240_v31  ;;  %v7213_v48 = vmul.f32 %v12260_v18, %v12314_v14 }
 0x7c5   : > { %v7418_v58 = vmul.f32 %v12277_v34, %v12246_v22  ;;  %v12363_v49 = vmul.f32 %v7205_v7, %v12277_v34  ;;  %v12393_v13 = vpop.f32.mrf.mxu1  ;;  %v7369_v31 = vmul.f32 %v7366_v28, %v12236_v2  ;;  %v7210_v16 = vmul.f32 %v12290_v45, %v12290_v45 }
 0x7c6   : > { %v12288_v53 = vpop.f32.mrf.mxu0  ;;  %12979 = vst [vmem:[#allocation15_spill] sm:$0xff] %v12388_v60  ;;  %12980 = vst [vmem:[#allocation22_spill] sm:$0xff] %v12393_v13  ;;  %v7212_v28 = vmul.f32 %v12250_v39, %v12280_v19 }
 0x7c7   : > { %7582 = vmatprep.subr.mxu0 %v7418_v58  ;;  %v12356_v58 = vmul.f32 3.0, %v12314_v14  ;;  %v7340_v25 = vmul.f32 %v12363_v49, %v12244_v47  ;;  %v12401_v54 = vmul.f32 %v12363_v49, %v12242_v8  ;;  %v12428_v37 = vpop.f32.mrf.mxu1  ;;  %v12431_v60 = vadd.f32 %v7372_v35, %v7369_v31 }
 0x7c8   : > { %v12299_v55 = vpop.f32.mrf.mxu0  ;;  %v7358_v35 = vmul.f32 %v12277_v34, %v12268_v50  ;;  %v7404_v31 = vmul.f32 %v12264_v4, %v12230_v56 }
 0x7c9   : > { %12972 = vst [vmem:[#allocation10_spill] sm:$0xff] %v12299_v55  ;;  %12976 = vst [vmem:[#allocation21_spill] sm:$0xff] %v12356_v58  ;;  %v7234_v63 = vmul.f32 %v12356_v58, %v12252_v41  ;;  %v7406_v41 = vmul.f32 %v12277_v34, %v12244_v47  ;;  %v7354_v58 = vmul.f32 %v7339_v42, %v12236_v2 }
 0x7ca   : > { %v12307_v10 = vpop.f32.mrf.mxu0  ;;  %v7355_v26 = vmul.f32 %v7340_v25, %v12242_v8  ;;  %v7209_v55 = vmul.f32 %v12264_v4, %v12264_v4 }
 0x7cb   : > { %7503 = vmatprep.subr.mxu1 %v7406_v41  ;;  %v12424_v6 = vmul.f32 %v7234_v63, %v12238_v40  ;;  %v7259_v41 = vmul.f32 2.0, %v12268_v50  ;;  %v12439_v63 = vmul.f32 3.0, %v12363_v49  ;;  %v7384_v50 = vmul.f32 %v12290_v45, %v12282_v61 }
 0x7cc   : > { %v12327_v59 = vpop.f32.mrf.mxu0  ;;  %7504 = vmatpush1.msra.mxu1 %v12262_v20  ;;  %v7289_v61 = vmul.f32 %v12297_v44, %v12244_v47 }
 0x7cd   : > { %12982 = vst [vmem:[#allocation9_spill] sm:$0xff] %v12439_v63 }
 0x7ce   : > { %v12339_v12 = vpop.f32.mrf.mxu0 }
 0x7cf   : > { %12973 = vst [vmem:[#allocation18_spill] sm:$0xff] %v12339_v12  ;;  %v7291_v12 = vmul.f32 %v7258_v17, %v12236_v2  ;;  %v7342_v17 = vmul.f32 %v7339_v42, %v12238_v40 }
 0x7d0   : > { %v8657_v62 = vpop.f32.mrf.mxu0 }
 0x7d1   : > { %v12406_v7 = vadd.f32 %v7291_v12, %v7288_v32  ;;  %v7412_v12 = vmul.f32 %v12277_v34, %v12242_v8  ;;  %v7405_v32 = vmul.f32 %v12290_v45, %v12238_v40  ;;  %v12426_v3 = vadd.f32 %v7345_v15, %v7342_v17 }
 0x7d2   : > { %v12376_v62 = vpop.f32.mrf.mxu0  ;;  %v7382_v15 = vmul.f32 %v7340_v25, %v12246_v22  ;;  %v7215_v17 = vadd.f32 %v7212_v28, %v7209_v55  ;;  %v7292_v55 = vmul.f32 %v7259_v41, %v12242_v8  ;;  %v7370_v28 = vmul.f32 %v12401_v54, %v12242_v8 }
 0x7d3   : > { %12978 = vst [vmem:[#allocation25_spill] sm:$0xff] %v12376_v62  ;;  %v7214_v62 = vmul.f32 %v12262_v20, %v12363_v49  ;;  %7583 = vmatpush1.msra.mxu0 %v7412_v12  ;;  %7505 = vmatprep.subr.mxu1 %v7405_v32 }
 0x7d4   : > { %v8660_v30 = vpop.f32.mrf.mxu0  ;;  %7584 = vmatprep.subr.mxu0 %v7417_v57  ;;  %7506 = vmatpush1.msra.mxu1 %v12260_v18  ;;  %v7361_v57 = vadd.f32 %v7358_v35, %v7355_v26  ;;  %v7385_v26 = vmul.f32 %v12277_v34, %v12325_v46  ;;  %v12477_v32 = vmul.f32 -2.0, %v7215_v17  ;;  %v7373_v35 = vmul.f32 %v12277_v34, %v12297_v44 }
 0x7d5   : > { %v7211_v30 = vmul.f32 %v12277_v34, %v12277_v34  ;;  %7507 = vmatprep.subr.mxu1 %v7404_v31  ;;  %v7262_v46 = vmul.f32 %v7259_v41, %v12244_v47  ;;  %v7295_v17 = vadd.f32 %v7292_v55, %v7289_v61  ;;  %v7410_v44 = vmul.f32 %v12264_v4, %v12232_v0 }
 0x7d6   : > { %v12414_v38 = vpop.f32.mrf.mxu0  ;;  %7508 = vmatpush1.msra.mxu1 %v12250_v39  ;;  %v7388_v39 = vadd.f32 %v7385_v26, %v7382_v15  ;;  %v7221_v41 = vmul.f32 %v12477_v32, %v12230_v56 }
 0x7d7   : > { %12981 = vst [vmem:[#allocation12_spill] sm:$0xff] %v12414_v38  ;;  %v7216_v38 = vadd.f32 %v7213_v48, %v7210_v16  ;;  %v7217_v13 = vadd.f32 %v7214_v62, %v7211_v30  ;;  %v7343_v62 = vmul.f32 %v7340_v25, %v12244_v47  ;;  %v7411_v48 = vmul.f32 %v12290_v45, %v12236_v2 }
 0x7d8   : > { %v8663_v42 = vpop.f32.mrf.mxu0  ;;  %v7360_v16 = vadd.f32 %v7357_v23, %v7354_v58  ;;  %v7346_v30 = vmul.f32 %v12277_v34, %v12258_v43  ;;  %v12465_v58 = vld [vmem:[%s12707_s2 + $0xc0] sm:$0xff]  ;;  %7660 = vmatprep.subr.mxu1 %v7361_v57  ;;  %v7298_v15 = vmul.f32 %v7295_v17, %v12363_v49 }
 0x7d9   : > { %v12442_v20 = vmul.f32 -2.0, %v7217_v13  ;;  %v12453_v25 = vmul.f32 -2.0, %v7216_v38  ;;  %v12455_v13 = vpop.f32.mrf.mxu1  ;;  %7585 = vmatpush1.msra.mxu0 %v7411_v48  ;;  %v7235_v38 = vmul.f32 %v12439_v63, %v12258_v43  ;;  %8408 = vmatmul.mubr.msk.f32.vlgmr.msra.gmra.mxu1 %vm404_vm3, %v12465_v58  ;;  %v7376_v63 = vadd.f32 %v7373_v35, %v7370_v28 }
 0x7da   : > { %v7349_v23 = vadd.f32 %v7346_v30, %v7343_v62  ;;  %7586 = vmatprep.subr.mxu0 %v12311_v27  ;;  %v7256_v62 = vmul.f32 %v12258_v43, %v12242_v8  ;;  %v12496_v43 = vmul.f32 %v12401_v54, %v12246_v22  ;;  %7547 = vmatprep.mubr.f32.mxu1 %v12763_v36 }
 0x7db   : > { %12983 = vst [vmem:[#allocation16_spill] sm:$0xff] %v12453_v25  ;;  %v7223_v18 = vmul.f32 %v12442_v20, %v12244_v47  ;;  %v7222_v27 = vmul.f32 %v12453_v25, %v12238_v40  ;;  %v12487_v48 = vpop.f32.mrf.mxu1  ;;  %v7387_v25 = vadd.f32 %v7384_v50, %v12379_v9  ;;  %v12508_v22 = vmul.f32 %v12264_v4, %v12273_v21  ;;  %v12515_v9 = vld [vmem:[%s12707_s2 + $0xc8] sm:$0xff] }
 0x7dc   : > { %7661 = vmatpush1.msra.mxu1 %v7349_v23  ;;  %7587 = vmatpush1.msra.mxu0 %v7410_v44  ;;  %v7265_v50 = vadd.f32 %v7262_v46, %v7256_v62  ;;  %v7266_v21 = vmul.f32 %v12323_v29, %v12280_v19  ;;  %v12524_v44 = vmul.f32 %v12264_v4, %v12284_v11 }
 0x7dd   : > { %v7226_v12 = vmul.f32 %v7223_v18, %v12244_v47  ;;  %v7283_v42 = vmul.f32 %v7223_v18, %v12242_v8  ;;  %v7238_v18 = vmul.f32 %v7235_v38, %v12244_v47  ;;  %7662 = vmatprep.subr.mxu1 %v7360_v16  ;;  %v7089_v55 = vpop.f32.mrf.mxu1  ;;  %v7282_v16 = vmul.f32 %v7222_v27, %v12236_v2 }
 0x7de   : > { %7663 = vmatpush1.msra.mxu1 %v12426_v3  ;;  %8411 = vmatmul.mubr.msk.f32.vlgmr.msra.gmra.mxu0 %vm404_vm3, %v12465_v58  ;;  %v7244_v3 = vmul.f32 %v12277_v34, %v12327_v59  ;;  %v7224_v38 = vmul.f32 %v7221_v41, %v12230_v56  ;;  %v7281_v23 = vmul.f32 %v7221_v41, %v12232_v0 }
 0x7df   : > { %v7229_v31 = vmul.f32 %v7226_v12, %v12244_v47  ;;  %v7286_v30 = vmul.f32 %v7283_v42, %v12242_v8  ;;  %v7225_v47 = vmul.f32 %v7222_v27, %v12238_v40  ;;  %7739 = vmatprep.subr.mxu0 %v7388_v39  ;;  %7625 = vmatprep.mubr.f32.mxu0 %v12763_v36  ;;  %v12985_v42 = vld [vmem:[#allocation13_spill] sm:$0xff]  ;;  %v12986_v39 = vld [vmem:[#allocation15_spill] sm:$0xff] }
 0x7e0   : > { %7740 = vmatpush1.msra.mxu0 %v7376_v63  ;;  %v7304_v28 = vmul.f32 %v12277_v34, %v7089_v55  ;;  %8409 = vmatmul.mubr.msk.f32.gmra.mxu1 %vm404_vm3, %v12515_v9  ;;  %v7253_v11 = vmul.f32 %v7226_v12, %v12242_v8  ;;  %v7296_v59 = vmul.f32 %v12331_v24, %v12280_v19 }
 0x7e1   : > { %v7241_v54 = vadd.f32 %v7238_v18, %v7229_v31  ;;  %v7301_v57 = vadd.f32 %v7298_v15, %v7286_v30  ;;  %7741 = vmatprep.subr.mxu0 %v7387_v25  ;;  %v7228_v29 = vmul.f32 %v7225_v47, %v12238_v40  ;;  %7664 = vmatprep.subr.mxu1 %v12371_v33  ;;  %v12547_v40 = vld [vmem:[%s12707_s2 + $0xd0] sm:$0xff] }
 0x7e2   : > { %7742 = vmatpush1.msra.mxu0 %v12431_v60  ;;  %v7285_v63 = vmul.f32 %v7282_v16, %v12236_v2  ;;  %v7252_v60 = vmul.f32 %v7225_v47, %v12236_v2  ;;  %v7267_v33 = vmul.f32 %v12383_v1, %v12314_v14  ;;  %v7268_v19 = vmul.f32 %v7265_v50, %v12363_v49  ;;  %v12987_v41 = vld [vmem:[#allocation16_spill] sm:$0xff]  ;;  %v12989_v50 = vld [vmem:[#allocation11_spill] sm:$0xff] }
 0x7e3   : > { %v7247_v61 = vadd.f32 %v7244_v3, %v7241_v54  ;;  %v7307_v26 = vadd.f32 %v7304_v28, %v7301_v57  ;;  %8412 = vmatmul.mubr.msk.f32.gmra.mxu0 %vm404_vm3, %v12515_v9  ;;  %7743 = vmatprep.subr.mxu0 %v12367_v51  ;;  %v7227_v24 = vmul.f32 %v7224_v38, %v12230_v56  ;;  %v12991_v3 = vld [vmem:[#allocation9_spill] sm:$0xff] }
 0x7e4   : > { %7665 = vmatpush1.msra.mxu1 %v12365_v5  ;;  %7744 = vmatpush1.msra.mxu0 %v12369_v52  ;;  %v7297_v51 = vmul.f32 %v12406_v7, %v12314_v14  ;;  %v7397_v25 = vmul.f32 %v12277_v34, %v12307_v10  ;;  %v7284_v1 = vmul.f32 %v7281_v23, %v12232_v0  ;;  %v12984_v14 = vld [vmem:[#allocation10_spill] sm:$0xff]  ;;  %v12992_v23 = vld [vmem:[#allocation19_spill] sm:$0xff] }
 0x7e5   : > { %7551 = vmatprep.mubr.f32.mxu1 %v12763_v36  ;;  %7629 = vmatprep.mubr.f32.mxu0 %v12763_v36  ;;  %v7240_v49 = vadd.f32 %v12424_v6, %v7228_v29  ;;  %v7271_v12 = vadd.f32 %v7268_v19, %v7253_v11  ;;  %v7396_v56 = vmul.f32 %v12290_v45, %v12288_v53  ;;  %v12994_v29 = vld [vmem:[#allocation21_spill] sm:$0xff] }
 0x7e6   : > { %8410 = vmatmul.mubr.msk.f32.gmra.mxu1 %vm404_vm3, %v12547_v40  ;;  %7818 = vmatprep.subr.mxu1 %v7247_v61  ;;  %v7243_v5 = vmul.f32 %v12290_v45, %v12984_v14  ;;  %v7300_v10 = vadd.f32 %v7297_v51, %v7285_v63  ;;  %v7251_v52 = vmul.f32 %v7224_v38, %v12232_v0 }
 0x7e7   : > { %8413 = vmatmul.mubr.msk.f32.gmra.mxu0 %vm404_vm3, %v12547_v40  ;;  %7897 = vmatprep.subr.mxu0 %v7307_v26  ;;  %v7270_v7 = vadd.f32 %v7267_v33, %v7252_v60  ;;  %v7274_v6 = vmul.f32 %v12277_v34, %v12487_v48  ;;  %v7239_v53 = vadd.f32 %v12985_v42, %v7227_v24  ;;  %v12996_v26 = vld [vmem:[#allocation8_spill] sm:$0xff] }
 0x7e8   : > { %7698 = vmatprep.mubr.f32.mxu1 %v12763_v36  ;;  %7777 = vmatprep.mubr.f32.mxu0 %v12763_v36  ;;  %v7303_v62 = vmul.f32 %v12290_v45, %v12455_v13  ;;  %v7400_v35 = vadd.f32 %v7397_v25, %v12496_v43  ;;  %v7313_v27 = vmul.f32 %v12442_v20, %v12242_v8  ;;  %v12988_v43 = vld [vmem:[#allocation22_spill] sm:$0xff]  ;;  %v12997_v24 = vld [vmem:[#allocation12_spill] sm:$0xff] }
 0x7e9   : > { %v7299_v31 = vadd.f32 %v7296_v59, %v7284_v1  ;;  %v7273_v46 = vmul.f32 %v12290_v45, %v12428_v37  ;;  %v7246_v17 = vadd.f32 %v7243_v5, %v7240_v49  ;;  %v7277_v48 = vadd.f32 %v7274_v6, %v7271_v12  ;;  %v12998_v49 = vld [vmem:[#allocation25_spill] sm:$0xff] }
 0x7ea   : > { %8414 = vmatmul.mubr.msk.f32.vlgmr.msra.gmra.mxu1 %vm404_vm3, %v12465_v58  ;;  %v7399_v30 = vadd.f32 %v7396_v56, %v12986_v39  ;;  %v7306_v18 = vadd.f32 %v7303_v62, %v7300_v10  ;;  %v7312_v13 = vmul.f32 %v12987_v41, %v12236_v2  ;;  %v7269_v20 = vadd.f32 %v7266_v21, %v7251_v52  ;;  %v12990_v21 = vld [vmem:[#allocation14_spill] sm:$0xff] }
 0x7eb   : > { %8417 = vmatmul.mubr.msk.f32.vlgmr.msra.gmra.mxu0 %vm404_vm3, %v12465_v58  ;;  %7819 = vmatpush1.msra.mxu1 %v7400_v35  ;;  %v7302_v15 = vmul.f32 %v12264_v4, %v12988_v43  ;;  %v7276_v37 = vadd.f32 %v7273_v46, %v7270_v7  ;;  %v7245_v47 = vadd.f32 %v12524_v44, %v7239_v53  ;;  %v12999_v56 = vld [vmem:[#allocation18_spill] sm:$0xff] }
 0x7ec   : > { %7898 = vmatpush1.msra.mxu0 %v7277_v48  ;;  %7820 = vmatprep.subr.mxu1 %v7246_v17  ;;  %v7311_v54 = vmul.f32 %v12477_v32, %v12232_v0  ;;  %v7316_v55 = vmul.f32 %v7313_v27, %v12242_v8  ;;  %v7272_v16 = vmul.f32 %v12264_v4, %v12989_v50  ;;  %v12993_v32 = vld [vmem:[#allocation23_spill] sm:$0xff] }
 0x7ed   : > { %7899 = vmatprep.subr.mxu0 %v7306_v18  ;;  %7821 = vmatpush1.msra.mxu1 %v7399_v30  ;;  %v7305_v57 = vadd.f32 %v7302_v15, %v7299_v31  ;;  %v7322_v38 = vmul.f32 %v12991_v3, %v12990_v21  ;;  %v7398_v44 = vadd.f32 %v12508_v22, %v12992_v23  ;;  %v12995_v22 = vld [vmem:[#allocation17_spill] sm:$0xff] }
 0x7ee   : > { %7900 = vmatpush1.msra.mxu0 %v7276_v37  ;;  %7704 = vmatprep.mubr.f32.mxu1 %v12763_v36  ;;  %v7315_v28 = vmul.f32 %v7312_v13, %v12236_v2  ;;  %v7321_v11 = vmul.f32 %v12994_v29, %v12993_v32  ;;  %v7275_v61 = vadd.f32 %v7272_v16, %v7269_v20 }
 0x7ef   : > { %7783 = vmatprep.mubr.f32.mxu0 %v12763_v36  ;;  %7822 = vmatprep.subr.mxu1 %v7245_v47  ;;  %v7314_v59 = vmul.f32 %v7311_v54, %v12232_v0  ;;  %v7319_v63 = vmul.f32 %v7316_v55, %v12242_v8  ;;  %v7320_v60 = vmul.f32 %v12996_v26, %v12995_v22 }
 0x7f0   : > { %7901 = vmatprep.subr.mxu0 %v7305_v57  ;;  %8415 = vmatmul.mubr.msk.f32.gmra.mxu1 %vm404_vm3, %v12515_v9  ;;  %v7325_v33 = vmul.f32 %v7322_v38, %v12242_v8  ;;  %v7318_v19 = vmul.f32 %v7315_v28, %v12236_v2  ;;  %v7331_v51 = vmul.f32 %v12277_v34, %v12997_v24  ;;  %v8066_v24 = vld [vmem:[%s8909_s17 + $0x4] sm:$0x1] }
 0x7f1   : > { %8418 = vmatmul.mubr.msk.f32.gmra.mxu0 %vm404_vm3, %v12515_v9  ;;  %7823 = vmatpush1.msra.mxu1 %v7398_v44  ;;  %v7324_v25 = vmul.f32 %v7321_v11, %v12236_v2  ;;  %v7317_v1 = vmul.f32 %v7314_v59, %v12232_v0  ;;  %v7330_v12 = vmul.f32 %v12290_v45, %v12998_v49 }
 0x7f2   : > { %7902 = vmatpush1.msra.mxu0 %v7275_v61  ;;  %7708 = vmatprep.mubr.f32.mxu1 %v12763_v36  ;;  %v7328_v8 = vadd.f32 %v7325_v33, %v7319_v63  ;;  %v7323_v34 = vmul.f32 %v7320_v60, %v12232_v0  ;;  %v7329_v2 = vmul.f32 %v12264_v4, %v12999_v56  ;;  %v8047_v60 = vstv %s8036_s30 }
 0x7f3   : > { %7787 = vmatprep.mubr.f32.mxu0 %v12763_v36  ;;  %8664 = vmatprep.subr.mxu1 %v12763_v36  ;;  %v7327_v14 = vadd.f32 %v7324_v25, %v7318_v19 }
 0x7f4   : > { %8416 = vmatmul.mubr.msk.f32.gmra.mxu1 %vm404_vm3, %v12547_v40  ;;  %v7334_v5 = vadd.f32 %v7331_v51, %v7328_v8  ;;  %v7326_v10 = vadd.f32 %v7323_v34, %v7317_v1  ;;  %v8064_v1 = vld [vmem:[%s8909_s17 + $0x3] sm:$0x1] }
 0x7f5   : > { %8419 = vmatmul.mubr.msk.f32.gmra.mxu0 %vm404_vm3, %v12547_v40  ;;  %7856 = vmatprep.mubr.f32.mxu1 %v12763_v36  ;;  %v7333_v45 = vadd.f32 %v7330_v12, %v7327_v14  ;;  %v8052_v14 = vstv %s12683_s6 }
 0x7f6   : > { %7935 = vmatprep.mubr.f32.mxu0 %v12763_v36  ;;  %v7332_v52 = vadd.f32 %v7329_v2, %v7326_v10 }
 0x7f8   : > { %8420 = vmatmul.mubr.msk.f32.vlgmr.msra.gmra.mxu1 %vm404_vm3, %v12465_v58 }
 0x7f9   : > { %8423 = vmatmul.mubr.msk.f32.vlgmr.msra.gmra.mxu0 %vm404_vm3, %v12465_v58  ;;  %8665 = vmatpush3.msra.mxu1 %v7334_v5 }
 0x7fa   : > { %8666 = vmatprep.subr.mxu1 %v12763_v36  ;;  %7862 = vmatprep.mubr.f32.mxu1 %v12763_v36 }
 0x7fb   : > { %8667 = vmatpush3.msra.mxu1 %v7333_v45  ;;  %7941 = vmatprep.mubr.f32.mxu0 %v12763_v36 }
 0x7fc   : > { %8668 = vmatprep.subr.mxu1 %v12763_v36  ;;  %8421 = vmatmul.mubr.msk.f32.gmra.mxu1 %vm404_vm3, %v12515_v9 }
 0x7fd   : > { %8669 = vmatpush3.msra.mxu1 %v7332_v52  ;;  %7866 = vmatprep.mubr.f32.mxu1 %v12763_v36 }
 0x7fe   : > { %8424 = vmatmul.mubr.msk.f32.gmra.mxu0 %vm404_vm3, %v12515_v9 }
 0x7ff   : > { %7945 = vmatprep.mubr.f32.mxu0 %v12763_v36 }
 0x800   : > { %8422 = vmatmul.mubr.msk.f32.gmra.mxu1 %vm404_vm3, %v12547_v40 }
 0x801   : > { %8670 = vmatprep.mubr.msk.f32.mxu1 %vm8819_vm4, %v12763_v36 }
 0x802   : > { %8425 = vmatmul.mubr.msk.f32.gmra.mxu0 %vm404_vm3, %v12547_v40 }
 0x804   : > { %8671 = vmatmul.mubr.msk.f32.vlgmr.msra.gmra.mxu1 %vm404_vm3, %v12465_v58  ;;  %v8033_v58 = vpop.permute.xlu0 %8032 }
 0x805   : > { %8673 = vmatprep.mubr.msk.f32.mxu1 %vm8819_vm4, %v12763_v36 }
 0x808   : > { %8674 = vmatmul.mubr.msk.f32.gmra.mxu1 %vm404_vm3, %v12515_v9 }
 0x809   : > { %8676 = vmatprep.mubr.msk.f32.mxu1 %vm8819_vm4, %v12763_v36 }
 0x80c   : > { %8677 = vmatmul.mubr.msk.f32.gmra.mxu1 %vm404_vm3, %v12547_v40 }
 0x899   : > { %v7543_v0 = vpop.f32.mrf.mxu1 }
 0x89a   : > { %v8035_v6 = vadd.f32 %v8033_v58, %v7543_v0 }
 0x89b   : > { %v12671_v4 = vpop.f32.mrf.mxu1 }
 0x89c   : > { %v8038_v7 = vsub.f32 0.0, %v12671_v4 }
 0x89e   : > { %v12675_v42 = vpop.f32.mrf.mxu0  ;;  %v8080_v9 = vrot.slane %v8038_v7, 6  ;;  %v8067_v56 = vsub.f32 %v8066_v24, %v8038_v7 }
 0x89f   : > { %v8077_v36 = vrot.slane %v12675_v42, 7  ;;  %v8065_v10 = vsub.f32 %v8064_v1, %v12675_v42 }
 0x8a0   : > { %v7624_v40 = vpop.f32.mrf.mxu0  ;;  %v7549_v53 = vpop.f32.mrf.mxu1 }
 0x8a1   : > { %v8083_v62 = vsel %vm8082_vm5, %v8035_v6, %v8077_v36  ;;  %v8069_v36 = vmul.f32 %v8067_v56, %v8067_v56  ;;  %v8068_v53 = vmul.f32 %v8065_v10, %v8065_v10 }
 0x8a2   : > { %v8085_v35 = vsel %vm8084_vm6, %v8083_v62, %v8080_v9  ;;  %v7550_v31 = vpop.f32.mrf.mxu1 }
 0x8a3   : > { %v7627_v27 = vpop.f32.mrf.mxu0  ;;  %8086 = vst [vmem:[%s285_s29] sm:$0x7] %v8085_v35 }
 0x8a5   : > { %v7628_v46 = vpop.f32.mrf.mxu0 }
 0x8a6   : > { %v7553_v17 = vpop.f32.mrf.mxu1 }
 0x8a7   : > { %v7631_v48 = vpop.f32.mrf.mxu0 }
 0x8a8   : > { %v7554_v39 = vpop.f32.mrf.mxu1  ;;  %v8070_v48 = vadd.f32 %v8069_v36, %v8068_v53 }
 0x8a9   : > { %v7632_v30 = vpop.f32.mrf.mxu0 }
 0x8aa   : > { %v7700_v18 = vpop.f32.mrf.mxu1 }
 0x8ab   : > { %v7779_v41 = vpop.f32.mrf.mxu0  ;;  %v8040_v50 = vsub.f32 0.0, %v7700_v18 }
 0x8ac   : > { %v7702_v13 = vpop.f32.mrf.mxu1  ;;  %v8045_v29 = vmul.f32 %v8038_v7, %v7779_v41 }
 0x8ad   : > { %v7781_v20 = vpop.f32.mrf.mxu0  ;;  %v8041_v47 = vsub.f32 0.0, %v7702_v13  ;;  %v8055_v23 = vmul.f32 %v8040_v50, %v12675_v42  ;;  %v8044_v44 = vmul.f32 %v7702_v13, %v12675_v42 }
 0x8ae   : > { %v8039_v51 = vsub.f32 0.0, %v7781_v20 }
 0x8af   : > { %v8056_v21 = vmul.f32 %v8041_v47, %v8038_v7  ;;  %v8046_v63 = vadd.f32 %v8045_v29, %v8044_v44 }
 0x8b0   : > { %v7706_v43 = vpop.f32.mrf.mxu1 }
 0x8b1   : > { %v7785_v15 = vpop.f32.mrf.mxu0  ;;  %v8057_v11 = vadd.f32 %v8056_v21, %v8055_v23  ;;  %v8048_v8 = vmul.f32 %v8047_v60, %v8046_v63 }
 0x8b2   : > { %v7707_v37 = vpop.f32.mrf.mxu1 }
 0x8b3   : > { %v7786_v54 = vpop.f32.mrf.mxu0  ;;  %v8058_v25 = vmul.f32 %v8057_v11, %v8047_v60 }
 0x8b4   : > { %v7710_v55 = vpop.f32.mrf.mxu1 }
 0x8b5   : > { %v7789_v16 = vpop.f32.mrf.mxu0  ;;  %v8059_v45 = vadd.f32 %v8058_v25, %v8039_v51 }
 0x8b6   : > { %v7711_v57 = vpop.f32.mrf.mxu1 }
 0x8b7   : > { %v7790_v3 = vpop.f32.mrf.mxu0  ;;  %v8060_v62 = vadd.f32 %v8059_v45, %v12675_v42 }
 0x8b8   : > { %v7858_v38 = vpop.f32.mrf.mxu1 }
 0x8b9   : > { %v7937_v28 = vpop.f32.mrf.mxu0  ;;  %v8049_v52 = vadd.f32 %v8048_v8, %v7858_v38 }
 0x8ba   : > { %v7860_v32 = vpop.f32.mrf.mxu1 }
 0x8bb   : > { %v7939_v61 = vpop.f32.mrf.mxu0  ;;  %v8042_v22 = vsub.f32 0.0, %v7860_v32  ;;  %v8050_v35 = vadd.f32 %v8049_v52, %v12671_v4 }
 0x8bc   : > { %v7864_v59 = vpop.f32.mrf.mxu1  ;;  %v8043_v26 = vsub.f32 0.0, %v7939_v61 }
 0x8be   : > { %v7865_v33 = vpop.f32.mrf.mxu1  ;;  %v7943_v19 = vpop.f32.mrf.mxu0  ;;  %v8061_v34 = vadd.f32 %v8043_v26, %v8042_v22 }
 0x8c0   : > { %v7868_v49 = vpop.f32.mrf.mxu1  ;;  %v7944_v12 = vpop.f32.mrf.mxu0  ;;  %v8062_v9 = vmul.f32 %v8061_v34, %v8052_v14 }
 0x8c2   : > { %v7869_v2 = vpop.f32.mrf.mxu1  ;;  %v7947_v5 = vpop.f32.mrf.mxu0  ;;  %v8063_v46 = vsub.f32 %v8060_v62, %v8062_v9 }
 0x8c4   : > { %v8016_v0 = vpop.f32.mrf.mxu1  ;;  %v7948_v58 = vpop.f32.mrf.mxu0  ;;  %v8073_v41 = vmul.f32 %v8063_v46, %v8063_v46 }
 0x8c5   : > { %v8051_v6 = vadd.f32 %v8016_v0, %v7937_v28 }
 0x8c6   : > { %v8672_v40 = vpop.f32.mrf.mxu1 }
 0x8c7   : > { %v8053_v7 = vmul.f32 %v8052_v14, %v8051_v6 }
 0x8c8   : > { %v8021_v27 = vpop.f32.mrf.mxu1 }
 0x8c9   : > { %v8054_v31 = vsub.f32 %v8050_v35, %v8053_v7 }
 0x8ca   : > { %v8675_v17 = vpop.f32.mrf.mxu1 }
 0x8cb   : > { %v8071_v39 = vmul.f32 %v8054_v31, %v8054_v31 }
 0x8cc   : > { %v8025_v30 = vpop.f32.mrf.mxu1 }
 0x8cd   : > { %v8072_v18 = vadd.f32 %v8071_v39, %v8070_v48 }
 0x8ce   : > { %v8678_v13 = vpop.f32.mrf.mxu1 }
 0x8cf   : > { %v8074_v20 = vadd.f32 %v8073_v41, %v8072_v18 }
 0x8d1   : > { %8075 = vst [vmem:[%s288_s8] sm:$0x1] %v8074_v20 }
 0x8d2 PF: > { %p14_p6 = scmp.ge.s32.totalorder %s8869_s22, 4   ;;  %s13000_s18 = smov %s8809_s19 }
 0x8d3   : > { %s13001_s19 = smov %s8879_s25  ;;  %s13002_s20 = smov %s8869_s22 }
 0x8d4   :  { %16 = sbr.rel (!%p14_p6) target bundleno = 2 (0x2), region = 142 }
 0x8d9   :  { %8118 = vsyncpa [#allocation5], 1 }
 0x8da   :  { %8120 = vsyncpa [#allocation5 + $0x1], 1 }

</bundles_post_ra>
